<compile_context>
chip_gen: v7x
topology: tpu7x:2x2x1
jax: 0.10.0
libtpu: 0.0.40
codegen_flags: <defaults>
</compile_context>

<pallas_src>
import functools

import jax
import jax.numpy as jnp
import numpy as np
from jax.experimental import pallas as pl
from jax.experimental.pallas import tpu as pltpu


# ----------------------------------------------------------------------------
# Pallas kernel: conv-as-GEMM, fused bias + ReLU.  bf16 inputs, f32 accumulate,
# bf16 activation output.
# ----------------------------------------------------------------------------
def _conv_gemm_kernel(x_ref, w_ref, b_ref, o_ref):
    acc = jnp.dot(x_ref[...], w_ref[...], preferred_element_type=jnp.float32)
    acc = jnp.maximum(acc + b_ref[...], 0.0)
    o_ref[...] = acc.astype(o_ref.dtype)


def conv_gemm(cols, w, b):
    """cols:(M,K) bf16, w:(K,N) bf16, b:(1,N) f32 -> ReLU(cols@w+b):(M,N) bf16."""
    M, K = cols.shape
    N = w.shape[1]
    tm = 512 if M > 512 else M            # big tiles: per-step overhead dominates
    return pl.pallas_call(
        _conv_gemm_kernel,
        out_shape=jax.ShapeDtypeStruct((M, N), jnp.bfloat16),
        grid=(pl.cdiv(M, tm),),
        in_specs=[
            pl.BlockSpec((tm, K), lambda i: (i, 0)),
            pl.BlockSpec((K, N), lambda i: (0, 0)),   # weight VMEM-resident
            pl.BlockSpec((1, N), lambda i: (0, 0)),
        ],
        out_specs=pl.BlockSpec((tm, N), lambda i: (i, 0)),
        compiler_params=pltpu.CompilerParams(
            dimension_semantics=("parallel",)),
    )(cols, w, b)


# ----------------------------------------------------------------------------
# Pallas kernel: fused tail  conv3(dense GEMM) -> fc(+ReLU) -> [actor|critic].
# All weights stay resident in VMEM; intermediates never touch HBM.
# ----------------------------------------------------------------------------
def _tail_kernel(x_ref, w3_ref, b3_ref, fcw_ref, fcb_ref, hw_ref, hb_ref,
                 o_ref):
    h3 = jnp.dot(x_ref[...], w3_ref[...], preferred_element_type=jnp.float32)
    h3 = jnp.maximum(h3 + b3_ref[...], 0.0)
    feat = jnp.dot(h3.astype(jnp.bfloat16), fcw_ref[...],
                   preferred_element_type=jnp.float32)
    feat = jnp.maximum(feat + fcb_ref[...], 0.0)
    out = jnp.dot(feat.astype(jnp.bfloat16), hw_ref[...],
                  preferred_element_type=jnp.float32)
    o_ref[...] = out + hb_ref[...]


def tail_forward(x6, w3, b3, fc_w, fc_b, head_w, head_b):
    """x6:(B,2304) bf16 -> (B,128) f32 = [logits | value | zero-pad]."""
    B, K = x6.shape
    mb = 256 if B > 256 else B
    Nh = head_w.shape[1]
    return pl.pallas_call(
        _tail_kernel,
        out_shape=jax.ShapeDtypeStruct((B, Nh), jnp.float32),
        grid=(pl.cdiv(B, mb),),
        in_specs=[
            pl.BlockSpec((mb, K), lambda i: (i, 0)),
            pl.BlockSpec(w3.shape, lambda i: (0, 0)),
            pl.BlockSpec(b3.shape, lambda i: (0, 0)),
            pl.BlockSpec(fc_w.shape, lambda i: (0, 0)),
            pl.BlockSpec(fc_b.shape, lambda i: (0, 0)),
            pl.BlockSpec(head_w.shape, lambda i: (0, 0)),
            pl.BlockSpec(head_b.shape, lambda i: (0, 0)),
        ],
        out_specs=pl.BlockSpec((mb, Nh), lambda i: (i, 0)),
        compiler_params=pltpu.CompilerParams(
            dimension_semantics=("parallel",)),
    )(x6, w3, b3, fc_w, fc_b, head_w, head_b)


# ----------------------------------------------------------------------------
# im2col on NHWC tensors (XLA glue: strided slices + concat, no transposes).
# Column order (kh, kw, Cin) matches the weight row order in prepare_params.
# ----------------------------------------------------------------------------
def _im2col_nhwc(x, kh, kw, stride):
    B, H, W, C = x.shape
    Ho = (H - kh) // stride + 1
    Wo = (W - kw) // stride + 1
    cols = []
    for i in range(kh):
        for j in range(kw):
            cols.append(x[:, i:i + stride * Ho:stride,
                          j:j + stride * Wo:stride, :])
    cols = jnp.concatenate(cols, axis=-1)             # (B,Ho,Wo,kh*kw*C)
    return cols.reshape(B * Ho * Wo, kh * kw * C), Ho, Wo


# ----------------------------------------------------------------------------
# Parameters (PyTorch convention) + one-time preparation for the kernels.
# ----------------------------------------------------------------------------
FLATTENED_SIZE = 64 * 4 * 4  # 64x64 input -> 15 -> 6 -> 4 spatial; 64 channels


def init_params(key, action_dim):
    def u(k, shape, fan_in):
        bound = 1.0 / np.sqrt(fan_in)
        return jax.random.uniform(k, shape, jnp.float32, -bound, bound)

    ks = jax.random.split(key, 12)
    return {
        "c1_w": u(ks[0], (32, 4, 8, 8), 4 * 8 * 8),
        "c1_b": u(ks[1], (32,), 4 * 8 * 8),
        "c2_w": u(ks[2], (64, 32, 4, 4), 32 * 4 * 4),
        "c2_b": u(ks[3], (64,), 32 * 4 * 4),
        "c3_w": u(ks[4], (64, 64, 3, 3), 64 * 3 * 3),
        "c3_b": u(ks[5], (64,), 64 * 3 * 3),
        "fc_w": u(ks[6], (FLATTENED_SIZE, 512), FLATTENED_SIZE),
        "fc_b": u(ks[7], (512,), FLATTENED_SIZE),
        "actor_w": u(ks[8], (512, action_dim), 512),
        "actor_b": u(ks[9], (action_dim,), 512),
        "critic_w": u(ks[10], (512, 1), 512),
        "critic_b": u(ks[11], (1,), 512),
    }


def prepare_params(params):
    """One-time (off hot path): GEMM-layout weights, space-to-depth permutation
    of c1_w, dense conv3 matrix, NHWC fc row-permute, fused bf16 head."""
    prep = {}

    # conv1 after space-to-depth: rows ordered (kh_blk, kw_blk, dh, dw, cin).
    w1 = params["c1_w"].reshape(32, 4, 2, 4, 2, 4)          # (co,ci,i,dh,j,dw)
    w1 = w1.transpose(2, 4, 3, 5, 1, 0).reshape(256, 32)    # (i,j,dh,dw,ci,co)
    prep["c1_w"] = w1.astype(jnp.bfloat16)
    prep["c1_b"] = params["c1_b"].reshape(1, 32).astype(jnp.float32)

    # conv2: rows ordered (kh, kw, cin) to match the im2col concat.
    w2 = params["c2_w"].transpose(2, 3, 1, 0).reshape(512, 64)
    prep["c2_w"] = w2.astype(jnp.bfloat16)
    prep["c2_b"] = params["c2_b"].reshape(1, 64).astype(jnp.float32)

    # conv3 embedded as a dense (6*6*64, 4*4*64) matrix (NHWC in / NHWC out).
    w3 = np.asarray(params["c3_w"], np.float32)              # (co, ci, kh, kw)
    w3d = np.zeros((6, 6, 64, 4, 4, 64), np.float32)         # (hi,wi,ci,ho,wo,co)
    for kh in range(3):
        for kw in range(3):
            for ho in range(4):
                for wo in range(4):
                    w3d[ho + kh, wo + kw, :, ho, wo, :] = w3[:, :, kh, kw].T
    prep["c3_w"] = jnp.asarray(w3d.reshape(2304, 1024), jnp.bfloat16)
    prep["c3_b"] = jnp.tile(params["c3_b"], 16).reshape(1, 1024).astype(
        jnp.float32)

    # fc: fold PyTorch NCHW-flatten ordering into fc_w row order so the kernel
    # consumes the NHWC-ordered conv3 columns directly.
    fcw = params["fc_w"].reshape(64, 4, 4, 512).transpose(1, 2, 0, 3)
    prep["fc_w"] = fcw.reshape(FLATTENED_SIZE, 512).astype(jnp.bfloat16)
    prep["fc_b"] = params["fc_b"].reshape(1, 512).astype(jnp.float32)

    # head: actor (512,A) and critic (512,1) fused into one lane-dense
    # (512,128) GEMM (zero-padded columns, padded once here).
    hw = jnp.concatenate([params["actor_w"], params["critic_w"]], axis=1)
    nh = hw.shape[1]
    prep["head_w"] = jnp.pad(hw, ((0, 0), (0, 128 - nh))).astype(jnp.bfloat16)
    hb = jnp.concatenate([params["actor_b"], params["critic_b"]])
    prep["head_b"] = jnp.pad(hb, ((0, 128 - nh),)).reshape(1, 128).astype(
        jnp.float32)
    return prep


# ----------------------------------------------------------------------------
# Forward pass (== PPOPolicy.forward)
# ----------------------------------------------------------------------------
def ppo_forward(prep, x, *, action_dim):
    B = x.shape[0]
    # Space-to-depth: NCHW f32 -> (B,16,16,64) bf16 in a single transpose.
    h = x.astype(jnp.bfloat16).reshape(B, 4, 16, 4, 16, 4)
    h = jnp.transpose(h, (0, 2, 4, 3, 5, 1)).reshape(B, 16, 16, 64)

    cols, Ho, Wo = _im2col_nhwc(h, 2, 2, 1)        # conv1 == 2x2/stride-1 now
    h = conv_gemm(cols, prep["c1_w"], prep["c1_b"]).reshape(B, Ho, Wo, 32)

    cols, Ho, Wo = _im2col_nhwc(h, 4, 4, 2)
    h = conv_gemm(cols, prep["c2_w"], prep["c2_b"]).reshape(B, Ho * Wo * 64)

    out = tail_forward(h, prep["c3_w"], prep["c3_b"], prep["fc_w"],
                       prep["fc_b"], prep["head_w"], prep["head_b"])
    logits = out[:, :action_dim]
    value = out[:, action_dim:action_dim + 1]
    return logits, value


# Pure-JAX reference (numerical sanity check; uses raw PyTorch-layout params).
def ref_forward(params, x):
    def conv(x, w, b, s):
        y = jax.lax.conv_general_dilated(
            x, w, (s, s), "VALID",
            dimension_numbers=("NCHW", "OIHW", "NCHW"),
            precision=jax.lax.Precision.HIGHEST)
        return jax.nn.relu(y + b[None, :, None, None])

    h = conv(x, params["c1_w"], params["c1_b"], 4)
    h = conv(h, params["c2_w"], params["c2_b"], 2)
    h = conv(h, params["c3_w"], params["c3_b"], 1)
    flat = h.reshape(h.shape[0], -1)
    feat = jax.nn.relu(flat @ params["fc_w"] + params["fc_b"])
    return (feat @ params["actor_w"] + params["actor_b"],
            feat @ params["critic_w"] + params["critic_b"])


if __name__ == "__main__":
    key = jax.random.PRNGKey(0)
    pkey, xkey = jax.random.split(key)
    action_dim = 6
    params = init_params(pkey, action_dim)
    prep = prepare_params(params)         # one-time weight prep (off hot path)

    # The module sizes its FC from a (1,4,64,64) dummy, so spatial must be 64.
    x = jax.random.normal(xkey, (2, 4, 64, 64), jnp.float32)

    fwd = jax.jit(functools.partial(ppo_forward, action_dim=action_dim))
    logits, value = fwd(prep, x)
    jax.block_until_ready((logits, value))
    assert logits.shape == (2, action_dim), logits.shape
    assert value.shape == (2, 1), value.shape

    ref_logits, ref_value = ref_forward(params, x)
    np.testing.assert_allclose(np.asarray(logits), np.asarray(ref_logits),
                               rtol=2e-2, atol=2e-2)
    np.testing.assert_allclose(np.asarray(value), np.asarray(ref_value),
                               rtol=2e-2, atol=2e-2)
    print("KERNEL_OK")
</pallas_src>

<mosaic_0001>
module attributes {stable_mosaic.version = 11 : i64} {
  func.func @_conv_gemm_kernel(%arg0: i32, %arg1: memref<450x256xbf16, #tpu.memory_space<vmem>>, %arg2: memref<256x32xbf16, #tpu.memory_space<vmem>>, %arg3: memref<1x32xf32, #tpu.memory_space<vmem>>, %arg4: memref<450x32xbf16, #tpu.memory_space<vmem>>) attributes {dimension_semantics = [#tpu.dimension_semantics<parallel>], iteration_bounds = array<i64: 1>, scalar_prefetch = 0 : i64, scratch_operands = 0 : i64, tpu.core_type = #tpu.core_type<tc>, window_params = [{transform_indices = @transform_0, window_bounds = array<i64: 450, 256>}, {pipeline_mode = #tpu.pipeline_mode<synchronous>, transform_indices = @transform_1, window_bounds = array<i64: 256, 32>}, {pipeline_mode = #tpu.pipeline_mode<synchronous>, transform_indices = @transform_2, window_bounds = array<i64: 1, 32>}, {transform_indices = @transform_3, window_bounds = array<i64: 450, 32>}]} {
    %c0 = arith.constant 0 : index
    %c0_0 = arith.constant 0 : index
    %0 = vector.load %arg1[%c0, %c0_0] : memref<450x256xbf16, #tpu.memory_space<vmem>>, vector<450x256xbf16>
    %c0_1 = arith.constant 0 : index
    %c0_2 = arith.constant 0 : index
    %1 = vector.load %arg2[%c0_1, %c0_2] : memref<256x32xbf16, #tpu.memory_space<vmem>>, vector<256x32xbf16>
    %cst = arith.constant dense<0.000000e+00> : vector<450x32xf32>
    %2 = tpu.matmul %0, %1, %cst {dimension_numbers = #tpu.dot_dimension_numbers<[1], [0], [0], [1], [0, 0, 1, 1], [], []>} : vector<450x256xbf16>, vector<256x32xbf16>, vector<450x32xf32> -> vector<450x32xf32>
    %c0_3 = arith.constant 0 : index
    %c0_4 = arith.constant 0 : index
    %3 = vector.load %arg3[%c0_3, %c0_4] : memref<1x32xf32, #tpu.memory_space<vmem>>, vector<1x32xf32>
    %4 = vector.broadcast %3 : vector<1x32xf32> to vector<450x32xf32>
    %5 = arith.addf %2, %4 : vector<450x32xf32>
    %cst_5 = arith.constant 0.000000e+00 : f32
    %6 = vector.broadcast %cst_5 : f32 to vector<450x32xf32>
    %7 = arith.maximumf %5, %6 : vector<450x32xf32>
    %8 = arith.truncf %7 : vector<450x32xf32> to vector<450x32xbf16>
    %c0_6 = arith.constant 0 : index
    %c0_7 = arith.constant 0 : index
    %9 = vector.load %arg4[%c0_6, %c0_7] : memref<450x32xbf16, #tpu.memory_space<vmem>>, vector<450x32xbf16>
    tpu.vector_store %arg4[%c0_6, %c0_7], %8 {strides = array<i32>} : memref<450x32xbf16, #tpu.memory_space<vmem>>, vector<450x32xbf16>,
    return
  }
  func.func @transform_0(%arg0: i32) -> (i32, i32) {
    %c0_i32 = arith.constant 0 : i32
    %c0_i32_0 = arith.constant 0 : i32
    return %arg0, %c0_i32 : i32, i32
  }
  func.func @transform_1(%arg0: i32) -> (i32, i32) {
    %c0_i32 = arith.constant 0 : i32
    %c0_i32_0 = arith.constant 0 : i32
    %c0_i32_1 = arith.constant 0 : i32
    return %c0_i32, %c0_i32_0 : i32, i32
  }
  func.func @transform_2(%arg0: i32) -> (i32, i32) {
    %c0_i32 = arith.constant 0 : i32
    %c0_i32_0 = arith.constant 0 : i32
    %c0_i32_1 = arith.constant 0 : i32
    return %c0_i32, %c0_i32_0 : i32, i32
  }
  func.func @transform_3(%arg0: i32) -> (i32, i32) {
    %c0_i32 = arith.constant 0 : i32
    %c0_i32_0 = arith.constant 0 : i32
    return %arg0, %c0_i32 : i32, i32
  }
}

module attributes {stable_mosaic.version = 11 : i64} {
  func.func @_conv_gemm_kernel(%arg0: i32, %arg1: memref<72x512xbf16, #tpu.memory_space<vmem>>, %arg2: memref<512x64xbf16, #tpu.memory_space<vmem>>, %arg3: memref<1x64xf32, #tpu.memory_space<vmem>>, %arg4: memref<72x64xbf16, #tpu.memory_space<vmem>>) attributes {dimension_semantics = [#tpu.dimension_semantics<parallel>], iteration_bounds = array<i64: 1>, scalar_prefetch = 0 : i64, scratch_operands = 0 : i64, tpu.core_type = #tpu.core_type<tc>, window_params = [{transform_indices = @transform_0, window_bounds = array<i64: 72, 512>}, {pipeline_mode = #tpu.pipeline_mode<synchronous>, transform_indices = @transform_1, window_bounds = array<i64: 512, 64>}, {pipeline_mode = #tpu.pipeline_mode<synchronous>, transform_indices = @transform_2, window_bounds = array<i64: 1, 64>}, {transform_indices = @transform_3, window_bounds = array<i64: 72, 64>}]} {
    %c0 = arith.constant 0 : index
    %c0_0 = arith.constant 0 : index
    %0 = vector.load %arg1[%c0, %c0_0] : memref<72x512xbf16, #tpu.memory_space<vmem>>, vector<72x512xbf16>
    %c0_1 = arith.constant 0 : index
    %c0_2 = arith.constant 0 : index
    %1 = vector.load %arg2[%c0_1, %c0_2] : memref<512x64xbf16, #tpu.memory_space<vmem>>, vector<512x64xbf16>
    %cst = arith.constant dense<0.000000e+00> : vector<72x64xf32>
    %2 = tpu.matmul %0, %1, %cst {dimension_numbers = #tpu.dot_dimension_numbers<[1], [0], [0], [1], [0, 0, 1, 1], [], []>} : vector<72x512xbf16>, vector<512x64xbf16>, vector<72x64xf32> -> vector<72x64xf32>
    %c0_3 = arith.constant 0 : index
    %c0_4 = arith.constant 0 : index
    %3 = vector.load %arg3[%c0_3, %c0_4] : memref<1x64xf32, #tpu.memory_space<vmem>>, vector<1x64xf32>
    %4 = vector.broadcast %3 : vector<1x64xf32> to vector<72x64xf32>
    %5 = arith.addf %2, %4 : vector<72x64xf32>
    %cst_5 = arith.constant 0.000000e+00 : f32
    %6 = vector.broadcast %cst_5 : f32 to vector<72x64xf32>
    %7 = arith.maximumf %5, %6 : vector<72x64xf32>
    %8 = arith.truncf %7 : vector<72x64xf32> to vector<72x64xbf16>
    %c0_6 = arith.constant 0 : index
    %c0_7 = arith.constant 0 : index
    %9 = vector.load %arg4[%c0_6, %c0_7] : memref<72x64xbf16, #tpu.memory_space<vmem>>, vector<72x64xbf16>
    tpu.vector_store %arg4[%c0_6, %c0_7], %8 {strides = array<i32>} : memref<72x64xbf16, #tpu.memory_space<vmem>>, vector<72x64xbf16>,
    return
  }
  func.func @transform_0(%arg0: i32) -> (i32, i32) {
    %c0_i32 = arith.constant 0 : i32
    %c0_i32_0 = arith.constant 0 : i32
    return %arg0, %c0_i32 : i32, i32
  }
  func.func @transform_1(%arg0: i32) -> (i32, i32) {
    %c0_i32 = arith.constant 0 : i32
    %c0_i32_0 = arith.constant 0 : i32
    %c0_i32_1 = arith.constant 0 : i32
    return %c0_i32, %c0_i32_0 : i32, i32
  }
  func.func @transform_2(%arg0: i32) -> (i32, i32) {
    %c0_i32 = arith.constant 0 : i32
    %c0_i32_0 = arith.constant 0 : i32
    %c0_i32_1 = arith.constant 0 : i32
    return %c0_i32, %c0_i32_0 : i32, i32
  }
  func.func @transform_3(%arg0: i32) -> (i32, i32) {
    %c0_i32 = arith.constant 0 : i32
    %c0_i32_0 = arith.constant 0 : i32
    return %arg0, %c0_i32 : i32, i32
  }
}

module attributes {stable_mosaic.version = 11 : i64} {
  func.func @_tail_kernel(%arg0: i32, %arg1: memref<2x2304xbf16, #tpu.memory_space<vmem>>, %arg2: memref<2304x1024xbf16, #tpu.memory_space<vmem>>, %arg3: memref<1x1024xf32, #tpu.memory_space<vmem>>, %arg4: memref<1024x512xbf16, #tpu.memory_space<vmem>>, %arg5: memref<1x512xf32, #tpu.memory_space<vmem>>, %arg6: memref<512x128xbf16, #tpu.memory_space<vmem>>, %arg7: memref<1x128xf32, #tpu.memory_space<vmem>>, %arg8: memref<2x128xf32, #tpu.memory_space<vmem>>) attributes {dimension_semantics = [#tpu.dimension_semantics<parallel>], iteration_bounds = array<i64: 1>, scalar_prefetch = 0 : i64, scratch_operands = 0 : i64, tpu.core_type = #tpu.core_type<tc>, window_params = [{transform_indices = @transform_0, window_bounds = array<i64: 2, 2304>}, {pipeline_mode = #tpu.pipeline_mode<synchronous>, transform_indices = @transform_1, window_bounds = array<i64: 2304, 1024>}, {pipeline_mode = #tpu.pipeline_mode<synchronous>, transform_indices = @transform_2, window_bounds = array<i64: 1, 1024>}, {pipeline_mode = #tpu.pipeline_mode<synchronous>, transform_indices = @transform_3, window_bounds = array<i64: 1024, 512>}, {pipeline_mode = #tpu.pipeline_mode<synchronous>, transform_indices = @transform_4, window_bounds = array<i64: 1, 512>}, {pipeline_mode = #tpu.pipeline_mode<synchronous>, transform_indices = @transform_5, window_bounds = array<i64: 512, 128>}, {pipeline_mode = #tpu.pipeline_mode<synchronous>, transform_indices = @transform_6, window_bounds = array<i64: 1, 128>}, {transform_indices = @transform_7, window_bounds = array<i64: 2, 128>}]} {
    %c0 = arith.constant 0 : index
    %c0_0 = arith.constant 0 : index
    %0 = vector.load %arg1[%c0, %c0_0] : memref<2x2304xbf16, #tpu.memory_space<vmem>>, vector<2x2304xbf16>
    %c0_1 = arith.constant 0 : index
    %c0_2 = arith.constant 0 : index
    %1 = vector.load %arg2[%c0_1, %c0_2] : memref<2304x1024xbf16, #tpu.memory_space<vmem>>, vector<2304x1024xbf16>
    %cst = arith.constant dense<0.000000e+00> : vector<2x1024xf32>
    %2 = tpu.matmul %0, %1, %cst {dimension_numbers = #tpu.dot_dimension_numbers<[1], [0], [0], [1], [0, 0, 1, 1], [], []>} : vector<2x2304xbf16>, vector<2304x1024xbf16>, vector<2x1024xf32> -> vector<2x1024xf32>
    %c0_3 = arith.constant 0 : index
    %c0_4 = arith.constant 0 : index
    %3 = vector.load %arg3[%c0_3, %c0_4] : memref<1x1024xf32, #tpu.memory_space<vmem>>, vector<1x1024xf32>
    %4 = vector.broadcast %3 : vector<1x1024xf32> to vector<2x1024xf32>
    %5 = arith.addf %2, %4 : vector<2x1024xf32>
    %cst_5 = arith.constant 0.000000e+00 : f32
    %6 = vector.broadcast %cst_5 : f32 to vector<2x1024xf32>
    %7 = arith.maximumf %5, %6 : vector<2x1024xf32>
    %8 = arith.truncf %7 : vector<2x1024xf32> to vector<2x1024xbf16>
    %c0_6 = arith.constant 0 : index
    %c0_7 = arith.constant 0 : index
    %9 = vector.load %arg4[%c0_6, %c0_7] : memref<1024x512xbf16, #tpu.memory_space<vmem>>, vector<1024x512xbf16>
    %cst_8 = arith.constant dense<0.000000e+00> : vector<2x512xf32>
    %10 = tpu.matmul %8, %9, %cst_8 {dimension_numbers = #tpu.dot_dimension_numbers<[1], [0], [0], [1], [0, 0, 1, 1], [], []>} : vector<2x1024xbf16>, vector<1024x512xbf16>, vector<2x512xf32> -> vector<2x512xf32>
    %c0_9 = arith.constant 0 : index
    %c0_10 = arith.constant 0 : index
    %11 = vector.load %arg5[%c0_9, %c0_10] : memref<1x512xf32, #tpu.memory_space<vmem>>, vector<1x512xf32>
    %12 = vector.broadcast %11 : vector<1x512xf32> to vector<2x512xf32>
    %13 = arith.addf %10, %12 : vector<2x512xf32>
    %cst_11 = arith.constant 0.000000e+00 : f32
    %14 = vector.broadcast %cst_11 : f32 to vector<2x512xf32>
    %15 = arith.maximumf %13, %14 : vector<2x512xf32>
    %16 = arith.truncf %15 : vector<2x512xf32> to vector<2x512xbf16>
    %c0_12 = arith.constant 0 : index
    %c0_13 = arith.constant 0 : index
    %17 = vector.load %arg6[%c0_12, %c0_13] : memref<512x128xbf16, #tpu.memory_space<vmem>>, vector<512x128xbf16>
    %cst_14 = arith.constant dense<0.000000e+00> : vector<2x128xf32>
    %18 = tpu.matmul %16, %17, %cst_14 {dimension_numbers = #tpu.dot_dimension_numbers<[1], [0], [0], [1], [0, 0, 1, 1], [], []>} : vector<2x512xbf16>, vector<512x128xbf16>, vector<2x128xf32> -> vector<2x128xf32>
    %c0_15 = arith.constant 0 : index
    %c0_16 = arith.constant 0 : index
    %19 = vector.load %arg7[%c0_15, %c0_16] : memref<1x128xf32, #tpu.memory_space<vmem>>, vector<1x128xf32>
    %20 = vector.broadcast %19 : vector<1x128xf32> to vector<2x128xf32>
    %21 = arith.addf %18, %20 : vector<2x128xf32>
    %c0_17 = arith.constant 0 : index
    %c0_18 = arith.constant 0 : index
    %22 = vector.load %arg8[%c0_17, %c0_18] : memref<2x128xf32, #tpu.memory_space<vmem>>, vector<2x128xf32>
    tpu.vector_store %arg8[%c0_17, %c0_18], %21 {strides = array<i32>} : memref<2x128xf32, #tpu.memory_space<vmem>>, vector<2x128xf32>,
    return
  }
  func.func @transform_0(%arg0: i32) -> (i32, i32) {
    %c0_i32 = arith.constant 0 : i32
    %c0_i32_0 = arith.constant 0 : i32
    return %arg0, %c0_i32 : i32, i32
  }
  func.func @transform_1(%arg0: i32) -> (i32, i32) {
    %c0_i32 = arith.constant 0 : i32
    %c0_i32_0 = arith.constant 0 : i32
    %c0_i32_1 = arith.constant 0 : i32
    return %c0_i32, %c0_i32_0 : i32, i32
  }
  func.func @transform_2(%arg0: i32) -> (i32, i32) {
    %c0_i32 = arith.constant 0 : i32
    %c0_i32_0 = arith.constant 0 : i32
    %c0_i32_1 = arith.constant 0 : i32
    return %c0_i32, %c0_i32_0 : i32, i32
  }
  func.func @transform_3(%arg0: i32) -> (i32, i32) {
    %c0_i32 = arith.constant 0 : i32
    %c0_i32_0 = arith.constant 0 : i32
    %c0_i32_1 = arith.constant 0 : i32
    return %c0_i32, %c0_i32_0 : i32, i32
  }
  func.func @transform_4(%arg0: i32) -> (i32, i32) {
    %c0_i32 = arith.constant 0 : i32
    %c0_i32_0 = arith.constant 0 : i32
    %c0_i32_1 = arith.constant 0 : i32
    return %c0_i32, %c0_i32_0 : i32, i32
  }
  func.func @transform_5(%arg0: i32) -> (i32, i32) {
    %c0_i32 = arith.constant 0 : i32
    %c0_i32_0 = arith.constant 0 : i32
    %c0_i32_1 = arith.constant 0 : i32
    return %c0_i32, %c0_i32_0 : i32, i32
  }
  func.func @transform_6(%arg0: i32) -> (i32, i32) {
    %c0_i32 = arith.constant 0 : i32
    %c0_i32_0 = arith.constant 0 : i32
    %c0_i32_1 = arith.constant 0 : i32
    return %c0_i32, %c0_i32_0 : i32, i32
  }
  func.func @transform_7(%arg0: i32) -> (i32, i32) {
    %c0_i32 = arith.constant 0 : i32
    %c0_i32_0 = arith.constant 0 : i32
    return %arg0, %c0_i32 : i32, i32
  }
}

</mosaic_0001>

<bundles_post_ra>
// kernel: ppo_forward.3
= control target key start
LH: loop header
LB: loop body
LE: loop exit
PB: predicated region body
PF: predicated region fallthrough
CT: control target
= control target key end

     0   :  { %v1431_v0 = vmov 0   ;;  %vm1044_vm0 = vcmask 257024   ;;  %vm1101_vm1 = vcmask 253952   ;;  %s1992_s1 = inlined_call_operand.vmem [shape: bf16[256,32], index: 1, kind: input, shape index: {}]   ;;  %s1993_s0 = inlined_call_operand.vmem [shape: bf16[450,256], index: 0, kind: input, shape index: {}]   ;;  %s1994_s2 = inlined_call_operand.vmem [shape: f32[1,32], index: 2, kind: input, shape index: {}]   ;;  %s1995_s3 = inlined_call_operand.vmem [shape: bf16[450,32], index: 3, kind: output, shape index: {}]  }
   0x1   :  { %494 = vmatprep.subr.bf16.mxu0 %v1431_v0  ;;  %v1329_v1 = vld [vmem:[%s1992_s1] sm:$0xff]   ;;  %1296 = vmatprep.subr.bf16.mxu1 %v1431_v0  ;;  %v1330_v2 = vld [vmem:[%s1992_s1 + $0x8] sm:$0xff]   ;;  %v1331_v3 = vld [vmem:[%s1992_s1 + $0x10] sm:$0xff]  }
   0x2   :  { %495 = vmatpush1.bf16.msra.mxu0 %v1329_v1  ;;  %1312 = vmatpush1.bf16.msra.mxu1 %v1329_v1  ;;  %v1332_v4 = vld [vmem:[%s1992_s1 + $0x18] sm:$0xff]   ;;  %v1333_v5 = vld [vmem:[%s1992_s1 + $0x20] sm:$0xff]   ;;  %v1334_v7 = vld [vmem:[%s1992_s1 + $0x28] sm:$0xff]  }
   0x3   :  { %496 = vmatprep.subr.bf16.mxu0 %v1431_v0  ;;  %1297 = vmatprep.subr.bf16.mxu1 %v1431_v0  ;;  %v1347_v6 = vld [vmem:[%s1993_s0 + $0x4] ss:$8 sps:$4 sm:$0xff]   ;;  %v1350_v8 = vld [vmem:[%s1993_s0 + $0xf4] ss:$8 sps:$4 sm:$0xff]   ;;  %v1345_v19 = vld [vmem:[%s1993_s0] ss:$8 sps:$4 sm:$0xff]  }
   0x4   :  { %526 = vmatprep.mubr.bf16.mxu0 %v1347_v6  ;;  %646 = vmatprep.mubr.bf16.mxu1 %v1350_v8  ;;  %v1335_v9 = vld [vmem:[%s1992_s1 + $0x30] sm:$0xff]   ;;  %v1336_v10 = vld [vmem:[%s1992_s1 + $0x38] sm:$0xff]   ;;  %v1337_v11 = vld [vmem:[%s1992_s1 + $0x40] sm:$0xff]  }
   0x5   :  { %v1338_v12 = vld [vmem:[%s1992_s1 + $0x48] sm:$0xff]   ;;  %v1339_v13 = vld [vmem:[%s1992_s1 + $0x50] sm:$0xff]   ;;  %v1340_v14 = vld [vmem:[%s1992_s1 + $0x58] sm:$0xff]  }
   0x6   :  { %497 = vmatpush1.bf16.msra.mxu0 %v1330_v2  ;;  %1313 = vmatpush1.bf16.msra.mxu1 %v1330_v2  ;;  %v1341_v15 = vld [vmem:[%s1992_s1 + $0x60] sm:$0xff]   ;;  %v1342_v16 = vld [vmem:[%s1992_s1 + $0x68] sm:$0xff]   ;;  %v1343_v17 = vld [vmem:[%s1992_s1 + $0x70] sm:$0xff]  }
   0x7   :  { %498 = vmatprep.subr.bf16.mxu0 %v1431_v0  ;;  %1298 = vmatprep.subr.bf16.mxu1 %v1431_v0  ;;  %v1344_v18 = vld [vmem:[%s1992_s1 + $0x78] sm:$0xff]   ;;  %v1354_v22 = vld [vmem:[%s1993_s0 + $0x104] ss:$8 sps:$4 sm:$0xff]   ;;  %v1358_v24 = vld [vmem:[%s1993_s0 + $0x100] ss:$8 sps:$4 sm:$0xff]  }
   0x8   :  { %v1348_v20 = vld [vmem:[%s1993_s0 + $0xf0] ss:$8 sps:$4 sm:$0xff]   ;;  %v1351_v21 = vld [vmem:[%s1993_s0 + $0x14] ss:$8 sps:$4 sm:$0xff]   ;;  %v1356_v25 = vld [vmem:[%s1993_s0 + $0x24] ss:$8 sps:$4 sm:$0xff]  }
   0x9   :  { %v1353_v23 = vld [vmem:[%s1993_s0 + $0x10] ss:$8 sps:$4 sm:$0xff]   ;;  %v1360_v26 = vld [vmem:[%s1993_s0 + $0x114] ss:$8 sps:$4 sm:$0xff]   ;;  %v1359_v27 = vld [vmem:[%s1993_s0 + $0x20] ss:$8 sps:$4 sm:$0xff]  }
   0xa   :  { %499 = vmatpush1.bf16.msra.mxu0 %v1331_v3  ;;  %1314 = vmatpush1.bf16.msra.mxu1 %v1331_v3  ;;  %v1364_v28 = vld [vmem:[%s1993_s0 + $0x110] ss:$8 sps:$4 sm:$0xff]   ;;  %v1362_v29 = vld [vmem:[%s1993_s0 + $0x34] ss:$8 sps:$4 sm:$0xff]   ;;  %v1366_v30 = vld [vmem:[%s1993_s0 + $0x124] ss:$8 sps:$4 sm:$0xff]  }
   0xb   :  { %500 = vmatprep.subr.bf16.mxu0 %v1431_v0  ;;  %1299 = vmatprep.subr.bf16.mxu1 %v1431_v0  ;;  %v1365_v31 = vld [vmem:[%s1993_s0 + $0x30] ss:$8 sps:$4 sm:$0xff]   ;;  %v1370_v32 = vld [vmem:[%s1993_s0 + $0x120] ss:$8 sps:$4 sm:$0xff]   ;;  %v1368_v33 = vld [vmem:[%s1993_s0 + $0x44] ss:$8 sps:$4 sm:$0xff]  }
   0xc   :  { %v1372_v34 = vld [vmem:[%s1993_s0 + $0x134] ss:$8 sps:$4 sm:$0xff]   ;;  %v1371_v35 = vld [vmem:[%s1993_s0 + $0x40] ss:$8 sps:$4 sm:$0xff]   ;;  %v1376_v36 = vld [vmem:[%s1993_s0 + $0x130] ss:$8 sps:$4 sm:$0xff]  }
   0xd   :  { %v1374_v37 = vld [vmem:[%s1993_s0 + $0x54] ss:$8 sps:$4 sm:$0xff]   ;;  %v1378_v38 = vld [vmem:[%s1993_s0 + $0x144] ss:$8 sps:$4 sm:$0xff]   ;;  %v1377_v39 = vld [vmem:[%s1993_s0 + $0x50] ss:$8 sps:$4 sm:$0xff]  }
   0xe   :  { %501 = vmatpush1.bf16.msra.mxu0 %v1332_v4  ;;  %1315 = vmatpush1.bf16.msra.mxu1 %v1332_v4  ;;  %v1382_v40 = vld [vmem:[%s1993_s0 + $0x140] ss:$8 sps:$4 sm:$0xff]   ;;  %v1380_v41 = vld [vmem:[%s1993_s0 + $0x64] ss:$8 sps:$4 sm:$0xff]   ;;  %v1384_v42 = vld [vmem:[%s1993_s0 + $0x154] ss:$8 sps:$4 sm:$0xff]  }
   0xf   :  { %502 = vmatprep.subr.bf16.mxu0 %v1431_v0  ;;  %1300 = vmatprep.subr.bf16.mxu1 %v1431_v0  ;;  %v1383_v43 = vld [vmem:[%s1993_s0 + $0x60] ss:$8 sps:$4 sm:$0xff]   ;;  %v1388_v44 = vld [vmem:[%s1993_s0 + $0x150] ss:$8 sps:$4 sm:$0xff]   ;;  %v1386_v45 = vld [vmem:[%s1993_s0 + $0x74] ss:$8 sps:$4 sm:$0xff]  }
  0x10   :  { %v1390_v46 = vld [vmem:[%s1993_s0 + $0x164] ss:$8 sps:$4 sm:$0xff]   ;;  %v1389_v47 = vld [vmem:[%s1993_s0 + $0x70] ss:$8 sps:$4 sm:$0xff]   ;;  %v1394_v48 = vld [vmem:[%s1993_s0 + $0x160] ss:$8 sps:$4 sm:$0xff]  }
  0x11   :  { %v1392_v49 = vld [vmem:[%s1993_s0 + $0x84] ss:$8 sps:$4 sm:$0xff]   ;;  %v1396_v50 = vld [vmem:[%s1993_s0 + $0x174] ss:$8 sps:$4 sm:$0xff]   ;;  %v1395_v51 = vld [vmem:[%s1993_s0 + $0x80] ss:$8 sps:$4 sm:$0xff]  }
  0x12   :  { %503 = vmatpush1.bf16.msra.mxu0 %v1333_v5  ;;  %1316 = vmatpush1.bf16.msra.mxu1 %v1333_v5  ;;  %v1400_v52 = vld [vmem:[%s1993_s0 + $0x170] ss:$8 sps:$4 sm:$0xff]   ;;  %v1398_v53 = vld [vmem:[%s1993_s0 + $0x94] ss:$8 sps:$4 sm:$0xff]   ;;  %v1402_v54 = vld [vmem:[%s1993_s0 + $0x184] ss:$8 sps:$4 sm:$0xff]  }
  0x13   :  { %504 = vmatprep.subr.bf16.mxu0 %v1431_v0  ;;  %1301 = vmatprep.subr.bf16.mxu1 %v1431_v0  ;;  %v1401_v55 = vld [vmem:[%s1993_s0 + $0x90] ss:$8 sps:$4 sm:$0xff]   ;;  %v1406_v56 = vld [vmem:[%s1993_s0 + $0x180] ss:$8 sps:$4 sm:$0xff]   ;;  %v1404_v57 = vld [vmem:[%s1993_s0 + $0xa4] ss:$8 sps:$4 sm:$0xff]  }
  0x14   :  { %v1408_v58 = vld [vmem:[%s1993_s0 + $0x194] ss:$8 sps:$4 sm:$0xff]   ;;  %v1407_v59 = vld [vmem:[%s1993_s0 + $0xa0] ss:$8 sps:$4 sm:$0xff]   ;;  %v1412_v60 = vld [vmem:[%s1993_s0 + $0x190] ss:$8 sps:$4 sm:$0xff]  }
  0x15   :  { %v1410_v61 = vld [vmem:[%s1993_s0 + $0xb4] ss:$8 sps:$4 sm:$0xff]   ;;  %v1414_v62 = vld [vmem:[%s1993_s0 + $0x1a4] ss:$8 sps:$4 sm:$0xff]   ;;  %v1413_v63 = vld [vmem:[%s1993_s0 + $0xb0] ss:$8 sps:$4 sm:$0xff]  }
  0x16   :  { %505 = vmatpush1.bf16.msra.mxu0 %v1334_v7  ;;  %1317 = vmatpush1.bf16.msra.mxu1 %v1334_v7  ;;  %v1416_v1 = vld [vmem:[%s1993_s0 + $0xc4] ss:$8 sps:$4 sm:$0xff]   ;;  %v1420_v2 = vld [vmem:[%s1993_s0 + $0x1b4] ss:$8 sps:$4 sm:$0xff]   ;;  %v1419_v4 = vld [vmem:[%s1993_s0 + $0xc0] ss:$8 sps:$4 sm:$0xff]  }
  0x17   :  { %506 = vmatprep.subr.bf16.mxu0 %v1431_v0  ;;  %1302 = vmatprep.subr.bf16.mxu1 %v1431_v0  ;;  %v71_v3 = vld [vmem:[%s1993_s0 + $0x1c0] sm:$0x11]  ;;  %v1424_v5 = vld [vmem:[%s1993_s0 + $0x1b0] ss:$8 sps:$4 sm:$0xff]   ;;  %v1422_v6 = vld [vmem:[%s1993_s0 + $0xd4] ss:$8 sps:$4 sm:$0xff]  }
  0x18   :  { %v1165_v7 = vcombine.high %v71_v3, %v71_v3  ;;  %v1425_v8 = vld [vmem:[%s1993_s0 + $0xd0] ss:$8 sps:$4 sm:$0xff]  }
  0x1a   :  { %507 = vmatpush1.bf16.msra.mxu0 %v1335_v9  ;;  %1318 = vmatpush1.bf16.msra.mxu1 %v1335_v9  ;;  %v1164_v9 = vcombine.low %v71_v3, %v71_v3 }
  0x1b   :  { %508 = vmatprep.subr.bf16.mxu0 %v1431_v0  ;;  %1303 = vmatprep.subr.bf16.mxu1 %v1431_v0 }
  0x1e   :  { %509 = vmatpush1.bf16.msra.mxu0 %v1336_v10  ;;  %1319 = vmatpush1.bf16.msra.mxu1 %v1336_v10  ;;  %v1427_v10 = vld [vmem:[%s1993_s0 + $0xe4] ss:$8 sps:$4 sm:$0xff]  }
  0x1f   :  { %510 = vmatprep.subr.bf16.mxu0 %v1431_v0  ;;  %1304 = vmatprep.subr.bf16.mxu1 %v1431_v0 }
  0x22   :  { %511 = vmatpush1.bf16.msra.mxu0 %v1337_v11  ;;  %1320 = vmatpush1.bf16.msra.mxu1 %v1337_v11  ;;  %v1430_v11 = vld [vmem:[%s1993_s0 + $0xe0] ss:$8 sps:$4 sm:$0xff]  }
  0x23   :  { %512 = vmatprep.subr.bf16.mxu0 %v1431_v0  ;;  %1305 = vmatprep.subr.bf16.mxu1 %v1431_v0 }
  0x26   :  { %513 = vmatpush1.bf16.msra.mxu0 %v1338_v12  ;;  %1321 = vmatpush1.bf16.msra.mxu1 %v1338_v12  ;;  %v1706_v12 = vld [vmem:[%s1994_s2] ss:$0 sm:$0xff] }
  0x27   :  { %514 = vmatprep.subr.bf16.mxu0 %v1431_v0  ;;  %1306 = vmatprep.subr.bf16.mxu1 %v1431_v0 }
  0x2a   :  { %515 = vmatpush1.bf16.msra.mxu0 %v1339_v13  ;;  %1322 = vmatpush1.bf16.msra.mxu1 %v1339_v13 }
  0x2b   :  { %516 = vmatprep.subr.bf16.mxu0 %v1431_v0  ;;  %1307 = vmatprep.subr.bf16.mxu1 %v1431_v0 }
  0x2e   :  { %517 = vmatpush1.bf16.msra.mxu0 %v1340_v14  ;;  %1323 = vmatpush1.bf16.msra.mxu1 %v1340_v14 }
  0x2f   :  { %518 = vmatprep.subr.bf16.mxu0 %v1431_v0  ;;  %1308 = vmatprep.subr.bf16.mxu1 %v1431_v0 }
  0x32   :  { %519 = vmatpush1.bf16.msra.mxu0 %v1341_v15  ;;  %1324 = vmatpush1.bf16.msra.mxu1 %v1341_v15 }
  0x33   :  { %520 = vmatprep.subr.bf16.mxu0 %v1431_v0  ;;  %1309 = vmatprep.subr.bf16.mxu1 %v1431_v0 }
  0x36   :  { %521 = vmatpush1.bf16.msra.mxu0 %v1342_v16  ;;  %1325 = vmatpush1.bf16.msra.mxu1 %v1342_v16 }
  0x37   :  { %522 = vmatprep.subr.bf16.mxu0 %v1431_v0  ;;  %1310 = vmatprep.subr.bf16.mxu1 %v1431_v0 }
  0x3a   :  { %523 = vmatpush1.bf16.msra.mxu0 %v1343_v17  ;;  %1326 = vmatpush1.bf16.msra.mxu1 %v1343_v17 }
  0x3b   :  { %524 = vmatprep.subr.bf16.mxu0 %v1431_v0  ;;  %1311 = vmatprep.subr.bf16.mxu1 %v1431_v0  ;;  %v1418_v0 = vld [vmem:[%s1993_s0 + $0x1a0] ss:$8 sps:$4 sm:$0xff]  }
  0x3e   :  { %525 = vmatpush1.bf16.msra.mxu0 %v1344_v18  ;;  %1327 = vmatpush1.bf16.msra.mxu1 %v1344_v18 }
  0x41   :  { %527 = vmatmul.mubr.bf16.vlgmr.msra.gmra.mrb[0].mxu0 %v1345_v19  ;;  %647 = vmatmul.mubr.bf16.vlgmr.msra.gmra.mrb[0].mxu1 %v1348_v20 }
  0x42   :  { %534 = vmatprep.mubr.bf16.mxu0 %v1351_v21  ;;  %654 = vmatprep.mubr.bf16.mxu1 %v1354_v22 }
  0x49   :  { %535 = vmatmul.mubr.bf16.gmra.mrb[4].mxu0 %v1353_v23  ;;  %655 = vmatmul.mubr.bf16.gmra.mrb[4].mxu1 %v1358_v24 }
  0x4a   :  { %542 = vmatprep.mubr.bf16.mxu0 %v1356_v25  ;;  %662 = vmatprep.mubr.bf16.mxu1 %v1360_v26 }
  0x51   :  { %543 = vmatmul.mubr.bf16.gmra.mrb[8].mxu0 %v1359_v27  ;;  %663 = vmatmul.mubr.bf16.gmra.mrb[8].mxu1 %v1364_v28 }
  0x52   :  { %550 = vmatprep.mubr.bf16.mxu0 %v1362_v29  ;;  %670 = vmatprep.mubr.bf16.mxu1 %v1366_v30 }
  0x59   :  { %551 = vmatmul.mubr.bf16.gmra.mrb[12].mxu0 %v1365_v31  ;;  %671 = vmatmul.mubr.bf16.gmra.mrb[12].mxu1 %v1370_v32 }
  0x5a   :  { %558 = vmatprep.mubr.bf16.mxu0 %v1368_v33  ;;  %678 = vmatprep.mubr.bf16.mxu1 %v1372_v34 }
  0x61   :  { %559 = vmatmul.mubr.bf16.gmra.mrb[16].mxu0 %v1371_v35  ;;  %679 = vmatmul.mubr.bf16.gmra.mrb[16].mxu1 %v1376_v36 }
  0x62   :  { %566 = vmatprep.mubr.bf16.mxu0 %v1374_v37  ;;  %686 = vmatprep.mubr.bf16.mxu1 %v1378_v38 }
  0x69   :  { %567 = vmatmul.mubr.bf16.gmra.mrb[20].mxu0 %v1377_v39  ;;  %687 = vmatmul.mubr.bf16.gmra.mrb[20].mxu1 %v1382_v40 }
  0x6a   :  { %574 = vmatprep.mubr.bf16.mxu0 %v1380_v41  ;;  %694 = vmatprep.mubr.bf16.mxu1 %v1384_v42 }
  0x71   :  { %575 = vmatmul.mubr.bf16.gmra.mrb[24].mxu0 %v1383_v43  ;;  %695 = vmatmul.mubr.bf16.gmra.mrb[24].mxu1 %v1388_v44 }
  0x72   :  { %582 = vmatprep.mubr.bf16.mxu0 %v1386_v45  ;;  %702 = vmatprep.mubr.bf16.mxu1 %v1390_v46 }
  0x79   :  { %583 = vmatmul.mubr.bf16.gmra.mrb[28].mxu0 %v1389_v47  ;;  %703 = vmatmul.mubr.bf16.gmra.mrb[28].mxu1 %v1394_v48 }
  0x7a   :  { %590 = vmatprep.mubr.bf16.mxu0 %v1392_v49  ;;  %710 = vmatprep.mubr.bf16.mxu1 %v1396_v50 }
  0x81   :  { %591 = vmatmul.mubr.bf16.gmra.mrb[32].mxu0 %v1395_v51  ;;  %711 = vmatmul.mubr.bf16.gmra.mrb[32].mxu1 %v1400_v52 }
  0x82   :  { %598 = vmatprep.mubr.bf16.mxu0 %v1398_v53  ;;  %718 = vmatprep.mubr.bf16.mxu1 %v1402_v54 }
  0x89   :  { %599 = vmatmul.mubr.bf16.gmra.mrb[36].mxu0 %v1401_v55  ;;  %719 = vmatmul.mubr.bf16.gmra.mrb[36].mxu1 %v1406_v56 }
  0x8a   :  { %606 = vmatprep.mubr.bf16.mxu0 %v1404_v57  ;;  %726 = vmatprep.mubr.bf16.mxu1 %v1408_v58 }
  0x91   :  { %607 = vmatmul.mubr.bf16.gmra.mrb[40].mxu0 %v1407_v59  ;;  %727 = vmatmul.mubr.bf16.gmra.mrb[40].mxu1 %v1412_v60 }
  0x92   :  { %614 = vmatprep.mubr.bf16.mxu0 %v1410_v61  ;;  %734 = vmatprep.mubr.bf16.mxu1 %v1414_v62 }
  0x99   :  { %615 = vmatmul.mubr.bf16.gmra.mrb[44].mxu0 %v1413_v63  ;;  %735 = vmatmul.mubr.bf16.gmra.mrb[44].mxu1 %v1418_v0 }
  0x9a   :  { %622 = vmatprep.mubr.bf16.mxu0 %v1416_v1  ;;  %742 = vmatprep.mubr.bf16.mxu1 %v1420_v2 }
  0xa1   :  { %623 = vmatmul.mubr.bf16.gmra.mrb[48].mxu0 %v1419_v4  ;;  %743 = vmatmul.mubr.bf16.gmra.mrb[48].mxu1 %v1424_v5 }
  0xa2   :  { %630 = vmatprep.mubr.bf16.mxu0 %v1422_v6  ;;  %750 = vmatprep.mubr.bf16.mxu1 %v1165_v7 }
  0xa9   :  { %631 = vmatmul.mubr.bf16.gmra.mrb[52].mxu0 %v1425_v8  ;;  %751 = vmatmul.mubr.bf16.gmra.mrb[52].mxu1 %v1164_v9 }
  0xaa   :  { %638 = vmatprep.mubr.bf16.mxu0 %v1427_v10 }
  0xb1   :  { %639 = vmatmul.mubr.bf16.gmra.mrb[56].mxu0 %v1430_v11 }
 0x114   :  { %v528_v13 = vpop.f32.mrb[0].mxu0  ;;  %v648_v14 = vpop.f32.mrb[0].mxu1 }
 0x115   :  { %v529_v15 = vadd.f32 %v1706_v12, %v528_v13  ;;  %v530_v16 = vpop.f32.mrb[1].mxu0  ;;  %v649_v17 = vadd.f32 %v1706_v12, %v648_v14  ;;  %v650_v18 = vpop.f32.mrb[1].mxu1 }
 0x116   :  { %v531_v19 = vpop.f32.mrb[2].mxu0  ;;  %v651_v20 = vpop.f32.mrb[2].mxu1 }
 0x117   :  { %v758_v21 = vmax.f32 %v529_v15, 0.0  ;;  %v532_v22 = vadd.f32 %v1706_v12, %v531_v19  ;;  %v533_v23 = vpop.f32.mrb[3].mxu0  ;;  %v788_v24 = vmax.f32 %v649_v17, 0.0  ;;  %v652_v25 = vadd.f32 %v1706_v12, %v651_v20  ;;  %v653_v26 = vpop.f32.mrb[3].mxu1 }
 0x119   :  { %v1239_v27 = vpack.c.bf16 %v758_v21, %v758_v21  ;;  %v759_v28 = vmax.f32 %v532_v22, 0.0  ;;  %v1269_v29 = vpack.c.bf16 %v788_v24, %v788_v24  ;;  %v789_v30 = vmax.f32 %v652_v25, 0.0 }
 0x11b   :  { %1045 = vst.msk [vmem:[%s1995_s3] sm:$0xf] %vm1044_vm0, %v1239_v27  ;;  %v1240_v31 = vpack.c.bf16 %v759_v28, %v759_v28  ;;  %1075 = vst.msk [vmem:[%s1995_s3 + $0x78] sm:$0xf] %vm1044_vm0, %v1269_v29  ;;  %v1270_v32 = vpack.c.bf16 %v789_v30, %v789_v30 }
 0x11c   :  { %v536_v33 = vpop.f32.mrb[4].mxu0  ;;  %v656_v34 = vpop.f32.mrb[4].mxu1 }
 0x11d   :  { %1046 = vst.msk [vmem:[%s1995_s3 + $0x4] sm:$0xf] %vm1044_vm0, %v1240_v31  ;;  %v537_v35 = vadd.f32 %v1706_v12, %v536_v33  ;;  %v538_v36 = vpop.f32.mrb[5].mxu0  ;;  %1076 = vst.msk [vmem:[%s1995_s3 + $0x7c] sm:$0xf] %vm1044_vm0, %v1270_v32  ;;  %v657_v37 = vadd.f32 %v1706_v12, %v656_v34  ;;  %v658_v38 = vpop.f32.mrb[5].mxu1 }
 0x11e   :  { %v539_v39 = vpop.f32.mrb[6].mxu0  ;;  %v659_v40 = vpop.f32.mrb[6].mxu1 }
 0x11f   :  { %v760_v41 = vmax.f32 %v537_v35, 0.0  ;;  %v540_v42 = vadd.f32 %v1706_v12, %v539_v39  ;;  %v541_v43 = vpop.f32.mrb[7].mxu0  ;;  %v790_v44 = vmax.f32 %v657_v37, 0.0  ;;  %v660_v45 = vadd.f32 %v1706_v12, %v659_v40  ;;  %v661_v46 = vpop.f32.mrb[7].mxu1 }
 0x121   :  { %v1241_v47 = vpack.c.bf16 %v760_v41, %v760_v41  ;;  %v761_v48 = vmax.f32 %v540_v42, 0.0  ;;  %v1271_v49 = vpack.c.bf16 %v790_v44, %v790_v44  ;;  %v791_v50 = vmax.f32 %v660_v45, 0.0 }
 0x123   :  { %1047 = vst.msk [vmem:[%s1995_s3 + $0x8] sm:$0xf] %vm1044_vm0, %v1241_v47  ;;  %v1242_v51 = vpack.c.bf16 %v761_v48, %v761_v48  ;;  %1077 = vst.msk [vmem:[%s1995_s3 + $0x80] sm:$0xf] %vm1044_vm0, %v1271_v49  ;;  %v1272_v52 = vpack.c.bf16 %v791_v50, %v791_v50 }
 0x124   :  { %v544_v53 = vpop.f32.mrb[8].mxu0  ;;  %v664_v54 = vpop.f32.mrb[8].mxu1 }
 0x125   :  { %1048 = vst.msk [vmem:[%s1995_s3 + $0xc] sm:$0xf] %vm1044_vm0, %v1242_v51  ;;  %v545_v55 = vadd.f32 %v1706_v12, %v544_v53  ;;  %v546_v56 = vpop.f32.mrb[9].mxu0  ;;  %1078 = vst.msk [vmem:[%s1995_s3 + $0x84] sm:$0xf] %vm1044_vm0, %v1272_v52  ;;  %v665_v57 = vadd.f32 %v1706_v12, %v664_v54  ;;  %v666_v58 = vpop.f32.mrb[9].mxu1 }
 0x126   :  { %v547_v59 = vpop.f32.mrb[10].mxu0  ;;  %v667_v60 = vpop.f32.mrb[10].mxu1 }
 0x127   :  { %v762_v61 = vmax.f32 %v545_v55, 0.0  ;;  %v548_v62 = vadd.f32 %v1706_v12, %v547_v59  ;;  %v549_v63 = vpop.f32.mrb[11].mxu0  ;;  %v792_v0 = vmax.f32 %v665_v57, 0.0  ;;  %v668_v1 = vadd.f32 %v1706_v12, %v667_v60  ;;  %v669_v2 = vpop.f32.mrb[11].mxu1 }
 0x129   :  { %v1243_v3 = vpack.c.bf16 %v762_v61, %v762_v61  ;;  %v763_v4 = vmax.f32 %v548_v62, 0.0  ;;  %v1273_v5 = vpack.c.bf16 %v792_v0, %v792_v0  ;;  %v793_v6 = vmax.f32 %v668_v1, 0.0 }
 0x12b   :  { %1049 = vst.msk [vmem:[%s1995_s3 + $0x10] sm:$0xf] %vm1044_vm0, %v1243_v3  ;;  %v1244_v7 = vpack.c.bf16 %v763_v4, %v763_v4  ;;  %1079 = vst.msk [vmem:[%s1995_s3 + $0x88] sm:$0xf] %vm1044_vm0, %v1273_v5  ;;  %v1274_v8 = vpack.c.bf16 %v793_v6, %v793_v6 }
 0x12c   :  { %v552_v9 = vpop.f32.mrb[12].mxu0  ;;  %v672_v10 = vpop.f32.mrb[12].mxu1 }
 0x12d   :  { %1050 = vst.msk [vmem:[%s1995_s3 + $0x14] sm:$0xf] %vm1044_vm0, %v1244_v7  ;;  %v553_v11 = vadd.f32 %v1706_v12, %v552_v9  ;;  %v554_v13 = vpop.f32.mrb[13].mxu0  ;;  %1080 = vst.msk [vmem:[%s1995_s3 + $0x8c] sm:$0xf] %vm1044_vm0, %v1274_v8  ;;  %v673_v14 = vadd.f32 %v1706_v12, %v672_v10  ;;  %v674_v15 = vpop.f32.mrb[13].mxu1 }
 0x12e   :  { %v555_v16 = vpop.f32.mrb[14].mxu0  ;;  %v675_v17 = vpop.f32.mrb[14].mxu1 }
 0x12f   :  { %v764_v18 = vmax.f32 %v553_v11, 0.0  ;;  %v556_v19 = vadd.f32 %v1706_v12, %v555_v16  ;;  %v557_v20 = vpop.f32.mrb[15].mxu0  ;;  %v794_v21 = vmax.f32 %v673_v14, 0.0  ;;  %v676_v22 = vadd.f32 %v1706_v12, %v675_v17  ;;  %v677_v23 = vpop.f32.mrb[15].mxu1 }
 0x131   :  { %v1245_v24 = vpack.c.bf16 %v764_v18, %v764_v18  ;;  %v765_v25 = vmax.f32 %v556_v19, 0.0  ;;  %v1275_v26 = vpack.c.bf16 %v794_v21, %v794_v21  ;;  %v795_v27 = vmax.f32 %v676_v22, 0.0 }
 0x133   :  { %1051 = vst.msk [vmem:[%s1995_s3 + $0x18] sm:$0xf] %vm1044_vm0, %v1245_v24  ;;  %v1246_v28 = vpack.c.bf16 %v765_v25, %v765_v25  ;;  %1081 = vst.msk [vmem:[%s1995_s3 + $0x90] sm:$0xf] %vm1044_vm0, %v1275_v26  ;;  %v1276_v29 = vpack.c.bf16 %v795_v27, %v795_v27 }
 0x134   :  { %v560_v30 = vpop.f32.mrb[16].mxu0  ;;  %v680_v31 = vpop.f32.mrb[16].mxu1 }
 0x135   :  { %1052 = vst.msk [vmem:[%s1995_s3 + $0x1c] sm:$0xf] %vm1044_vm0, %v1246_v28  ;;  %v561_v32 = vadd.f32 %v1706_v12, %v560_v30  ;;  %v562_v33 = vpop.f32.mrb[17].mxu0  ;;  %1082 = vst.msk [vmem:[%s1995_s3 + $0x94] sm:$0xf] %vm1044_vm0, %v1276_v29  ;;  %v681_v34 = vadd.f32 %v1706_v12, %v680_v31  ;;  %v682_v35 = vpop.f32.mrb[17].mxu1 }
 0x136   :  { %v563_v36 = vpop.f32.mrb[18].mxu0  ;;  %v683_v37 = vpop.f32.mrb[18].mxu1 }
 0x137   :  { %v766_v38 = vmax.f32 %v561_v32, 0.0  ;;  %v564_v39 = vadd.f32 %v1706_v12, %v563_v36  ;;  %v565_v40 = vpop.f32.mrb[19].mxu0  ;;  %v796_v41 = vmax.f32 %v681_v34, 0.0  ;;  %v684_v42 = vadd.f32 %v1706_v12, %v683_v37  ;;  %v685_v43 = vpop.f32.mrb[19].mxu1 }
 0x139   :  { %v1247_v44 = vpack.c.bf16 %v766_v38, %v766_v38  ;;  %v767_v45 = vmax.f32 %v564_v39, 0.0  ;;  %v1277_v46 = vpack.c.bf16 %v796_v41, %v796_v41  ;;  %v797_v47 = vmax.f32 %v684_v42, 0.0 }
 0x13b   :  { %1053 = vst.msk [vmem:[%s1995_s3 + $0x20] sm:$0xf] %vm1044_vm0, %v1247_v44  ;;  %v1248_v48 = vpack.c.bf16 %v767_v45, %v767_v45  ;;  %1083 = vst.msk [vmem:[%s1995_s3 + $0x98] sm:$0xf] %vm1044_vm0, %v1277_v46  ;;  %v1278_v49 = vpack.c.bf16 %v797_v47, %v797_v47 }
 0x13c   :  { %v568_v50 = vpop.f32.mrb[20].mxu0  ;;  %v688_v51 = vpop.f32.mrb[20].mxu1 }
 0x13d   :  { %1054 = vst.msk [vmem:[%s1995_s3 + $0x24] sm:$0xf] %vm1044_vm0, %v1248_v48  ;;  %v569_v52 = vadd.f32 %v1706_v12, %v568_v50  ;;  %v570_v53 = vpop.f32.mrb[21].mxu0  ;;  %1084 = vst.msk [vmem:[%s1995_s3 + $0x9c] sm:$0xf] %vm1044_vm0, %v1278_v49  ;;  %v689_v54 = vadd.f32 %v1706_v12, %v688_v51  ;;  %v690_v55 = vpop.f32.mrb[21].mxu1 }
 0x13e   :  { %v571_v56 = vpop.f32.mrb[22].mxu0  ;;  %v691_v57 = vpop.f32.mrb[22].mxu1 }
 0x13f   :  { %v768_v58 = vmax.f32 %v569_v52, 0.0  ;;  %v572_v59 = vadd.f32 %v1706_v12, %v571_v56  ;;  %v573_v60 = vpop.f32.mrb[23].mxu0  ;;  %v798_v61 = vmax.f32 %v689_v54, 0.0  ;;  %v692_v62 = vadd.f32 %v1706_v12, %v691_v57  ;;  %v693_v63 = vpop.f32.mrb[23].mxu1 }
 0x141   :  { %v1249_v0 = vpack.c.bf16 %v768_v58, %v768_v58  ;;  %v769_v1 = vmax.f32 %v572_v59, 0.0  ;;  %v1279_v2 = vpack.c.bf16 %v798_v61, %v798_v61  ;;  %v799_v3 = vmax.f32 %v692_v62, 0.0 }
 0x143   :  { %1055 = vst.msk [vmem:[%s1995_s3 + $0x28] sm:$0xf] %vm1044_vm0, %v1249_v0  ;;  %v1250_v4 = vpack.c.bf16 %v769_v1, %v769_v1  ;;  %1085 = vst.msk [vmem:[%s1995_s3 + $0xa0] sm:$0xf] %vm1044_vm0, %v1279_v2  ;;  %v1280_v5 = vpack.c.bf16 %v799_v3, %v799_v3 }
 0x144   :  { %v576_v6 = vpop.f32.mrb[24].mxu0  ;;  %v696_v7 = vpop.f32.mrb[24].mxu1 }
 0x145   :  { %1056 = vst.msk [vmem:[%s1995_s3 + $0x2c] sm:$0xf] %vm1044_vm0, %v1250_v4  ;;  %v577_v8 = vadd.f32 %v1706_v12, %v576_v6  ;;  %v578_v9 = vpop.f32.mrb[25].mxu0  ;;  %1086 = vst.msk [vmem:[%s1995_s3 + $0xa4] sm:$0xf] %vm1044_vm0, %v1280_v5  ;;  %v697_v10 = vadd.f32 %v1706_v12, %v696_v7  ;;  %v698_v11 = vpop.f32.mrb[25].mxu1 }
 0x146   :  { %v579_v13 = vpop.f32.mrb[26].mxu0  ;;  %v699_v14 = vpop.f32.mrb[26].mxu1 }
 0x147   :  { %v770_v15 = vmax.f32 %v577_v8, 0.0  ;;  %v580_v16 = vadd.f32 %v1706_v12, %v579_v13  ;;  %v581_v17 = vpop.f32.mrb[27].mxu0  ;;  %v800_v18 = vmax.f32 %v697_v10, 0.0  ;;  %v700_v19 = vadd.f32 %v1706_v12, %v699_v14  ;;  %v701_v20 = vpop.f32.mrb[27].mxu1 }
 0x149   :  { %v1251_v21 = vpack.c.bf16 %v770_v15, %v770_v15  ;;  %v771_v22 = vmax.f32 %v580_v16, 0.0  ;;  %v1281_v23 = vpack.c.bf16 %v800_v18, %v800_v18  ;;  %v801_v24 = vmax.f32 %v700_v19, 0.0 }
 0x14b   :  { %1057 = vst.msk [vmem:[%s1995_s3 + $0x30] sm:$0xf] %vm1044_vm0, %v1251_v21  ;;  %v1252_v25 = vpack.c.bf16 %v771_v22, %v771_v22  ;;  %1087 = vst.msk [vmem:[%s1995_s3 + $0xa8] sm:$0xf] %vm1044_vm0, %v1281_v23  ;;  %v1282_v26 = vpack.c.bf16 %v801_v24, %v801_v24 }
 0x14c   :  { %v584_v27 = vpop.f32.mrb[28].mxu0  ;;  %v704_v28 = vpop.f32.mrb[28].mxu1 }
 0x14d   :  { %1058 = vst.msk [vmem:[%s1995_s3 + $0x34] sm:$0xf] %vm1044_vm0, %v1252_v25  ;;  %v585_v29 = vadd.f32 %v1706_v12, %v584_v27  ;;  %v586_v30 = vpop.f32.mrb[29].mxu0  ;;  %1088 = vst.msk [vmem:[%s1995_s3 + $0xac] sm:$0xf] %vm1044_vm0, %v1282_v26  ;;  %v705_v31 = vadd.f32 %v1706_v12, %v704_v28  ;;  %v706_v32 = vpop.f32.mrb[29].mxu1 }
 0x14e   :  { %v587_v33 = vpop.f32.mrb[30].mxu0  ;;  %v707_v34 = vpop.f32.mrb[30].mxu1 }
 0x14f   :  { %v772_v35 = vmax.f32 %v585_v29, 0.0  ;;  %v588_v36 = vadd.f32 %v1706_v12, %v587_v33  ;;  %v589_v37 = vpop.f32.mrb[31].mxu0  ;;  %v802_v38 = vmax.f32 %v705_v31, 0.0  ;;  %v708_v39 = vadd.f32 %v1706_v12, %v707_v34  ;;  %v709_v40 = vpop.f32.mrb[31].mxu1 }
 0x151   :  { %v1253_v41 = vpack.c.bf16 %v772_v35, %v772_v35  ;;  %v773_v42 = vmax.f32 %v588_v36, 0.0  ;;  %v1283_v43 = vpack.c.bf16 %v802_v38, %v802_v38  ;;  %v803_v44 = vmax.f32 %v708_v39, 0.0 }
 0x153   :  { %1059 = vst.msk [vmem:[%s1995_s3 + $0x38] sm:$0xf] %vm1044_vm0, %v1253_v41  ;;  %v1254_v45 = vpack.c.bf16 %v773_v42, %v773_v42  ;;  %1089 = vst.msk [vmem:[%s1995_s3 + $0xb0] sm:$0xf] %vm1044_vm0, %v1283_v43  ;;  %v1284_v46 = vpack.c.bf16 %v803_v44, %v803_v44 }
 0x154   :  { %v592_v47 = vpop.f32.mrb[32].mxu0  ;;  %v712_v48 = vpop.f32.mrb[32].mxu1 }
 0x155   :  { %1060 = vst.msk [vmem:[%s1995_s3 + $0x3c] sm:$0xf] %vm1044_vm0, %v1254_v45  ;;  %v593_v49 = vadd.f32 %v1706_v12, %v592_v47  ;;  %v594_v50 = vpop.f32.mrb[33].mxu0  ;;  %1090 = vst.msk [vmem:[%s1995_s3 + $0xb4] sm:$0xf] %vm1044_vm0, %v1284_v46  ;;  %v713_v51 = vadd.f32 %v1706_v12, %v712_v48  ;;  %v714_v52 = vpop.f32.mrb[33].mxu1 }
 0x156   :  { %v595_v53 = vpop.f32.mrb[34].mxu0  ;;  %v715_v54 = vpop.f32.mrb[34].mxu1 }
 0x157   :  { %v774_v55 = vmax.f32 %v593_v49, 0.0  ;;  %v596_v56 = vadd.f32 %v1706_v12, %v595_v53  ;;  %v597_v57 = vpop.f32.mrb[35].mxu0  ;;  %v804_v58 = vmax.f32 %v713_v51, 0.0  ;;  %v716_v59 = vadd.f32 %v1706_v12, %v715_v54  ;;  %v717_v60 = vpop.f32.mrb[35].mxu1 }
 0x159   :  { %v1255_v61 = vpack.c.bf16 %v774_v55, %v774_v55  ;;  %v775_v62 = vmax.f32 %v596_v56, 0.0  ;;  %v1285_v63 = vpack.c.bf16 %v804_v58, %v804_v58  ;;  %v805_v0 = vmax.f32 %v716_v59, 0.0 }
 0x15b   :  { %1061 = vst.msk [vmem:[%s1995_s3 + $0x40] sm:$0xf] %vm1044_vm0, %v1255_v61  ;;  %v1256_v1 = vpack.c.bf16 %v775_v62, %v775_v62  ;;  %1091 = vst.msk [vmem:[%s1995_s3 + $0xb8] sm:$0xf] %vm1044_vm0, %v1285_v63  ;;  %v1286_v2 = vpack.c.bf16 %v805_v0, %v805_v0 }
 0x15c   :  { %v600_v3 = vpop.f32.mrb[36].mxu0  ;;  %v720_v4 = vpop.f32.mrb[36].mxu1 }
 0x15d   :  { %1062 = vst.msk [vmem:[%s1995_s3 + $0x44] sm:$0xf] %vm1044_vm0, %v1256_v1  ;;  %v601_v5 = vadd.f32 %v1706_v12, %v600_v3  ;;  %v602_v6 = vpop.f32.mrb[37].mxu0  ;;  %1092 = vst.msk [vmem:[%s1995_s3 + $0xbc] sm:$0xf] %vm1044_vm0, %v1286_v2  ;;  %v721_v7 = vadd.f32 %v1706_v12, %v720_v4  ;;  %v722_v8 = vpop.f32.mrb[37].mxu1 }
 0x15e   :  { %v603_v9 = vpop.f32.mrb[38].mxu0  ;;  %v723_v10 = vpop.f32.mrb[38].mxu1 }
 0x15f   :  { %v776_v11 = vmax.f32 %v601_v5, 0.0  ;;  %v604_v13 = vadd.f32 %v1706_v12, %v603_v9  ;;  %v605_v14 = vpop.f32.mrb[39].mxu0  ;;  %v806_v15 = vmax.f32 %v721_v7, 0.0  ;;  %v724_v16 = vadd.f32 %v1706_v12, %v723_v10  ;;  %v725_v17 = vpop.f32.mrb[39].mxu1 }
 0x161   :  { %v1257_v18 = vpack.c.bf16 %v776_v11, %v776_v11  ;;  %v777_v19 = vmax.f32 %v604_v13, 0.0  ;;  %v1287_v20 = vpack.c.bf16 %v806_v15, %v806_v15  ;;  %v807_v21 = vmax.f32 %v724_v16, 0.0 }
 0x163   :  { %1063 = vst.msk [vmem:[%s1995_s3 + $0x48] sm:$0xf] %vm1044_vm0, %v1257_v18  ;;  %v1258_v22 = vpack.c.bf16 %v777_v19, %v777_v19  ;;  %1093 = vst.msk [vmem:[%s1995_s3 + $0xc0] sm:$0xf] %vm1044_vm0, %v1287_v20  ;;  %v1288_v23 = vpack.c.bf16 %v807_v21, %v807_v21 }
 0x164   :  { %v608_v24 = vpop.f32.mrb[40].mxu0  ;;  %v728_v25 = vpop.f32.mrb[40].mxu1 }
 0x165   :  { %1064 = vst.msk [vmem:[%s1995_s3 + $0x4c] sm:$0xf] %vm1044_vm0, %v1258_v22  ;;  %v609_v26 = vadd.f32 %v1706_v12, %v608_v24  ;;  %v610_v27 = vpop.f32.mrb[41].mxu0  ;;  %1094 = vst.msk [vmem:[%s1995_s3 + $0xc4] sm:$0xf] %vm1044_vm0, %v1288_v23  ;;  %v729_v28 = vadd.f32 %v1706_v12, %v728_v25  ;;  %v730_v29 = vpop.f32.mrb[41].mxu1 }
 0x166   :  { %v611_v30 = vpop.f32.mrb[42].mxu0  ;;  %v731_v31 = vpop.f32.mrb[42].mxu1 }
 0x167   :  { %v778_v32 = vmax.f32 %v609_v26, 0.0  ;;  %v612_v33 = vadd.f32 %v1706_v12, %v611_v30  ;;  %v613_v34 = vpop.f32.mrb[43].mxu0  ;;  %v808_v35 = vmax.f32 %v729_v28, 0.0  ;;  %v732_v36 = vadd.f32 %v1706_v12, %v731_v31  ;;  %v733_v37 = vpop.f32.mrb[43].mxu1 }
 0x169   :  { %v1259_v38 = vpack.c.bf16 %v778_v32, %v778_v32  ;;  %v779_v39 = vmax.f32 %v612_v33, 0.0  ;;  %v1289_v40 = vpack.c.bf16 %v808_v35, %v808_v35  ;;  %v809_v41 = vmax.f32 %v732_v36, 0.0 }
 0x16b   :  { %1065 = vst.msk [vmem:[%s1995_s3 + $0x50] sm:$0xf] %vm1044_vm0, %v1259_v38  ;;  %v1260_v42 = vpack.c.bf16 %v779_v39, %v779_v39  ;;  %1095 = vst.msk [vmem:[%s1995_s3 + $0xc8] sm:$0xf] %vm1044_vm0, %v1289_v40  ;;  %v1290_v43 = vpack.c.bf16 %v809_v41, %v809_v41 }
 0x16c   :  { %v616_v44 = vpop.f32.mrb[44].mxu0  ;;  %v736_v45 = vpop.f32.mrb[44].mxu1 }
 0x16d   :  { %1066 = vst.msk [vmem:[%s1995_s3 + $0x54] sm:$0xf] %vm1044_vm0, %v1260_v42  ;;  %v617_v46 = vadd.f32 %v1706_v12, %v616_v44  ;;  %v618_v47 = vpop.f32.mrb[45].mxu0  ;;  %1096 = vst.msk [vmem:[%s1995_s3 + $0xcc] sm:$0xf] %vm1044_vm0, %v1290_v43  ;;  %v737_v48 = vadd.f32 %v1706_v12, %v736_v45  ;;  %v738_v49 = vpop.f32.mrb[45].mxu1 }
 0x16e   :  { %v619_v50 = vpop.f32.mrb[46].mxu0  ;;  %v739_v51 = vpop.f32.mrb[46].mxu1 }
 0x16f   :  { %v780_v52 = vmax.f32 %v617_v46, 0.0  ;;  %v620_v53 = vadd.f32 %v1706_v12, %v619_v50  ;;  %v621_v54 = vpop.f32.mrb[47].mxu0  ;;  %v810_v55 = vmax.f32 %v737_v48, 0.0  ;;  %v740_v56 = vadd.f32 %v1706_v12, %v739_v51  ;;  %v741_v57 = vpop.f32.mrb[47].mxu1 }
 0x171   :  { %v1261_v58 = vpack.c.bf16 %v780_v52, %v780_v52  ;;  %v781_v59 = vmax.f32 %v620_v53, 0.0  ;;  %v1291_v60 = vpack.c.bf16 %v810_v55, %v810_v55  ;;  %v811_v61 = vmax.f32 %v740_v56, 0.0 }
 0x173   :  { %1067 = vst.msk [vmem:[%s1995_s3 + $0x58] sm:$0xf] %vm1044_vm0, %v1261_v58  ;;  %v1262_v62 = vpack.c.bf16 %v781_v59, %v781_v59  ;;  %1097 = vst.msk [vmem:[%s1995_s3 + $0xd0] sm:$0xf] %vm1044_vm0, %v1291_v60  ;;  %v1292_v63 = vpack.c.bf16 %v811_v61, %v811_v61 }
 0x174   :  { %v624_v0 = vpop.f32.mrb[48].mxu0  ;;  %v744_v1 = vpop.f32.mrb[48].mxu1 }
 0x175   :  { %1068 = vst.msk [vmem:[%s1995_s3 + $0x5c] sm:$0xf] %vm1044_vm0, %v1262_v62  ;;  %v625_v2 = vadd.f32 %v1706_v12, %v624_v0  ;;  %v626_v3 = vpop.f32.mrb[49].mxu0  ;;  %1098 = vst.msk [vmem:[%s1995_s3 + $0xd4] sm:$0xf] %vm1044_vm0, %v1292_v63  ;;  %v745_v4 = vadd.f32 %v1706_v12, %v744_v1  ;;  %v746_v5 = vpop.f32.mrb[49].mxu1 }
 0x176   :  { %v627_v6 = vpop.f32.mrb[50].mxu0  ;;  %v747_v7 = vpop.f32.mrb[50].mxu1 }
 0x177   :  { %v782_v8 = vmax.f32 %v625_v2, 0.0  ;;  %v628_v9 = vadd.f32 %v1706_v12, %v627_v6  ;;  %v629_v10 = vpop.f32.mrb[51].mxu0  ;;  %v812_v11 = vmax.f32 %v745_v4, 0.0  ;;  %v748_v13 = vadd.f32 %v1706_v12, %v747_v7  ;;  %v749_v14 = vpop.f32.mrb[51].mxu1 }
 0x179   :  { %v1263_v15 = vpack.c.bf16 %v782_v8, %v782_v8  ;;  %v783_v16 = vmax.f32 %v628_v9, 0.0  ;;  %v1293_v17 = vpack.c.bf16 %v812_v11, %v812_v11  ;;  %v813_v18 = vmax.f32 %v748_v13, 0.0 }
 0x17b   :  { %1069 = vst.msk [vmem:[%s1995_s3 + $0x60] sm:$0xf] %vm1044_vm0, %v1263_v15  ;;  %v1264_v19 = vpack.c.bf16 %v783_v16, %v783_v16  ;;  %1099 = vst.msk [vmem:[%s1995_s3 + $0xd8] sm:$0xf] %vm1044_vm0, %v1293_v17  ;;  %v1294_v20 = vpack.c.bf16 %v813_v18, %v813_v18 }
 0x17c   :  { %v632_v21 = vpop.f32.mrb[52].mxu0  ;;  %v752_v22 = vpop.f32.mrb[52].mxu1 }
 0x17d   :  { %1070 = vst.msk [vmem:[%s1995_s3 + $0x64] sm:$0xf] %vm1044_vm0, %v1264_v19  ;;  %v633_v23 = vadd.f32 %v1706_v12, %v632_v21  ;;  %v634_v24 = vpop.f32.mrb[53].mxu0  ;;  %1100 = vst.msk [vmem:[%s1995_s3 + $0xdc] sm:$0xf] %vm1044_vm0, %v1294_v20  ;;  %v753_v25 = vadd.f32 %v1706_v12, %v752_v22  ;;  %v754_v26 = vpop.f32.mrb[53].mxu1 }
 0x17e   :  { %v635_v27 = vpop.f32.mrb[54].mxu0  ;;  %v755_v28 = vpop.f32.mrb[54].mxu1 }
 0x17f   :  { %v784_v29 = vmax.f32 %v633_v23, 0.0  ;;  %v636_v30 = vadd.f32 %v1706_v12, %v635_v27  ;;  %v637_v31 = vpop.f32.mrb[55].mxu0  ;;  %v814_v32 = vmax.f32 %v753_v25, 0.0  ;;  %v756_v33 = vpop.f32.mrb[55].mxu1 }
 0x181   :  { %v1265_v34 = vpack.c.bf16 %v784_v29, %v784_v29  ;;  %v785_v35 = vmax.f32 %v636_v30, 0.0  ;;  %v1295_v36 = vpack.c.bf16 %v814_v32, %v814_v32 }
 0x183   :  { %1071 = vst.msk [vmem:[%s1995_s3 + $0x68] sm:$0xf] %vm1044_vm0, %v1265_v34  ;;  %v1266_v37 = vpack.c.bf16 %v785_v35, %v785_v35 }
 0x184   :  { %1102 = vst.msk [vmem:[%s1995_s3 + $0xe0] sm:$0x1] %vm1101_vm1, %v1295_v36  ;;  %v640_v38 = vpop.f32.mrb[56].mxu0 }
 0x185   :  { %1072 = vst.msk [vmem:[%s1995_s3 + $0x6c] sm:$0xf] %vm1044_vm0, %v1266_v37  ;;  %v641_v39 = vadd.f32 %v1706_v12, %v640_v38  ;;  %v642_v40 = vpop.f32.mrb[57].mxu0 }
 0x186   :  { %v643_v41 = vpop.f32.mrb[58].mxu0 }
 0x187   :  { %v786_v42 = vmax.f32 %v641_v39, 0.0  ;;  %v644_v43 = vadd.f32 %v1706_v12, %v643_v41  ;;  %v645_v44 = vpop.f32.mrb[59].mxu0 }
 0x189   :  { %v1267_v45 = vpack.c.bf16 %v786_v42, %v786_v42  ;;  %v787_v46 = vmax.f32 %v644_v43, 0.0 }
 0x18b   :  { %1073 = vst.msk [vmem:[%s1995_s3 + $0x70] sm:$0xf] %vm1044_vm0, %v1267_v45  ;;  %v1268_v47 = vpack.c.bf16 %v787_v46, %v787_v46 }
 0x18d   :  { %1074 = vst.msk [vmem:[%s1995_s3 + $0x74] sm:$0xf] %vm1044_vm0, %v1268_v47 }

// kernel: ppo_forward.4
= control target key start
LH: loop header
LB: loop body
LE: loop exit
PB: predicated region body
PF: predicated region fallthrough
CT: control target
= control target key end

     0   :  { %vm580_vm0 = vcmask 519168   ;;  %s1037_s1 = inlined_call_operand.vmem [shape: bf16[512,64], index: 1, kind: input, shape index: {}]   ;;  %s1038_s0 = inlined_call_operand.vmem [shape: bf16[72,512], index: 0, kind: input, shape index: {}]   ;;  %s1039_s2 = inlined_call_operand.vmem [shape: f32[1,64], index: 2, kind: input, shape index: {}]   ;;  %s1040_s3 = inlined_call_operand.vmem [shape: bf16[72,64], index: 3, kind: output, shape index: {}]  }
   0x1   :  { %v757_v0 = vld [vmem:[%s1037_s1 + $0x40] sm:$0xff]   ;;  %v761_v4 = vld [vmem:[%s1037_s1 + $0x48] sm:$0xff]   ;;  %v765_v8 = vld [vmem:[%s1037_s1 + $0x50] sm:$0xff]  }
   0x2   :  { %v758_v1 = vld [vmem:[%s1037_s1 + $0xc0] sm:$0xff]   ;;  %665 = vmatprep.subr.bf16.mxu0 %v757_v0  ;;  %v762_v5 = vld [vmem:[%s1037_s1 + $0xc8] sm:$0xff]   ;;  %v766_v9 = vld [vmem:[%s1037_s1 + $0xd0] sm:$0xff]  }
   0x3   :  { %v759_v2 = vld [vmem:[%s1037_s1] sm:$0xff]   ;;  %711 = vmatprep.subr.bf16.mxu1 %v758_v1  ;;  %v763_v6 = vld [vmem:[%s1037_s1 + $0x8] sm:$0xff]   ;;  %v767_v10 = vld [vmem:[%s1037_s1 + $0x10] sm:$0xff]  }
   0x4   :  { %v760_v3 = vld [vmem:[%s1037_s1 + $0x80] sm:$0xff]   ;;  %666 = vmatpush3.bf16.msra.mxu0 %v759_v2  ;;  %v764_v7 = vld [vmem:[%s1037_s1 + $0x88] sm:$0xff]   ;;  %v768_v11 = vld [vmem:[%s1037_s1 + $0x90] sm:$0xff]  }
   0x5   :  { %712 = vmatpush3.bf16.msra.mxu1 %v760_v3  ;;  %667 = vmatprep.subr.bf16.mxu0 %v761_v4  ;;  %v769_v12 = vld [vmem:[%s1037_s1 + $0x58] sm:$0xff]   ;;  %v773_v16 = vld [vmem:[%s1037_s1 + $0x60] sm:$0xff]   ;;  %v777_v20 = vld [vmem:[%s1037_s1 + $0x68] sm:$0xff]  }
   0x6   :  { %713 = vmatprep.subr.bf16.mxu1 %v762_v5  ;;  %v770_v13 = vld [vmem:[%s1037_s1 + $0xd8] sm:$0xff]   ;;  %v774_v17 = vld [vmem:[%s1037_s1 + $0xe0] sm:$0xff]   ;;  %v778_v21 = vld [vmem:[%s1037_s1 + $0xe8] sm:$0xff]  }
   0x7   :  { %v771_v14 = vld [vmem:[%s1037_s1 + $0x18] sm:$0xff]   ;;  %v775_v18 = vld [vmem:[%s1037_s1 + $0x20] sm:$0xff]   ;;  %v779_v22 = vld [vmem:[%s1037_s1 + $0x28] sm:$0xff]  }
   0x8   :  { %668 = vmatpush3.bf16.msra.mxu0 %v763_v6  ;;  %v772_v15 = vld [vmem:[%s1037_s1 + $0x98] sm:$0xff]   ;;  %v776_v19 = vld [vmem:[%s1037_s1 + $0xa0] sm:$0xff]   ;;  %v780_v23 = vld [vmem:[%s1037_s1 + $0xa8] sm:$0xff]  }
   0x9   :  { %714 = vmatpush3.bf16.msra.mxu1 %v764_v7  ;;  %669 = vmatprep.subr.bf16.mxu0 %v765_v8  ;;  %v781_v24 = vld [vmem:[%s1037_s1 + $0x70] sm:$0xff]   ;;  %v785_v28 = vld [vmem:[%s1037_s1 + $0x78] sm:$0xff]   ;;  %v31_v46 = vld [vmem:[%s1038_s0 + $0x80] sm:$0xff] }
   0xa   :  { %715 = vmatprep.subr.bf16.mxu1 %v766_v9  ;;  %v782_v25 = vld [vmem:[%s1037_s1 + $0xf0] sm:$0xff]   ;;  %v786_v29 = vld [vmem:[%s1037_s1 + $0xf8] sm:$0xff]   ;;  %v32_v47 = vld [vmem:[%s1038_s0 + $0x88] sm:$0xff]  ;;  %v612_v50 = vcombine.high %v31_v46, %v31_v46  ;;  %v611_v52 = vcombine.low %v31_v46, %v31_v46 }
   0xb   :  { %v783_v26 = vld [vmem:[%s1037_s1 + $0x30] sm:$0xff]   ;;  %v787_v30 = vld [vmem:[%s1037_s1 + $0x38] sm:$0xff]   ;;  %v614_v51 = vcombine.high %v32_v47, %v32_v47  ;;  %v613_v53 = vcombine.low %v32_v47, %v32_v47  ;;  %v990_v56 = vld [vmem:[%s1039_s2] ss:$0 sm:$0xff] }
   0xc   :  { %670 = vmatpush3.bf16.msra.mxu0 %v767_v10  ;;  %v784_v27 = vld [vmem:[%s1037_s1 + $0xb0] sm:$0xff]   ;;  %v788_v31 = vld [vmem:[%s1037_s1 + $0xb8] sm:$0xff]  }
   0xd   :  { %716 = vmatpush3.bf16.msra.mxu1 %v768_v11  ;;  %671 = vmatprep.subr.bf16.mxu0 %v769_v12  ;;  %v789_v32 = vld [vmem:[%s1038_s0] ss:$16 sps:$4 sm:$0xff]   ;;  %v791_v33 = vld [vmem:[%s1038_s0 + $0x4] ss:$16 sps:$4 sm:$0xff]   ;;  %v792_v34 = vld [vmem:[%s1038_s0 + $0x8] ss:$16 sps:$4 sm:$0xff]  }
   0xe   :  { %717 = vmatprep.subr.bf16.mxu1 %v770_v13  ;;  %v794_v35 = vld [vmem:[%s1038_s0 + $0xc] ss:$16 sps:$4 sm:$0xff]   ;;  %422 = vmatprep.mubr.bf16.mxu0 %v791_v33  ;;  %v795_v36 = vld [vmem:[%s1038_s0 + $0x24] ss:$16 sps:$4 sm:$0xff]   ;;  %v799_v38 = vld [vmem:[%s1038_s0 + $0x20] ss:$16 sps:$4 sm:$0xff]  }
   0xf   :  { %494 = vmatprep.mubr.bf16.mxu1 %v794_v35  ;;  %v797_v37 = vld [vmem:[%s1038_s0 + $0x2c] ss:$16 sps:$4 sm:$0xff]   ;;  %v800_v39 = vld [vmem:[%s1038_s0 + $0x28] ss:$16 sps:$4 sm:$0xff]   ;;  %v801_v40 = vld [vmem:[%s1038_s0 + $0x44] ss:$16 sps:$4 sm:$0xff]  }
  0x10   :  { %672 = vmatpush3.bf16.msra.mxu0 %v771_v14  ;;  %v803_v41 = vld [vmem:[%s1038_s0 + $0x4c] ss:$16 sps:$4 sm:$0xff]   ;;  %v805_v42 = vld [vmem:[%s1038_s0 + $0x40] ss:$16 sps:$4 sm:$0xff]   ;;  %v806_v43 = vld [vmem:[%s1038_s0 + $0x48] ss:$16 sps:$4 sm:$0xff]  }
  0x11   :  { %718 = vmatpush3.bf16.msra.mxu1 %v772_v15  ;;  %673 = vmatprep.subr.bf16.mxu0 %v773_v16  ;;  %v807_v44 = vld [vmem:[%s1038_s0 + $0x64] ss:$16 sps:$4 sm:$0xff]   ;;  %v809_v45 = vld [vmem:[%s1038_s0 + $0x6c] ss:$16 sps:$4 sm:$0xff]   ;;  %v811_v48 = vld [vmem:[%s1038_s0 + $0x60] ss:$16 sps:$4 sm:$0xff]  }
  0x12   :  { %719 = vmatprep.subr.bf16.mxu1 %v774_v17  ;;  %v812_v49 = vld [vmem:[%s1038_s0 + $0x68] ss:$16 sps:$4 sm:$0xff]  }
  0x14   :  { %674 = vmatpush3.bf16.msra.mxu0 %v775_v18 }
  0x15   :  { %720 = vmatpush3.bf16.msra.mxu1 %v776_v19  ;;  %675 = vmatprep.subr.bf16.mxu0 %v777_v20 }
  0x16   :  { %721 = vmatprep.subr.bf16.mxu1 %v778_v21 }
  0x18   :  { %676 = vmatpush3.bf16.msra.mxu0 %v779_v22 }
  0x19   :  { %722 = vmatpush3.bf16.msra.mxu1 %v780_v23  ;;  %677 = vmatprep.subr.bf16.mxu0 %v781_v24 }
  0x1a   :  { %723 = vmatprep.subr.bf16.mxu1 %v782_v25 }
  0x1c   :  { %678 = vmatpush3.bf16.msra.mxu0 %v783_v26 }
  0x1d   :  { %724 = vmatpush3.bf16.msra.mxu1 %v784_v27  ;;  %679 = vmatprep.subr.bf16.mxu0 %v785_v28 }
  0x1e   :  { %725 = vmatprep.subr.bf16.mxu1 %v786_v29 }
  0x20   :  { %680 = vmatpush3.bf16.msra.mxu0 %v787_v30 }
  0x21   :  { %726 = vmatpush3.bf16.msra.mxu1 %v788_v31 }
  0x23   :  { %423 = vmatmul.mubr.bf16.vlgmr.msra.gmra.mrb[0].mxu0 %v789_v32 }
  0x24   :  { %495 = vmatmul.mubr.bf16.vlgmr.msra.gmra.mrb[0].mxu1 %v792_v34  ;;  %430 = vmatprep.mubr.bf16.mxu0 %v795_v36 }
  0x25   :  { %502 = vmatprep.mubr.bf16.mxu1 %v797_v37 }
  0x2b   :  { %431 = vmatmul.mubr.bf16.gmra.mrb[4].mxu0 %v799_v38 }
  0x2c   :  { %503 = vmatmul.mubr.bf16.gmra.mrb[4].mxu1 %v800_v39  ;;  %438 = vmatprep.mubr.bf16.mxu0 %v801_v40 }
  0x2d   :  { %510 = vmatprep.mubr.bf16.mxu1 %v803_v41 }
  0x33   :  { %439 = vmatmul.mubr.bf16.gmra.mrb[8].mxu0 %v805_v42 }
  0x34   :  { %511 = vmatmul.mubr.bf16.gmra.mrb[8].mxu1 %v806_v43  ;;  %446 = vmatprep.mubr.bf16.mxu0 %v807_v44 }
  0x35   :  { %518 = vmatprep.mubr.bf16.mxu1 %v809_v45 }
  0x3b   :  { %447 = vmatmul.mubr.bf16.gmra.mrb[12].mxu0 %v811_v48 }
  0x3c   :  { %519 = vmatmul.mubr.bf16.gmra.mrb[12].mxu1 %v812_v49  ;;  %454 = vmatprep.mubr.bf16.mxu0 %v612_v50 }
  0x3d   :  { %526 = vmatprep.mubr.bf16.mxu1 %v614_v51 }
  0x43   :  { %455 = vmatmul.mubr.bf16.gmra.mrb[16].mxu0 %v611_v52 }
  0x44   :  { %527 = vmatmul.mubr.bf16.gmra.mrb[16].mxu1 %v613_v53 }
  0xf6   :  { %v681_v54 = vpop.f32.mrb[0].mxu0 }
  0xf7   :  { %v727_v55 = vpop.f32.mrb[0].mxu1  ;;  %v682_v57 = vpop.f32.mrb[1].mxu0 }
  0xf8   :  { %v683_v58 = vadd.f32 %v682_v57, %v681_v54  ;;  %v728_v59 = vpop.f32.mrb[1].mxu1  ;;  %v684_v60 = vpop.f32.mrb[2].mxu0 }
  0xf9   :  { %v729_v61 = vadd.f32 %v728_v59, %v727_v55  ;;  %v730_v62 = vpop.f32.mrb[2].mxu1  ;;  %v685_v63 = vpop.f32.mrb[3].mxu0 }
  0xfa   :  { %v425_v0 = vadd.f32 %v683_v58, %v990_v56  ;;  %v686_v1 = vadd.f32 %v685_v63, %v684_v60  ;;  %v731_v2 = vpop.f32.mrb[3].mxu1 }
  0xfb   :  { %v732_v3 = vadd.f32 %v731_v2, %v730_v62 }
  0xfc   :  { %v497_v4 = vadd.f32 %v729_v61, %v425_v0  ;;  %v428_v5 = vadd.f32 %v686_v1, %v990_v56 }
  0xfe   :  { %v534_v6 = vmax.f32 %v497_v4, 0.0  ;;  %v500_v7 = vadd.f32 %v732_v3, %v428_v5  ;;  %v687_v8 = vpop.f32.mrb[4].mxu0 }
  0xff   :  { %v733_v9 = vpop.f32.mrb[4].mxu1  ;;  %v688_v10 = vpop.f32.mrb[5].mxu0 }
 0x100   :  { %v656_v11 = vpack.c.bf16 %v534_v6, %v534_v6  ;;  %v535_v12 = vmax.f32 %v500_v7, 0.0  ;;  %v689_v13 = vadd.f32 %v688_v10, %v687_v8  ;;  %v734_v14 = vpop.f32.mrb[5].mxu1  ;;  %v690_v15 = vpop.f32.mrb[6].mxu0 }
 0x101   :  { %v735_v16 = vadd.f32 %v734_v14, %v733_v9  ;;  %v736_v17 = vpop.f32.mrb[6].mxu1  ;;  %v691_v18 = vpop.f32.mrb[7].mxu0 }
 0x102   :  { %581 = vst.msk [vmem:[%s1040_s3] sm:$0xf] %vm580_vm0, %v656_v11  ;;  %v657_v19 = vpack.c.bf16 %v535_v12, %v535_v12  ;;  %v433_v20 = vadd.f32 %v689_v13, %v990_v56  ;;  %v692_v21 = vadd.f32 %v691_v18, %v690_v15  ;;  %v737_v22 = vpop.f32.mrb[7].mxu1 }
 0x103   :  { %v738_v23 = vadd.f32 %v737_v22, %v736_v17 }
 0x104   :  { %582 = vst.msk [vmem:[%s1040_s3 + $0x4] sm:$0xf] %vm580_vm0, %v657_v19  ;;  %v505_v24 = vadd.f32 %v735_v16, %v433_v20  ;;  %v436_v25 = vadd.f32 %v692_v21, %v990_v56 }
 0x106   :  { %v536_v26 = vmax.f32 %v505_v24, 0.0  ;;  %v508_v27 = vadd.f32 %v738_v23, %v436_v25  ;;  %v693_v28 = vpop.f32.mrb[8].mxu0 }
 0x107   :  { %v739_v29 = vpop.f32.mrb[8].mxu1  ;;  %v694_v30 = vpop.f32.mrb[9].mxu0 }
 0x108   :  { %v658_v31 = vpack.c.bf16 %v536_v26, %v536_v26  ;;  %v537_v32 = vmax.f32 %v508_v27, 0.0  ;;  %v695_v33 = vadd.f32 %v694_v30, %v693_v28  ;;  %v740_v34 = vpop.f32.mrb[9].mxu1  ;;  %v696_v35 = vpop.f32.mrb[10].mxu0 }
 0x109   :  { %v741_v36 = vadd.f32 %v740_v34, %v739_v29  ;;  %v742_v37 = vpop.f32.mrb[10].mxu1  ;;  %v697_v38 = vpop.f32.mrb[11].mxu0 }
 0x10a   :  { %583 = vst.msk [vmem:[%s1040_s3 + $0x8] sm:$0xf] %vm580_vm0, %v658_v31  ;;  %v659_v39 = vpack.c.bf16 %v537_v32, %v537_v32  ;;  %v441_v40 = vadd.f32 %v695_v33, %v990_v56  ;;  %v698_v41 = vadd.f32 %v697_v38, %v696_v35  ;;  %v743_v42 = vpop.f32.mrb[11].mxu1 }
 0x10b   :  { %v744_v43 = vadd.f32 %v743_v42, %v742_v37 }
 0x10c   :  { %584 = vst.msk [vmem:[%s1040_s3 + $0xc] sm:$0xf] %vm580_vm0, %v659_v39  ;;  %v513_v44 = vadd.f32 %v741_v36, %v441_v40  ;;  %v444_v45 = vadd.f32 %v698_v41, %v990_v56 }
 0x10e   :  { %v538_v46 = vmax.f32 %v513_v44, 0.0  ;;  %v516_v47 = vadd.f32 %v744_v43, %v444_v45  ;;  %v699_v48 = vpop.f32.mrb[12].mxu0 }
 0x10f   :  { %v745_v49 = vpop.f32.mrb[12].mxu1  ;;  %v700_v50 = vpop.f32.mrb[13].mxu0 }
 0x110   :  { %v660_v51 = vpack.c.bf16 %v538_v46, %v538_v46  ;;  %v539_v52 = vmax.f32 %v516_v47, 0.0  ;;  %v701_v53 = vadd.f32 %v700_v50, %v699_v48  ;;  %v746_v54 = vpop.f32.mrb[13].mxu1  ;;  %v702_v55 = vpop.f32.mrb[14].mxu0 }
 0x111   :  { %v747_v57 = vadd.f32 %v746_v54, %v745_v49  ;;  %v748_v58 = vpop.f32.mrb[14].mxu1  ;;  %v703_v59 = vpop.f32.mrb[15].mxu0 }
 0x112   :  { %585 = vst.msk [vmem:[%s1040_s3 + $0x10] sm:$0xf] %vm580_vm0, %v660_v51  ;;  %v661_v60 = vpack.c.bf16 %v539_v52, %v539_v52  ;;  %v449_v61 = vadd.f32 %v701_v53, %v990_v56  ;;  %v704_v62 = vadd.f32 %v703_v59, %v702_v55  ;;  %v749_v63 = vpop.f32.mrb[15].mxu1 }
 0x113   :  { %v750_v0 = vadd.f32 %v749_v63, %v748_v58 }
 0x114   :  { %586 = vst.msk [vmem:[%s1040_s3 + $0x14] sm:$0xf] %vm580_vm0, %v661_v60  ;;  %v521_v1 = vadd.f32 %v747_v57, %v449_v61  ;;  %v452_v2 = vadd.f32 %v704_v62, %v990_v56 }
 0x116   :  { %v540_v3 = vmax.f32 %v521_v1, 0.0  ;;  %v524_v4 = vadd.f32 %v750_v0, %v452_v2  ;;  %v705_v5 = vpop.f32.mrb[16].mxu0 }
 0x117   :  { %v751_v6 = vpop.f32.mrb[16].mxu1  ;;  %v706_v7 = vpop.f32.mrb[17].mxu0 }
 0x118   :  { %v662_v8 = vpack.c.bf16 %v540_v3, %v540_v3  ;;  %v541_v9 = vmax.f32 %v524_v4, 0.0  ;;  %v707_v10 = vadd.f32 %v706_v7, %v705_v5  ;;  %v752_v11 = vpop.f32.mrb[17].mxu1  ;;  %v708_v12 = vpop.f32.mrb[18].mxu0 }
 0x119   :  { %v753_v13 = vadd.f32 %v752_v11, %v751_v6  ;;  %v754_v14 = vpop.f32.mrb[18].mxu1  ;;  %v709_v15 = vpop.f32.mrb[19].mxu0 }
 0x11a   :  { %587 = vst.msk [vmem:[%s1040_s3 + $0x18] sm:$0xf] %vm580_vm0, %v662_v8  ;;  %v663_v16 = vpack.c.bf16 %v541_v9, %v541_v9  ;;  %v457_v17 = vadd.f32 %v707_v10, %v990_v56  ;;  %v755_v18 = vpop.f32.mrb[19].mxu1 }
 0x11c   :  { %588 = vst.msk [vmem:[%s1040_s3 + $0x1c] sm:$0xf] %vm580_vm0, %v663_v16  ;;  %v529_v19 = vadd.f32 %v753_v13, %v457_v17 }
 0x11e   :  { %v542_v20 = vmax.f32 %v529_v19, 0.0 }
 0x120   :  { %v664_v21 = vpack.c.bf16 %v542_v20, %v542_v20 }
 0x122   :  { %589 = vst.msk [vmem:[%s1040_s3 + $0x20] sm:$0xf] %vm580_vm0, %v664_v21 }

// kernel: ppo_forward.5
= control target key start
LH: loop header
LB: loop body
LE: loop exit
PB: predicated region body
PF: predicated region fallthrough
CT: control target
= control target key end

     0   :  { %v1184_v32 = vlaneseq  ;;  %v12929_v33 = vmov 1966171168   ;;  %s17543_s1 = inlined_call_operand.vmem [shape: bf16[2304,1024], index: 1, kind: input, shape index: {}]   ;;  %s17544_s0 = inlined_call_operand.vmem [shape: bf16[2,2304], index: 0, kind: input, shape index: {}]   ;;  %s17545_s3 = inlined_call_operand.vmem [shape: bf16[1024,512], index: 3, kind: input, shape index: {}]   ;;  %s17546_s2 = inlined_call_operand.vmem [shape: f32[1,1024], index: 2, kind: input, shape index: {}]   ;;  %s17547_s5 = inlined_call_operand.vmem [shape: bf16[512,128], index: 5, kind: input, shape index: {}]   ;;  %s17548_s4 = inlined_call_operand.vmem [shape: f32[1,512], index: 4, kind: input, shape index: {}]   ;;  %s17549_s6 = inlined_call_operand.vmem [shape: f32[1,128], index: 6, kind: input, shape index: {}]   ;;  %s17550_s7 = inlined_call_operand.vmem [shape: f32[2,128], index: 7, kind: output, shape index: {}]  }
   0x1   :  { %v30_v0 = vld [vmem:[%s17543_s1] sm:$0xff]  ;;  %v31_v2 = vld [vmem:[%s17543_s1 + $0x8] sm:$0xff]  ;;  %v1229_v34 = vunpack.c.l.s4 %v12929_v33 }
   0x2   :  { %v34_v1 = vld [vmem:[%s17543_s1 + $0x20] sm:$0xff]  ;;  %v35_v4 = vld [vmem:[%s17543_s1 + $0x28] sm:$0xff]  ;;  %v13036_v43 = vshrl.u32 %v1184_v32, 7 }
   0x3   :  { %v10861_v3 = vcombine.high %v30_v0, %v34_v1  ;;  %v10860_v5 = vcombine.low %v30_v0, %v34_v1  ;;  %v38_v6 = vld [vmem:[%s17543_s1 + $0x40] sm:$0xff]  ;;  %v10863_v8 = vcombine.high %v31_v2, %v35_v4  ;;  %v10862_v9 = vcombine.low %v31_v2, %v35_v4  ;;  %v39_v11 = vld [vmem:[%s17543_s1 + $0x48] sm:$0xff] }
   0x4   :  { %v42_v7 = vld [vmem:[%s17543_s1 + $0x60] sm:$0xff]  ;;  %v43_v12 = vld [vmem:[%s17543_s1 + $0x68] sm:$0xff]  ;;  %v1230_v44 = vunpack.c.0.s8 %v1229_v34 }
   0x5   :  { %v10869_v10 = vcombine.high %v38_v6, %v42_v7  ;;  %v46_v13 = vld [vmem:[%s17543_s1 + $0x80] sm:$0xff]  ;;  %7125 = vmatprep.subr.bf16.mxu0 %v10861_v3  ;;  %v10871_v14 = vcombine.high %v39_v11, %v43_v12  ;;  %v47_v16 = vld [vmem:[%s17543_s1 + $0x88] sm:$0xff]  ;;  %7494 = vmatprep.subr.bf16.mxu1 %v10863_v8  ;;  %v10868_v18 = vcombine.low %v38_v6, %v42_v7 }
   0x6   :  { %v50_v15 = vld [vmem:[%s17543_s1 + $0xa0] sm:$0xff]  ;;  %v51_v17 = vld [vmem:[%s17543_s1 + $0xa8] sm:$0xff]  ;;  %7126 = vmatpush1.bf16.msra.mxu0 %v10860_v5  ;;  %7495 = vmatpush1.bf16.msra.mxu1 %v10862_v9  ;;  %v10870_v19 = vcombine.low %v39_v11, %v43_v12  ;;  %v13051_v53 = vsub.s32 %v1230_v44, %v13036_v43 }
   0x7   :  { %7127 = vmatprep.subr.bf16.mxu0 %v10869_v10  ;;  %v10877_v20 = vcombine.high %v46_v13, %v50_v15  ;;  %7496 = vmatprep.subr.bf16.mxu1 %v10871_v14  ;;  %v10879_v21 = vcombine.high %v47_v16, %v51_v17  ;;  %v54_v22 = vld [vmem:[%s17543_s1 + $0xc0] sm:$0xff]  ;;  %v55_v24 = vld [vmem:[%s17543_s1 + $0xc8] sm:$0xff]  ;;  %v10876_v26 = vcombine.low %v46_v13, %v50_v15 }
   0x8   :  { %v58_v23 = vld [vmem:[%s17543_s1 + $0xe0] sm:$0xff]  ;;  %v59_v25 = vld [vmem:[%s17543_s1 + $0xe8] sm:$0xff]  ;;  %v10878_v27 = vcombine.low %v47_v16, %v51_v17 }
   0x9   :  { %v10885_v28 = vcombine.high %v54_v22, %v58_v23  ;;  %v10887_v29 = vcombine.high %v55_v24, %v59_v25  ;;  %v62_v30 = vld [vmem:[%s17543_s1 + $0x100] sm:$0xff]  ;;  %v63_v35 = vld [vmem:[%s17543_s1 + $0x108] sm:$0xff]  ;;  %v10884_v37 = vcombine.low %v54_v22, %v58_v23  ;;  %v10886_v38 = vcombine.low %v55_v24, %v59_v25 }
   0xa   :  { %7128 = vmatpush1.bf16.msra.mxu0 %v10868_v18  ;;  %7497 = vmatpush1.bf16.msra.mxu1 %v10870_v19  ;;  %v66_v31 = vld [vmem:[%s17543_s1 + $0x120] sm:$0xff]  ;;  %v67_v36 = vld [vmem:[%s17543_s1 + $0x128] sm:$0xff] }
   0xb   :  { %7129 = vmatprep.subr.bf16.mxu0 %v10877_v20  ;;  %7498 = vmatprep.subr.bf16.mxu1 %v10879_v21  ;;  %v10893_v39 = vcombine.high %v62_v30, %v66_v31  ;;  %v10895_v40 = vcombine.high %v63_v35, %v67_v36  ;;  %v70_v41 = vld [vmem:[%s17543_s1 + $0x140] sm:$0xff]  ;;  %v71_v45 = vld [vmem:[%s17543_s1 + $0x148] sm:$0xff]  ;;  %v10892_v47 = vcombine.low %v62_v30, %v66_v31 }
   0xc   :  { %v74_v42 = vld [vmem:[%s17543_s1 + $0x160] sm:$0xff]  ;;  %v75_v46 = vld [vmem:[%s17543_s1 + $0x168] sm:$0xff]  ;;  %v10894_v48 = vcombine.low %v63_v35, %v67_v36 }
   0xd   :  { %v10901_v49 = vcombine.high %v70_v41, %v74_v42  ;;  %v10903_v50 = vcombine.high %v71_v45, %v75_v46  ;;  %v78_v51 = vld [vmem:[%s17543_s1 + $0x180] sm:$0xff]  ;;  %v79_v54 = vld [vmem:[%s17543_s1 + $0x188] sm:$0xff]  ;;  %v10900_v56 = vcombine.low %v70_v41, %v74_v42  ;;  %v10902_v57 = vcombine.low %v71_v45, %v75_v46 }
   0xe   :  { %7130 = vmatpush1.bf16.msra.mxu0 %v10876_v26  ;;  %7499 = vmatpush1.bf16.msra.mxu1 %v10878_v27  ;;  %v82_v52 = vld [vmem:[%s17543_s1 + $0x1a0] sm:$0xff]  ;;  %v83_v55 = vld [vmem:[%s17543_s1 + $0x1a8] sm:$0xff] }
   0xf   :  { %7131 = vmatprep.subr.bf16.mxu0 %v10885_v28  ;;  %7500 = vmatprep.subr.bf16.mxu1 %v10887_v29  ;;  %v10909_v58 = vcombine.high %v78_v51, %v82_v52  ;;  %v13062_v59 = vld [vmem:[%s17544_s0] sm:$0xff]  ;;  %v10911_v60 = vcombine.high %v79_v54, %v83_v55  ;;  %v87_v0 = vld [vmem:[%s17543_s1 + $0x1c8] sm:$0xff]  ;;  %v10908_v2 = vcombine.low %v78_v51, %v82_v52 }
  0x10   :  { %v86_v61 = vld [vmem:[%s17543_s1 + $0x1c0] sm:$0xff]  ;;  %v13072_v63 = vrot.slane %v13062_v59, %v13051_v53  ;;  %v91_v1 = vld [vmem:[%s17543_s1 + $0x1e8] sm:$0xff]  ;;  %v10910_v4 = vcombine.low %v79_v54, %v83_v55 }
  0x11   :  { %v90_v62 = vld [vmem:[%s17543_s1 + $0x1e0] sm:$0xff]  ;;  %v10919_v6 = vcombine.high %v87_v0, %v91_v1  ;;  %v95_v10 = vld [vmem:[%s17543_s1 + $0x208] sm:$0xff]  ;;  %v10918_v13 = vcombine.low %v87_v0, %v91_v1 }
  0x12   :  { %7132 = vmatpush1.bf16.msra.mxu0 %v10884_v37  ;;  %7501 = vmatpush1.bf16.msra.mxu1 %v10886_v38  ;;  %v1242_v3 = vcombine.high %v13072_v63, %v13072_v63  ;;  %v10917_v5 = vcombine.high %v86_v61, %v90_v62  ;;  %v94_v7 = vld [vmem:[%s17543_s1 + $0x200] sm:$0xff]  ;;  %v99_v11 = vld [vmem:[%s17543_s1 + $0x228] sm:$0xff]  ;;  %v10916_v12 = vcombine.low %v86_v61, %v90_v62 }
  0x13   :  { %7133 = vmatprep.subr.bf16.mxu0 %v10893_v39  ;;  %7502 = vmatprep.subr.bf16.mxu1 %v10895_v40  ;;  %v98_v8 = vld [vmem:[%s17543_s1 + $0x220] sm:$0xff]  ;;  %v10927_v15 = vcombine.high %v95_v10, %v99_v11  ;;  %v103_v18 = vld [vmem:[%s17543_s1 + $0x248] sm:$0xff]  ;;  %v10926_v21 = vcombine.low %v95_v10, %v99_v11 }
  0x14   :  { %v13089_v9 = vrot.slane %v1242_v3, %v13051_v53  ;;  %v10925_v14 = vcombine.high %v94_v7, %v98_v8  ;;  %v102_v16 = vld [vmem:[%s17543_s1 + $0x240] sm:$0xff]  ;;  %v107_v19 = vld [vmem:[%s17543_s1 + $0x268] sm:$0xff]  ;;  %v10924_v20 = vcombine.low %v94_v7, %v98_v8 }
  0x15   :  { %v106_v17 = vld [vmem:[%s17543_s1 + $0x260] sm:$0xff]  ;;  %v10935_v23 = vcombine.high %v103_v18, %v107_v19  ;;  %v111_v26 = vld [vmem:[%s17543_s1 + $0x288] sm:$0xff]  ;;  %v10934_v29 = vcombine.low %v103_v18, %v107_v19 }
  0x16   :  { %7134 = vmatpush1.bf16.msra.mxu0 %v10892_v47  ;;  %7503 = vmatpush1.bf16.msra.mxu1 %v10894_v48  ;;  %v10933_v22 = vcombine.high %v102_v16, %v106_v17  ;;  %v110_v24 = vld [vmem:[%s17543_s1 + $0x280] sm:$0xff]  ;;  %v115_v27 = vld [vmem:[%s17543_s1 + $0x2a8] sm:$0xff]  ;;  %v10932_v28 = vcombine.low %v102_v16, %v106_v17 }
  0x17   :  { %7135 = vmatprep.subr.bf16.mxu0 %v10901_v49  ;;  %7504 = vmatprep.subr.bf16.mxu1 %v10903_v50  ;;  %v114_v25 = vld [vmem:[%s17543_s1 + $0x2a0] sm:$0xff]  ;;  %v10943_v31 = vcombine.high %v111_v26, %v115_v27  ;;  %v119_v34 = vld [vmem:[%s17543_s1 + $0x2c8] sm:$0xff]  ;;  %v10942_v37 = vcombine.low %v111_v26, %v115_v27 }
  0x18   :  { %7157 = vmatprep.mubr.bf16.mxu0 %v13089_v9  ;;  %7526 = vmatprep.mubr.bf16.mxu1 %v13089_v9  ;;  %v10941_v30 = vcombine.high %v110_v24, %v114_v25  ;;  %v118_v32 = vld [vmem:[%s17543_s1 + $0x2c0] sm:$0xff]  ;;  %v123_v35 = vld [vmem:[%s17543_s1 + $0x2e8] sm:$0xff]  ;;  %v10940_v36 = vcombine.low %v110_v24, %v114_v25 }
  0x19   :  { %v122_v33 = vld [vmem:[%s17543_s1 + $0x2e0] sm:$0xff]  ;;  %v10951_v39 = vcombine.high %v119_v34, %v123_v35  ;;  %v127_v42 = vld [vmem:[%s17543_s1 + $0x308] sm:$0xff]  ;;  %v10950_v46 = vcombine.low %v119_v34, %v123_v35 }
  0x1a   :  { %7136 = vmatpush1.bf16.msra.mxu0 %v10900_v56  ;;  %7505 = vmatpush1.bf16.msra.mxu1 %v10902_v57  ;;  %v10949_v38 = vcombine.high %v118_v32, %v122_v33  ;;  %v126_v40 = vld [vmem:[%s17543_s1 + $0x300] sm:$0xff]  ;;  %v131_v44 = vld [vmem:[%s17543_s1 + $0x328] sm:$0xff]  ;;  %v10948_v45 = vcombine.low %v118_v32, %v122_v33 }
  0x1b   :  { %7137 = vmatprep.subr.bf16.mxu0 %v10909_v58  ;;  %7506 = vmatprep.subr.bf16.mxu1 %v10911_v60  ;;  %v130_v41 = vld [vmem:[%s17543_s1 + $0x320] sm:$0xff]  ;;  %v10959_v48 = vcombine.high %v127_v42, %v131_v44  ;;  %v135_v51 = vld [vmem:[%s17543_s1 + $0x348] sm:$0xff]  ;;  %v10958_v55 = vcombine.low %v127_v42, %v131_v44 }
  0x1c   :  { %v10957_v47 = vcombine.high %v126_v40, %v130_v41  ;;  %v134_v49 = vld [vmem:[%s17543_s1 + $0x340] sm:$0xff]  ;;  %v139_v52 = vld [vmem:[%s17543_s1 + $0x368] sm:$0xff]  ;;  %v10956_v54 = vcombine.low %v126_v40, %v130_v41 }
  0x1d   :  { %v138_v50 = vld [vmem:[%s17543_s1 + $0x360] sm:$0xff]  ;;  %v10967_v57 = vcombine.high %v135_v51, %v139_v52  ;;  %v143_v61 = vld [vmem:[%s17543_s1 + $0x388] sm:$0xff]  ;;  %v10966_v1 = vcombine.low %v135_v51, %v139_v52 }
  0x1e   :  { %7138 = vmatpush1.bf16.msra.mxu0 %v10908_v2  ;;  %7507 = vmatpush1.bf16.msra.mxu1 %v10910_v4  ;;  %v10965_v56 = vcombine.high %v134_v49, %v138_v50  ;;  %v142_v58 = vld [vmem:[%s17543_s1 + $0x380] sm:$0xff]  ;;  %v147_v62 = vld [vmem:[%s17543_s1 + $0x3a8] sm:$0xff]  ;;  %v10964_v0 = vcombine.low %v134_v49, %v138_v50 }
  0x1f   :  { %7139 = vmatprep.subr.bf16.mxu0 %v10917_v5  ;;  %7508 = vmatprep.subr.bf16.mxu1 %v10919_v6  ;;  %v146_v60 = vld [vmem:[%s17543_s1 + $0x3a0] sm:$0xff]  ;;  %v10975_v3 = vcombine.high %v143_v61, %v147_v62  ;;  %v151_v6 = vld [vmem:[%s17543_s1 + $0x3c8] sm:$0xff]  ;;  %v10974_v10 = vcombine.low %v143_v61, %v147_v62 }
  0x20   :  { %v10973_v2 = vcombine.high %v142_v58, %v146_v60  ;;  %v150_v4 = vld [vmem:[%s17543_s1 + $0x3c0] sm:$0xff]  ;;  %v155_v7 = vld [vmem:[%s17543_s1 + $0x3e8] sm:$0xff]  ;;  %v10972_v8 = vcombine.low %v142_v58, %v146_v60 }
  0x21   :  { %v154_v5 = vld [vmem:[%s17543_s1 + $0x3e0] sm:$0xff]  ;;  %v163_v16 = vld [vmem:[%s17543_s1 + $0x428] sm:$0xff]  ;;  %v10982_v18 = vcombine.low %v151_v6, %v155_v7 }
  0x22   :  { %7140 = vmatpush1.bf16.msra.mxu0 %v10916_v12  ;;  %7509 = vmatpush1.bf16.msra.mxu1 %v10918_v13  ;;  %v10981_v11 = vcombine.high %v150_v4, %v154_v5  ;;  %v10983_v12 = vcombine.high %v151_v6, %v155_v7  ;;  %v158_v13 = vld [vmem:[%s17543_s1 + $0x400] sm:$0xff]  ;;  %v10980_v17 = vcombine.low %v150_v4, %v154_v5  ;;  %v167_v24 = vld [vmem:[%s17543_s1 + $0x448] sm:$0xff] }
  0x23   :  { %7141 = vmatprep.subr.bf16.mxu0 %v10925_v14  ;;  %7510 = vmatprep.subr.bf16.mxu1 %v10927_v15  ;;  %v162_v14 = vld [vmem:[%s17543_s1 + $0x420] sm:$0xff]  ;;  %v159_v15 = vld [vmem:[%s17543_s1 + $0x408] sm:$0xff] }
  0x24   :  { %v10989_v19 = vcombine.high %v158_v13, %v162_v14  ;;  %v171_v25 = vld [vmem:[%s17543_s1 + $0x468] sm:$0xff]  ;;  %v10988_v26 = vcombine.low %v158_v13, %v162_v14  ;;  %v10990_v27 = vcombine.low %v159_v15, %v163_v16 }
  0x25   :  { %v175_v32 = vld [vmem:[%s17543_s1 + $0x488] sm:$0xff]  ;;  %v10998_v35 = vcombine.low %v167_v24, %v171_v25 }
  0x26   :  { %7142 = vmatpush1.bf16.msra.mxu0 %v10924_v20  ;;  %7511 = vmatpush1.bf16.msra.mxu1 %v10926_v21  ;;  %v10991_v20 = vcombine.high %v159_v15, %v163_v16  ;;  %v166_v21 = vld [vmem:[%s17543_s1 + $0x440] sm:$0xff]  ;;  %v179_v33 = vld [vmem:[%s17543_s1 + $0x4a8] sm:$0xff] }
  0x27   :  { %7143 = vmatprep.subr.bf16.mxu0 %v10933_v22  ;;  %7512 = vmatprep.subr.bf16.mxu1 %v10935_v23  ;;  %v170_v22 = vld [vmem:[%s17543_s1 + $0x460] sm:$0xff]  ;;  %v13203_v23 = vrot.slane %v13072_v63, %v13051_v53  ;;  %v183_v40 = vld [vmem:[%s17543_s1 + $0x4c8] sm:$0xff]  ;;  %v11006_v44 = vcombine.low %v175_v32, %v179_v33 }
  0x28   :  { %v174_v63 = vld [vmem:[%s17543_s1 + $0x480] sm:$0xff]  ;;  %v10996_v34 = vcombine.low %v166_v21, %v170_v22  ;;  %v187_v41 = vld [vmem:[%s17543_s1 + $0x4e8] sm:$0xff] }
  0x29   :  { %v191_v49 = vld [vmem:[%s17543_s1 + $0x508] sm:$0xff]  ;;  %v11014_v52 = vcombine.low %v183_v40, %v187_v41 }
  0x2a   :  { %7144 = vmatpush1.bf16.msra.mxu0 %v10932_v28  ;;  %7513 = vmatpush1.bf16.msra.mxu1 %v10934_v29  ;;  %v10997_v28 = vcombine.high %v166_v21, %v170_v22  ;;  %v10999_v29 = vcombine.high %v167_v24, %v171_v25  ;;  %v195_v50 = vld [vmem:[%s17543_s1 + $0x528] sm:$0xff] }
  0x2b   :  { %7145 = vmatprep.subr.bf16.mxu0 %v10941_v30  ;;  %7514 = vmatprep.subr.bf16.mxu1 %v10943_v31  ;;  %v178_v30 = vld [vmem:[%s17543_s1 + $0x4a0] sm:$0xff]  ;;  %v13219_v31 = vcombine.high %v13089_v9, %v13089_v9  ;;  %v199_v58 = vld [vmem:[%s17543_s1 + $0x548] sm:$0xff]  ;;  %v11022_v62 = vcombine.low %v191_v49, %v195_v50 }
  0x2c   :  { %v11004_v42 = vcombine.low %v174_v63, %v178_v30  ;;  %v203_v60 = vld [vmem:[%s17543_s1 + $0x568] sm:$0xff] }
  0x2d   :  { %v207_v4 = vld [vmem:[%s17543_s1 + $0x588] sm:$0xff]  ;;  %v11030_v7 = vcombine.low %v199_v58, %v203_v60 }
  0x2e   :  { %7146 = vmatpush1.bf16.msra.mxu0 %v10940_v36  ;;  %7515 = vmatpush1.bf16.msra.mxu1 %v10942_v37  ;;  %v11005_v36 = vcombine.high %v174_v63, %v178_v30  ;;  %v11007_v37 = vcombine.high %v175_v32, %v179_v33  ;;  %v211_v5 = vld [vmem:[%s17543_s1 + $0x5a8] sm:$0xff] }
  0x2f   :  { %7147 = vmatprep.subr.bf16.mxu0 %v10949_v38  ;;  %7516 = vmatprep.subr.bf16.mxu1 %v10951_v39  ;;  %v182_v38 = vld [vmem:[%s17543_s1 + $0x4c0] sm:$0xff]  ;;  %v215_v13 = vld [vmem:[%s17543_s1 + $0x5c8] sm:$0xff]  ;;  %v11038_v16 = vcombine.low %v207_v4, %v211_v5 }
  0x30   :  { %v186_v39 = vld [vmem:[%s17543_s1 + $0x4e0] sm:$0xff]  ;;  %v219_v14 = vld [vmem:[%s17543_s1 + $0x5e8] sm:$0xff] }
  0x31   :  { %v11012_v51 = vcombine.low %v182_v38, %v186_v39  ;;  %v223_v21 = vld [vmem:[%s17543_s1 + $0x608] sm:$0xff]  ;;  %v11046_v25 = vcombine.low %v215_v13, %v219_v14 }
  0x32   :  { %7148 = vmatpush1.bf16.msra.mxu0 %v10948_v45  ;;  %7517 = vmatpush1.bf16.msra.mxu1 %v10950_v46  ;;  %v11013_v45 = vcombine.high %v182_v38, %v186_v39  ;;  %v11015_v46 = vcombine.high %v183_v40, %v187_v41  ;;  %v227_v22 = vld [vmem:[%s17543_s1 + $0x628] sm:$0xff] }
  0x33   :  { %7149 = vmatprep.subr.bf16.mxu0 %v10957_v47  ;;  %7518 = vmatprep.subr.bf16.mxu1 %v10959_v48  ;;  %v190_v47 = vld [vmem:[%s17543_s1 + $0x500] sm:$0xff]  ;;  %v231_v63 = vld [vmem:[%s17543_s1 + $0x648] sm:$0xff]  ;;  %v11054_v33 = vcombine.low %v223_v21, %v227_v22 }
  0x34   :  { %v194_v48 = vld [vmem:[%s17543_s1 + $0x520] sm:$0xff]  ;;  %v235_v30 = vld [vmem:[%s17543_s1 + $0x668] sm:$0xff] }
  0x35   :  { %v11020_v61 = vcombine.low %v190_v47, %v194_v48  ;;  %v239_v38 = vld [vmem:[%s17543_s1 + $0x688] sm:$0xff]  ;;  %v11062_v41 = vcombine.low %v231_v63, %v235_v30 }
  0x36   :  { %7150 = vmatpush1.bf16.msra.mxu0 %v10956_v54  ;;  %7519 = vmatpush1.bf16.msra.mxu1 %v10958_v55  ;;  %v11021_v54 = vcombine.high %v190_v47, %v194_v48  ;;  %v11023_v55 = vcombine.high %v191_v49, %v195_v50  ;;  %v243_v39 = vld [vmem:[%s17543_s1 + $0x6a8] sm:$0xff] }
  0x37   :  { %7151 = vmatprep.subr.bf16.mxu0 %v10965_v56  ;;  %7520 = vmatprep.subr.bf16.mxu1 %v10967_v57  ;;  %v198_v56 = vld [vmem:[%s17543_s1 + $0x540] sm:$0xff]  ;;  %v247_v47 = vld [vmem:[%s17543_s1 + $0x6c8] sm:$0xff]  ;;  %v11070_v50 = vcombine.low %v239_v38, %v243_v39 }
  0x38   :  { %v202_v57 = vld [vmem:[%s17543_s1 + $0x560] sm:$0xff]  ;;  %v251_v48 = vld [vmem:[%s17543_s1 + $0x6e8] sm:$0xff] }
  0x39   :  { %v11028_v6 = vcombine.low %v198_v56, %v202_v57 }
  0x3a   :  { %7152 = vmatpush1.bf16.msra.mxu0 %v10964_v0  ;;  %7521 = vmatpush1.bf16.msra.mxu1 %v10966_v1  ;;  %v11029_v0 = vcombine.high %v198_v56, %v202_v57  ;;  %v11031_v1 = vcombine.high %v199_v58, %v203_v60  ;;  %v255_v56 = vld [vmem:[%s17543_s1 + $0x708] sm:$0xff]  ;;  %v11078_v60 = vcombine.low %v247_v47, %v251_v48 }
  0x3b   :  { %7153 = vmatprep.subr.bf16.mxu0 %v10973_v2  ;;  %7522 = vmatprep.subr.bf16.mxu1 %v10975_v3  ;;  %v206_v2 = vld [vmem:[%s17543_s1 + $0x580] sm:$0xff]  ;;  %v259_v57 = vld [vmem:[%s17543_s1 + $0x728] sm:$0xff] }
  0x3c   :  { %v210_v3 = vld [vmem:[%s17543_s1 + $0x5a0] sm:$0xff] }
  0x3d   :  { %v11036_v15 = vcombine.low %v206_v2, %v210_v3 }
  0x3e   :  { %7154 = vmatpush1.bf16.msra.mxu0 %v10972_v8  ;;  %7523 = vmatpush1.bf16.msra.mxu1 %v10974_v10  ;;  %v11037_v8 = vcombine.high %v206_v2, %v210_v3  ;;  %v11039_v10 = vcombine.high %v207_v4, %v211_v5  ;;  %v263_v2 = vld [vmem:[%s17543_s1 + $0x748] sm:$0xff]  ;;  %v11086_v5 = vcombine.low %v255_v56, %v259_v57 }
  0x3f   :  { %7155 = vmatprep.subr.bf16.mxu0 %v10981_v11  ;;  %7524 = vmatprep.subr.bf16.mxu1 %v10983_v12  ;;  %v214_v11 = vld [vmem:[%s17543_s1 + $0x5c0] sm:$0xff]  ;;  %v267_v3 = vld [vmem:[%s17543_s1 + $0x768] sm:$0xff] }
  0x40   :  { %v218_v12 = vld [vmem:[%s17543_s1 + $0x5e0] sm:$0xff] }
  0x41   :  { %v11044_v24 = vcombine.low %v214_v11, %v218_v12 }
  0x42   :  { %7156 = vmatpush1.bf16.msra.mxu0 %v10980_v17  ;;  %7525 = vmatpush1.bf16.msra.mxu1 %v10982_v18  ;;  %v11045_v17 = vcombine.high %v214_v11, %v218_v12  ;;  %v11047_v18 = vcombine.high %v215_v13, %v219_v14  ;;  %v271_v11 = vld [vmem:[%s17543_s1 + $0x788] sm:$0xff]  ;;  %v11094_v14 = vcombine.low %v263_v2, %v267_v3 }
  0x43   :  { %7166 = vmatprep.subr.bf16.mxu0 %v10989_v19  ;;  %7535 = vmatprep.subr.bf16.mxu1 %v10991_v20  ;;  %v222_v19 = vld [vmem:[%s17543_s1 + $0x600] sm:$0xff]  ;;  %v275_v12 = vld [vmem:[%s17543_s1 + $0x7a8] sm:$0xff] }
  0x44   :  { %v226_v20 = vld [vmem:[%s17543_s1 + $0x620] sm:$0xff] }
  0x45   :  { %7158 = vmatmul.mubr.bf16.vlgmr.msra.gmra.mrb[0].mxu0 %v13203_v23  ;;  %7527 = vmatmul.mubr.bf16.vlgmr.msra.gmra.mrb[0].mxu1 %v13203_v23  ;;  %v11052_v32 = vcombine.low %v222_v19, %v226_v20 }
  0x46   :  { %7167 = vmatpush1.bf16.msra.mxu0 %v10988_v26  ;;  %7536 = vmatpush1.bf16.msra.mxu1 %v10990_v27  ;;  %v11053_v26 = vcombine.high %v222_v19, %v226_v20  ;;  %v11055_v27 = vcombine.high %v223_v21, %v227_v22  ;;  %v1227_v19 = vcombine.high %v13062_v59, %v13062_v59  ;;  %v279_v20 = vld [vmem:[%s17543_s1 + $0x7c8] sm:$0xff]  ;;  %v286_v59 = vld [vmem:[%s17543_s1 + $0x800] sm:$0xff] }
  0x47   :  { %7168 = vmatprep.subr.bf16.mxu0 %v10997_v28  ;;  %7537 = vmatprep.subr.bf16.mxu1 %v10999_v29  ;;  %v230_v28 = vld [vmem:[%s17543_s1 + $0x640] sm:$0xff]  ;;  %v283_v21 = vld [vmem:[%s17543_s1 + $0x7e8] sm:$0xff] }
  0x48   :  { %7198 = vmatprep.mubr.bf16.mxu0 %v13219_v31  ;;  %7567 = vmatprep.mubr.bf16.mxu1 %v13219_v31  ;;  %v234_v29 = vld [vmem:[%s17543_s1 + $0x660] sm:$0xff] }
  0x49   :  { %v11060_v40 = vcombine.low %v230_v28, %v234_v29 }
  0x4a   :  { %7169 = vmatpush1.bf16.msra.mxu0 %v10996_v34  ;;  %7538 = vmatpush1.bf16.msra.mxu1 %v10998_v35  ;;  %v11061_v34 = vcombine.high %v230_v28, %v234_v29  ;;  %v11063_v35 = vcombine.high %v231_v63, %v235_v30  ;;  %v13396_v28 = vrot.slane %v1227_v19, %v13051_v53  ;;  %v287_v29 = vld [vmem:[%s17543_s1 + $0x808] sm:$0xff]  ;;  %v334_v19 = vld [vmem:[%s17543_s1 + $0x980] sm:$0xff] }
  0x4b   :  { %7170 = vmatprep.subr.bf16.mxu0 %v11005_v36  ;;  %7539 = vmatprep.subr.bf16.mxu1 %v11007_v37  ;;  %v238_v36 = vld [vmem:[%s17543_s1 + $0x680] sm:$0xff]  ;;  %v291_v63 = vld [vmem:[%s17543_s1 + $0x828] sm:$0xff] }
  0x4c   :  { %v242_v37 = vld [vmem:[%s17543_s1 + $0x6a0] sm:$0xff] }
  0x4d   :  { %v11068_v49 = vcombine.low %v238_v36, %v242_v37 }
  0x4e   :  { %7171 = vmatpush1.bf16.msra.mxu0 %v11004_v42  ;;  %7540 = vmatpush1.bf16.msra.mxu1 %v11006_v44  ;;  %v11069_v42 = vcombine.high %v238_v36, %v242_v37  ;;  %v11071_v44 = vcombine.high %v239_v38, %v243_v39  ;;  %v298_v36 = vld [vmem:[%s17543_s1 + $0x860] sm:$0xff]  ;;  %v1243_v37 = vcombine.high %v13396_v28, %v13396_v28  ;;  %v295_v39 = vld [vmem:[%s17543_s1 + $0x848] sm:$0xff] }
  0x4f   :  { %7172 = vmatprep.subr.bf16.mxu0 %v11013_v45  ;;  %7541 = vmatprep.subr.bf16.mxu1 %v11015_v46  ;;  %v246_v45 = vld [vmem:[%s17543_s1 + $0x6c0] sm:$0xff]  ;;  %v13414_v38 = vcombine.high %v13203_v23, %v13203_v23 }
  0x50   :  { %v250_v46 = vld [vmem:[%s17543_s1 + $0x6e0] sm:$0xff] }
  0x51   :  { %v11076_v58 = vcombine.low %v246_v45, %v250_v46 }
  0x52   :  { %7173 = vmatpush1.bf16.msra.mxu0 %v11012_v51  ;;  %7542 = vmatpush1.bf16.msra.mxu1 %v11014_v52  ;;  %v11077_v51 = vcombine.high %v246_v45, %v250_v46  ;;  %v11079_v52 = vcombine.high %v247_v47, %v251_v48  ;;  %v302_v46 = vld [vmem:[%s17543_s1 + $0x880] sm:$0xff]  ;;  %v13429_v48 = vrot.slane %v1243_v37, %v13051_v53 }
  0x53   :  { %7174 = vmatprep.subr.bf16.mxu0 %v11021_v54  ;;  %7543 = vmatprep.subr.bf16.mxu1 %v11023_v55  ;;  %v254_v54 = vld [vmem:[%s17543_s1 + $0x700] sm:$0xff] }
  0x54   :  { %v258_v55 = vld [vmem:[%s17543_s1 + $0x720] sm:$0xff] }
  0x55   :  { %v11084_v4 = vcombine.low %v254_v54, %v258_v55  ;;  %v306_v47 = vld [vmem:[%s17543_s1 + $0x8a0] sm:$0xff] }
  0x56   :  { %7175 = vmatpush1.bf16.msra.mxu0 %v11020_v61  ;;  %7544 = vmatpush1.bf16.msra.mxu1 %v11022_v62  ;;  %v11085_v61 = vcombine.high %v254_v54, %v258_v55  ;;  %v11087_v62 = vcombine.high %v255_v56, %v259_v57  ;;  %v11133_v54 = vcombine.high %v302_v46, %v306_v47  ;;  %v310_v56 = vld [vmem:[%s17543_s1 + $0x8c0] sm:$0xff] }
  0x57   :  { %7176 = vmatprep.subr.bf16.mxu0 %v11029_v0  ;;  %7545 = vmatprep.subr.bf16.mxu1 %v11031_v1  ;;  %v262_v0 = vld [vmem:[%s17543_s1 + $0x740] sm:$0xff] }
  0x58   :  { %v266_v1 = vld [vmem:[%s17543_s1 + $0x760] sm:$0xff] }
  0x59   :  { %v11092_v13 = vcombine.low %v262_v0, %v266_v1  ;;  %v314_v57 = vld [vmem:[%s17543_s1 + $0x8e0] sm:$0xff] }
  0x5a   :  { %7177 = vmatpush1.bf16.msra.mxu0 %v11028_v6  ;;  %7546 = vmatpush1.bf16.msra.mxu1 %v11030_v7  ;;  %v11093_v6 = vcombine.high %v262_v0, %v266_v1  ;;  %v11095_v7 = vcombine.high %v263_v2, %v267_v3  ;;  %v11141_v0 = vcombine.high %v310_v56, %v314_v57  ;;  %v318_v2 = vld [vmem:[%s17543_s1 + $0x900] sm:$0xff] }
  0x5b   :  { %7178 = vmatprep.subr.bf16.mxu0 %v11037_v8  ;;  %7547 = vmatprep.subr.bf16.mxu1 %v11039_v10  ;;  %v270_v8 = vld [vmem:[%s17543_s1 + $0x780] sm:$0xff] }
  0x5c   :  { %v274_v10 = vld [vmem:[%s17543_s1 + $0x7a0] sm:$0xff] }
  0x5d   :  { %v11100_v22 = vcombine.low %v270_v8, %v274_v10  ;;  %v322_v3 = vld [vmem:[%s17543_s1 + $0x920] sm:$0xff] }
  0x5e   :  { %7179 = vmatpush1.bf16.msra.mxu0 %v11036_v15  ;;  %7548 = vmatpush1.bf16.msra.mxu1 %v11038_v16  ;;  %v11101_v15 = vcombine.high %v270_v8, %v274_v10  ;;  %v11103_v16 = vcombine.high %v271_v11, %v275_v12  ;;  %v11149_v8 = vcombine.high %v318_v2, %v322_v3  ;;  %v354_v37 = vld [vmem:[%s17543_s1 + $0xa20] sm:$0xff] }
  0x5f   :  { %7180 = vmatprep.subr.bf16.mxu0 %v11045_v17  ;;  %7549 = vmatprep.subr.bf16.mxu1 %v11047_v18  ;;  %v278_v17 = vld [vmem:[%s17543_s1 + $0x7c0] sm:$0xff] }
  0x60   :  { %v282_v18 = vld [vmem:[%s17543_s1 + $0x7e0] sm:$0xff] }
  0x61   :  { %v11108_v30 = vcombine.low %v278_v17, %v282_v18 }
  0x62   :  { %7181 = vmatpush1.bf16.msra.mxu0 %v11044_v24  ;;  %7550 = vmatpush1.bf16.msra.mxu1 %v11046_v25  ;;  %v11102_v24 = vcombine.low %v271_v11, %v275_v12  ;;  %v11109_v25 = vcombine.high %v278_v17, %v282_v18  ;;  %v326_v11 = vld [vmem:[%s17543_s1 + $0x940] sm:$0xff] }
  0x63   :  { %7182 = vmatprep.subr.bf16.mxu0 %v11053_v26  ;;  %7551 = vmatprep.subr.bf16.mxu1 %v11055_v27  ;;  %v11111_v26 = vcombine.high %v279_v20, %v283_v21  ;;  %v290_v27 = vld [vmem:[%s17543_s1 + $0x820] sm:$0xff] }
  0x64   :  { %v330_v12 = vld [vmem:[%s17543_s1 + $0x960] sm:$0xff] }
  0x65   :  { %v11157_v17 = vcombine.high %v326_v11, %v330_v12 }
  0x66   :  { %7183 = vmatpush1.bf16.msra.mxu0 %v11052_v32  ;;  %7552 = vmatpush1.bf16.msra.mxu1 %v11054_v33  ;;  %v11110_v32 = vcombine.low %v279_v20, %v283_v21  ;;  %v11117_v33 = vcombine.high %v286_v59, %v290_v27  ;;  %v338_v20 = vld [vmem:[%s17543_s1 + $0x9a0] sm:$0xff]  ;;  %v335_v21 = vld [vmem:[%s17543_s1 + $0x988] sm:$0xff] }
  0x67   :  { %7184 = vmatprep.subr.bf16.mxu0 %v11061_v34  ;;  %7553 = vmatprep.subr.bf16.mxu1 %v11063_v35  ;;  %v11119_v34 = vcombine.high %v287_v29, %v291_v63  ;;  %v294_v35 = vld [vmem:[%s17543_s1 + $0x840] sm:$0xff] }
  0x6a   :  { %7185 = vmatpush1.bf16.msra.mxu0 %v11060_v40  ;;  %7554 = vmatpush1.bf16.msra.mxu1 %v11062_v41  ;;  %v299_v40 = vld [vmem:[%s17543_s1 + $0x868] sm:$0xff]  ;;  %v11116_v41 = vcombine.low %v286_v59, %v290_v27  ;;  %v342_v27 = vld [vmem:[%s17543_s1 + $0x9c0] sm:$0xff] }
  0x6b   :  { %7186 = vmatprep.subr.bf16.mxu0 %v11069_v42  ;;  %7555 = vmatprep.subr.bf16.mxu1 %v11071_v44  ;;  %v11118_v42 = vcombine.low %v287_v29, %v291_v63  ;;  %v11125_v44 = vcombine.high %v294_v35, %v298_v36  ;;  %v11127_v45 = vcombine.high %v295_v39, %v299_v40  ;;  %v346_v29 = vld [vmem:[%s17543_s1 + $0x9e0] sm:$0xff]  ;;  %v343_v63 = vld [vmem:[%s17543_s1 + $0x9c8] sm:$0xff] }
  0x6e   :  { %7187 = vmatpush1.bf16.msra.mxu0 %v11068_v49  ;;  %7556 = vmatpush1.bf16.msra.mxu1 %v11070_v50  ;;  %v303_v49 = vld [vmem:[%s17543_s1 + $0x888] sm:$0xff] }
  0x6f   :  { %7188 = vmatprep.subr.bf16.mxu0 %v11077_v51  ;;  %7557 = vmatprep.subr.bf16.mxu1 %v11079_v52  ;;  %v307_v50 = vld [vmem:[%s17543_s1 + $0x8a8] sm:$0xff]  ;;  %v11124_v51 = vcombine.low %v294_v35, %v298_v36  ;;  %v11126_v52 = vcombine.low %v295_v39, %v299_v40  ;;  %v350_v36 = vld [vmem:[%s17543_s1 + $0xa00] sm:$0xff] }
  0x70   :  { %v11135_v55 = vcombine.high %v303_v49, %v307_v50  ;;  %v351_v39 = vld [vmem:[%s17543_s1 + $0xa08] sm:$0xff] }
  0x71   :  { %v355_v40 = vld [vmem:[%s17543_s1 + $0xa28] sm:$0xff] }
  0x72   :  { %7189 = vmatpush1.bf16.msra.mxu0 %v11076_v58  ;;  %7558 = vmatpush1.bf16.msra.mxu1 %v11078_v60  ;;  %v311_v58 = vld [vmem:[%s17543_s1 + $0x8c8] sm:$0xff] }
  0x73   :  { %7190 = vmatprep.subr.bf16.mxu0 %v11085_v61  ;;  %7559 = vmatprep.subr.bf16.mxu1 %v11087_v62  ;;  %v315_v60 = vld [vmem:[%s17543_s1 + $0x8e8] sm:$0xff]  ;;  %v11132_v61 = vcombine.low %v302_v46, %v306_v47  ;;  %v11134_v62 = vcombine.low %v303_v49, %v307_v50  ;;  %v358_v46 = vld [vmem:[%s17543_s1 + $0xa40] sm:$0xff] }
  0x74   :  { %v11143_v1 = vcombine.high %v311_v58, %v315_v60  ;;  %v362_v47 = vld [vmem:[%s17543_s1 + $0xa60] sm:$0xff]  ;;  %v359_v49 = vld [vmem:[%s17543_s1 + $0xa48] sm:$0xff] }
  0x75   :  { %v363_v50 = vld [vmem:[%s17543_s1 + $0xa68] sm:$0xff] }
  0x76   :  { %7191 = vmatpush1.bf16.msra.mxu0 %v11084_v4  ;;  %7560 = vmatpush1.bf16.msra.mxu1 %v11086_v5  ;;  %v319_v4 = vld [vmem:[%s17543_s1 + $0x908] sm:$0xff] }
  0x77   :  { %7192 = vmatprep.subr.bf16.mxu0 %v11093_v6  ;;  %7561 = vmatprep.subr.bf16.mxu1 %v11095_v7  ;;  %v323_v5 = vld [vmem:[%s17543_s1 + $0x928] sm:$0xff]  ;;  %v11140_v6 = vcombine.low %v310_v56, %v314_v57  ;;  %v11142_v7 = vcombine.low %v311_v58, %v315_v60  ;;  %v366_v56 = vld [vmem:[%s17543_s1 + $0xa80] sm:$0xff] }
  0x78   :  { %v11151_v10 = vcombine.high %v319_v4, %v323_v5  ;;  %v370_v57 = vld [vmem:[%s17543_s1 + $0xaa0] sm:$0xff]  ;;  %v367_v58 = vld [vmem:[%s17543_s1 + $0xa88] sm:$0xff] }
  0x79   :  { %v371_v60 = vld [vmem:[%s17543_s1 + $0xaa8] sm:$0xff] }
  0x7a   :  { %7193 = vmatpush1.bf16.msra.mxu0 %v11092_v13  ;;  %7562 = vmatpush1.bf16.msra.mxu1 %v11094_v14  ;;  %v327_v13 = vld [vmem:[%s17543_s1 + $0x948] sm:$0xff] }
  0x7b   :  { %7194 = vmatprep.subr.bf16.mxu0 %v11101_v15  ;;  %7563 = vmatprep.subr.bf16.mxu1 %v11103_v16  ;;  %v331_v14 = vld [vmem:[%s17543_s1 + $0x968] sm:$0xff]  ;;  %v11148_v15 = vcombine.low %v318_v2, %v322_v3  ;;  %v11150_v16 = vcombine.low %v319_v4, %v323_v5  ;;  %v374_v2 = vld [vmem:[%s17543_s1 + $0xac0] sm:$0xff] }
  0x7c   :  { %v11159_v18 = vcombine.high %v327_v13, %v331_v14  ;;  %v378_v3 = vld [vmem:[%s17543_s1 + $0xae0] sm:$0xff]  ;;  %v375_v4 = vld [vmem:[%s17543_s1 + $0xac8] sm:$0xff] }
  0x7d   :  { %v379_v5 = vld [vmem:[%s17543_s1 + $0xae8] sm:$0xff] }
  0x7e   :  { %7195 = vmatpush1.bf16.msra.mxu0 %v11100_v22  ;;  %7564 = vmatpush1.bf16.msra.mxu1 %v11102_v24  ;;  %v339_v22 = vld [vmem:[%s17543_s1 + $0x9a8] sm:$0xff]  ;;  %v11156_v24 = vcombine.low %v326_v11, %v330_v12  ;;  %v382_v11 = vld [vmem:[%s17543_s1 + $0xb00] sm:$0xff] }
  0x7f   :  { %7196 = vmatprep.subr.bf16.mxu0 %v11109_v25  ;;  %7565 = vmatprep.subr.bf16.mxu1 %v11111_v26  ;;  %v11158_v25 = vcombine.low %v327_v13, %v331_v14  ;;  %v11165_v26 = vcombine.high %v334_v19, %v338_v20  ;;  %v11167_v59 = vcombine.high %v335_v21, %v339_v22  ;;  %v386_v12 = vld [vmem:[%s17543_s1 + $0xb20] sm:$0xff]  ;;  %v383_v13 = vld [vmem:[%s17543_s1 + $0xb08] sm:$0xff] }
  0x80   :  { %v387_v14 = vld [vmem:[%s17543_s1 + $0xb28] sm:$0xff] }
  0x82   :  { %7197 = vmatpush1.bf16.msra.mxu0 %v11108_v30  ;;  %7566 = vmatpush1.bf16.msra.mxu1 %v11110_v32  ;;  %v347_v30 = vld [vmem:[%s17543_s1 + $0x9e8] sm:$0xff]  ;;  %v11164_v32 = vcombine.low %v334_v19, %v338_v20  ;;  %v390_v19 = vld [vmem:[%s17543_s1 + $0xb40] sm:$0xff] }
  0x83   :  { %7207 = vmatprep.subr.bf16.mxu0 %v11117_v33  ;;  %7576 = vmatprep.subr.bf16.mxu1 %v11119_v34  ;;  %v11166_v33 = vcombine.low %v335_v21, %v339_v22  ;;  %v11173_v34 = vcombine.high %v342_v27, %v346_v29  ;;  %v11175_v35 = vcombine.high %v343_v63, %v347_v30  ;;  %v394_v20 = vld [vmem:[%s17543_s1 + $0xb60] sm:$0xff]  ;;  %v391_v21 = vld [vmem:[%s17543_s1 + $0xb48] sm:$0xff] }
  0x84   :  { %v395_v22 = vld [vmem:[%s17543_s1 + $0xb68] sm:$0xff] }
  0x85   :  { %7199 = vmatmul.mubr.bf16.vlgmr.msra.gmra.mrb[0].mxu0 %v13414_v38  ;;  %7568 = vmatmul.mubr.bf16.vlgmr.msra.gmra.mrb[0].mxu1 %v13414_v38 }
  0x86   :  { %7208 = vmatpush1.bf16.msra.mxu0 %v11116_v41  ;;  %7577 = vmatpush1.bf16.msra.mxu1 %v11118_v42  ;;  %v11172_v41 = vcombine.low %v342_v27, %v346_v29  ;;  %v11174_v42 = vcombine.low %v343_v63, %v347_v30  ;;  %v398_v27 = vld [vmem:[%s17543_s1 + $0xb80] sm:$0xff]  ;;  %v399_v63 = vld [vmem:[%s17543_s1 + $0xb88] sm:$0xff] }
  0x87   :  { %7209 = vmatprep.subr.bf16.mxu0 %v11125_v44  ;;  %7578 = vmatprep.subr.bf16.mxu1 %v11127_v45  ;;  %v11181_v44 = vcombine.high %v350_v36, %v354_v37  ;;  %v11183_v45 = vcombine.high %v351_v39, %v355_v40  ;;  %v402_v29 = vld [vmem:[%s17543_s1 + $0xba0] sm:$0xff]  ;;  %v403_v30 = vld [vmem:[%s17543_s1 + $0xba8] sm:$0xff] }
  0x88   :  { %7239 = vmatprep.mubr.bf16.mxu0 %v13429_v48  ;;  %7608 = vmatprep.mubr.bf16.mxu1 %v13429_v48 }
  0x8a   :  { %7210 = vmatpush1.bf16.msra.mxu0 %v11124_v51  ;;  %7579 = vmatpush1.bf16.msra.mxu1 %v11126_v52  ;;  %v11180_v51 = vcombine.low %v350_v36, %v354_v37  ;;  %v11182_v52 = vcombine.low %v351_v39, %v355_v40  ;;  %v406_v36 = vld [vmem:[%s17543_s1 + $0xbc0] sm:$0xff]  ;;  %v407_v39 = vld [vmem:[%s17543_s1 + $0xbc8] sm:$0xff] }
  0x8b   :  { %7211 = vmatprep.subr.bf16.mxu0 %v11133_v54  ;;  %7580 = vmatprep.subr.bf16.mxu1 %v11135_v55  ;;  %v11189_v54 = vcombine.high %v358_v46, %v362_v47  ;;  %v11191_v55 = vcombine.high %v359_v49, %v363_v50  ;;  %v410_v37 = vld [vmem:[%s17543_s1 + $0xbe0] sm:$0xff]  ;;  %v411_v40 = vld [vmem:[%s17543_s1 + $0xbe8] sm:$0xff] }
  0x8e   :  { %7212 = vmatpush1.bf16.msra.mxu0 %v11132_v61  ;;  %7581 = vmatpush1.bf16.msra.mxu1 %v11134_v62  ;;  %v11188_v61 = vcombine.low %v358_v46, %v362_v47  ;;  %v11190_v62 = vcombine.low %v359_v49, %v363_v50  ;;  %v414_v46 = vld [vmem:[%s17543_s1 + $0xc00] sm:$0xff]  ;;  %v415_v49 = vld [vmem:[%s17543_s1 + $0xc08] sm:$0xff] }
  0x8f   :  { %7213 = vmatprep.subr.bf16.mxu0 %v11141_v0  ;;  %7582 = vmatprep.subr.bf16.mxu1 %v11143_v1  ;;  %v11197_v0 = vcombine.high %v366_v56, %v370_v57  ;;  %v11199_v1 = vcombine.high %v367_v58, %v371_v60  ;;  %v418_v47 = vld [vmem:[%s17543_s1 + $0xc20] sm:$0xff]  ;;  %v419_v50 = vld [vmem:[%s17543_s1 + $0xc28] sm:$0xff] }
  0x92   :  { %7214 = vmatpush1.bf16.msra.mxu0 %v11140_v6  ;;  %7583 = vmatpush1.bf16.msra.mxu1 %v11142_v7  ;;  %v11196_v6 = vcombine.low %v366_v56, %v370_v57  ;;  %v11198_v7 = vcombine.low %v367_v58, %v371_v60  ;;  %v422_v56 = vld [vmem:[%s17543_s1 + $0xc40] sm:$0xff]  ;;  %v13617_v58 = vrot.slane %v13396_v28, %v13051_v53  ;;  %v423_v60 = vld [vmem:[%s17543_s1 + $0xc48] sm:$0xff] }
  0x93   :  { %7215 = vmatprep.subr.bf16.mxu0 %v11149_v8  ;;  %7584 = vmatprep.subr.bf16.mxu1 %v11151_v10  ;;  %v11205_v8 = vcombine.high %v374_v2, %v378_v3  ;;  %v11207_v10 = vcombine.high %v375_v4, %v379_v5  ;;  %v426_v57 = vld [vmem:[%s17543_s1 + $0xc60] sm:$0xff] }
  0x94   :  { %v430_v28 = vld [vmem:[%s17543_s1 + $0xc80] sm:$0xff] }
  0x96   :  { %7216 = vmatpush1.bf16.msra.mxu0 %v11148_v15  ;;  %7585 = vmatpush1.bf16.msra.mxu1 %v11150_v16  ;;  %v11204_v15 = vcombine.low %v374_v2, %v378_v3  ;;  %v11206_v16 = vcombine.low %v375_v4, %v379_v5  ;;  %v434_v3 = vld [vmem:[%s17543_s1 + $0xca0] sm:$0xff]  ;;  %v13633_v4 = vcombine.high %v13429_v48, %v13429_v48  ;;  %v431_v5 = vld [vmem:[%s17543_s1 + $0xc88] sm:$0xff] }
  0x97   :  { %7217 = vmatprep.subr.bf16.mxu0 %v11157_v17  ;;  %7586 = vmatprep.subr.bf16.mxu1 %v11159_v18  ;;  %v11213_v17 = vcombine.high %v382_v11, %v386_v12  ;;  %v11215_v18 = vcombine.high %v383_v13, %v387_v14 }
  0x9a   :  { %7218 = vmatpush1.bf16.msra.mxu0 %v11156_v24  ;;  %7587 = vmatpush1.bf16.msra.mxu1 %v11158_v25  ;;  %v11212_v24 = vcombine.low %v382_v11, %v386_v12  ;;  %v11214_v25 = vcombine.low %v383_v13, %v387_v14  ;;  %v438_v12 = vld [vmem:[%s17543_s1 + $0xcc0] sm:$0xff]  ;;  %v439_v14 = vld [vmem:[%s17543_s1 + $0xcc8] sm:$0xff] }
  0x9b   :  { %7219 = vmatprep.subr.bf16.mxu0 %v11165_v26  ;;  %7588 = vmatprep.subr.bf16.mxu1 %v11167_v59  ;;  %v11221_v26 = vcombine.high %v390_v19, %v394_v20  ;;  %v11223_v59 = vcombine.high %v391_v21, %v395_v22  ;;  %v442_v13 = vld [vmem:[%s17543_s1 + $0xce0] sm:$0xff] }
  0x9e   :  { %7220 = vmatpush1.bf16.msra.mxu0 %v11164_v32  ;;  %7589 = vmatpush1.bf16.msra.mxu1 %v11166_v33  ;;  %v11220_v32 = vcombine.low %v390_v19, %v394_v20  ;;  %v11222_v33 = vcombine.low %v391_v21, %v395_v22  ;;  %v446_v20 = vld [vmem:[%s17543_s1 + $0xd00] sm:$0xff]  ;;  %v447_v22 = vld [vmem:[%s17543_s1 + $0xd08] sm:$0xff] }
  0x9f   :  { %7221 = vmatprep.subr.bf16.mxu0 %v11173_v34  ;;  %7590 = vmatprep.subr.bf16.mxu1 %v11175_v35  ;;  %v11229_v34 = vcombine.high %v398_v27, %v402_v29  ;;  %v11231_v35 = vcombine.high %v399_v63, %v403_v30  ;;  %v450_v21 = vld [vmem:[%s17543_s1 + $0xd20] sm:$0xff] }
  0xa2   :  { %7222 = vmatpush1.bf16.msra.mxu0 %v11172_v41  ;;  %7591 = vmatpush1.bf16.msra.mxu1 %v11174_v42  ;;  %v11228_v41 = vcombine.low %v398_v27, %v402_v29  ;;  %v11230_v42 = vcombine.low %v399_v63, %v403_v30  ;;  %v454_v29 = vld [vmem:[%s17543_s1 + $0xd40] sm:$0xff]  ;;  %v455_v30 = vld [vmem:[%s17543_s1 + $0xd48] sm:$0xff] }
  0xa3   :  { %7223 = vmatprep.subr.bf16.mxu0 %v11181_v44  ;;  %7592 = vmatprep.subr.bf16.mxu1 %v11183_v45  ;;  %v11237_v44 = vcombine.high %v406_v36, %v410_v37  ;;  %v11239_v45 = vcombine.high %v407_v39, %v411_v40  ;;  %v458_v63 = vld [vmem:[%s17543_s1 + $0xd60] sm:$0xff] }
  0xa6   :  { %7224 = vmatpush1.bf16.msra.mxu0 %v11180_v51  ;;  %7593 = vmatpush1.bf16.msra.mxu1 %v11182_v52  ;;  %v11236_v51 = vcombine.low %v406_v36, %v410_v37  ;;  %v11238_v52 = vcombine.low %v407_v39, %v411_v40  ;;  %v462_v37 = vld [vmem:[%s17543_s1 + $0xd80] sm:$0xff]  ;;  %v463_v40 = vld [vmem:[%s17543_s1 + $0xd88] sm:$0xff] }
  0xa7   :  { %7225 = vmatprep.subr.bf16.mxu0 %v11189_v54  ;;  %7594 = vmatprep.subr.bf16.mxu1 %v11191_v55  ;;  %v11245_v54 = vcombine.high %v414_v46, %v418_v47  ;;  %v11247_v55 = vcombine.high %v415_v49, %v419_v50  ;;  %v466_v39 = vld [vmem:[%s17543_s1 + $0xda0] sm:$0xff] }
  0xaa   :  { %7226 = vmatpush1.bf16.msra.mxu0 %v11188_v61  ;;  %7595 = vmatpush1.bf16.msra.mxu1 %v11190_v62  ;;  %v427_v61 = vld [vmem:[%s17543_s1 + $0xc68] sm:$0xff]  ;;  %v11244_v62 = vcombine.low %v414_v46, %v418_v47  ;;  %v470_v47 = vld [vmem:[%s17543_s1 + $0xdc0] sm:$0xff] }
  0xab   :  { %7227 = vmatprep.subr.bf16.mxu0 %v11197_v0  ;;  %7596 = vmatprep.subr.bf16.mxu1 %v11199_v1  ;;  %v11246_v0 = vcombine.low %v415_v49, %v419_v50  ;;  %v11253_v1 = vcombine.high %v422_v56, %v426_v57  ;;  %v11255_v2 = vcombine.high %v423_v60, %v427_v61  ;;  %v474_v49 = vld [vmem:[%s17543_s1 + $0xde0] sm:$0xff]  ;;  %v471_v50 = vld [vmem:[%s17543_s1 + $0xdc8] sm:$0xff] }
  0xae   :  { %7228 = vmatpush1.bf16.msra.mxu0 %v11196_v6  ;;  %7597 = vmatpush1.bf16.msra.mxu1 %v11198_v7  ;;  %v435_v6 = vld [vmem:[%s17543_s1 + $0xca8] sm:$0xff]  ;;  %v11252_v7 = vcombine.low %v422_v56, %v426_v57  ;;  %v478_v57 = vld [vmem:[%s17543_s1 + $0xe00] sm:$0xff] }
  0xaf   :  { %7229 = vmatprep.subr.bf16.mxu0 %v11205_v8  ;;  %7598 = vmatprep.subr.bf16.mxu1 %v11207_v10  ;;  %v11254_v8 = vcombine.low %v423_v60, %v427_v61  ;;  %v11261_v10 = vcombine.high %v430_v28, %v434_v3  ;;  %v11263_v11 = vcombine.high %v431_v5, %v435_v6  ;;  %v482_v60 = vld [vmem:[%s17543_s1 + $0xe20] sm:$0xff]  ;;  %v479_v61 = vld [vmem:[%s17543_s1 + $0xe08] sm:$0xff] }
  0xb2   :  { %7230 = vmatpush1.bf16.msra.mxu0 %v11204_v15  ;;  %7599 = vmatpush1.bf16.msra.mxu1 %v11206_v16  ;;  %v443_v15 = vld [vmem:[%s17543_s1 + $0xce8] sm:$0xff]  ;;  %v11260_v16 = vcombine.low %v430_v28, %v434_v3  ;;  %v486_v3 = vld [vmem:[%s17543_s1 + $0xe40] sm:$0xff] }
  0xb3   :  { %7231 = vmatprep.subr.bf16.mxu0 %v11213_v17  ;;  %7600 = vmatprep.subr.bf16.mxu1 %v11215_v18  ;;  %v11262_v17 = vcombine.low %v431_v5, %v435_v6  ;;  %v11269_v18 = vcombine.high %v438_v12, %v442_v13  ;;  %v11271_v19 = vcombine.high %v439_v14, %v443_v15  ;;  %v490_v5 = vld [vmem:[%s17543_s1 + $0xe60] sm:$0xff]  ;;  %v487_v6 = vld [vmem:[%s17543_s1 + $0xe48] sm:$0xff] }
  0xb6   :  { %7232 = vmatpush1.bf16.msra.mxu0 %v11212_v24  ;;  %7601 = vmatpush1.bf16.msra.mxu1 %v11214_v25  ;;  %v451_v24 = vld [vmem:[%s17543_s1 + $0xd28] sm:$0xff]  ;;  %v11268_v25 = vcombine.low %v438_v12, %v442_v13  ;;  %v494_v13 = vld [vmem:[%s17543_s1 + $0xe80] sm:$0xff] }
  0xb7   :  { %7233 = vmatprep.subr.bf16.mxu0 %v11221_v26  ;;  %7602 = vmatprep.subr.bf16.mxu1 %v11223_v59  ;;  %v11270_v26 = vcombine.low %v439_v14, %v443_v15  ;;  %v11277_v59 = vcombine.high %v446_v20, %v450_v21  ;;  %v11279_v27 = vcombine.high %v447_v22, %v451_v24  ;;  %v498_v14 = vld [vmem:[%s17543_s1 + $0xea0] sm:$0xff]  ;;  %v495_v15 = vld [vmem:[%s17543_s1 + $0xe88] sm:$0xff] }
  0xba   :  { %7234 = vmatpush1.bf16.msra.mxu0 %v11220_v32  ;;  %7603 = vmatpush1.bf16.msra.mxu1 %v11222_v33  ;;  %v459_v32 = vld [vmem:[%s17543_s1 + $0xd68] sm:$0xff]  ;;  %v11276_v33 = vcombine.low %v446_v20, %v450_v21  ;;  %v502_v21 = vld [vmem:[%s17543_s1 + $0xec0] sm:$0xff] }
  0xbb   :  { %7235 = vmatprep.subr.bf16.mxu0 %v11229_v34  ;;  %7604 = vmatprep.subr.bf16.mxu1 %v11231_v35  ;;  %v11278_v34 = vcombine.low %v447_v22, %v451_v24  ;;  %v11285_v35 = vcombine.high %v454_v29, %v458_v63  ;;  %v11287_v36 = vcombine.high %v455_v30, %v459_v32  ;;  %v506_v22 = vld [vmem:[%s17543_s1 + $0xee0] sm:$0xff]  ;;  %v503_v24 = vld [vmem:[%s17543_s1 + $0xec8] sm:$0xff] }
  0xbe   :  { %7236 = vmatpush1.bf16.msra.mxu0 %v11228_v41  ;;  %7605 = vmatpush1.bf16.msra.mxu1 %v11230_v42  ;;  %v467_v41 = vld [vmem:[%s17543_s1 + $0xda8] sm:$0xff]  ;;  %v11284_v42 = vcombine.low %v454_v29, %v458_v63  ;;  %v510_v63 = vld [vmem:[%s17543_s1 + $0xf00] sm:$0xff] }
  0xbf   :  { %7237 = vmatprep.subr.bf16.mxu0 %v11237_v44  ;;  %7606 = vmatprep.subr.bf16.mxu1 %v11239_v45  ;;  %v11286_v44 = vcombine.low %v455_v30, %v459_v32  ;;  %v11293_v45 = vcombine.high %v462_v37, %v466_v39  ;;  %v11295_v46 = vcombine.high %v463_v40, %v467_v41  ;;  %v514_v30 = vld [vmem:[%s17543_s1 + $0xf20] sm:$0xff]  ;;  %v511_v32 = vld [vmem:[%s17543_s1 + $0xf08] sm:$0xff] }
  0xc2   :  { %7238 = vmatpush1.bf16.msra.mxu0 %v11236_v51  ;;  %7607 = vmatpush1.bf16.msra.mxu1 %v11238_v52  ;;  %v475_v51 = vld [vmem:[%s17543_s1 + $0xde8] sm:$0xff]  ;;  %v11292_v52 = vcombine.low %v462_v37, %v466_v39  ;;  %v518_v39 = vld [vmem:[%s17543_s1 + $0xf40] sm:$0xff] }
  0xc3   :  { %7248 = vmatprep.subr.bf16.mxu0 %v11245_v54  ;;  %7617 = vmatprep.subr.bf16.mxu1 %v11247_v55  ;;  %v11294_v54 = vcombine.low %v463_v40, %v467_v41  ;;  %v11301_v55 = vcombine.high %v470_v47, %v474_v49  ;;  %v11303_v56 = vcombine.high %v471_v50, %v475_v51  ;;  %v522_v40 = vld [vmem:[%s17543_s1 + $0xf60] sm:$0xff]  ;;  %v519_v41 = vld [vmem:[%s17543_s1 + $0xf48] sm:$0xff] }
  0xc5   :  { %7240 = vmatmul.mubr.bf16.vlgmr.msra.gmra.mrb[0].mxu0 %v13617_v58  ;;  %7609 = vmatmul.mubr.bf16.vlgmr.msra.gmra.mrb[0].mxu1 %v13617_v58 }
  0xc6   :  { %7249 = vmatpush1.bf16.msra.mxu0 %v11244_v62  ;;  %7618 = vmatpush1.bf16.msra.mxu1 %v11246_v0  ;;  %v483_v62 = vld [vmem:[%s17543_s1 + $0xe28] sm:$0xff]  ;;  %v11300_v0 = vcombine.low %v470_v47, %v474_v49  ;;  %v526_v49 = vld [vmem:[%s17543_s1 + $0xf80] sm:$0xff] }
  0xc7   :  { %7250 = vmatprep.subr.bf16.mxu0 %v11253_v1  ;;  %7619 = vmatprep.subr.bf16.mxu1 %v11255_v2  ;;  %v11302_v1 = vcombine.low %v471_v50, %v475_v51  ;;  %v11309_v2 = vcombine.high %v478_v57, %v482_v60  ;;  %v11311_v28 = vcombine.high %v479_v61, %v483_v62  ;;  %v530_v50 = vld [vmem:[%s17543_s1 + $0xfa0] sm:$0xff]  ;;  %v527_v51 = vld [vmem:[%s17543_s1 + $0xf88] sm:$0xff] }
  0xc8   :  { %7280 = vmatprep.mubr.bf16.mxu0 %v13633_v4  ;;  %7649 = vmatprep.mubr.bf16.mxu1 %v13633_v4 }
  0xca   :  { %7251 = vmatpush1.bf16.msra.mxu0 %v11252_v7  ;;  %7620 = vmatpush1.bf16.msra.mxu1 %v11254_v8  ;;  %v491_v7 = vld [vmem:[%s17543_s1 + $0xe68] sm:$0xff]  ;;  %v11308_v8 = vcombine.low %v478_v57, %v482_v60  ;;  %v534_v60 = vld [vmem:[%s17543_s1 + $0xfc0] sm:$0xff] }
  0xcb   :  { %7252 = vmatprep.subr.bf16.mxu0 %v11261_v10  ;;  %7621 = vmatprep.subr.bf16.mxu1 %v11263_v11  ;;  %v11310_v10 = vcombine.low %v479_v61, %v483_v62  ;;  %v11317_v11 = vcombine.high %v486_v3, %v490_v5  ;;  %v11319_v12 = vcombine.high %v487_v6, %v491_v7  ;;  %v538_v61 = vld [vmem:[%s17543_s1 + $0xfe0] sm:$0xff]  ;;  %v535_v62 = vld [vmem:[%s17543_s1 + $0xfc8] sm:$0xff] }
  0xce   :  { %7253 = vmatpush1.bf16.msra.mxu0 %v11260_v16  ;;  %7622 = vmatpush1.bf16.msra.mxu1 %v11262_v17  ;;  %v499_v16 = vld [vmem:[%s17543_s1 + $0xea8] sm:$0xff]  ;;  %v11316_v17 = vcombine.low %v486_v3, %v490_v5  ;;  %v11365_v3 = vcombine.high %v534_v60, %v538_v61 }
  0xcf   :  { %7254 = vmatprep.subr.bf16.mxu0 %v11269_v18  ;;  %7623 = vmatprep.subr.bf16.mxu1 %v11271_v19  ;;  %v11318_v18 = vcombine.low %v487_v6, %v491_v7  ;;  %v11325_v19 = vcombine.high %v494_v13, %v498_v14  ;;  %v11327_v20 = vcombine.high %v495_v15, %v499_v16  ;;  %v542_v6 = vld [vmem:[%s17543_s1 + $0x1000] sm:$0xff] }
  0xd0   :  { %v546_v7 = vld [vmem:[%s17543_s1 + $0x1020] sm:$0xff] }
  0xd2   :  { %7255 = vmatpush1.bf16.msra.mxu0 %v11268_v25  ;;  %7624 = vmatpush1.bf16.msra.mxu1 %v11270_v26  ;;  %v507_v25 = vld [vmem:[%s17543_s1 + $0xee8] sm:$0xff]  ;;  %v11324_v26 = vcombine.low %v494_v13, %v498_v14  ;;  %v11373_v14 = vcombine.high %v542_v6, %v546_v7 }
  0xd3   :  { %7256 = vmatprep.subr.bf16.mxu0 %v11277_v59  ;;  %7625 = vmatprep.subr.bf16.mxu1 %v11279_v27  ;;  %v11326_v59 = vcombine.low %v495_v15, %v499_v16  ;;  %v11333_v27 = vcombine.high %v502_v21, %v506_v22  ;;  %v11335_v29 = vcombine.high %v503_v24, %v507_v25  ;;  %v550_v16 = vld [vmem:[%s17543_s1 + $0x1040] sm:$0xff] }
  0xd6   :  { %7257 = vmatpush1.bf16.msra.mxu0 %v11276_v33  ;;  %7626 = vmatpush1.bf16.msra.mxu1 %v11278_v34  ;;  %v515_v33 = vld [vmem:[%s17543_s1 + $0xf28] sm:$0xff]  ;;  %v11332_v34 = vcombine.low %v502_v21, %v506_v22  ;;  %v11372_v22 = vcombine.low %v542_v6, %v546_v7 }
  0xd7   :  { %7258 = vmatprep.subr.bf16.mxu0 %v11285_v35  ;;  %7627 = vmatprep.subr.bf16.mxu1 %v11287_v36  ;;  %v11334_v35 = vcombine.low %v503_v24, %v507_v25  ;;  %v11341_v36 = vcombine.high %v510_v63, %v514_v30  ;;  %v11343_v37 = vcombine.high %v511_v32, %v515_v33  ;;  %v555_v21 = vld [vmem:[%s17543_s1 + $0x1068] sm:$0xff] }
  0xd8   :  { %v591_v6 = vld [vmem:[%s17543_s1 + $0x1188] sm:$0xff] }
  0xd9   :  { %v595_v7 = vld [vmem:[%s17543_s1 + $0x11a8] sm:$0xff] }
  0xda   :  { %7259 = vmatpush1.bf16.msra.mxu0 %v11284_v42  ;;  %7628 = vmatpush1.bf16.msra.mxu1 %v11286_v44  ;;  %v523_v42 = vld [vmem:[%s17543_s1 + $0xf68] sm:$0xff]  ;;  %v11340_v44 = vcombine.low %v510_v63, %v514_v30 }
  0xdb   :  { %7260 = vmatprep.subr.bf16.mxu0 %v11293_v45  ;;  %7629 = vmatprep.subr.bf16.mxu1 %v11295_v46  ;;  %v11342_v45 = vcombine.low %v511_v32, %v515_v33  ;;  %v11349_v46 = vcombine.high %v518_v39, %v522_v40  ;;  %v11351_v47 = vcombine.high %v519_v41, %v523_v42  ;;  %v559_v63 = vld [vmem:[%s17543_s1 + $0x1088] sm:$0xff] }
  0xdc   :  { %v563_v30 = vld [vmem:[%s17543_s1 + $0x10a8] sm:$0xff] }
  0xde   :  { %7261 = vmatpush1.bf16.msra.mxu0 %v11292_v52  ;;  %7630 = vmatpush1.bf16.msra.mxu1 %v11294_v54  ;;  %v531_v52 = vld [vmem:[%s17543_s1 + $0xfa8] sm:$0xff]  ;;  %v11348_v54 = vcombine.low %v518_v39, %v522_v40 }
  0xdf   :  { %7262 = vmatprep.subr.bf16.mxu0 %v11301_v55  ;;  %7631 = vmatprep.subr.bf16.mxu1 %v11303_v56  ;;  %v11350_v55 = vcombine.low %v519_v41, %v523_v42  ;;  %v11357_v56 = vcombine.high %v526_v49, %v530_v50  ;;  %v11359_v57 = vcombine.high %v527_v51, %v531_v52  ;;  %v567_v39 = vld [vmem:[%s17543_s1 + $0x10c8] sm:$0xff] }
  0xe0   :  { %v571_v40 = vld [vmem:[%s17543_s1 + $0x10e8] sm:$0xff]  ;;  %v11390_v42 = vcombine.low %v559_v63, %v563_v30 }
  0xe2   :  { %7263 = vmatpush1.bf16.msra.mxu0 %v11300_v0  ;;  %7632 = vmatpush1.bf16.msra.mxu1 %v11302_v1  ;;  %v539_v0 = vld [vmem:[%s17543_s1 + $0xfe8] sm:$0xff] }
  0xe3   :  { %7264 = vmatprep.subr.bf16.mxu0 %v11309_v2  ;;  %7633 = vmatprep.subr.bf16.mxu1 %v11311_v28  ;;  %v13804_v1 = vld [vmem:[%s17544_s0 + $0x8] sm:$0xff]  ;;  %v11356_v2 = vcombine.low %v526_v49, %v530_v50  ;;  %v11358_v28 = vcombine.low %v527_v51, %v531_v52  ;;  %v11367_v5 = vcombine.high %v535_v62, %v539_v0 }
  0xe4   :  { %v11366_v13 = vcombine.low %v535_v62, %v539_v0  ;;  %v575_v49 = vld [vmem:[%s17543_s1 + $0x1108] sm:$0xff]  ;;  %v11398_v52 = vcombine.low %v567_v39, %v571_v40 }
  0xe5   :  { %v579_v50 = vld [vmem:[%s17543_s1 + $0x1128] sm:$0xff] }
  0xe6   :  { %7265 = vmatpush1.bf16.msra.mxu0 %v11308_v8  ;;  %7634 = vmatpush1.bf16.msra.mxu1 %v11310_v10  ;;  %v13814_v8 = vrot.slane %v13804_v1, %v13051_v53  ;;  %v543_v10 = vld [vmem:[%s17543_s1 + $0x1008] sm:$0xff]  ;;  %v11406_v0 = vcombine.low %v575_v49, %v579_v50 }
  0xe7   :  { %7266 = vmatprep.subr.bf16.mxu0 %v11317_v11  ;;  %7635 = vmatprep.subr.bf16.mxu1 %v11319_v12  ;;  %v547_v11 = vld [vmem:[%s17543_s1 + $0x1028] sm:$0xff]  ;;  %v11364_v12 = vcombine.low %v534_v60, %v538_v61 }
  0xe8   :  { %v11375_v15 = vcombine.high %v543_v10, %v547_v11  ;;  %v11374_v24 = vcombine.low %v543_v10, %v547_v11  ;;  %v583_v60 = vld [vmem:[%s17543_s1 + $0x1148] sm:$0xff] }
  0xe9   :  { %v587_v61 = vld [vmem:[%s17543_s1 + $0x1168] sm:$0xff] }
  0xea   :  { %7267 = vmatpush1.bf16.msra.mxu0 %v11316_v17  ;;  %7636 = vmatpush1.bf16.msra.mxu1 %v11318_v18  ;;  %v554_v17 = vld [vmem:[%s17543_s1 + $0x1060] sm:$0xff]  ;;  %v1291_v18 = vcombine.high %v13814_v8, %v13814_v8  ;;  %v11414_v11 = vcombine.low %v583_v60, %v587_v61 }
  0xeb   :  { %7268 = vmatprep.subr.bf16.mxu0 %v11325_v19  ;;  %7637 = vmatprep.subr.bf16.mxu1 %v11327_v20  ;;  %v13832_v19 = vcombine.high %v13617_v58, %v13617_v58  ;;  %v551_v20 = vld [vmem:[%s17543_s1 + $0x1048] sm:$0xff]  ;;  %v11381_v25 = vcombine.high %v550_v16, %v554_v17  ;;  %v11380_v32 = vcombine.low %v550_v16, %v554_v17 }
  0xec   :  { %v11382_v33 = vcombine.low %v551_v20, %v555_v21  ;;  %v599_v16 = vld [vmem:[%s17543_s1 + $0x11c8] sm:$0xff] }
  0xed   :  { %v603_v17 = vld [vmem:[%s17543_s1 + $0x11e8] sm:$0xff] }
  0xee   :  { %7269 = vmatpush1.bf16.msra.mxu0 %v11324_v26  ;;  %7638 = vmatpush1.bf16.msra.mxu1 %v11326_v59  ;;  %v11383_v26 = vcombine.high %v551_v20, %v555_v21  ;;  %v558_v59 = vld [vmem:[%s17543_s1 + $0x1080] sm:$0xff]  ;;  %v11422_v20 = vcombine.low %v591_v6, %v595_v7 }
  0xef   :  { %7270 = vmatprep.subr.bf16.mxu0 %v11333_v27  ;;  %7639 = vmatprep.subr.bf16.mxu1 %v11335_v29  ;;  %v562_v27 = vld [vmem:[%s17543_s1 + $0x10a0] sm:$0xff]  ;;  %v13847_v29 = vrot.slane %v1291_v18, %v13051_v53 }
  0xf0   :  { %v11388_v41 = vcombine.low %v558_v59, %v562_v27 }
  0xf2   :  { %7271 = vmatpush1.bf16.msra.mxu0 %v11332_v34  ;;  %7640 = vmatpush1.bf16.msra.mxu1 %v11334_v35  ;;  %v11389_v34 = vcombine.high %v558_v59, %v562_v27  ;;  %v11391_v35 = vcombine.high %v559_v63, %v563_v30  ;;  %v611_v59 = vld [vmem:[%s17543_s1 + $0x1228] sm:$0xff]  ;;  %v11430_v63 = vcombine.low %v599_v16, %v603_v17 }
  0xf3   :  { %7272 = vmatprep.subr.bf16.mxu0 %v11341_v36  ;;  %7641 = vmatprep.subr.bf16.mxu1 %v11343_v37  ;;  %v566_v36 = vld [vmem:[%s17543_s1 + $0x10c0] sm:$0xff] }
  0xf4   :  { %v570_v37 = vld [vmem:[%s17543_s1 + $0x10e0] sm:$0xff] }
  0xf5   :  { %v11396_v51 = vcombine.low %v566_v36, %v570_v37 }
  0xf6   :  { %7273 = vmatpush1.bf16.msra.mxu0 %v11340_v44  ;;  %7642 = vmatpush1.bf16.msra.mxu1 %v11342_v45  ;;  %v11397_v44 = vcombine.high %v566_v36, %v570_v37  ;;  %v11399_v45 = vcombine.high %v567_v39, %v571_v40  ;;  %v619_v36 = vld [vmem:[%s17543_s1 + $0x1268] sm:$0xff] }
  0xf7   :  { %7274 = vmatprep.subr.bf16.mxu0 %v11349_v46  ;;  %7643 = vmatprep.subr.bf16.mxu1 %v11351_v47  ;;  %v574_v46 = vld [vmem:[%s17543_s1 + $0x1100] sm:$0xff] }
  0xf8   :  { %v578_v47 = vld [vmem:[%s17543_s1 + $0x1120] sm:$0xff] }
  0xf9   :  { %v11404_v62 = vcombine.low %v574_v46, %v578_v47 }
  0xfa   :  { %7275 = vmatpush1.bf16.msra.mxu0 %v11348_v54  ;;  %7644 = vmatpush1.bf16.msra.mxu1 %v11350_v55  ;;  %v11405_v54 = vcombine.high %v574_v46, %v578_v47  ;;  %v11407_v55 = vcombine.high %v575_v49, %v579_v50  ;;  %v627_v46 = vld [vmem:[%s17543_s1 + $0x12a8] sm:$0xff] }
  0xfb   :  { %7276 = vmatprep.subr.bf16.mxu0 %v11357_v56  ;;  %7645 = vmatprep.subr.bf16.mxu1 %v11359_v57  ;;  %v582_v56 = vld [vmem:[%s17543_s1 + $0x1140] sm:$0xff] }
  0xfc   :  { %v586_v57 = vld [vmem:[%s17543_s1 + $0x1160] sm:$0xff] }
  0xfd   :  { %v11412_v10 = vcombine.low %v582_v56, %v586_v57 }
  0xfe   :  { %7277 = vmatpush1.bf16.msra.mxu0 %v11356_v2  ;;  %7646 = vmatpush1.bf16.msra.mxu1 %v11358_v28  ;;  %v11413_v2 = vcombine.high %v582_v56, %v586_v57  ;;  %v11415_v28 = vcombine.high %v583_v60, %v587_v61  ;;  %v635_v56 = vld [vmem:[%s17543_s1 + $0x12e8] sm:$0xff] }
  0xff   :  { %7278 = vmatprep.subr.bf16.mxu0 %v11365_v3  ;;  %7647 = vmatprep.subr.bf16.mxu1 %v11367_v5  ;;  %v590_v3 = vld [vmem:[%s17543_s1 + $0x1180] sm:$0xff] }
 0x100   :  { %v594_v5 = vld [vmem:[%s17543_s1 + $0x11a0] sm:$0xff] }
 0x101   :  { %v11420_v18 = vcombine.low %v590_v3, %v594_v5 }
 0x102   :  { %7279 = vmatpush1.bf16.msra.mxu0 %v11364_v12  ;;  %7648 = vmatpush1.bf16.msra.mxu1 %v11366_v13  ;;  %v11421_v12 = vcombine.high %v590_v3, %v594_v5  ;;  %v11423_v13 = vcombine.high %v591_v6, %v595_v7  ;;  %v643_v3 = vld [vmem:[%s17543_s1 + $0x1328] sm:$0xff] }
 0x103   :  { %7289 = vmatprep.subr.bf16.mxu0 %v11373_v14  ;;  %7658 = vmatprep.subr.bf16.mxu1 %v11375_v15  ;;  %v598_v14 = vld [vmem:[%s17543_s1 + $0x11c0] sm:$0xff] }
 0x104   :  { %v602_v15 = vld [vmem:[%s17543_s1 + $0x11e0] sm:$0xff] }
 0x105   :  { %7281 = vmatmul.mubr.bf16.vlgmr.msra.gmra.mrb[0].mxu0 %v13832_v19  ;;  %7650 = vmatmul.mubr.bf16.vlgmr.msra.gmra.mrb[0].mxu1 %v13832_v19  ;;  %v11429_v21 = vcombine.high %v598_v14, %v602_v15  ;;  %v11428_v27 = vcombine.low %v598_v14, %v602_v15  ;;  %v651_v14 = vld [vmem:[%s17543_s1 + $0x1368] sm:$0xff] }
 0x106   :  { %7290 = vmatpush1.bf16.msra.mxu0 %v11372_v22  ;;  %7659 = vmatpush1.bf16.msra.mxu1 %v11374_v24  ;;  %v11431_v22 = vcombine.high %v599_v16, %v603_v17  ;;  %v606_v24 = vld [vmem:[%s17543_s1 + $0x1200] sm:$0xff] }
 0x107   :  { %7291 = vmatprep.subr.bf16.mxu0 %v11381_v25  ;;  %7660 = vmatprep.subr.bf16.mxu1 %v11383_v26  ;;  %v610_v25 = vld [vmem:[%s17543_s1 + $0x1220] sm:$0xff]  ;;  %v607_v26 = vld [vmem:[%s17543_s1 + $0x1208] sm:$0xff] }
 0x108   :  { %7321 = vmatprep.mubr.bf16.mxu0 %v13847_v29  ;;  %7690 = vmatprep.mubr.bf16.mxu1 %v13847_v29  ;;  %v11437_v30 = vcombine.high %v606_v24, %v610_v25  ;;  %v11436_v37 = vcombine.low %v606_v24, %v610_v25  ;;  %v11438_v39 = vcombine.low %v607_v26, %v611_v59  ;;  %v659_v24 = vld [vmem:[%s17543_s1 + $0x13a8] sm:$0xff] }
 0x10a   :  { %7292 = vmatpush1.bf16.msra.mxu0 %v11380_v32  ;;  %7661 = vmatpush1.bf16.msra.mxu1 %v11382_v33  ;;  %v11439_v32 = vcombine.high %v607_v26, %v611_v59  ;;  %v614_v33 = vld [vmem:[%s17543_s1 + $0x1240] sm:$0xff] }
 0x10b   :  { %7293 = vmatprep.subr.bf16.mxu0 %v11389_v34  ;;  %7662 = vmatprep.subr.bf16.mxu1 %v11391_v35  ;;  %v618_v34 = vld [vmem:[%s17543_s1 + $0x1260] sm:$0xff]  ;;  %v615_v35 = vld [vmem:[%s17543_s1 + $0x1248] sm:$0xff] }
 0x10c   :  { %v11445_v40 = vcombine.high %v614_v33, %v618_v34  ;;  %v11444_v47 = vcombine.low %v614_v33, %v618_v34  ;;  %v11446_v49 = vcombine.low %v615_v35, %v619_v36  ;;  %v667_v33 = vld [vmem:[%s17543_s1 + $0x13e8] sm:$0xff] }
 0x10e   :  { %7294 = vmatpush1.bf16.msra.mxu0 %v11388_v41  ;;  %7663 = vmatpush1.bf16.msra.mxu1 %v11390_v42  ;;  %v11447_v41 = vcombine.high %v615_v35, %v619_v36  ;;  %v622_v42 = vld [vmem:[%s17543_s1 + $0x1280] sm:$0xff] }
 0x10f   :  { %7295 = vmatprep.subr.bf16.mxu0 %v11397_v44  ;;  %7664 = vmatprep.subr.bf16.mxu1 %v11399_v45  ;;  %v626_v44 = vld [vmem:[%s17543_s1 + $0x12a0] sm:$0xff]  ;;  %v623_v45 = vld [vmem:[%s17543_s1 + $0x1288] sm:$0xff] }
 0x110   :  { %v11453_v50 = vcombine.high %v622_v42, %v626_v44  ;;  %v11452_v57 = vcombine.low %v622_v42, %v626_v44  ;;  %v11454_v60 = vcombine.low %v623_v45, %v627_v46  ;;  %v675_v42 = vld [vmem:[%s17543_s1 + $0x1428] sm:$0xff] }
 0x112   :  { %7296 = vmatpush1.bf16.msra.mxu0 %v11396_v51  ;;  %7665 = vmatpush1.bf16.msra.mxu1 %v11398_v52  ;;  %v11455_v51 = vcombine.high %v623_v45, %v627_v46  ;;  %v630_v52 = vld [vmem:[%s17543_s1 + $0x12c0] sm:$0xff] }
 0x113   :  { %7297 = vmatprep.subr.bf16.mxu0 %v11405_v54  ;;  %7666 = vmatprep.subr.bf16.mxu1 %v11407_v55  ;;  %v634_v54 = vld [vmem:[%s17543_s1 + $0x12e0] sm:$0xff]  ;;  %v631_v55 = vld [vmem:[%s17543_s1 + $0x12c8] sm:$0xff] }
 0x114   :  { %v11461_v61 = vcombine.high %v630_v52, %v634_v54  ;;  %v11460_v5 = vcombine.low %v630_v52, %v634_v54  ;;  %v11462_v6 = vcombine.low %v631_v55, %v635_v56  ;;  %v679_v52 = vld [vmem:[%s17543_s1 + $0x1448] sm:$0xff] }
 0x115   :  { %v683_v54 = vld [vmem:[%s17543_s1 + $0x1468] sm:$0xff] }
 0x116   :  { %7298 = vmatpush1.bf16.msra.mxu0 %v11404_v62  ;;  %7667 = vmatpush1.bf16.msra.mxu1 %v11406_v0  ;;  %v11463_v62 = vcombine.high %v631_v55, %v635_v56  ;;  %v638_v0 = vld [vmem:[%s17543_s1 + $0x1300] sm:$0xff] }
 0x117   :  { %7299 = vmatprep.subr.bf16.mxu0 %v11413_v2  ;;  %7668 = vmatprep.subr.bf16.mxu1 %v11415_v28  ;;  %v642_v2 = vld [vmem:[%s17543_s1 + $0x1320] sm:$0xff]  ;;  %v639_v28 = vld [vmem:[%s17543_s1 + $0x1308] sm:$0xff] }
 0x118   :  { %v11469_v7 = vcombine.high %v638_v0, %v642_v2  ;;  %v11468_v15 = vcombine.low %v638_v0, %v642_v2  ;;  %v11470_v16 = vcombine.low %v639_v28, %v643_v3  ;;  %v687_v0 = vld [vmem:[%s17543_s1 + $0x1488] sm:$0xff] }
 0x119   :  { %v691_v2 = vld [vmem:[%s17543_s1 + $0x14a8] sm:$0xff] }
 0x11a   :  { %7300 = vmatpush1.bf16.msra.mxu0 %v11412_v10  ;;  %7669 = vmatpush1.bf16.msra.mxu1 %v11414_v11  ;;  %v11471_v10 = vcombine.high %v639_v28, %v643_v3  ;;  %v646_v11 = vld [vmem:[%s17543_s1 + $0x1340] sm:$0xff]  ;;  %v11510_v3 = vcombine.low %v679_v52, %v683_v54 }
 0x11b   :  { %7301 = vmatprep.subr.bf16.mxu0 %v11421_v12  ;;  %7670 = vmatprep.subr.bf16.mxu1 %v11423_v13  ;;  %v650_v12 = vld [vmem:[%s17543_s1 + $0x1360] sm:$0xff]  ;;  %v647_v13 = vld [vmem:[%s17543_s1 + $0x1348] sm:$0xff] }
 0x11c   :  { %v11477_v17 = vcombine.high %v646_v11, %v650_v12  ;;  %v11476_v25 = vcombine.low %v646_v11, %v650_v12  ;;  %v11478_v26 = vcombine.low %v647_v13, %v651_v14  ;;  %v695_v11 = vld [vmem:[%s17543_s1 + $0x14c8] sm:$0xff] }
 0x11d   :  { %v699_v12 = vld [vmem:[%s17543_s1 + $0x14e8] sm:$0xff] }
 0x11e   :  { %7302 = vmatpush1.bf16.msra.mxu0 %v11420_v18  ;;  %7671 = vmatpush1.bf16.msra.mxu1 %v11422_v20  ;;  %v11479_v18 = vcombine.high %v647_v13, %v651_v14  ;;  %v654_v20 = vld [vmem:[%s17543_s1 + $0x1380] sm:$0xff]  ;;  %v11518_v14 = vcombine.low %v687_v0, %v691_v2 }
 0x11f   :  { %7303 = vmatprep.subr.bf16.mxu0 %v11429_v21  ;;  %7672 = vmatprep.subr.bf16.mxu1 %v11431_v22  ;;  %v658_v21 = vld [vmem:[%s17543_s1 + $0x13a0] sm:$0xff]  ;;  %v655_v22 = vld [vmem:[%s17543_s1 + $0x1388] sm:$0xff] }
 0x120   :  { %v11485_v59 = vcombine.high %v654_v20, %v658_v21  ;;  %v11484_v34 = vcombine.low %v654_v20, %v658_v21  ;;  %v11486_v35 = vcombine.low %v655_v22, %v659_v24  ;;  %v703_v20 = vld [vmem:[%s17543_s1 + $0x1508] sm:$0xff] }
 0x121   :  { %v707_v21 = vld [vmem:[%s17543_s1 + $0x1528] sm:$0xff] }
 0x122   :  { %7304 = vmatpush1.bf16.msra.mxu0 %v11428_v27  ;;  %7673 = vmatpush1.bf16.msra.mxu1 %v11430_v63  ;;  %v11487_v27 = vcombine.high %v655_v22, %v659_v24  ;;  %v662_v63 = vld [vmem:[%s17543_s1 + $0x13c0] sm:$0xff]  ;;  %v11526_v24 = vcombine.low %v695_v11, %v699_v12 }
 0x123   :  { %7305 = vmatprep.subr.bf16.mxu0 %v11437_v30  ;;  %7674 = vmatprep.subr.bf16.mxu1 %v11439_v32  ;;  %v666_v30 = vld [vmem:[%s17543_s1 + $0x13e0] sm:$0xff]  ;;  %v663_v32 = vld [vmem:[%s17543_s1 + $0x13c8] sm:$0xff] }
 0x124   :  { %v11493_v36 = vcombine.high %v662_v63, %v666_v30  ;;  %v11492_v44 = vcombine.low %v662_v63, %v666_v30  ;;  %v11494_v45 = vcombine.low %v663_v32, %v667_v33  ;;  %v711_v63 = vld [vmem:[%s17543_s1 + $0x1548] sm:$0xff] }
 0x125   :  { %v715_v30 = vld [vmem:[%s17543_s1 + $0x1568] sm:$0xff] }
 0x126   :  { %7306 = vmatpush1.bf16.msra.mxu0 %v11436_v37  ;;  %7675 = vmatpush1.bf16.msra.mxu1 %v11438_v39  ;;  %v11495_v37 = vcombine.high %v663_v32, %v667_v33  ;;  %v670_v39 = vld [vmem:[%s17543_s1 + $0x1400] sm:$0xff]  ;;  %v11534_v33 = vcombine.low %v703_v20, %v707_v21 }
 0x127   :  { %7307 = vmatprep.subr.bf16.mxu0 %v11445_v40  ;;  %7676 = vmatprep.subr.bf16.mxu1 %v11447_v41  ;;  %v674_v40 = vld [vmem:[%s17543_s1 + $0x1420] sm:$0xff]  ;;  %v671_v41 = vld [vmem:[%s17543_s1 + $0x1408] sm:$0xff] }
 0x128   :  { %v11501_v46 = vcombine.high %v670_v39, %v674_v40  ;;  %v11500_v55 = vcombine.low %v670_v39, %v674_v40  ;;  %v11502_v56 = vcombine.low %v671_v41, %v675_v42  ;;  %v719_v39 = vld [vmem:[%s17543_s1 + $0x1588] sm:$0xff] }
 0x129   :  { %v723_v40 = vld [vmem:[%s17543_s1 + $0x15a8] sm:$0xff] }
 0x12a   :  { %7308 = vmatpush1.bf16.msra.mxu0 %v11444_v47  ;;  %7677 = vmatpush1.bf16.msra.mxu1 %v11446_v49  ;;  %v11503_v47 = vcombine.high %v671_v41, %v675_v42  ;;  %v678_v49 = vld [vmem:[%s17543_s1 + $0x1440] sm:$0xff]  ;;  %v11542_v42 = vcombine.low %v711_v63, %v715_v30 }
 0x12b   :  { %7309 = vmatprep.subr.bf16.mxu0 %v11453_v50  ;;  %7678 = vmatprep.subr.bf16.mxu1 %v11455_v51  ;;  %v682_v50 = vld [vmem:[%s17543_s1 + $0x1460] sm:$0xff]  ;;  %v14035_v51 = vrot.slane %v13814_v8, %v13051_v53 }
 0x12c   :  { %v686_v8 = vld [vmem:[%s17543_s1 + $0x1480] sm:$0xff]  ;;  %v11508_v28 = vcombine.low %v678_v49, %v682_v50 }
 0x12e   :  { %7310 = vmatpush1.bf16.msra.mxu0 %v11452_v57  ;;  %7679 = vmatpush1.bf16.msra.mxu1 %v11454_v60  ;;  %v11509_v57 = vcombine.high %v678_v49, %v682_v50  ;;  %v11511_v60 = vcombine.high %v679_v52, %v683_v54  ;;  %v727_v49 = vld [vmem:[%s17543_s1 + $0x15c8] sm:$0xff]  ;;  %v11550_v54 = vcombine.low %v719_v39, %v723_v40 }
 0x12f   :  { %7311 = vmatprep.subr.bf16.mxu0 %v11461_v61  ;;  %7680 = vmatprep.subr.bf16.mxu1 %v11463_v62  ;;  %v690_v61 = vld [vmem:[%s17543_s1 + $0x14a0] sm:$0xff]  ;;  %v14051_v62 = vcombine.high %v13847_v29, %v13847_v29  ;;  %v731_v50 = vld [vmem:[%s17543_s1 + $0x15e8] sm:$0xff] }
 0x130   :  { %v11516_v13 = vcombine.low %v686_v8, %v690_v61 }
 0x132   :  { %7312 = vmatpush1.bf16.msra.mxu0 %v11460_v5  ;;  %7681 = vmatpush1.bf16.msra.mxu1 %v11462_v6  ;;  %v11517_v5 = vcombine.high %v686_v8, %v690_v61  ;;  %v11519_v6 = vcombine.high %v687_v0, %v691_v2  ;;  %v735_v8 = vld [vmem:[%s17543_s1 + $0x1608] sm:$0xff]  ;;  %v11558_v2 = vcombine.low %v727_v49, %v731_v50 }
 0x133   :  { %7313 = vmatprep.subr.bf16.mxu0 %v11469_v7  ;;  %7682 = vmatprep.subr.bf16.mxu1 %v11471_v10  ;;  %v694_v7 = vld [vmem:[%s17543_s1 + $0x14c0] sm:$0xff]  ;;  %v739_v61 = vld [vmem:[%s17543_s1 + $0x1628] sm:$0xff] }
 0x134   :  { %v698_v10 = vld [vmem:[%s17543_s1 + $0x14e0] sm:$0xff] }
 0x135   :  { %v11524_v22 = vcombine.low %v694_v7, %v698_v10 }
 0x136   :  { %7314 = vmatpush1.bf16.msra.mxu0 %v11468_v15  ;;  %7683 = vmatpush1.bf16.msra.mxu1 %v11470_v16  ;;  %v11525_v15 = vcombine.high %v694_v7, %v698_v10  ;;  %v11527_v16 = vcombine.high %v695_v11, %v699_v12  ;;  %v743_v7 = vld [vmem:[%s17543_s1 + $0x1648] sm:$0xff]  ;;  %v11566_v12 = vcombine.low %v735_v8, %v739_v61 }
 0x137   :  { %7315 = vmatprep.subr.bf16.mxu0 %v11477_v17  ;;  %7684 = vmatprep.subr.bf16.mxu1 %v11479_v18  ;;  %v702_v17 = vld [vmem:[%s17543_s1 + $0x1500] sm:$0xff]  ;;  %v747_v10 = vld [vmem:[%s17543_s1 + $0x1668] sm:$0xff] }
 0x138   :  { %v706_v18 = vld [vmem:[%s17543_s1 + $0x1520] sm:$0xff] }
 0x139   :  { %v11532_v32 = vcombine.low %v702_v17, %v706_v18 }
 0x13a   :  { %7316 = vmatpush1.bf16.msra.mxu0 %v11476_v25  ;;  %7685 = vmatpush1.bf16.msra.mxu1 %v11478_v26  ;;  %v11533_v25 = vcombine.high %v702_v17, %v706_v18  ;;  %v11535_v26 = vcombine.high %v703_v20, %v707_v21  ;;  %v751_v17 = vld [vmem:[%s17543_s1 + $0x1688] sm:$0xff]  ;;  %v11574_v21 = vcombine.low %v743_v7, %v747_v10 }
 0x13b   :  { %7317 = vmatprep.subr.bf16.mxu0 %v11485_v59  ;;  %7686 = vmatprep.subr.bf16.mxu1 %v11487_v27  ;;  %v710_v59 = vld [vmem:[%s17543_s1 + $0x1540] sm:$0xff]  ;;  %v755_v18 = vld [vmem:[%s17543_s1 + $0x16a8] sm:$0xff] }
 0x13c   :  { %v714_v27 = vld [vmem:[%s17543_s1 + $0x1560] sm:$0xff] }
 0x13d   :  { %v11540_v41 = vcombine.low %v710_v59, %v714_v27 }
 0x13e   :  { %7318 = vmatpush1.bf16.msra.mxu0 %v11484_v34  ;;  %7687 = vmatpush1.bf16.msra.mxu1 %v11486_v35  ;;  %v11541_v34 = vcombine.high %v710_v59, %v714_v27  ;;  %v11543_v35 = vcombine.high %v711_v63, %v715_v30  ;;  %v759_v59 = vld [vmem:[%s17543_s1 + $0x16c8] sm:$0xff]  ;;  %v11582_v30 = vcombine.low %v751_v17, %v755_v18 }
 0x13f   :  { %7319 = vmatprep.subr.bf16.mxu0 %v11493_v36  ;;  %7688 = vmatprep.subr.bf16.mxu1 %v11495_v37  ;;  %v718_v36 = vld [vmem:[%s17543_s1 + $0x1580] sm:$0xff]  ;;  %v763_v27 = vld [vmem:[%s17543_s1 + $0x16e8] sm:$0xff] }
 0x140   :  { %v722_v37 = vld [vmem:[%s17543_s1 + $0x15a0] sm:$0xff] }
 0x141   :  { %v11548_v52 = vcombine.low %v718_v36, %v722_v37 }
 0x142   :  { %7320 = vmatpush1.bf16.msra.mxu0 %v11492_v44  ;;  %7689 = vmatpush1.bf16.msra.mxu1 %v11494_v45  ;;  %v11549_v44 = vcombine.high %v718_v36, %v722_v37  ;;  %v11551_v45 = vcombine.high %v719_v39, %v723_v40  ;;  %v767_v36 = vld [vmem:[%s17543_s1 + $0x1708] sm:$0xff]  ;;  %v11590_v40 = vcombine.low %v759_v59, %v763_v27 }
 0x143   :  { %7330 = vmatprep.subr.bf16.mxu0 %v11501_v46  ;;  %7699 = vmatprep.subr.bf16.mxu1 %v11503_v47  ;;  %v726_v46 = vld [vmem:[%s17543_s1 + $0x15c0] sm:$0xff]  ;;  %v771_v37 = vld [vmem:[%s17543_s1 + $0x1728] sm:$0xff] }
 0x144   :  { %v730_v47 = vld [vmem:[%s17543_s1 + $0x15e0] sm:$0xff] }
 0x145   :  { %7322 = vmatmul.mubr.bf16.vlgmr.msra.gmra.mrb[0].mxu0 %v14035_v51  ;;  %7691 = vmatmul.mubr.bf16.vlgmr.msra.gmra.mrb[0].mxu1 %v14035_v51  ;;  %v11556_v0 = vcombine.low %v726_v46, %v730_v47 }
 0x146   :  { %7331 = vmatpush1.bf16.msra.mxu0 %v11500_v55  ;;  %7700 = vmatpush1.bf16.msra.mxu1 %v11502_v56  ;;  %v11557_v55 = vcombine.high %v726_v46, %v730_v47  ;;  %v11559_v56 = vcombine.high %v727_v49, %v731_v50  ;;  %v775_v46 = vld [vmem:[%s17543_s1 + $0x1748] sm:$0xff]  ;;  %v11598_v50 = vcombine.low %v767_v36, %v771_v37 }
 0x147   :  { %7332 = vmatprep.subr.bf16.mxu0 %v11509_v57  ;;  %7701 = vmatprep.subr.bf16.mxu1 %v11511_v60  ;;  %v734_v57 = vld [vmem:[%s17543_s1 + $0x1600] sm:$0xff]  ;;  %v779_v47 = vld [vmem:[%s17543_s1 + $0x1768] sm:$0xff] }
 0x148   :  { %7362 = vmatprep.mubr.bf16.mxu0 %v14051_v62  ;;  %7731 = vmatprep.mubr.bf16.mxu1 %v14051_v62  ;;  %v738_v60 = vld [vmem:[%s17543_s1 + $0x1620] sm:$0xff] }
 0x149   :  { %v11564_v11 = vcombine.low %v734_v57, %v738_v60 }
 0x14a   :  { %7333 = vmatpush1.bf16.msra.mxu0 %v11508_v28  ;;  %7702 = vmatpush1.bf16.msra.mxu1 %v11510_v3  ;;  %v11565_v28 = vcombine.high %v734_v57, %v738_v60  ;;  %v11567_v3 = vcombine.high %v735_v8, %v739_v61  ;;  %v783_v57 = vld [vmem:[%s17543_s1 + $0x1788] sm:$0xff]  ;;  %v11606_v61 = vcombine.low %v775_v46, %v779_v47 }
 0x14b   :  { %7334 = vmatprep.subr.bf16.mxu0 %v11517_v5  ;;  %7703 = vmatprep.subr.bf16.mxu1 %v11519_v6  ;;  %v742_v5 = vld [vmem:[%s17543_s1 + $0x1640] sm:$0xff]  ;;  %v787_v60 = vld [vmem:[%s17543_s1 + $0x17a8] sm:$0xff] }
 0x14c   :  { %v746_v6 = vld [vmem:[%s17543_s1 + $0x1660] sm:$0xff] }
 0x14d   :  { %v11572_v20 = vcombine.low %v742_v5, %v746_v6 }
 0x14e   :  { %7335 = vmatpush1.bf16.msra.mxu0 %v11516_v13  ;;  %7704 = vmatpush1.bf16.msra.mxu1 %v11518_v14  ;;  %v11573_v13 = vcombine.high %v742_v5, %v746_v6  ;;  %v11575_v14 = vcombine.high %v743_v7, %v747_v10  ;;  %v1276_v5 = vcombine.high %v13804_v1, %v13804_v1  ;;  %v791_v6 = vld [vmem:[%s17543_s1 + $0x17c8] sm:$0xff]  ;;  %v798_v1 = vld [vmem:[%s17543_s1 + $0x1800] sm:$0xff] }
 0x14f   :  { %7336 = vmatprep.subr.bf16.mxu0 %v11525_v15  ;;  %7705 = vmatprep.subr.bf16.mxu1 %v11527_v16  ;;  %v750_v15 = vld [vmem:[%s17543_s1 + $0x1680] sm:$0xff]  ;;  %v795_v7 = vld [vmem:[%s17543_s1 + $0x17e8] sm:$0xff] }
 0x150   :  { %v754_v16 = vld [vmem:[%s17543_s1 + $0x16a0] sm:$0xff] }
 0x151   :  { %v11580_v63 = vcombine.low %v750_v15, %v754_v16 }
 0x152   :  { %7337 = vmatpush1.bf16.msra.mxu0 %v11524_v22  ;;  %7706 = vmatpush1.bf16.msra.mxu1 %v11526_v24  ;;  %v11581_v22 = vcombine.high %v750_v15, %v754_v16  ;;  %v11583_v24 = vcombine.high %v751_v17, %v755_v18  ;;  %v14228_v15 = vrot.slane %v1276_v5, %v13051_v53  ;;  %v799_v16 = vld [vmem:[%s17543_s1 + $0x1808] sm:$0xff]  ;;  %v838_v5 = vld [vmem:[%s17543_s1 + $0x1940] sm:$0xff] }
 0x153   :  { %7338 = vmatprep.subr.bf16.mxu0 %v11533_v25  ;;  %7707 = vmatprep.subr.bf16.mxu1 %v11535_v26  ;;  %v758_v25 = vld [vmem:[%s17543_s1 + $0x16c0] sm:$0xff]  ;;  %v803_v17 = vld [vmem:[%s17543_s1 + $0x1828] sm:$0xff] }
 0x154   :  { %v762_v26 = vld [vmem:[%s17543_s1 + $0x16e0] sm:$0xff] }
 0x155   :  { %v11588_v39 = vcombine.low %v758_v25, %v762_v26 }
 0x156   :  { %7339 = vmatpush1.bf16.msra.mxu0 %v11532_v32  ;;  %7708 = vmatpush1.bf16.msra.mxu1 %v11534_v33  ;;  %v11589_v32 = vcombine.high %v758_v25, %v762_v26  ;;  %v11591_v33 = vcombine.high %v759_v59, %v763_v27  ;;  %v810_v25 = vld [vmem:[%s17543_s1 + $0x1860] sm:$0xff]  ;;  %v1292_v26 = vcombine.high %v14228_v15, %v14228_v15  ;;  %v807_v27 = vld [vmem:[%s17543_s1 + $0x1848] sm:$0xff] }
 0x157   :  { %7340 = vmatprep.subr.bf16.mxu0 %v11541_v34  ;;  %7709 = vmatprep.subr.bf16.mxu1 %v11543_v35  ;;  %v766_v34 = vld [vmem:[%s17543_s1 + $0x1700] sm:$0xff]  ;;  %v14246_v59 = vcombine.high %v14035_v51, %v14035_v51 }
 0x158   :  { %v770_v35 = vld [vmem:[%s17543_s1 + $0x1720] sm:$0xff] }
 0x159   :  { %v11596_v49 = vcombine.low %v766_v34, %v770_v35 }
 0x15a   :  { %7341 = vmatpush1.bf16.msra.mxu0 %v11540_v41  ;;  %7710 = vmatpush1.bf16.msra.mxu1 %v11542_v42  ;;  %v11597_v41 = vcombine.high %v766_v34, %v770_v35  ;;  %v11599_v42 = vcombine.high %v767_v36, %v771_v37  ;;  %v814_v35 = vld [vmem:[%s17543_s1 + $0x1880] sm:$0xff]  ;;  %v14261_v37 = vrot.slane %v1292_v26, %v13051_v53 }
 0x15b   :  { %7342 = vmatprep.subr.bf16.mxu0 %v11549_v44  ;;  %7711 = vmatprep.subr.bf16.mxu1 %v11551_v45  ;;  %v774_v44 = vld [vmem:[%s17543_s1 + $0x1740] sm:$0xff] }
 0x15c   :  { %v778_v45 = vld [vmem:[%s17543_s1 + $0x1760] sm:$0xff] }
 0x15d   :  { %v11604_v8 = vcombine.low %v774_v44, %v778_v45  ;;  %v818_v36 = vld [vmem:[%s17543_s1 + $0x18a0] sm:$0xff] }
 0x15e   :  { %7343 = vmatpush1.bf16.msra.mxu0 %v11548_v52  ;;  %7712 = vmatpush1.bf16.msra.mxu1 %v11550_v54  ;;  %v11605_v52 = vcombine.high %v774_v44, %v778_v45  ;;  %v11607_v54 = vcombine.high %v775_v46, %v779_v47  ;;  %v11645_v44 = vcombine.high %v814_v35, %v818_v36  ;;  %v822_v46 = vld [vmem:[%s17543_s1 + $0x18c0] sm:$0xff] }
 0x15f   :  { %7344 = vmatprep.subr.bf16.mxu0 %v11557_v55  ;;  %7713 = vmatprep.subr.bf16.mxu1 %v11559_v56  ;;  %v782_v55 = vld [vmem:[%s17543_s1 + $0x1780] sm:$0xff] }
 0x160   :  { %v786_v56 = vld [vmem:[%s17543_s1 + $0x17a0] sm:$0xff] }
 0x161   :  { %v11612_v10 = vcombine.low %v782_v55, %v786_v56  ;;  %v826_v47 = vld [vmem:[%s17543_s1 + $0x18e0] sm:$0xff] }
 0x162   :  { %7345 = vmatpush1.bf16.msra.mxu0 %v11556_v0  ;;  %7714 = vmatpush1.bf16.msra.mxu1 %v11558_v2  ;;  %v11613_v0 = vcombine.high %v782_v55, %v786_v56  ;;  %v11615_v2 = vcombine.high %v783_v57, %v787_v60  ;;  %v11653_v55 = vcombine.high %v822_v46, %v826_v47  ;;  %v858_v26 = vld [vmem:[%s17543_s1 + $0x19e0] sm:$0xff] }
 0x163   :  { %7346 = vmatprep.subr.bf16.mxu0 %v11565_v28  ;;  %7715 = vmatprep.subr.bf16.mxu1 %v11567_v3  ;;  %v790_v28 = vld [vmem:[%s17543_s1 + $0x17c0] sm:$0xff] }
 0x164   :  { %v794_v3 = vld [vmem:[%s17543_s1 + $0x17e0] sm:$0xff] }
 0x165   :  { %v11620_v18 = vcombine.low %v790_v28, %v794_v3 }
 0x166   :  { %7347 = vmatpush1.bf16.msra.mxu0 %v11564_v11  ;;  %7716 = vmatpush1.bf16.msra.mxu1 %v11566_v12  ;;  %v11614_v11 = vcombine.low %v783_v57, %v787_v60  ;;  %v11621_v12 = vcombine.high %v790_v28, %v794_v3  ;;  %v830_v57 = vld [vmem:[%s17543_s1 + $0x1900] sm:$0xff] }
 0x167   :  { %7348 = vmatprep.subr.bf16.mxu0 %v11573_v13  ;;  %7717 = vmatprep.subr.bf16.mxu1 %v11575_v14  ;;  %v11623_v13 = vcombine.high %v791_v6, %v795_v7  ;;  %v802_v14 = vld [vmem:[%s17543_s1 + $0x1820] sm:$0xff] }
 0x168   :  { %v834_v60 = vld [vmem:[%s17543_s1 + $0x1920] sm:$0xff] }
 0x169   :  { %v11661_v28 = vcombine.high %v830_v57, %v834_v60 }
 0x16a   :  { %7349 = vmatpush1.bf16.msra.mxu0 %v11572_v20  ;;  %7718 = vmatpush1.bf16.msra.mxu1 %v11574_v21  ;;  %v11622_v20 = vcombine.low %v791_v6, %v795_v7  ;;  %v11629_v21 = vcombine.high %v798_v1, %v802_v14  ;;  %v842_v6 = vld [vmem:[%s17543_s1 + $0x1960] sm:$0xff]  ;;  %v839_v7 = vld [vmem:[%s17543_s1 + $0x1948] sm:$0xff] }
 0x16b   :  { %7350 = vmatprep.subr.bf16.mxu0 %v11581_v22  ;;  %7719 = vmatprep.subr.bf16.mxu1 %v11583_v24  ;;  %v11631_v22 = vcombine.high %v799_v16, %v803_v17  ;;  %v806_v24 = vld [vmem:[%s17543_s1 + $0x1840] sm:$0xff] }
 0x16e   :  { %7351 = vmatpush1.bf16.msra.mxu0 %v11580_v63  ;;  %7720 = vmatpush1.bf16.msra.mxu1 %v11582_v30  ;;  %v811_v63 = vld [vmem:[%s17543_s1 + $0x1868] sm:$0xff]  ;;  %v11628_v30 = vcombine.low %v798_v1, %v802_v14  ;;  %v846_v14 = vld [vmem:[%s17543_s1 + $0x1980] sm:$0xff] }
 0x16f   :  { %7352 = vmatprep.subr.bf16.mxu0 %v11589_v32  ;;  %7721 = vmatprep.subr.bf16.mxu1 %v11591_v33  ;;  %v11630_v32 = vcombine.low %v799_v16, %v803_v17  ;;  %v11637_v33 = vcombine.high %v806_v24, %v810_v25  ;;  %v11639_v34 = vcombine.high %v807_v27, %v811_v63  ;;  %v850_v16 = vld [vmem:[%s17543_s1 + $0x19a0] sm:$0xff]  ;;  %v847_v17 = vld [vmem:[%s17543_s1 + $0x1988] sm:$0xff] }
 0x172   :  { %7353 = vmatpush1.bf16.msra.mxu0 %v11588_v39  ;;  %7722 = vmatpush1.bf16.msra.mxu1 %v11590_v40  ;;  %v815_v39 = vld [vmem:[%s17543_s1 + $0x1888] sm:$0xff] }
 0x173   :  { %7354 = vmatprep.subr.bf16.mxu0 %v11597_v41  ;;  %7723 = vmatprep.subr.bf16.mxu1 %v11599_v42  ;;  %v819_v40 = vld [vmem:[%s17543_s1 + $0x18a8] sm:$0xff]  ;;  %v11636_v41 = vcombine.low %v806_v24, %v810_v25  ;;  %v11638_v42 = vcombine.low %v807_v27, %v811_v63  ;;  %v854_v25 = vld [vmem:[%s17543_s1 + $0x19c0] sm:$0xff] }
 0x174   :  { %v11647_v45 = vcombine.high %v815_v39, %v819_v40  ;;  %v855_v27 = vld [vmem:[%s17543_s1 + $0x19c8] sm:$0xff] }
 0x175   :  { %v859_v63 = vld [vmem:[%s17543_s1 + $0x19e8] sm:$0xff] }
 0x176   :  { %7355 = vmatpush1.bf16.msra.mxu0 %v11596_v49  ;;  %7724 = vmatpush1.bf16.msra.mxu1 %v11598_v50  ;;  %v823_v49 = vld [vmem:[%s17543_s1 + $0x18c8] sm:$0xff] }
 0x177   :  { %7356 = vmatprep.subr.bf16.mxu0 %v11605_v52  ;;  %7725 = vmatprep.subr.bf16.mxu1 %v11607_v54  ;;  %v827_v50 = vld [vmem:[%s17543_s1 + $0x18e8] sm:$0xff]  ;;  %v11644_v52 = vcombine.low %v814_v35, %v818_v36  ;;  %v11646_v54 = vcombine.low %v815_v39, %v819_v40  ;;  %v862_v35 = vld [vmem:[%s17543_s1 + $0x1a00] sm:$0xff] }
 0x178   :  { %v11655_v56 = vcombine.high %v823_v49, %v827_v50  ;;  %v866_v36 = vld [vmem:[%s17543_s1 + $0x1a20] sm:$0xff]  ;;  %v863_v39 = vld [vmem:[%s17543_s1 + $0x1a08] sm:$0xff] }
 0x179   :  { %v867_v40 = vld [vmem:[%s17543_s1 + $0x1a28] sm:$0xff] }
 0x17a   :  { %7357 = vmatpush1.bf16.msra.mxu0 %v11604_v8  ;;  %7726 = vmatpush1.bf16.msra.mxu1 %v11606_v61  ;;  %v831_v8 = vld [vmem:[%s17543_s1 + $0x1908] sm:$0xff] }
 0x17b   :  { %7358 = vmatprep.subr.bf16.mxu0 %v11613_v0  ;;  %7727 = vmatprep.subr.bf16.mxu1 %v11615_v2  ;;  %v835_v61 = vld [vmem:[%s17543_s1 + $0x1928] sm:$0xff]  ;;  %v11652_v0 = vcombine.low %v822_v46, %v826_v47  ;;  %v11654_v2 = vcombine.low %v823_v49, %v827_v50  ;;  %v870_v46 = vld [vmem:[%s17543_s1 + $0x1a40] sm:$0xff] }
 0x17c   :  { %v11663_v3 = vcombine.high %v831_v8, %v835_v61  ;;  %v874_v47 = vld [vmem:[%s17543_s1 + $0x1a60] sm:$0xff]  ;;  %v871_v49 = vld [vmem:[%s17543_s1 + $0x1a48] sm:$0xff] }
 0x17d   :  { %v875_v50 = vld [vmem:[%s17543_s1 + $0x1a68] sm:$0xff] }
 0x17e   :  { %7359 = vmatpush1.bf16.msra.mxu0 %v11612_v10  ;;  %7728 = vmatpush1.bf16.msra.mxu1 %v11614_v11  ;;  %v843_v10 = vld [vmem:[%s17543_s1 + $0x1968] sm:$0xff]  ;;  %v11660_v11 = vcombine.low %v830_v57, %v834_v60  ;;  %v878_v57 = vld [vmem:[%s17543_s1 + $0x1a80] sm:$0xff] }
 0x17f   :  { %7360 = vmatprep.subr.bf16.mxu0 %v11621_v12  ;;  %7729 = vmatprep.subr.bf16.mxu1 %v11623_v13  ;;  %v11662_v12 = vcombine.low %v831_v8, %v835_v61  ;;  %v11669_v13 = vcombine.high %v838_v5, %v842_v6  ;;  %v11671_v1 = vcombine.high %v839_v7, %v843_v10  ;;  %v882_v60 = vld [vmem:[%s17543_s1 + $0x1aa0] sm:$0xff]  ;;  %v879_v8 = vld [vmem:[%s17543_s1 + $0x1a88] sm:$0xff] }
 0x180   :  { %v883_v61 = vld [vmem:[%s17543_s1 + $0x1aa8] sm:$0xff] }
 0x182   :  { %7361 = vmatpush1.bf16.msra.mxu0 %v11620_v18  ;;  %7730 = vmatpush1.bf16.msra.mxu1 %v11622_v20  ;;  %v851_v18 = vld [vmem:[%s17543_s1 + $0x19a8] sm:$0xff]  ;;  %v11668_v20 = vcombine.low %v838_v5, %v842_v6  ;;  %v886_v5 = vld [vmem:[%s17543_s1 + $0x1ac0] sm:$0xff] }
 0x183   :  { %7371 = vmatprep.subr.bf16.mxu0 %v11629_v21  ;;  %7740 = vmatprep.subr.bf16.mxu1 %v11631_v22  ;;  %v11670_v21 = vcombine.low %v839_v7, %v843_v10  ;;  %v11677_v22 = vcombine.high %v846_v14, %v850_v16  ;;  %v11679_v24 = vcombine.high %v847_v17, %v851_v18  ;;  %v890_v6 = vld [vmem:[%s17543_s1 + $0x1ae0] sm:$0xff]  ;;  %v887_v7 = vld [vmem:[%s17543_s1 + $0x1ac8] sm:$0xff] }
 0x184   :  { %v891_v10 = vld [vmem:[%s17543_s1 + $0x1ae8] sm:$0xff] }
 0x185   :  { %7363 = vmatmul.mubr.bf16.vlgmr.msra.gmra.mrb[0].mxu0 %v14246_v59  ;;  %7732 = vmatmul.mubr.bf16.vlgmr.msra.gmra.mrb[0].mxu1 %v14246_v59 }
 0x186   :  { %7372 = vmatpush1.bf16.msra.mxu0 %v11628_v30  ;;  %7741 = vmatpush1.bf16.msra.mxu1 %v11630_v32  ;;  %v11676_v30 = vcombine.low %v846_v14, %v850_v16  ;;  %v11678_v32 = vcombine.low %v847_v17, %v851_v18  ;;  %v894_v14 = vld [vmem:[%s17543_s1 + $0x1b00] sm:$0xff]  ;;  %v895_v17 = vld [vmem:[%s17543_s1 + $0x1b08] sm:$0xff] }
 0x187   :  { %7373 = vmatprep.subr.bf16.mxu0 %v11637_v33  ;;  %7742 = vmatprep.subr.bf16.mxu1 %v11639_v34  ;;  %v11685_v33 = vcombine.high %v854_v25, %v858_v26  ;;  %v11687_v34 = vcombine.high %v855_v27, %v859_v63  ;;  %v898_v16 = vld [vmem:[%s17543_s1 + $0x1b20] sm:$0xff]  ;;  %v899_v18 = vld [vmem:[%s17543_s1 + $0x1b28] sm:$0xff] }
 0x188   :  { %7403 = vmatprep.mubr.bf16.mxu0 %v14261_v37  ;;  %7772 = vmatprep.mubr.bf16.mxu1 %v14261_v37 }
 0x18a   :  { %7374 = vmatpush1.bf16.msra.mxu0 %v11636_v41  ;;  %7743 = vmatpush1.bf16.msra.mxu1 %v11638_v42  ;;  %v11684_v41 = vcombine.low %v854_v25, %v858_v26  ;;  %v11686_v42 = vcombine.low %v855_v27, %v859_v63  ;;  %v902_v25 = vld [vmem:[%s17543_s1 + $0x1b40] sm:$0xff]  ;;  %v903_v27 = vld [vmem:[%s17543_s1 + $0x1b48] sm:$0xff] }
 0x18b   :  { %7375 = vmatprep.subr.bf16.mxu0 %v11645_v44  ;;  %7744 = vmatprep.subr.bf16.mxu1 %v11647_v45  ;;  %v11693_v44 = vcombine.high %v862_v35, %v866_v36  ;;  %v11695_v45 = vcombine.high %v863_v39, %v867_v40  ;;  %v906_v26 = vld [vmem:[%s17543_s1 + $0x1b60] sm:$0xff]  ;;  %v907_v63 = vld [vmem:[%s17543_s1 + $0x1b68] sm:$0xff] }
 0x18e   :  { %7376 = vmatpush1.bf16.msra.mxu0 %v11644_v52  ;;  %7745 = vmatpush1.bf16.msra.mxu1 %v11646_v54  ;;  %v11692_v52 = vcombine.low %v862_v35, %v866_v36  ;;  %v11694_v54 = vcombine.low %v863_v39, %v867_v40  ;;  %v910_v35 = vld [vmem:[%s17543_s1 + $0x1b80] sm:$0xff]  ;;  %v911_v39 = vld [vmem:[%s17543_s1 + $0x1b88] sm:$0xff] }
 0x18f   :  { %7377 = vmatprep.subr.bf16.mxu0 %v11653_v55  ;;  %7746 = vmatprep.subr.bf16.mxu1 %v11655_v56  ;;  %v11701_v55 = vcombine.high %v870_v46, %v874_v47  ;;  %v11703_v56 = vcombine.high %v871_v49, %v875_v50  ;;  %v914_v36 = vld [vmem:[%s17543_s1 + $0x1ba0] sm:$0xff]  ;;  %v915_v40 = vld [vmem:[%s17543_s1 + $0x1ba8] sm:$0xff] }
 0x192   :  { %7378 = vmatpush1.bf16.msra.mxu0 %v11652_v0  ;;  %7747 = vmatpush1.bf16.msra.mxu1 %v11654_v2  ;;  %v11700_v0 = vcombine.low %v870_v46, %v874_v47  ;;  %v11702_v2 = vcombine.low %v871_v49, %v875_v50  ;;  %v918_v46 = vld [vmem:[%s17543_s1 + $0x1bc0] sm:$0xff]  ;;  %v919_v49 = vld [vmem:[%s17543_s1 + $0x1bc8] sm:$0xff] }
 0x193   :  { %7379 = vmatprep.subr.bf16.mxu0 %v11661_v28  ;;  %7748 = vmatprep.subr.bf16.mxu1 %v11663_v3  ;;  %v11709_v28 = vcombine.high %v878_v57, %v882_v60  ;;  %v11711_v3 = vcombine.high %v879_v8, %v883_v61  ;;  %v922_v47 = vld [vmem:[%s17543_s1 + $0x1be0] sm:$0xff]  ;;  %v923_v50 = vld [vmem:[%s17543_s1 + $0x1be8] sm:$0xff] }
 0x196   :  { %7380 = vmatpush1.bf16.msra.mxu0 %v11660_v11  ;;  %7749 = vmatpush1.bf16.msra.mxu1 %v11662_v12  ;;  %v11708_v11 = vcombine.low %v878_v57, %v882_v60  ;;  %v11710_v12 = vcombine.low %v879_v8, %v883_v61  ;;  %v926_v57 = vld [vmem:[%s17543_s1 + $0x1c00] sm:$0xff]  ;;  %v927_v8 = vld [vmem:[%s17543_s1 + $0x1c08] sm:$0xff] }
 0x197   :  { %7381 = vmatprep.subr.bf16.mxu0 %v11669_v13  ;;  %7750 = vmatprep.subr.bf16.mxu1 %v11671_v1  ;;  %v11717_v13 = vcombine.high %v886_v5, %v890_v6  ;;  %v11719_v1 = vcombine.high %v887_v7, %v891_v10  ;;  %v930_v60 = vld [vmem:[%s17543_s1 + $0x1c20] sm:$0xff]  ;;  %v931_v61 = vld [vmem:[%s17543_s1 + $0x1c28] sm:$0xff] }
 0x19a   :  { %7382 = vmatpush1.bf16.msra.mxu0 %v11668_v20  ;;  %7751 = vmatpush1.bf16.msra.mxu1 %v11670_v21  ;;  %v11716_v20 = vcombine.low %v886_v5, %v890_v6  ;;  %v11718_v21 = vcombine.low %v887_v7, %v891_v10  ;;  %v934_v5 = vld [vmem:[%s17543_s1 + $0x1c40] sm:$0xff]  ;;  %v14449_v7 = vrot.slane %v14228_v15, %v13051_v53  ;;  %v935_v10 = vld [vmem:[%s17543_s1 + $0x1c48] sm:$0xff] }
 0x19b   :  { %7383 = vmatprep.subr.bf16.mxu0 %v11677_v22  ;;  %7752 = vmatprep.subr.bf16.mxu1 %v11679_v24  ;;  %v11725_v22 = vcombine.high %v894_v14, %v898_v16  ;;  %v11727_v24 = vcombine.high %v895_v17, %v899_v18  ;;  %v938_v6 = vld [vmem:[%s17543_s1 + $0x1c60] sm:$0xff] }
 0x19c   :  { %v942_v15 = vld [vmem:[%s17543_s1 + $0x1c80] sm:$0xff] }
 0x19e   :  { %7384 = vmatpush1.bf16.msra.mxu0 %v11676_v30  ;;  %7753 = vmatpush1.bf16.msra.mxu1 %v11678_v32  ;;  %v11724_v30 = vcombine.low %v894_v14, %v898_v16  ;;  %v11726_v32 = vcombine.low %v895_v17, %v899_v18  ;;  %v946_v16 = vld [vmem:[%s17543_s1 + $0x1ca0] sm:$0xff]  ;;  %v14465_v17 = vcombine.high %v14261_v37, %v14261_v37  ;;  %v943_v18 = vld [vmem:[%s17543_s1 + $0x1c88] sm:$0xff] }
 0x19f   :  { %7385 = vmatprep.subr.bf16.mxu0 %v11685_v33  ;;  %7754 = vmatprep.subr.bf16.mxu1 %v11687_v34  ;;  %v11733_v33 = vcombine.high %v902_v25, %v906_v26  ;;  %v11735_v34 = vcombine.high %v903_v27, %v907_v63 }
 0x1a2   :  { %7386 = vmatpush1.bf16.msra.mxu0 %v11684_v41  ;;  %7755 = vmatpush1.bf16.msra.mxu1 %v11686_v42  ;;  %v11732_v41 = vcombine.low %v902_v25, %v906_v26  ;;  %v11734_v42 = vcombine.low %v903_v27, %v907_v63  ;;  %v950_v26 = vld [vmem:[%s17543_s1 + $0x1cc0] sm:$0xff]  ;;  %v951_v63 = vld [vmem:[%s17543_s1 + $0x1cc8] sm:$0xff] }
 0x1a3   :  { %7387 = vmatprep.subr.bf16.mxu0 %v11693_v44  ;;  %7756 = vmatprep.subr.bf16.mxu1 %v11695_v45  ;;  %v11741_v44 = vcombine.high %v910_v35, %v914_v36  ;;  %v11743_v45 = vcombine.high %v911_v39, %v915_v40  ;;  %v954_v27 = vld [vmem:[%s17543_s1 + $0x1ce0] sm:$0xff] }
 0x1a6   :  { %7388 = vmatpush1.bf16.msra.mxu0 %v11692_v52  ;;  %7757 = vmatpush1.bf16.msra.mxu1 %v11694_v54  ;;  %v11740_v52 = vcombine.low %v910_v35, %v914_v36  ;;  %v11742_v54 = vcombine.low %v911_v39, %v915_v40  ;;  %v958_v36 = vld [vmem:[%s17543_s1 + $0x1d00] sm:$0xff]  ;;  %v959_v40 = vld [vmem:[%s17543_s1 + $0x1d08] sm:$0xff] }
 0x1a7   :  { %7389 = vmatprep.subr.bf16.mxu0 %v11701_v55  ;;  %7758 = vmatprep.subr.bf16.mxu1 %v11703_v56  ;;  %v11749_v55 = vcombine.high %v918_v46, %v922_v47  ;;  %v11751_v56 = vcombine.high %v919_v49, %v923_v50  ;;  %v962_v39 = vld [vmem:[%s17543_s1 + $0x1d20] sm:$0xff] }
 0x1aa   :  { %7390 = vmatpush1.bf16.msra.mxu0 %v11700_v0  ;;  %7759 = vmatpush1.bf16.msra.mxu1 %v11702_v2  ;;  %v11748_v0 = vcombine.low %v918_v46, %v922_v47  ;;  %v11750_v2 = vcombine.low %v919_v49, %v923_v50  ;;  %v966_v47 = vld [vmem:[%s17543_s1 + $0x1d40] sm:$0xff]  ;;  %v967_v50 = vld [vmem:[%s17543_s1 + $0x1d48] sm:$0xff] }
 0x1ab   :  { %7391 = vmatprep.subr.bf16.mxu0 %v11709_v28  ;;  %7760 = vmatprep.subr.bf16.mxu1 %v11711_v3  ;;  %v11757_v28 = vcombine.high %v926_v57, %v930_v60  ;;  %v11759_v3 = vcombine.high %v927_v8, %v931_v61  ;;  %v970_v49 = vld [vmem:[%s17543_s1 + $0x1d60] sm:$0xff] }
 0x1ae   :  { %7392 = vmatpush1.bf16.msra.mxu0 %v11708_v11  ;;  %7761 = vmatpush1.bf16.msra.mxu1 %v11710_v12  ;;  %v939_v11 = vld [vmem:[%s17543_s1 + $0x1c68] sm:$0xff]  ;;  %v11756_v12 = vcombine.low %v926_v57, %v930_v60  ;;  %v974_v60 = vld [vmem:[%s17543_s1 + $0x1d80] sm:$0xff] }
 0x1af   :  { %7393 = vmatprep.subr.bf16.mxu0 %v11717_v13  ;;  %7762 = vmatprep.subr.bf16.mxu1 %v11719_v1  ;;  %v11758_v13 = vcombine.low %v927_v8, %v931_v61  ;;  %v11765_v1 = vcombine.high %v934_v5, %v938_v6  ;;  %v11767_v14 = vcombine.high %v935_v10, %v939_v11  ;;  %v978_v8 = vld [vmem:[%s17543_s1 + $0x1da0] sm:$0xff]  ;;  %v975_v61 = vld [vmem:[%s17543_s1 + $0x1d88] sm:$0xff] }
 0x1b2   :  { %7394 = vmatpush1.bf16.msra.mxu0 %v11716_v20  ;;  %7763 = vmatpush1.bf16.msra.mxu1 %v11718_v21  ;;  %v947_v20 = vld [vmem:[%s17543_s1 + $0x1ca8] sm:$0xff]  ;;  %v11764_v21 = vcombine.low %v934_v5, %v938_v6  ;;  %v982_v6 = vld [vmem:[%s17543_s1 + $0x1dc0] sm:$0xff] }
 0x1b3   :  { %7395 = vmatprep.subr.bf16.mxu0 %v11725_v22  ;;  %7764 = vmatprep.subr.bf16.mxu1 %v11727_v24  ;;  %v11766_v22 = vcombine.low %v935_v10, %v939_v11  ;;  %v11773_v24 = vcombine.high %v942_v15, %v946_v16  ;;  %v11775_v25 = vcombine.high %v943_v18, %v947_v20  ;;  %v986_v10 = vld [vmem:[%s17543_s1 + $0x1de0] sm:$0xff]  ;;  %v983_v11 = vld [vmem:[%s17543_s1 + $0x1dc8] sm:$0xff] }
 0x1b6   :  { %7396 = vmatpush1.bf16.msra.mxu0 %v11724_v30  ;;  %7765 = vmatpush1.bf16.msra.mxu1 %v11726_v32  ;;  %v955_v30 = vld [vmem:[%s17543_s1 + $0x1ce8] sm:$0xff]  ;;  %v11772_v32 = vcombine.low %v942_v15, %v946_v16  ;;  %v990_v16 = vld [vmem:[%s17543_s1 + $0x1e00] sm:$0xff] }
 0x1b7   :  { %7397 = vmatprep.subr.bf16.mxu0 %v11733_v33  ;;  %7766 = vmatprep.subr.bf16.mxu1 %v11735_v34  ;;  %v11774_v33 = vcombine.low %v943_v18, %v947_v20  ;;  %v11781_v34 = vcombine.high %v950_v26, %v954_v27  ;;  %v11783_v35 = vcombine.high %v951_v63, %v955_v30  ;;  %v994_v18 = vld [vmem:[%s17543_s1 + $0x1e20] sm:$0xff]  ;;  %v991_v20 = vld [vmem:[%s17543_s1 + $0x1e08] sm:$0xff] }
 0x1ba   :  { %7398 = vmatpush1.bf16.msra.mxu0 %v11732_v41  ;;  %7767 = vmatpush1.bf16.msra.mxu1 %v11734_v42  ;;  %v963_v41 = vld [vmem:[%s17543_s1 + $0x1d28] sm:$0xff]  ;;  %v11780_v42 = vcombine.low %v950_v26, %v954_v27  ;;  %v998_v27 = vld [vmem:[%s17543_s1 + $0x1e40] sm:$0xff] }
 0x1bb   :  { %7399 = vmatprep.subr.bf16.mxu0 %v11741_v44  ;;  %7768 = vmatprep.subr.bf16.mxu1 %v11743_v45  ;;  %v11782_v44 = vcombine.low %v951_v63, %v955_v30  ;;  %v11789_v45 = vcombine.high %v958_v36, %v962_v39  ;;  %v11791_v46 = vcombine.high %v959_v40, %v963_v41  ;;  %v1002_v63 = vld [vmem:[%s17543_s1 + $0x1e60] sm:$0xff]  ;;  %v999_v30 = vld [vmem:[%s17543_s1 + $0x1e48] sm:$0xff] }
 0x1be   :  { %7400 = vmatpush1.bf16.msra.mxu0 %v11740_v52  ;;  %7769 = vmatpush1.bf16.msra.mxu1 %v11742_v54  ;;  %v971_v52 = vld [vmem:[%s17543_s1 + $0x1d68] sm:$0xff]  ;;  %v11788_v54 = vcombine.low %v958_v36, %v962_v39  ;;  %v1006_v39 = vld [vmem:[%s17543_s1 + $0x1e80] sm:$0xff] }
 0x1bf   :  { %7401 = vmatprep.subr.bf16.mxu0 %v11749_v55  ;;  %7770 = vmatprep.subr.bf16.mxu1 %v11751_v56  ;;  %v11790_v55 = vcombine.low %v959_v40, %v963_v41  ;;  %v11797_v56 = vcombine.high %v966_v47, %v970_v49  ;;  %v11799_v57 = vcombine.high %v967_v50, %v971_v52  ;;  %v1010_v40 = vld [vmem:[%s17543_s1 + $0x1ea0] sm:$0xff]  ;;  %v1007_v41 = vld [vmem:[%s17543_s1 + $0x1e88] sm:$0xff] }
 0x1c2   :  { %7402 = vmatpush1.bf16.msra.mxu0 %v11748_v0  ;;  %7771 = vmatpush1.bf16.msra.mxu1 %v11750_v2  ;;  %v979_v0 = vld [vmem:[%s17543_s1 + $0x1da8] sm:$0xff]  ;;  %v11796_v2 = vcombine.low %v966_v47, %v970_v49  ;;  %v1014_v49 = vld [vmem:[%s17543_s1 + $0x1ec0] sm:$0xff] }
 0x1c3   :  { %7412 = vmatprep.subr.bf16.mxu0 %v11757_v28  ;;  %7781 = vmatprep.subr.bf16.mxu1 %v11759_v3  ;;  %v11798_v28 = vcombine.low %v967_v50, %v971_v52  ;;  %v11805_v3 = vcombine.high %v974_v60, %v978_v8  ;;  %v11807_v5 = vcombine.high %v975_v61, %v979_v0  ;;  %v1018_v50 = vld [vmem:[%s17543_s1 + $0x1ee0] sm:$0xff]  ;;  %v1015_v52 = vld [vmem:[%s17543_s1 + $0x1ec8] sm:$0xff] }
 0x1c5   :  { %7404 = vmatmul.mubr.bf16.vlgmr.msra.gmra.mrb[0].mxu0 %v14449_v7  ;;  %7773 = vmatmul.mubr.bf16.vlgmr.msra.gmra.mrb[0].mxu1 %v14449_v7 }
 0x1c6   :  { %7413 = vmatpush1.bf16.msra.mxu0 %v11756_v12  ;;  %7782 = vmatpush1.bf16.msra.mxu1 %v11758_v13  ;;  %v987_v12 = vld [vmem:[%s17543_s1 + $0x1de8] sm:$0xff]  ;;  %v11804_v13 = vcombine.low %v974_v60, %v978_v8  ;;  %v1022_v8 = vld [vmem:[%s17543_s1 + $0x1f00] sm:$0xff] }
 0x1c7   :  { %7414 = vmatprep.subr.bf16.mxu0 %v11765_v1  ;;  %7783 = vmatprep.subr.bf16.mxu1 %v11767_v14  ;;  %v11806_v1 = vcombine.low %v975_v61, %v979_v0  ;;  %v11813_v14 = vcombine.high %v982_v6, %v986_v10  ;;  %v11815_v15 = vcombine.high %v983_v11, %v987_v12  ;;  %v1026_v61 = vld [vmem:[%s17543_s1 + $0x1f20] sm:$0xff]  ;;  %v1023_v0 = vld [vmem:[%s17543_s1 + $0x1f08] sm:$0xff] }
 0x1c8   :  { %7444 = vmatprep.mubr.bf16.mxu0 %v14465_v17  ;;  %7813 = vmatprep.mubr.bf16.mxu1 %v14465_v17 }
 0x1ca   :  { %7415 = vmatpush1.bf16.msra.mxu0 %v11764_v21  ;;  %7784 = vmatpush1.bf16.msra.mxu1 %v11766_v22  ;;  %v995_v21 = vld [vmem:[%s17543_s1 + $0x1e28] sm:$0xff]  ;;  %v11812_v22 = vcombine.low %v982_v6, %v986_v10  ;;  %v1030_v10 = vld [vmem:[%s17543_s1 + $0x1f40] sm:$0xff] }
 0x1cb   :  { %7416 = vmatprep.subr.bf16.mxu0 %v11773_v24  ;;  %7785 = vmatprep.subr.bf16.mxu1 %v11775_v25  ;;  %v11814_v24 = vcombine.low %v983_v11, %v987_v12  ;;  %v11821_v25 = vcombine.high %v990_v16, %v994_v18  ;;  %v11823_v26 = vcombine.high %v991_v20, %v995_v21  ;;  %v1034_v11 = vld [vmem:[%s17543_s1 + $0x1f60] sm:$0xff]  ;;  %v1031_v12 = vld [vmem:[%s17543_s1 + $0x1f48] sm:$0xff] }
 0x1ce   :  { %7417 = vmatpush1.bf16.msra.mxu0 %v11772_v32  ;;  %7786 = vmatpush1.bf16.msra.mxu1 %v11774_v33  ;;  %v1003_v32 = vld [vmem:[%s17543_s1 + $0x1e68] sm:$0xff]  ;;  %v11820_v33 = vcombine.low %v990_v16, %v994_v18  ;;  %v1038_v18 = vld [vmem:[%s17543_s1 + $0x1f80] sm:$0xff] }
 0x1cf   :  { %7418 = vmatprep.subr.bf16.mxu0 %v11781_v34  ;;  %7787 = vmatprep.subr.bf16.mxu1 %v11783_v35  ;;  %v11822_v34 = vcombine.low %v991_v20, %v995_v21  ;;  %v11829_v35 = vcombine.high %v998_v27, %v1002_v63  ;;  %v11831_v36 = vcombine.high %v999_v30, %v1003_v32  ;;  %v1042_v20 = vld [vmem:[%s17543_s1 + $0x1fa0] sm:$0xff]  ;;  %v1039_v21 = vld [vmem:[%s17543_s1 + $0x1f88] sm:$0xff] }
 0x1d2   :  { %7419 = vmatpush1.bf16.msra.mxu0 %v11780_v42  ;;  %7788 = vmatpush1.bf16.msra.mxu1 %v11782_v44  ;;  %v1011_v42 = vld [vmem:[%s17543_s1 + $0x1ea8] sm:$0xff]  ;;  %v11828_v44 = vcombine.low %v998_v27, %v1002_v63  ;;  %v1046_v63 = vld [vmem:[%s17543_s1 + $0x1fc0] sm:$0xff] }
 0x1d3   :  { %7420 = vmatprep.subr.bf16.mxu0 %v11789_v45  ;;  %7789 = vmatprep.subr.bf16.mxu1 %v11791_v46  ;;  %v11830_v45 = vcombine.low %v999_v30, %v1003_v32  ;;  %v11837_v46 = vcombine.high %v1006_v39, %v1010_v40  ;;  %v11839_v47 = vcombine.high %v1007_v41, %v1011_v42  ;;  %v1050_v30 = vld [vmem:[%s17543_s1 + $0x1fe0] sm:$0xff]  ;;  %v1047_v32 = vld [vmem:[%s17543_s1 + $0x1fc8] sm:$0xff] }
 0x1d6   :  { %7421 = vmatpush1.bf16.msra.mxu0 %v11788_v54  ;;  %7790 = vmatpush1.bf16.msra.mxu1 %v11790_v55  ;;  %v1019_v54 = vld [vmem:[%s17543_s1 + $0x1ee8] sm:$0xff]  ;;  %v11836_v55 = vcombine.low %v1006_v39, %v1010_v40  ;;  %v1054_v40 = vld [vmem:[%s17543_s1 + $0x2000] sm:$0xff] }
 0x1d7   :  { %7422 = vmatprep.subr.bf16.mxu0 %v11797_v56  ;;  %7791 = vmatprep.subr.bf16.mxu1 %v11799_v57  ;;  %v11838_v56 = vcombine.low %v1007_v41, %v1011_v42  ;;  %v11845_v57 = vcombine.high %v1014_v49, %v1018_v50  ;;  %v11847_v60 = vcombine.high %v1015_v52, %v1019_v54  ;;  %v1058_v41 = vld [vmem:[%s17543_s1 + $0x2020] sm:$0xff]  ;;  %v1055_v42 = vld [vmem:[%s17543_s1 + $0x2008] sm:$0xff] }
 0x1da   :  { %7423 = vmatpush1.bf16.msra.mxu0 %v11796_v2  ;;  %7792 = vmatpush1.bf16.msra.mxu1 %v11798_v28  ;;  %v1027_v2 = vld [vmem:[%s17543_s1 + $0x1f28] sm:$0xff]  ;;  %v11844_v28 = vcombine.low %v1014_v49, %v1018_v50  ;;  %v11885_v49 = vcombine.high %v1054_v40, %v1058_v41 }
 0x1db   :  { %7424 = vmatprep.subr.bf16.mxu0 %v11805_v3  ;;  %7793 = vmatprep.subr.bf16.mxu1 %v11807_v5  ;;  %v11846_v3 = vcombine.low %v1015_v52, %v1019_v54  ;;  %v11853_v5 = vcombine.high %v1022_v8, %v1026_v61  ;;  %v11855_v6 = vcombine.high %v1023_v0, %v1027_v2  ;;  %v1062_v52 = vld [vmem:[%s17543_s1 + $0x2040] sm:$0xff] }
 0x1dc   :  { %v1066_v54 = vld [vmem:[%s17543_s1 + $0x2060] sm:$0xff] }
 0x1de   :  { %7425 = vmatpush1.bf16.msra.mxu0 %v11804_v13  ;;  %7794 = vmatpush1.bf16.msra.mxu1 %v11806_v1  ;;  %v1035_v13 = vld [vmem:[%s17543_s1 + $0x1f68] sm:$0xff]  ;;  %v11852_v1 = vcombine.low %v1022_v8, %v1026_v61  ;;  %v11884_v8 = vcombine.low %v1054_v40, %v1058_v41 }
 0x1df   :  { %7426 = vmatprep.subr.bf16.mxu0 %v11813_v14  ;;  %7795 = vmatprep.subr.bf16.mxu1 %v11815_v15  ;;  %v11854_v14 = vcombine.low %v1023_v0, %v1027_v2  ;;  %v11861_v15 = vcombine.high %v1030_v10, %v1034_v11  ;;  %v11863_v16 = vcombine.high %v1031_v12, %v1035_v13  ;;  %v1099_v40 = vld [vmem:[%s17543_s1 + $0x2168] sm:$0xff] }
 0x1e0   :  { %v11893_v0 = vcombine.high %v1062_v52, %v1066_v54 }
 0x1e2   :  { %7427 = vmatpush1.bf16.msra.mxu0 %v11812_v22  ;;  %7796 = vmatpush1.bf16.msra.mxu1 %v11814_v24  ;;  %v1043_v22 = vld [vmem:[%s17543_s1 + $0x1fa8] sm:$0xff]  ;;  %v11860_v24 = vcombine.low %v1030_v10, %v1034_v11  ;;  %v11892_v11 = vcombine.low %v1062_v52, %v1066_v54 }
 0x1e3   :  { %7428 = vmatprep.subr.bf16.mxu0 %v11821_v25  ;;  %7797 = vmatprep.subr.bf16.mxu1 %v11823_v26  ;;  %v11862_v25 = vcombine.low %v1031_v12, %v1035_v13  ;;  %v11869_v26 = vcombine.high %v1038_v18, %v1042_v20  ;;  %v11871_v27 = vcombine.high %v1039_v21, %v1043_v22  ;;  %v1075_v10 = vld [vmem:[%s17543_s1 + $0x20a8] sm:$0xff] }
 0x1e4   :  { %v1107_v52 = vld [vmem:[%s17543_s1 + $0x21a8] sm:$0xff] }
 0x1e6   :  { %7429 = vmatpush1.bf16.msra.mxu0 %v11820_v33  ;;  %7798 = vmatpush1.bf16.msra.mxu1 %v11822_v34  ;;  %v1051_v33 = vld [vmem:[%s17543_s1 + $0x1fe8] sm:$0xff]  ;;  %v11868_v34 = vcombine.low %v1038_v18, %v1042_v20 }
 0x1e7   :  { %7430 = vmatprep.subr.bf16.mxu0 %v11829_v35  ;;  %7799 = vmatprep.subr.bf16.mxu1 %v11831_v36  ;;  %v11870_v35 = vcombine.low %v1039_v21, %v1043_v22  ;;  %v11877_v36 = vcombine.high %v1046_v63, %v1050_v30  ;;  %v11879_v39 = vcombine.high %v1047_v32, %v1051_v33  ;;  %v1083_v18 = vld [vmem:[%s17543_s1 + $0x20e8] sm:$0xff] }
 0x1ea   :  { %7431 = vmatpush1.bf16.msra.mxu0 %v11828_v44  ;;  %7800 = vmatpush1.bf16.msra.mxu1 %v11830_v45  ;;  %v1059_v44 = vld [vmem:[%s17543_s1 + $0x2028] sm:$0xff]  ;;  %v14648_v45 = vld.sshfl [vmem:[%s17544_s0 + $0x10] sm:$0x11 pattern:$0x75316420] }
 0x1eb   :  { %7432 = vmatprep.subr.bf16.mxu0 %v11837_v46  ;;  %7801 = vmatprep.subr.bf16.mxu1 %v11839_v47  ;;  %v11876_v46 = vcombine.low %v1046_v63, %v1050_v30  ;;  %v11878_v47 = vcombine.low %v1047_v32, %v1051_v33  ;;  %v11887_v50 = vcombine.high %v1055_v42, %v1059_v44  ;;  %v1091_v63 = vld [vmem:[%s17543_s1 + $0x2128] sm:$0xff] }
 0x1ec   :  { %v11886_v61 = vcombine.low %v1055_v42, %v1059_v44 }
 0x1ee   :  { %7433 = vmatpush1.bf16.msra.mxu0 %v11836_v55  ;;  %7802 = vmatpush1.bf16.msra.mxu1 %v11838_v56  ;;  %v1332_v55 = vcombine.high %v14648_v45, %v14648_v45  ;;  %v14660_v56 = vcombine.high %v14449_v7, %v14449_v7 }
 0x1ef   :  { %7434 = vmatprep.subr.bf16.mxu0 %v11845_v57  ;;  %7803 = vmatprep.subr.bf16.mxu1 %v11847_v60  ;;  %v1063_v57 = vld [vmem:[%s17543_s1 + $0x2048] sm:$0xff] }
 0x1f0   :  { %v1067_v60 = vld [vmem:[%s17543_s1 + $0x2068] sm:$0xff] }
 0x1f1   :  { %v11895_v2 = vcombine.high %v1063_v57, %v1067_v60  ;;  %v11894_v12 = vcombine.low %v1063_v57, %v1067_v60 }
 0x1f2   :  { %7435 = vmatpush1.bf16.msra.mxu0 %v11844_v28  ;;  %7804 = vmatpush1.bf16.msra.mxu1 %v11846_v3  ;;  %v1070_v28 = vld [vmem:[%s17543_s1 + $0x2080] sm:$0xff] }
 0x1f3   :  { %7436 = vmatprep.subr.bf16.mxu0 %v11853_v5  ;;  %7805 = vmatprep.subr.bf16.mxu1 %v11855_v6  ;;  %v1074_v3 = vld [vmem:[%s17543_s1 + $0x20a0] sm:$0xff]  ;;  %v14675_v5 = vrot.slane %v1332_v55, %v13051_v53  ;;  %v1071_v6 = vld [vmem:[%s17543_s1 + $0x2088] sm:$0xff] }
 0x1f4   :  { %v11901_v13 = vcombine.high %v1070_v28, %v1074_v3  ;;  %v11900_v20 = vcombine.low %v1070_v28, %v1074_v3  ;;  %v11902_v21 = vcombine.low %v1071_v6, %v1075_v10 }
 0x1f6   :  { %7437 = vmatpush1.bf16.msra.mxu0 %v11852_v1  ;;  %7806 = vmatpush1.bf16.msra.mxu1 %v11854_v14  ;;  %v11903_v1 = vcombine.high %v1071_v6, %v1075_v10  ;;  %v1078_v14 = vld [vmem:[%s17543_s1 + $0x20c0] sm:$0xff] }
 0x1f7   :  { %7438 = vmatprep.subr.bf16.mxu0 %v11861_v15  ;;  %7807 = vmatprep.subr.bf16.mxu1 %v11863_v16  ;;  %v1082_v15 = vld [vmem:[%s17543_s1 + $0x20e0] sm:$0xff]  ;;  %v1079_v16 = vld [vmem:[%s17543_s1 + $0x20c8] sm:$0xff] }
 0x1f8   :  { %v11909_v22 = vcombine.high %v1078_v14, %v1082_v15  ;;  %v11908_v30 = vcombine.low %v1078_v14, %v1082_v15  ;;  %v11910_v32 = vcombine.low %v1079_v16, %v1083_v18 }
 0x1fa   :  { %7439 = vmatpush1.bf16.msra.mxu0 %v11860_v24  ;;  %7808 = vmatpush1.bf16.msra.mxu1 %v11862_v25  ;;  %v11911_v24 = vcombine.high %v1079_v16, %v1083_v18  ;;  %v1086_v25 = vld [vmem:[%s17543_s1 + $0x2100] sm:$0xff] }
 0x1fb   :  { %7440 = vmatprep.subr.bf16.mxu0 %v11869_v26  ;;  %7809 = vmatprep.subr.bf16.mxu1 %v11871_v27  ;;  %v1090_v26 = vld [vmem:[%s17543_s1 + $0x2120] sm:$0xff]  ;;  %v1087_v27 = vld [vmem:[%s17543_s1 + $0x2108] sm:$0xff] }
 0x1fc   :  { %v11917_v33 = vcombine.high %v1086_v25, %v1090_v26  ;;  %v11916_v41 = vcombine.low %v1086_v25, %v1090_v26  ;;  %v11918_v42 = vcombine.low %v1087_v27, %v1091_v63 }
 0x1fe   :  { %7441 = vmatpush1.bf16.msra.mxu0 %v11868_v34  ;;  %7810 = vmatpush1.bf16.msra.mxu1 %v11870_v35  ;;  %v11919_v34 = vcombine.high %v1087_v27, %v1091_v63  ;;  %v1094_v35 = vld [vmem:[%s17543_s1 + $0x2140] sm:$0xff] }
 0x1ff   :  { %7442 = vmatprep.subr.bf16.mxu0 %v11877_v36  ;;  %7811 = vmatprep.subr.bf16.mxu1 %v11879_v39  ;;  %v1098_v36 = vld [vmem:[%s17543_s1 + $0x2160] sm:$0xff]  ;;  %v1095_v39 = vld [vmem:[%s17543_s1 + $0x2148] sm:$0xff] }
 0x200   :  { %v11925_v44 = vcombine.high %v1094_v35, %v1098_v36  ;;  %v11924_v54 = vcombine.low %v1094_v35, %v1098_v36  ;;  %v11926_v55 = vcombine.low %v1095_v39, %v1099_v40 }
 0x202   :  { %7443 = vmatpush1.bf16.msra.mxu0 %v11876_v46  ;;  %7812 = vmatpush1.bf16.msra.mxu1 %v11878_v47  ;;  %v11927_v46 = vcombine.high %v1095_v39, %v1099_v40  ;;  %v1102_v47 = vld [vmem:[%s17543_s1 + $0x2180] sm:$0xff] }
 0x203   :  { %7453 = vmatprep.subr.bf16.mxu0 %v11885_v49  ;;  %7822 = vmatprep.subr.bf16.mxu1 %v11887_v50  ;;  %v1106_v49 = vld [vmem:[%s17543_s1 + $0x21a0] sm:$0xff]  ;;  %v1103_v50 = vld [vmem:[%s17543_s1 + $0x2188] sm:$0xff] }
 0x204   :  { %v11933_v57 = vcombine.high %v1102_v47, %v1106_v49  ;;  %v11935_v60 = vcombine.high %v1103_v50, %v1107_v52  ;;  %v11932_v28 = vcombine.low %v1102_v47, %v1106_v49  ;;  %v11934_v3 = vcombine.low %v1103_v50, %v1107_v52 }
 0x205   :  { %7445 = vmatmul.mubr.bf16.vlgmr.msra.gmra.mrb[0].mxu0 %v14660_v56  ;;  %7814 = vmatmul.mubr.bf16.vlgmr.msra.gmra.mrb[0].mxu1 %v14660_v56 }
 0x206   :  { %7454 = vmatpush1.bf16.msra.mxu0 %v11884_v8  ;;  %7823 = vmatpush1.bf16.msra.mxu1 %v11886_v61  ;;  %v1110_v8 = vld [vmem:[%s17543_s1 + $0x21c0] sm:$0xff] }
 0x207   :  { %7455 = vmatprep.subr.bf16.mxu0 %v11893_v0  ;;  %7824 = vmatprep.subr.bf16.mxu1 %v11895_v2  ;;  %v1114_v61 = vld [vmem:[%s17543_s1 + $0x21e0] sm:$0xff]  ;;  %v1111_v0 = vld [vmem:[%s17543_s1 + $0x21c8] sm:$0xff] }
 0x208   :  { %7485 = vmatprep.mubr.bf16.mxu0 %v14675_v5  ;;  %7854 = vmatprep.mubr.bf16.mxu1 %v14675_v5  ;;  %v1115_v2 = vld [vmem:[%s17543_s1 + $0x21e8] sm:$0xff]  ;;  %v11941_v6 = vcombine.high %v1110_v8, %v1114_v61  ;;  %v11940_v14 = vcombine.low %v1110_v8, %v1114_v61 }
 0x209   :  { %v11943_v10 = vcombine.high %v1111_v0, %v1115_v2  ;;  %v11942_v15 = vcombine.low %v1111_v0, %v1115_v2 }
 0x20a   :  { %7456 = vmatpush1.bf16.msra.mxu0 %v11892_v11  ;;  %7825 = vmatpush1.bf16.msra.mxu1 %v11894_v12  ;;  %v1118_v11 = vld [vmem:[%s17543_s1 + $0x2200] sm:$0xff] }
 0x20b   :  { %7457 = vmatprep.subr.bf16.mxu0 %v11901_v13  ;;  %7826 = vmatprep.subr.bf16.mxu1 %v11903_v1  ;;  %v1122_v12 = vld [vmem:[%s17543_s1 + $0x2220] sm:$0xff]  ;;  %v1119_v13 = vld [vmem:[%s17543_s1 + $0x2208] sm:$0xff] }
 0x20c   :  { %v1123_v1 = vld [vmem:[%s17543_s1 + $0x2228] sm:$0xff]  ;;  %v11949_v16 = vcombine.high %v1118_v11, %v1122_v12  ;;  %v11948_v25 = vcombine.low %v1118_v11, %v1122_v12 }
 0x20d   :  { %v11951_v18 = vcombine.high %v1119_v13, %v1123_v1  ;;  %v11950_v26 = vcombine.low %v1119_v13, %v1123_v1 }
 0x20e   :  { %7458 = vmatpush1.bf16.msra.mxu0 %v11900_v20  ;;  %7827 = vmatpush1.bf16.msra.mxu1 %v11902_v21  ;;  %v1126_v20 = vld [vmem:[%s17543_s1 + $0x2240] sm:$0xff] }
 0x20f   :  { %7459 = vmatprep.subr.bf16.mxu0 %v11909_v22  ;;  %7828 = vmatprep.subr.bf16.mxu1 %v11911_v24  ;;  %v1130_v21 = vld [vmem:[%s17543_s1 + $0x2260] sm:$0xff]  ;;  %v1127_v22 = vld [vmem:[%s17543_s1 + $0x2248] sm:$0xff] }
 0x210   :  { %v1131_v24 = vld [vmem:[%s17543_s1 + $0x2268] sm:$0xff]  ;;  %v11957_v27 = vcombine.high %v1126_v20, %v1130_v21  ;;  %v11956_v35 = vcombine.low %v1126_v20, %v1130_v21 }
 0x211   :  { %v11959_v63 = vcombine.high %v1127_v22, %v1131_v24  ;;  %v11958_v36 = vcombine.low %v1127_v22, %v1131_v24 }
 0x212   :  { %7460 = vmatpush1.bf16.msra.mxu0 %v11908_v30  ;;  %7829 = vmatpush1.bf16.msra.mxu1 %v11910_v32  ;;  %v1134_v30 = vld [vmem:[%s17543_s1 + $0x2280] sm:$0xff] }
 0x213   :  { %7461 = vmatprep.subr.bf16.mxu0 %v11917_v33  ;;  %7830 = vmatprep.subr.bf16.mxu1 %v11919_v34  ;;  %v1138_v32 = vld [vmem:[%s17543_s1 + $0x22a0] sm:$0xff]  ;;  %v1135_v33 = vld [vmem:[%s17543_s1 + $0x2288] sm:$0xff] }
 0x214   :  { %v1139_v34 = vld [vmem:[%s17543_s1 + $0x22a8] sm:$0xff]  ;;  %v11965_v39 = vcombine.high %v1134_v30, %v1138_v32  ;;  %v11964_v47 = vcombine.low %v1134_v30, %v1138_v32 }
 0x215   :  { %v11967_v40 = vcombine.high %v1135_v33, %v1139_v34  ;;  %v11966_v49 = vcombine.low %v1135_v33, %v1139_v34 }
 0x216   :  { %7462 = vmatpush1.bf16.msra.mxu0 %v11916_v41  ;;  %7831 = vmatpush1.bf16.msra.mxu1 %v11918_v42  ;;  %v1142_v41 = vld [vmem:[%s17543_s1 + $0x22c0] sm:$0xff] }
 0x217   :  { %7463 = vmatprep.subr.bf16.mxu0 %v11925_v44  ;;  %7832 = vmatprep.subr.bf16.mxu1 %v11927_v46  ;;  %v1146_v42 = vld [vmem:[%s17543_s1 + $0x22e0] sm:$0xff]  ;;  %v1143_v44 = vld [vmem:[%s17543_s1 + $0x22c8] sm:$0xff] }
 0x218   :  { %v1147_v46 = vld [vmem:[%s17543_s1 + $0x22e8] sm:$0xff]  ;;  %v11973_v50 = vcombine.high %v1142_v41, %v1146_v42  ;;  %v11972_v8 = vcombine.low %v1142_v41, %v1146_v42 }
 0x219   :  { %v11975_v52 = vcombine.high %v1143_v44, %v1147_v46  ;;  %v11974_v61 = vcombine.low %v1143_v44, %v1147_v46 }
 0x21a   :  { %7464 = vmatpush1.bf16.msra.mxu0 %v11924_v54  ;;  %7833 = vmatpush1.bf16.msra.mxu1 %v11926_v55  ;;  %v1150_v54 = vld [vmem:[%s17543_s1 + $0x2300] sm:$0xff] }
 0x21b   :  { %7465 = vmatprep.subr.bf16.mxu0 %v11933_v57  ;;  %7834 = vmatprep.subr.bf16.mxu1 %v11935_v60  ;;  %v1154_v55 = vld [vmem:[%s17543_s1 + $0x2320] sm:$0xff]  ;;  %v1151_v57 = vld [vmem:[%s17543_s1 + $0x2308] sm:$0xff] }
 0x21c   :  { %v1155_v60 = vld [vmem:[%s17543_s1 + $0x2328] sm:$0xff]  ;;  %v11981_v0 = vcombine.high %v1150_v54, %v1154_v55  ;;  %v11980_v11 = vcombine.low %v1150_v54, %v1154_v55  ;;  %v45_v54 = vld [vmem:[%s17543_s1 + $0x78] sm:$0xff] }
 0x21d   :  { %v11983_v2 = vcombine.high %v1151_v57, %v1155_v60  ;;  %v11982_v12 = vcombine.low %v1151_v57, %v1155_v60 }
 0x21e   :  { %7466 = vmatpush1.bf16.msra.mxu0 %v11932_v28  ;;  %7835 = vmatpush1.bf16.msra.mxu1 %v11934_v3  ;;  %v1158_v28 = vld [vmem:[%s17543_s1 + $0x2340] sm:$0xff] }
 0x21f   :  { %7467 = vmatprep.subr.bf16.mxu0 %v11941_v6  ;;  %7836 = vmatprep.subr.bf16.mxu1 %v11943_v10  ;;  %v1162_v3 = vld [vmem:[%s17543_s1 + $0x2360] sm:$0xff]  ;;  %v1159_v6 = vld [vmem:[%s17543_s1 + $0x2348] sm:$0xff] }
 0x220   :  { %v1163_v10 = vld [vmem:[%s17543_s1 + $0x2368] sm:$0xff]  ;;  %v11989_v13 = vcombine.high %v1158_v28, %v1162_v3  ;;  %v11988_v20 = vcombine.low %v1158_v28, %v1162_v3 }
 0x221   :  { %v11991_v1 = vcombine.high %v1159_v6, %v1163_v10  ;;  %v11990_v21 = vcombine.low %v1159_v6, %v1163_v10  ;;  %v56_v10 = vld [vmem:[%s17543_s1 + $0xd0] sm:$0xff] }
 0x222   :  { %7468 = vmatpush1.bf16.msra.mxu0 %v11940_v14  ;;  %7837 = vmatpush1.bf16.msra.mxu1 %v11942_v15  ;;  %v1166_v14 = vld [vmem:[%s17543_s1 + $0x2380] sm:$0xff] }
 0x223   :  { %7469 = vmatprep.subr.bf16.mxu0 %v11949_v16  ;;  %7838 = vmatprep.subr.bf16.mxu1 %v11951_v18  ;;  %v1170_v15 = vld [vmem:[%s17543_s1 + $0x23a0] sm:$0xff]  ;;  %v1167_v16 = vld [vmem:[%s17543_s1 + $0x2388] sm:$0xff] }
 0x224   :  { %v1171_v18 = vld [vmem:[%s17543_s1 + $0x23a8] sm:$0xff]  ;;  %v11997_v22 = vcombine.high %v1166_v14, %v1170_v15  ;;  %v11996_v30 = vcombine.low %v1166_v14, %v1170_v15 }
 0x225   :  { %v11999_v24 = vcombine.high %v1167_v16, %v1171_v18  ;;  %v11998_v32 = vcombine.low %v1167_v16, %v1171_v18  ;;  %v64_v18 = vld [vmem:[%s17543_s1 + $0x110] sm:$0xff] }
 0x226   :  { %7470 = vmatpush1.bf16.msra.mxu0 %v11948_v25  ;;  %7839 = vmatpush1.bf16.msra.mxu1 %v11950_v26  ;;  %v1174_v25 = vld [vmem:[%s17543_s1 + $0x23c0] sm:$0xff] }
 0x227   :  { %7471 = vmatprep.subr.bf16.mxu0 %v11957_v27  ;;  %7840 = vmatprep.subr.bf16.mxu1 %v11959_v63  ;;  %v1178_v26 = vld [vmem:[%s17543_s1 + $0x23e0] sm:$0xff]  ;;  %v1175_v27 = vld [vmem:[%s17543_s1 + $0x23c8] sm:$0xff] }
 0x228   :  { %v1179_v63 = vld [vmem:[%s17543_s1 + $0x23e8] sm:$0xff]  ;;  %v12005_v33 = vcombine.high %v1174_v25, %v1178_v26  ;;  %v12004_v41 = vcombine.low %v1174_v25, %v1178_v26 }
 0x229   :  { %v12007_v34 = vcombine.high %v1175_v27, %v1179_v63  ;;  %v12006_v42 = vcombine.low %v1175_v27, %v1179_v63  ;;  %v72_v27 = vld [vmem:[%s17543_s1 + $0x150] sm:$0xff] }
 0x22a   :  { %7472 = vmatpush1.bf16.msra.mxu0 %v11956_v35  ;;  %7841 = vmatpush1.bf16.msra.mxu1 %v11958_v36  ;;  %v32_v35 = vld [vmem:[%s17543_s1 + $0x10] sm:$0xff] }
 0x22b   :  { %7473 = vmatprep.subr.bf16.mxu0 %v11965_v39  ;;  %7842 = vmatprep.subr.bf16.mxu1 %v11967_v40  ;;  %v36_v36 = vld [vmem:[%s17543_s1 + $0x30] sm:$0xff]  ;;  %v33_v39 = vld [vmem:[%s17543_s1 + $0x18] sm:$0xff] }
 0x22c   :  { %v37_v40 = vld [vmem:[%s17543_s1 + $0x38] sm:$0xff]  ;;  %v10865_v44 = vcombine.high %v32_v35, %v36_v36  ;;  %v10864_v55 = vcombine.low %v32_v35, %v36_v36  ;;  %v76_v63 = vld [vmem:[%s17543_s1 + $0x170] sm:$0xff] }
 0x22d   :  { %v10867_v46 = vcombine.high %v33_v39, %v37_v40  ;;  %v10866_v57 = vcombine.low %v33_v39, %v37_v40  ;;  %v10905_v35 = vcombine.high %v72_v27, %v76_v63  ;;  %v80_v39 = vld [vmem:[%s17543_s1 + $0x190] sm:$0xff] }
 0x22e   :  { %7474 = vmatpush1.bf16.msra.mxu0 %v11964_v47  ;;  %7843 = vmatpush1.bf16.msra.mxu1 %v11966_v49  ;;  %v40_v47 = vld [vmem:[%s17543_s1 + $0x50] sm:$0xff] }
 0x22f   :  { %7475 = vmatprep.subr.bf16.mxu0 %v11973_v50  ;;  %7844 = vmatprep.subr.bf16.mxu1 %v11975_v52  ;;  %v44_v49 = vld [vmem:[%s17543_s1 + $0x70] sm:$0xff]  ;;  %v14863_v50 = vrot.slane %v14648_v45, %v13051_v53  ;;  %v41_v52 = vld [vmem:[%s17543_s1 + $0x58] sm:$0xff] }
 0x230   :  { %v10873_v60 = vcombine.high %v40_v47, %v44_v49  ;;  %v48_v53 = vld [vmem:[%s17543_s1 + $0x90] sm:$0xff]  ;;  %v10874_v28 = vcombine.low %v41_v52, %v45_v54 }
 0x231   :  { %v52_v45 = vld [vmem:[%s17543_s1 + $0xb0] sm:$0xff] }
 0x232   :  { %7476 = vmatpush1.bf16.msra.mxu0 %v11972_v8  ;;  %7845 = vmatpush1.bf16.msra.mxu1 %v11974_v61  ;;  %v10875_v8 = vcombine.high %v41_v52, %v45_v54  ;;  %v49_v61 = vld [vmem:[%s17543_s1 + $0x98] sm:$0xff]  ;;  %v10881_v3 = vcombine.high %v48_v53, %v52_v45  ;;  %v84_v40 = vld [vmem:[%s17543_s1 + $0x1b0] sm:$0xff] }
 0x233   :  { %7477 = vmatprep.subr.bf16.mxu0 %v11981_v0  ;;  %7846 = vmatprep.subr.bf16.mxu1 %v11983_v2  ;;  %v53_v0 = vld [vmem:[%s17543_s1 + $0xb8] sm:$0xff]  ;;  %v10872_v2 = vcombine.low %v40_v47, %v44_v49  ;;  %v10913_v47 = vcombine.high %v80_v39, %v84_v40  ;;  %v88_v52 = vld [vmem:[%s17543_s1 + $0x1d0] sm:$0xff] }
 0x234   :  { %v10883_v6 = vcombine.high %v49_v61, %v53_v0  ;;  %v10882_v14 = vcombine.low %v49_v61, %v53_v0  ;;  %v92_v54 = vld [vmem:[%s17543_s1 + $0x1f0] sm:$0xff] }
 0x235   :  { %v96_v61 = vld [vmem:[%s17543_s1 + $0x210] sm:$0xff] }
 0x236   :  { %7478 = vmatpush1.bf16.msra.mxu0 %v11980_v11  ;;  %7847 = vmatpush1.bf16.msra.mxu1 %v11982_v12  ;;  %v60_v11 = vld [vmem:[%s17543_s1 + $0xf0] sm:$0xff]  ;;  %v57_v12 = vld [vmem:[%s17543_s1 + $0xd8] sm:$0xff] }
 0x237   :  { %7479 = vmatprep.subr.bf16.mxu0 %v11989_v13  ;;  %7848 = vmatprep.subr.bf16.mxu1 %v11991_v1  ;;  %v61_v13 = vld [vmem:[%s17543_s1 + $0xf8] sm:$0xff]  ;;  %v10880_v1 = vcombine.low %v48_v53, %v52_v45  ;;  %v10889_v15 = vcombine.high %v56_v10, %v60_v11  ;;  %v10921_v53 = vcombine.high %v88_v52, %v92_v54  ;;  %v100_v0 = vld [vmem:[%s17543_s1 + $0x230] sm:$0xff] }
 0x238   :  { %v10891_v16 = vcombine.high %v57_v12, %v61_v13 }
 0x23a   :  { %7480 = vmatpush1.bf16.msra.mxu0 %v11988_v20  ;;  %7849 = vmatpush1.bf16.msra.mxu1 %v11990_v21  ;;  %v68_v20 = vld [vmem:[%s17543_s1 + $0x130] sm:$0xff]  ;;  %v69_v21 = vld [vmem:[%s17543_s1 + $0x138] sm:$0xff] }
 0x23b   :  { %7481 = vmatprep.subr.bf16.mxu0 %v11997_v22  ;;  %7850 = vmatprep.subr.bf16.mxu1 %v11999_v24  ;;  %v10888_v22 = vcombine.low %v56_v10, %v60_v11  ;;  %v10890_v24 = vcombine.low %v57_v12, %v61_v13  ;;  %v10897_v25 = vcombine.high %v64_v18, %v68_v20  ;;  %v104_v12 = vld [vmem:[%s17543_s1 + $0x250] sm:$0xff] }
 0x23c   :  { %v10929_v10 = vcombine.high %v96_v61, %v100_v0  ;;  %v108_v13 = vld [vmem:[%s17543_s1 + $0x270] sm:$0xff] }
 0x23e   :  { %7482 = vmatpush1.bf16.msra.mxu0 %v11996_v30  ;;  %7851 = vmatpush1.bf16.msra.mxu1 %v11998_v32  ;;  %v73_v30 = vld [vmem:[%s17543_s1 + $0x158] sm:$0xff] }
 0x23f   :  { %7483 = vmatprep.subr.bf16.mxu0 %v12005_v33  ;;  %7852 = vmatprep.subr.bf16.mxu1 %v12007_v34  ;;  %v77_v32 = vld [vmem:[%s17543_s1 + $0x178] sm:$0xff]  ;;  %v10896_v33 = vcombine.low %v64_v18, %v68_v20  ;;  %v10937_v18 = vcombine.high %v104_v12, %v108_v13 }
 0x240   :  { %v10907_v36 = vcombine.high %v73_v30, %v77_v32 }
 0x242   :  { %7484 = vmatpush1.bf16.msra.mxu0 %v12004_v41  ;;  %7853 = vmatpush1.bf16.msra.mxu1 %v12006_v42  ;;  %v81_v41 = vld [vmem:[%s17543_s1 + $0x198] sm:$0xff] }
 0x243   :  { %7863 = vmatprep.subr.bf16.mxu0 %v10865_v44  ;;  %8232 = vmatprep.subr.bf16.mxu1 %v10867_v46  ;;  %v85_v42 = vld [vmem:[%s17543_s1 + $0x1b8] sm:$0xff]  ;;  %v10904_v44 = vcombine.low %v72_v27, %v76_v63  ;;  %v10906_v46 = vcombine.low %v73_v30, %v77_v32  ;;  %v120_v30 = vld [vmem:[%s17543_s1 + $0x2d0] sm:$0xff] }
 0x244   :  { %v10915_v49 = vcombine.high %v81_v41, %v85_v42  ;;  %v124_v32 = vld [vmem:[%s17543_s1 + $0x2f0] sm:$0xff] }
 0x245   :  { %7486 = vmatmul.mubr.bf16.vlgmr.msra.gmra.mrb[0].mxu0 %v14863_v50  ;;  %7855 = vmatmul.mubr.bf16.vlgmr.msra.gmra.mrb[0].mxu1 %v14863_v50 }
 0x246   :  { %7864 = vmatpush1.bf16.msra.mxu0 %v10864_v55  ;;  %8233 = vmatpush1.bf16.msra.mxu1 %v10866_v57  ;;  %v89_v55 = vld [vmem:[%s17543_s1 + $0x1d8] sm:$0xff] }
 0x247   :  { %7865 = vmatprep.subr.bf16.mxu0 %v10873_v60  ;;  %8234 = vmatprep.subr.bf16.mxu1 %v10875_v8  ;;  %v93_v57 = vld [vmem:[%s17543_s1 + $0x1f8] sm:$0xff]  ;;  %v10912_v60 = vcombine.low %v80_v39, %v84_v40  ;;  %v10914_v8 = vcombine.low %v81_v41, %v85_v42  ;;  %v10953_v39 = vcombine.high %v120_v30, %v124_v32  ;;  %v128_v41 = vld [vmem:[%s17543_s1 + $0x310] sm:$0xff] }
 0x248   :  { %7895 = vmatprep.mubr.bf16.mxu0 %v13089_v9  ;;  %8264 = vmatprep.mubr.bf16.mxu1 %v13089_v9  ;;  %v65_v9 = vld [vmem:[%s17543_s1 + $0x118] sm:$0xff]  ;;  %v10923_v45 = vcombine.high %v89_v55, %v93_v57  ;;  %v132_v42 = vld [vmem:[%s17543_s1 + $0x330] sm:$0xff] }
 0x249   :  { %v10899_v26 = vcombine.high %v65_v9, %v69_v21  ;;  %v10898_v34 = vcombine.low %v65_v9, %v69_v21  ;;  %v112_v9 = vld [vmem:[%s17543_s1 + $0x290] sm:$0xff] }
 0x24a   :  { %7866 = vmatpush1.bf16.msra.mxu0 %v10872_v2  ;;  %8235 = vmatpush1.bf16.msra.mxu1 %v10874_v28  ;;  %v97_v2 = vld [vmem:[%s17543_s1 + $0x218] sm:$0xff]  ;;  %v116_v21 = vld [vmem:[%s17543_s1 + $0x2b0] sm:$0xff] }
 0x24b   :  { %7867 = vmatprep.subr.bf16.mxu0 %v10881_v3  ;;  %8236 = vmatprep.subr.bf16.mxu1 %v10883_v6  ;;  %v101_v28 = vld [vmem:[%s17543_s1 + $0x238] sm:$0xff]  ;;  %v10920_v3 = vcombine.low %v88_v52, %v92_v54  ;;  %v10922_v6 = vcombine.low %v89_v55, %v93_v57  ;;  %v10945_v27 = vcombine.high %v112_v9, %v116_v21  ;;  %v136_v55 = vld [vmem:[%s17543_s1 + $0x350] sm:$0xff] }
 0x24c   :  { %v10931_v11 = vcombine.high %v97_v2, %v101_v28  ;;  %v10961_v52 = vcombine.high %v128_v41, %v132_v42  ;;  %v140_v57 = vld [vmem:[%s17543_s1 + $0x370] sm:$0xff] }
 0x24e   :  { %7868 = vmatpush1.bf16.msra.mxu0 %v10880_v1  ;;  %8237 = vmatpush1.bf16.msra.mxu1 %v10882_v14  ;;  %v105_v1 = vld [vmem:[%s17543_s1 + $0x258] sm:$0xff] }
 0x24f   :  { %7869 = vmatprep.subr.bf16.mxu0 %v10889_v15  ;;  %8238 = vmatprep.subr.bf16.mxu1 %v10891_v16  ;;  %v109_v14 = vld [vmem:[%s17543_s1 + $0x278] sm:$0xff]  ;;  %v10928_v15 = vcombine.low %v96_v61, %v100_v0  ;;  %v10930_v16 = vcombine.low %v97_v2, %v101_v28  ;;  %v10969_v61 = vcombine.high %v136_v55, %v140_v57  ;;  %v144_v2 = vld [vmem:[%s17543_s1 + $0x390] sm:$0xff] }
 0x250   :  { %v10939_v20 = vcombine.high %v105_v1, %v109_v14  ;;  %v148_v28 = vld [vmem:[%s17543_s1 + $0x3b0] sm:$0xff] }
 0x252   :  { %7870 = vmatpush1.bf16.msra.mxu0 %v10888_v22  ;;  %8239 = vmatpush1.bf16.msra.mxu1 %v10890_v24  ;;  %v113_v22 = vld [vmem:[%s17543_s1 + $0x298] sm:$0xff] }
 0x253   :  { %7871 = vmatprep.subr.bf16.mxu0 %v10897_v25  ;;  %8240 = vmatprep.subr.bf16.mxu1 %v10899_v26  ;;  %v117_v24 = vld [vmem:[%s17543_s1 + $0x2b8] sm:$0xff]  ;;  %v10936_v25 = vcombine.low %v104_v12, %v108_v13  ;;  %v10938_v26 = vcombine.low %v105_v1, %v109_v14  ;;  %v10977_v12 = vcombine.high %v144_v2, %v148_v28  ;;  %v152_v1 = vld [vmem:[%s17543_s1 + $0x3d0] sm:$0xff] }
 0x254   :  { %v10947_v63 = vcombine.high %v113_v22, %v117_v24  ;;  %v156_v14 = vld [vmem:[%s17543_s1 + $0x3f0] sm:$0xff] }
 0x256   :  { %7872 = vmatpush1.bf16.msra.mxu0 %v10896_v33  ;;  %8241 = vmatpush1.bf16.msra.mxu1 %v10898_v34  ;;  %v121_v33 = vld [vmem:[%s17543_s1 + $0x2d8] sm:$0xff] }
 0x257   :  { %7873 = vmatprep.subr.bf16.mxu0 %v10905_v35  ;;  %8242 = vmatprep.subr.bf16.mxu1 %v10907_v36  ;;  %v125_v34 = vld [vmem:[%s17543_s1 + $0x2f8] sm:$0xff]  ;;  %v10944_v35 = vcombine.low %v112_v9, %v116_v21  ;;  %v10946_v36 = vcombine.low %v113_v22, %v117_v24  ;;  %v10985_v9 = vcombine.high %v152_v1, %v156_v14  ;;  %v160_v22 = vld [vmem:[%s17543_s1 + $0x410] sm:$0xff] }
 0x258   :  { %v10955_v40 = vcombine.high %v121_v33, %v125_v34  ;;  %v164_v24 = vld [vmem:[%s17543_s1 + $0x430] sm:$0xff] }
 0x25a   :  { %7874 = vmatpush1.bf16.msra.mxu0 %v10904_v44  ;;  %8243 = vmatpush1.bf16.msra.mxu1 %v10906_v46  ;;  %v129_v44 = vld [vmem:[%s17543_s1 + $0x318] sm:$0xff] }
 0x25b   :  { %7875 = vmatprep.subr.bf16.mxu0 %v10913_v47  ;;  %8244 = vmatprep.subr.bf16.mxu1 %v10915_v49  ;;  %v133_v46 = vld [vmem:[%s17543_s1 + $0x338] sm:$0xff]  ;;  %v10952_v47 = vcombine.low %v120_v30, %v124_v32  ;;  %v10954_v49 = vcombine.low %v121_v33, %v125_v34  ;;  %v10993_v30 = vcombine.high %v160_v22, %v164_v24  ;;  %v168_v33 = vld [vmem:[%s17543_s1 + $0x450] sm:$0xff] }
 0x25c   :  { %v10963_v54 = vcombine.high %v129_v44, %v133_v46  ;;  %v172_v34 = vld [vmem:[%s17543_s1 + $0x470] sm:$0xff] }
 0x25e   :  { %7876 = vmatpush1.bf16.msra.mxu0 %v10912_v60  ;;  %8245 = vmatpush1.bf16.msra.mxu1 %v10914_v8  ;;  %v137_v60 = vld [vmem:[%s17543_s1 + $0x358] sm:$0xff] }
 0x25f   :  { %7877 = vmatprep.subr.bf16.mxu0 %v10921_v53  ;;  %8246 = vmatprep.subr.bf16.mxu1 %v10923_v45  ;;  %v141_v8 = vld [vmem:[%s17543_s1 + $0x378] sm:$0xff]  ;;  %v10960_v53 = vcombine.low %v128_v41, %v132_v42  ;;  %v10962_v45 = vcombine.low %v129_v44, %v133_v46  ;;  %v11001_v41 = vcombine.high %v168_v33, %v172_v34  ;;  %v176_v44 = vld [vmem:[%s17543_s1 + $0x490] sm:$0xff] }
 0x260   :  { %v10971_v0 = vcombine.high %v137_v60, %v141_v8  ;;  %v180_v46 = vld [vmem:[%s17543_s1 + $0x4b0] sm:$0xff] }
 0x262   :  { %7878 = vmatpush1.bf16.msra.mxu0 %v10920_v3  ;;  %8247 = vmatpush1.bf16.msra.mxu1 %v10922_v6  ;;  %v145_v3 = vld [vmem:[%s17543_s1 + $0x398] sm:$0xff] }
 0x263   :  { %7879 = vmatprep.subr.bf16.mxu0 %v10929_v10  ;;  %8248 = vmatprep.subr.bf16.mxu1 %v10931_v11  ;;  %v149_v6 = vld [vmem:[%s17543_s1 + $0x3b8] sm:$0xff]  ;;  %v10968_v10 = vcombine.low %v136_v55, %v140_v57  ;;  %v10970_v11 = vcombine.low %v137_v60, %v141_v8  ;;  %v11009_v55 = vcombine.high %v176_v44, %v180_v46  ;;  %v184_v60 = vld [vmem:[%s17543_s1 + $0x4d0] sm:$0xff] }
 0x264   :  { %v10979_v13 = vcombine.high %v145_v3, %v149_v6  ;;  %v188_v8 = vld [vmem:[%s17543_s1 + $0x4f0] sm:$0xff] }
 0x266   :  { %7880 = vmatpush1.bf16.msra.mxu0 %v10928_v15  ;;  %8249 = vmatpush1.bf16.msra.mxu1 %v10930_v16  ;;  %v153_v15 = vld [vmem:[%s17543_s1 + $0x3d8] sm:$0xff] }
 0x267   :  { %7881 = vmatprep.subr.bf16.mxu0 %v10937_v18  ;;  %8250 = vmatprep.subr.bf16.mxu1 %v10939_v20  ;;  %v157_v16 = vld [vmem:[%s17543_s1 + $0x3f8] sm:$0xff]  ;;  %v10976_v18 = vcombine.low %v144_v2, %v148_v28  ;;  %v10978_v20 = vcombine.low %v145_v3, %v149_v6  ;;  %v192_v28 = vld [vmem:[%s17543_s1 + $0x510] sm:$0xff] }
 0x268   :  { %v10987_v21 = vcombine.high %v153_v15, %v157_v16  ;;  %v196_v3 = vld [vmem:[%s17543_s1 + $0x530] sm:$0xff]  ;;  %v197_v6 = vld [vmem:[%s17543_s1 + $0x538] sm:$0xff] }
 0x26a   :  { %7882 = vmatpush1.bf16.msra.mxu0 %v10936_v25  ;;  %8251 = vmatpush1.bf16.msra.mxu1 %v10938_v26  ;;  %v161_v25 = vld [vmem:[%s17543_s1 + $0x418] sm:$0xff] }
 0x26b   :  { %7883 = vmatprep.subr.bf16.mxu0 %v10945_v27  ;;  %8252 = vmatprep.subr.bf16.mxu1 %v10947_v63  ;;  %v165_v26 = vld [vmem:[%s17543_s1 + $0x438] sm:$0xff]  ;;  %v10984_v27 = vcombine.low %v152_v1, %v156_v14  ;;  %v10986_v63 = vcombine.low %v153_v15, %v157_v16  ;;  %v200_v1 = vld [vmem:[%s17543_s1 + $0x550] sm:$0xff] }
 0x26c   :  { %v10995_v32 = vcombine.high %v161_v25, %v165_v26  ;;  %v204_v14 = vld [vmem:[%s17543_s1 + $0x570] sm:$0xff]  ;;  %v201_v15 = vld [vmem:[%s17543_s1 + $0x558] sm:$0xff] }
 0x26d   :  { %v205_v16 = vld [vmem:[%s17543_s1 + $0x578] sm:$0xff] }
 0x26e   :  { %7884 = vmatpush1.bf16.msra.mxu0 %v10944_v35  ;;  %8253 = vmatpush1.bf16.msra.mxu1 %v10946_v36  ;;  %v169_v35 = vld [vmem:[%s17543_s1 + $0x458] sm:$0xff] }
 0x26f   :  { %7885 = vmatprep.subr.bf16.mxu0 %v10953_v39  ;;  %8254 = vmatprep.subr.bf16.mxu1 %v10955_v40  ;;  %v173_v36 = vld [vmem:[%s17543_s1 + $0x478] sm:$0xff]  ;;  %v10992_v39 = vcombine.low %v160_v22, %v164_v24  ;;  %v10994_v40 = vcombine.low %v161_v25, %v165_v26  ;;  %v208_v22 = vld [vmem:[%s17543_s1 + $0x590] sm:$0xff] }
 0x270   :  { %v11003_v42 = vcombine.high %v169_v35, %v173_v36  ;;  %v212_v24 = vld [vmem:[%s17543_s1 + $0x5b0] sm:$0xff]  ;;  %v209_v25 = vld [vmem:[%s17543_s1 + $0x598] sm:$0xff] }
 0x271   :  { %v213_v26 = vld [vmem:[%s17543_s1 + $0x5b8] sm:$0xff] }
 0x272   :  { %7886 = vmatpush1.bf16.msra.mxu0 %v10952_v47  ;;  %8255 = vmatpush1.bf16.msra.mxu1 %v10954_v49  ;;  %v177_v47 = vld [vmem:[%s17543_s1 + $0x498] sm:$0xff] }
 0x273   :  { %7887 = vmatprep.subr.bf16.mxu0 %v10961_v52  ;;  %8256 = vmatprep.subr.bf16.mxu1 %v10963_v54  ;;  %v181_v49 = vld [vmem:[%s17543_s1 + $0x4b8] sm:$0xff]  ;;  %v11000_v52 = vcombine.low %v168_v33, %v172_v34  ;;  %v11002_v54 = vcombine.low %v169_v35, %v173_v36  ;;  %v216_v33 = vld [vmem:[%s17543_s1 + $0x5d0] sm:$0xff] }
 0x274   :  { %v11011_v57 = vcombine.high %v177_v47, %v181_v49  ;;  %v220_v34 = vld [vmem:[%s17543_s1 + $0x5f0] sm:$0xff]  ;;  %v217_v35 = vld [vmem:[%s17543_s1 + $0x5d8] sm:$0xff] }
 0x275   :  { %v221_v36 = vld [vmem:[%s17543_s1 + $0x5f8] sm:$0xff] }
 0x276   :  { %7888 = vmatpush1.bf16.msra.mxu0 %v10960_v53  ;;  %8257 = vmatpush1.bf16.msra.mxu1 %v10962_v45  ;;  %v189_v53 = vld [vmem:[%s17543_s1 + $0x4f8] sm:$0xff]  ;;  %v11008_v45 = vcombine.low %v176_v44, %v180_v46  ;;  %v224_v44 = vld [vmem:[%s17543_s1 + $0x610] sm:$0xff] }
 0x277   :  { %7889 = vmatprep.subr.bf16.mxu0 %v10969_v61  ;;  %8258 = vmatprep.subr.bf16.mxu1 %v10971_v0  ;;  %v11010_v61 = vcombine.low %v177_v47, %v181_v49  ;;  %v11017_v0 = vcombine.high %v184_v60, %v188_v8  ;;  %v228_v46 = vld [vmem:[%s17543_s1 + $0x630] sm:$0xff]  ;;  %v225_v47 = vld [vmem:[%s17543_s1 + $0x618] sm:$0xff] }
 0x278   :  { %v229_v49 = vld [vmem:[%s17543_s1 + $0x638] sm:$0xff] }
 0x27a   :  { %7890 = vmatpush1.bf16.msra.mxu0 %v10968_v10  ;;  %8259 = vmatpush1.bf16.msra.mxu1 %v10970_v11  ;;  %v11016_v10 = vcombine.low %v184_v60, %v188_v8  ;;  %v232_v60 = vld [vmem:[%s17543_s1 + $0x650] sm:$0xff] }
 0x27b   :  { %7891 = vmatprep.subr.bf16.mxu0 %v10977_v12  ;;  %8260 = vmatprep.subr.bf16.mxu1 %v10979_v13  ;;  %v11025_v12 = vcombine.high %v192_v28, %v196_v3  ;;  %v236_v8 = vld [vmem:[%s17543_s1 + $0x670] sm:$0xff] }
 0x27e   :  { %7892 = vmatpush1.bf16.msra.mxu0 %v10976_v18  ;;  %8261 = vmatpush1.bf16.msra.mxu1 %v10978_v20  ;;  %v11024_v18 = vcombine.low %v192_v28, %v196_v3  ;;  %v240_v28 = vld [vmem:[%s17543_s1 + $0x690] sm:$0xff] }
 0x27f   :  { %7893 = vmatprep.subr.bf16.mxu0 %v10985_v9  ;;  %8262 = vmatprep.subr.bf16.mxu1 %v10987_v21  ;;  %v11033_v9 = vcombine.high %v200_v1, %v204_v14  ;;  %v11035_v21 = vcombine.high %v201_v15, %v205_v16  ;;  %v244_v3 = vld [vmem:[%s17543_s1 + $0x6b0] sm:$0xff] }
 0x282   :  { %7894 = vmatpush1.bf16.msra.mxu0 %v10984_v27  ;;  %8263 = vmatpush1.bf16.msra.mxu1 %v10986_v63  ;;  %v11032_v27 = vcombine.low %v200_v1, %v204_v14  ;;  %v11034_v63 = vcombine.low %v201_v15, %v205_v16  ;;  %v248_v1 = vld [vmem:[%s17543_s1 + $0x6d0] sm:$0xff]  ;;  %v249_v15 = vld [vmem:[%s17543_s1 + $0x6d8] sm:$0xff] }
 0x283   :  { %7904 = vmatprep.subr.bf16.mxu0 %v10993_v30  ;;  %8273 = vmatprep.subr.bf16.mxu1 %v10995_v32  ;;  %v11041_v30 = vcombine.high %v208_v22, %v212_v24  ;;  %v11043_v32 = vcombine.high %v209_v25, %v213_v26  ;;  %v252_v14 = vld [vmem:[%s17543_s1 + $0x6f0] sm:$0xff]  ;;  %v253_v16 = vld [vmem:[%s17543_s1 + $0x6f8] sm:$0xff] }
 0x285   :  { %7896 = vmatmul.mubr.bf16.vlgmr.msra.gmra.mrb[4].mxu0 %v13203_v23  ;;  %8265 = vmatmul.mubr.bf16.vlgmr.msra.gmra.mrb[4].mxu1 %v13203_v23  ;;  %v185_v23 = vld [vmem:[%s17543_s1 + $0x4d8] sm:$0xff] }
 0x286   :  { %7905 = vmatpush1.bf16.msra.mxu0 %v10992_v39  ;;  %8274 = vmatpush1.bf16.msra.mxu1 %v10994_v40  ;;  %v11019_v2 = vcombine.high %v185_v23, %v189_v53  ;;  %v11018_v11 = vcombine.low %v185_v23, %v189_v53  ;;  %v11040_v39 = vcombine.low %v208_v22, %v212_v24  ;;  %v233_v23 = vld [vmem:[%s17543_s1 + $0x658] sm:$0xff]  ;;  %v256_v22 = vld [vmem:[%s17543_s1 + $0x710] sm:$0xff] }
 0x287   :  { %7906 = vmatprep.subr.bf16.mxu0 %v11001_v41  ;;  %8275 = vmatprep.subr.bf16.mxu1 %v11003_v42  ;;  %v11042_v40 = vcombine.low %v209_v25, %v213_v26  ;;  %v11049_v41 = vcombine.high %v216_v33, %v220_v34  ;;  %v11051_v42 = vcombine.high %v217_v35, %v221_v36  ;;  %v237_v53 = vld [vmem:[%s17543_s1 + $0x678] sm:$0xff]  ;;  %v260_v24 = vld [vmem:[%s17543_s1 + $0x730] sm:$0xff] }
 0x288   :  { %7936 = vmatprep.mubr.bf16.mxu0 %v13219_v31  ;;  %8305 = vmatprep.mubr.bf16.mxu1 %v13219_v31  ;;  %v193_v31 = vld [vmem:[%s17543_s1 + $0x518] sm:$0xff] }
 0x289   :  { %v11027_v13 = vcombine.high %v193_v31, %v197_v6  ;;  %v11026_v20 = vcombine.low %v193_v31, %v197_v6  ;;  %v241_v31 = vld [vmem:[%s17543_s1 + $0x698] sm:$0xff] }
 0x28a   :  { %7907 = vmatpush1.bf16.msra.mxu0 %v11000_v52  ;;  %8276 = vmatpush1.bf16.msra.mxu1 %v11002_v54  ;;  %v11048_v52 = vcombine.low %v216_v33, %v220_v34  ;;  %v11050_v54 = vcombine.low %v217_v35, %v221_v36  ;;  %v245_v6 = vld [vmem:[%s17543_s1 + $0x6b8] sm:$0xff]  ;;  %v264_v33 = vld [vmem:[%s17543_s1 + $0x750] sm:$0xff] }
 0x28b   :  { %7908 = vmatprep.subr.bf16.mxu0 %v11009_v55  ;;  %8277 = vmatprep.subr.bf16.mxu1 %v11011_v57  ;;  %v11057_v55 = vcombine.high %v224_v44, %v228_v46  ;;  %v11059_v57 = vcombine.high %v225_v47, %v229_v49  ;;  %v257_v25 = vld [vmem:[%s17543_s1 + $0x718] sm:$0xff]  ;;  %v268_v34 = vld [vmem:[%s17543_s1 + $0x770] sm:$0xff] }
 0x28c   :  { %v261_v26 = vld [vmem:[%s17543_s1 + $0x738] sm:$0xff] }
 0x28d   :  { %v265_v35 = vld [vmem:[%s17543_s1 + $0x758] sm:$0xff] }
 0x28e   :  { %7909 = vmatpush1.bf16.msra.mxu0 %v11008_v45  ;;  %8278 = vmatpush1.bf16.msra.mxu1 %v11010_v61  ;;  %v11056_v45 = vcombine.low %v224_v44, %v228_v46  ;;  %v11058_v61 = vcombine.low %v225_v47, %v229_v49  ;;  %v269_v36 = vld [vmem:[%s17543_s1 + $0x778] sm:$0xff]  ;;  %v272_v44 = vld [vmem:[%s17543_s1 + $0x790] sm:$0xff] }
 0x28f   :  { %7910 = vmatprep.subr.bf16.mxu0 %v11017_v0  ;;  %8279 = vmatprep.subr.bf16.mxu1 %v11019_v2  ;;  %v11065_v0 = vcombine.high %v232_v60, %v236_v8  ;;  %v11067_v2 = vcombine.high %v233_v23, %v237_v53  ;;  %v276_v46 = vld [vmem:[%s17543_s1 + $0x7b0] sm:$0xff]  ;;  %v273_v47 = vld [vmem:[%s17543_s1 + $0x798] sm:$0xff] }
 0x290   :  { %v277_v49 = vld [vmem:[%s17543_s1 + $0x7b8] sm:$0xff] }
 0x292   :  { %7911 = vmatpush1.bf16.msra.mxu0 %v11016_v10  ;;  %8280 = vmatpush1.bf16.msra.mxu1 %v11018_v11  ;;  %v11064_v10 = vcombine.low %v232_v60, %v236_v8  ;;  %v11066_v11 = vcombine.low %v233_v23, %v237_v53  ;;  %v280_v60 = vld [vmem:[%s17543_s1 + $0x7d0] sm:$0xff]  ;;  %v281_v23 = vld [vmem:[%s17543_s1 + $0x7d8] sm:$0xff] }
 0x293   :  { %7912 = vmatprep.subr.bf16.mxu0 %v11025_v12  ;;  %8281 = vmatprep.subr.bf16.mxu1 %v11027_v13  ;;  %v11073_v12 = vcombine.high %v240_v28, %v244_v3  ;;  %v11075_v13 = vcombine.high %v241_v31, %v245_v6  ;;  %v284_v8 = vld [vmem:[%s17543_s1 + $0x7f0] sm:$0xff]  ;;  %v285_v53 = vld [vmem:[%s17543_s1 + $0x7f8] sm:$0xff] }
 0x296   :  { %7913 = vmatpush1.bf16.msra.mxu0 %v11024_v18  ;;  %8282 = vmatpush1.bf16.msra.mxu1 %v11026_v20  ;;  %v11072_v18 = vcombine.low %v240_v28, %v244_v3  ;;  %v11074_v20 = vcombine.low %v241_v31, %v245_v6  ;;  %v288_v28 = vld [vmem:[%s17543_s1 + $0x810] sm:$0xff]  ;;  %v289_v31 = vld [vmem:[%s17543_s1 + $0x818] sm:$0xff] }
 0x297   :  { %7914 = vmatprep.subr.bf16.mxu0 %v11033_v9  ;;  %8283 = vmatprep.subr.bf16.mxu1 %v11035_v21  ;;  %v11081_v9 = vcombine.high %v248_v1, %v252_v14  ;;  %v11083_v21 = vcombine.high %v249_v15, %v253_v16  ;;  %v292_v3 = vld [vmem:[%s17543_s1 + $0x830] sm:$0xff]  ;;  %v293_v6 = vld [vmem:[%s17543_s1 + $0x838] sm:$0xff] }
 0x29a   :  { %7915 = vmatpush1.bf16.msra.mxu0 %v11032_v27  ;;  %8284 = vmatpush1.bf16.msra.mxu1 %v11034_v63  ;;  %v11080_v27 = vcombine.low %v248_v1, %v252_v14  ;;  %v11082_v63 = vcombine.low %v249_v15, %v253_v16  ;;  %v296_v1 = vld [vmem:[%s17543_s1 + $0x850] sm:$0xff]  ;;  %v297_v15 = vld [vmem:[%s17543_s1 + $0x858] sm:$0xff] }
 0x29b   :  { %7916 = vmatprep.subr.bf16.mxu0 %v11041_v30  ;;  %8285 = vmatprep.subr.bf16.mxu1 %v11043_v32  ;;  %v11089_v30 = vcombine.high %v256_v22, %v260_v24  ;;  %v11091_v32 = vcombine.high %v257_v25, %v261_v26  ;;  %v300_v14 = vld [vmem:[%s17543_s1 + $0x870] sm:$0xff]  ;;  %v301_v16 = vld [vmem:[%s17543_s1 + $0x878] sm:$0xff] }
 0x29e   :  { %7917 = vmatpush1.bf16.msra.mxu0 %v11040_v39  ;;  %8286 = vmatpush1.bf16.msra.mxu1 %v11042_v40  ;;  %v11088_v39 = vcombine.low %v256_v22, %v260_v24  ;;  %v11090_v40 = vcombine.low %v257_v25, %v261_v26  ;;  %v304_v22 = vld [vmem:[%s17543_s1 + $0x890] sm:$0xff]  ;;  %v305_v25 = vld [vmem:[%s17543_s1 + $0x898] sm:$0xff] }
 0x29f   :  { %7918 = vmatprep.subr.bf16.mxu0 %v11049_v41  ;;  %8287 = vmatprep.subr.bf16.mxu1 %v11051_v42  ;;  %v11097_v41 = vcombine.high %v264_v33, %v268_v34  ;;  %v11099_v42 = vcombine.high %v265_v35, %v269_v36  ;;  %v308_v24 = vld [vmem:[%s17543_s1 + $0x8b0] sm:$0xff]  ;;  %v309_v26 = vld [vmem:[%s17543_s1 + $0x8b8] sm:$0xff] }
 0x2a2   :  { %7919 = vmatpush1.bf16.msra.mxu0 %v11048_v52  ;;  %8288 = vmatpush1.bf16.msra.mxu1 %v11050_v54  ;;  %v11096_v52 = vcombine.low %v264_v33, %v268_v34  ;;  %v11098_v54 = vcombine.low %v265_v35, %v269_v36  ;;  %v312_v33 = vld [vmem:[%s17543_s1 + $0x8d0] sm:$0xff]  ;;  %v317_v35 = vld [vmem:[%s17543_s1 + $0x8f8] sm:$0xff]  ;;  %v11136_v36 = vcombine.low %v304_v22, %v308_v24 }
 0x2a3   :  { %7920 = vmatprep.subr.bf16.mxu0 %v11057_v55  ;;  %8289 = vmatprep.subr.bf16.mxu1 %v11059_v57  ;;  %v11105_v55 = vcombine.high %v272_v44, %v276_v46  ;;  %v11107_v57 = vcombine.high %v273_v47, %v277_v49  ;;  %v316_v34 = vld [vmem:[%s17543_s1 + $0x8f0] sm:$0xff] }
 0x2a6   :  { %7921 = vmatpush1.bf16.msra.mxu0 %v11056_v45  ;;  %8290 = vmatpush1.bf16.msra.mxu1 %v11058_v61  ;;  %v11104_v45 = vcombine.low %v272_v44, %v276_v46  ;;  %v11106_v61 = vcombine.low %v273_v47, %v277_v49  ;;  %v324_v44 = vld [vmem:[%s17543_s1 + $0x930] sm:$0xff]  ;;  %v325_v46 = vld [vmem:[%s17543_s1 + $0x938] sm:$0xff]  ;;  %v11144_v47 = vcombine.low %v312_v33, %v316_v34 }
 0x2a7   :  { %7922 = vmatprep.subr.bf16.mxu0 %v11065_v0  ;;  %8291 = vmatprep.subr.bf16.mxu1 %v11067_v2  ;;  %v11113_v0 = vcombine.high %v280_v60, %v284_v8  ;;  %v11115_v2 = vcombine.high %v281_v23, %v285_v53 }
 0x2aa   :  { %7923 = vmatpush1.bf16.msra.mxu0 %v11064_v10  ;;  %8292 = vmatpush1.bf16.msra.mxu1 %v11066_v11  ;;  %v11112_v10 = vcombine.low %v280_v60, %v284_v8  ;;  %v11114_v11 = vcombine.low %v281_v23, %v285_v53  ;;  %v329_v60 = vld [vmem:[%s17543_s1 + $0x958] sm:$0xff] }
 0x2ab   :  { %7924 = vmatprep.subr.bf16.mxu0 %v11073_v12  ;;  %8293 = vmatprep.subr.bf16.mxu1 %v11075_v13  ;;  %v11121_v12 = vcombine.high %v288_v28, %v292_v3  ;;  %v11123_v13 = vcombine.high %v289_v31, %v293_v6  ;;  %v333_v8 = vld [vmem:[%s17543_s1 + $0x978] sm:$0xff] }
 0x2ae   :  { %7925 = vmatpush1.bf16.msra.mxu0 %v11072_v18  ;;  %8294 = vmatpush1.bf16.msra.mxu1 %v11074_v20  ;;  %v11120_v18 = vcombine.low %v288_v28, %v292_v3  ;;  %v11122_v20 = vcombine.low %v289_v31, %v293_v6  ;;  %v337_v28 = vld [vmem:[%s17543_s1 + $0x998] sm:$0xff]  ;;  %v11162_v6 = vcombine.low %v329_v60, %v333_v8 }
 0x2af   :  { %7926 = vmatprep.subr.bf16.mxu0 %v11081_v9  ;;  %8295 = vmatprep.subr.bf16.mxu1 %v11083_v21  ;;  %v11129_v9 = vcombine.high %v296_v1, %v300_v14  ;;  %v11131_v21 = vcombine.high %v297_v15, %v301_v16  ;;  %v341_v3 = vld [vmem:[%s17543_s1 + $0x9b8] sm:$0xff] }
 0x2b2   :  { %7927 = vmatpush1.bf16.msra.mxu0 %v11080_v27  ;;  %8296 = vmatpush1.bf16.msra.mxu1 %v11082_v63  ;;  %v11128_v27 = vcombine.low %v296_v1, %v300_v14  ;;  %v11130_v63 = vcombine.low %v297_v15, %v301_v16  ;;  %v345_v1 = vld [vmem:[%s17543_s1 + $0x9d8] sm:$0xff]  ;;  %v11170_v16 = vcombine.low %v337_v28, %v341_v3 }
 0x2b3   :  { %7928 = vmatprep.subr.bf16.mxu0 %v11089_v30  ;;  %8297 = vmatprep.subr.bf16.mxu1 %v11091_v32  ;;  %v11137_v30 = vcombine.high %v304_v22, %v308_v24  ;;  %v11139_v32 = vcombine.high %v305_v25, %v309_v26  ;;  %v349_v14 = vld [vmem:[%s17543_s1 + $0x9f8] sm:$0xff] }
 0x2b4   :  { %v353_v22 = vld [vmem:[%s17543_s1 + $0xa18] sm:$0xff] }
 0x2b5   :  { %v357_v24 = vld [vmem:[%s17543_s1 + $0xa38] sm:$0xff] }
 0x2b6   :  { %7929 = vmatpush1.bf16.msra.mxu0 %v11088_v39  ;;  %8298 = vmatpush1.bf16.msra.mxu1 %v11090_v40  ;;  %v11138_v39 = vcombine.low %v305_v25, %v309_v26  ;;  %v11145_v40 = vcombine.high %v312_v33, %v316_v34  ;;  %v11178_v26 = vcombine.low %v345_v1, %v349_v14  ;;  %v361_v33 = vld [vmem:[%s17543_s1 + $0xa58] sm:$0xff] }
 0x2b7   :  { %7930 = vmatprep.subr.bf16.mxu0 %v11097_v41  ;;  %8299 = vmatprep.subr.bf16.mxu1 %v11099_v42  ;;  %v320_v42 = vld [vmem:[%s17543_s1 + $0x910] sm:$0xff]  ;;  %v365_v34 = vld [vmem:[%s17543_s1 + $0xa78] sm:$0xff] }
 0x2b8   :  { %v11152_v23 = vcombine.low %v320_v42, %v324_v44 }
 0x2ba   :  { %7931 = vmatpush1.bf16.msra.mxu0 %v11096_v52  ;;  %8300 = vmatpush1.bf16.msra.mxu1 %v11098_v54  ;;  %v11153_v52 = vcombine.high %v320_v42, %v324_v44  ;;  %v369_v42 = vld [vmem:[%s17543_s1 + $0xa98] sm:$0xff] }
 0x2bb   :  { %7932 = vmatprep.subr.bf16.mxu0 %v11105_v55  ;;  %8301 = vmatprep.subr.bf16.mxu1 %v11107_v57  ;;  %v328_v55 = vld [vmem:[%s17543_s1 + $0x950] sm:$0xff]  ;;  %v373_v44 = vld [vmem:[%s17543_s1 + $0xab8] sm:$0xff] }
 0x2bc   :  { %v332_v57 = vld [vmem:[%s17543_s1 + $0x970] sm:$0xff] }
 0x2bd   :  { %v11160_v31 = vcombine.low %v328_v55, %v332_v57 }
 0x2be   :  { %7933 = vmatpush1.bf16.msra.mxu0 %v11104_v45  ;;  %8302 = vmatpush1.bf16.msra.mxu1 %v11106_v61  ;;  %v11161_v45 = vcombine.high %v328_v55, %v332_v57  ;;  %v11163_v61 = vcombine.high %v329_v60, %v333_v8  ;;  %v377_v55 = vld [vmem:[%s17543_s1 + $0xad8] sm:$0xff]  ;;  %v11202_v8 = vcombine.low %v369_v42, %v373_v44 }
 0x2bf   :  { %7934 = vmatprep.subr.bf16.mxu0 %v11113_v0  ;;  %8303 = vmatprep.subr.bf16.mxu1 %v11115_v2  ;;  %v336_v0 = vld [vmem:[%s17543_s1 + $0x990] sm:$0xff]  ;;  %v381_v57 = vld [vmem:[%s17543_s1 + $0xaf8] sm:$0xff] }
 0x2c0   :  { %v340_v2 = vld [vmem:[%s17543_s1 + $0x9b0] sm:$0xff] }
 0x2c1   :  { %v11168_v15 = vcombine.low %v336_v0, %v340_v2 }
 0x2c2   :  { %7935 = vmatpush1.bf16.msra.mxu0 %v11112_v10  ;;  %8304 = vmatpush1.bf16.msra.mxu1 %v11114_v11  ;;  %v11169_v10 = vcombine.high %v336_v0, %v340_v2  ;;  %v11171_v11 = vcombine.high %v337_v28, %v341_v3  ;;  %v385_v0 = vld [vmem:[%s17543_s1 + $0xb18] sm:$0xff]  ;;  %v11210_v3 = vcombine.low %v377_v55, %v381_v57 }
 0x2c3   :  { %7945 = vmatprep.subr.bf16.mxu0 %v11121_v12  ;;  %8314 = vmatprep.subr.bf16.mxu1 %v11123_v13  ;;  %v344_v12 = vld [vmem:[%s17543_s1 + $0x9d0] sm:$0xff]  ;;  %v389_v2 = vld [vmem:[%s17543_s1 + $0xb38] sm:$0xff] }
 0x2c4   :  { %v348_v13 = vld [vmem:[%s17543_s1 + $0x9f0] sm:$0xff] }
 0x2c5   :  { %7937 = vmatmul.mubr.bf16.vlgmr.msra.gmra.mrb[4].mxu0 %v13414_v38  ;;  %8306 = vmatmul.mubr.bf16.vlgmr.msra.gmra.mrb[4].mxu1 %v13414_v38  ;;  %v313_v38 = vld [vmem:[%s17543_s1 + $0x8d8] sm:$0xff]  ;;  %v11176_v25 = vcombine.low %v344_v12, %v348_v13 }
 0x2c6   :  { %7946 = vmatpush1.bf16.msra.mxu0 %v11120_v18  ;;  %8315 = vmatpush1.bf16.msra.mxu1 %v11122_v20  ;;  %v11147_v41 = vcombine.high %v313_v38, %v317_v35  ;;  %v11146_v49 = vcombine.low %v313_v38, %v317_v35  ;;  %v11177_v18 = vcombine.high %v344_v12, %v348_v13  ;;  %v393_v12 = vld [vmem:[%s17543_s1 + $0xb58] sm:$0xff] }
 0x2c7   :  { %7947 = vmatprep.subr.bf16.mxu0 %v11129_v9  ;;  %8316 = vmatprep.subr.bf16.mxu1 %v11131_v21  ;;  %v11179_v20 = vcombine.high %v345_v1, %v349_v14  ;;  %v352_v9 = vld [vmem:[%s17543_s1 + $0xa10] sm:$0xff]  ;;  %v11186_v35 = vcombine.low %v353_v22, %v357_v24  ;;  %v397_v13 = vld [vmem:[%s17543_s1 + $0xb78] sm:$0xff]  ;;  %v11218_v14 = vcombine.low %v385_v0, %v389_v2 }
 0x2c8   :  { %7977 = vmatprep.mubr.bf16.mxu0 %v13429_v48  ;;  %8346 = vmatprep.mubr.bf16.mxu1 %v13429_v48  ;;  %v321_v48 = vld [vmem:[%s17543_s1 + $0x918] sm:$0xff]  ;;  %v356_v21 = vld [vmem:[%s17543_s1 + $0xa30] sm:$0xff] }
 0x2c9   :  { %v11155_v54 = vcombine.high %v321_v48, %v325_v46  ;;  %v11154_v53 = vcombine.low %v321_v48, %v325_v46  ;;  %v11184_v38 = vcombine.low %v352_v9, %v356_v21  ;;  %v11194_v46 = vcombine.low %v361_v33, %v365_v34 }
 0x2ca   :  { %7948 = vmatpush1.bf16.msra.mxu0 %v11128_v27  ;;  %8317 = vmatpush1.bf16.msra.mxu1 %v11130_v63  ;;  %v11185_v27 = vcombine.high %v352_v9, %v356_v21  ;;  %v11187_v63 = vcombine.high %v353_v22, %v357_v24  ;;  %v401_v9 = vld [vmem:[%s17543_s1 + $0xb98] sm:$0xff]  ;;  %v11226_v24 = vcombine.low %v393_v12, %v397_v13 }
 0x2cb   :  { %7949 = vmatprep.subr.bf16.mxu0 %v11137_v30  ;;  %8318 = vmatprep.subr.bf16.mxu1 %v11139_v32  ;;  %v360_v30 = vld [vmem:[%s17543_s1 + $0xa50] sm:$0xff]  ;;  %v405_v21 = vld [vmem:[%s17543_s1 + $0xbb8] sm:$0xff] }
 0x2cc   :  { %v364_v32 = vld [vmem:[%s17543_s1 + $0xa70] sm:$0xff] }
 0x2cd   :  { %v11192_v48 = vcombine.low %v360_v30, %v364_v32 }
 0x2ce   :  { %7950 = vmatpush1.bf16.msra.mxu0 %v11136_v36  ;;  %8319 = vmatpush1.bf16.msra.mxu1 %v11138_v39  ;;  %v11193_v36 = vcombine.high %v360_v30, %v364_v32  ;;  %v11195_v39 = vcombine.high %v361_v33, %v365_v34  ;;  %v409_v30 = vld [vmem:[%s17543_s1 + $0xbd8] sm:$0xff]  ;;  %v11234_v34 = vcombine.low %v401_v9, %v405_v21 }
 0x2cf   :  { %7951 = vmatprep.subr.bf16.mxu0 %v11145_v40  ;;  %8320 = vmatprep.subr.bf16.mxu1 %v11147_v41  ;;  %v368_v40 = vld [vmem:[%s17543_s1 + $0xa90] sm:$0xff]  ;;  %v413_v32 = vld [vmem:[%s17543_s1 + $0xbf8] sm:$0xff] }
 0x2d0   :  { %v372_v41 = vld [vmem:[%s17543_s1 + $0xab0] sm:$0xff] }
 0x2d1   :  { %v11200_v60 = vcombine.low %v368_v40, %v372_v41 }
 0x2d2   :  { %7952 = vmatpush1.bf16.msra.mxu0 %v11144_v47  ;;  %8321 = vmatpush1.bf16.msra.mxu1 %v11146_v49  ;;  %v11201_v47 = vcombine.high %v368_v40, %v372_v41  ;;  %v11203_v49 = vcombine.high %v369_v42, %v373_v44  ;;  %v417_v40 = vld [vmem:[%s17543_s1 + $0xc18] sm:$0xff]  ;;  %v11242_v44 = vcombine.low %v409_v30, %v413_v32 }
 0x2d3   :  { %7953 = vmatprep.subr.bf16.mxu0 %v11153_v52  ;;  %8322 = vmatprep.subr.bf16.mxu1 %v11155_v54  ;;  %v376_v52 = vld [vmem:[%s17543_s1 + $0xad0] sm:$0xff]  ;;  %v421_v41 = vld [vmem:[%s17543_s1 + $0xc38] sm:$0xff] }
 0x2d4   :  { %v380_v54 = vld [vmem:[%s17543_s1 + $0xaf0] sm:$0xff] }
 0x2d5   :  { %v11208_v28 = vcombine.low %v376_v52, %v380_v54 }
 0x2d6   :  { %7954 = vmatpush1.bf16.msra.mxu0 %v11152_v23  ;;  %8323 = vmatpush1.bf16.msra.mxu1 %v11154_v53  ;;  %v11209_v23 = vcombine.high %v376_v52, %v380_v54  ;;  %v11211_v53 = vcombine.high %v377_v55, %v381_v57  ;;  %v425_v52 = vld [vmem:[%s17543_s1 + $0xc58] sm:$0xff]  ;;  %v11250_v57 = vcombine.low %v417_v40, %v421_v41 }
 0x2d7   :  { %7955 = vmatprep.subr.bf16.mxu0 %v11161_v45  ;;  %8324 = vmatprep.subr.bf16.mxu1 %v11163_v61  ;;  %v384_v45 = vld [vmem:[%s17543_s1 + $0xb10] sm:$0xff]  ;;  %v429_v54 = vld [vmem:[%s17543_s1 + $0xc78] sm:$0xff] }
 0x2d8   :  { %v388_v61 = vld [vmem:[%s17543_s1 + $0xb30] sm:$0xff] }
 0x2d9   :  { %v11216_v1 = vcombine.low %v384_v45, %v388_v61 }
 0x2da   :  { %7956 = vmatpush1.bf16.msra.mxu0 %v11160_v31  ;;  %8325 = vmatpush1.bf16.msra.mxu1 %v11162_v6  ;;  %v11217_v31 = vcombine.high %v384_v45, %v388_v61  ;;  %v11219_v6 = vcombine.high %v385_v0, %v389_v2  ;;  %v433_v45 = vld [vmem:[%s17543_s1 + $0xc98] sm:$0xff]  ;;  %v11258_v2 = vcombine.low %v425_v52, %v429_v54 }
 0x2db   :  { %7957 = vmatprep.subr.bf16.mxu0 %v11169_v10  ;;  %8326 = vmatprep.subr.bf16.mxu1 %v11171_v11  ;;  %v392_v10 = vld [vmem:[%s17543_s1 + $0xb50] sm:$0xff]  ;;  %v437_v61 = vld [vmem:[%s17543_s1 + $0xcb8] sm:$0xff] }
 0x2dc   :  { %v396_v11 = vld [vmem:[%s17543_s1 + $0xb70] sm:$0xff] }
 0x2dd   :  { %v11224_v22 = vcombine.low %v392_v10, %v396_v11 }
 0x2de   :  { %7958 = vmatpush1.bf16.msra.mxu0 %v11168_v15  ;;  %8327 = vmatpush1.bf16.msra.mxu1 %v11170_v16  ;;  %v11225_v15 = vcombine.high %v392_v10, %v396_v11  ;;  %v11227_v16 = vcombine.high %v393_v12, %v397_v13  ;;  %v445_v10 = vld [vmem:[%s17543_s1 + $0xcf8] sm:$0xff]  ;;  %v11266_v12 = vcombine.low %v433_v45, %v437_v61 }
 0x2df   :  { %7959 = vmatprep.subr.bf16.mxu0 %v11177_v18  ;;  %8328 = vmatprep.subr.bf16.mxu1 %v11179_v20  ;;  %v400_v18 = vld [vmem:[%s17543_s1 + $0xb90] sm:$0xff] }
 0x2e0   :  { %v404_v20 = vld [vmem:[%s17543_s1 + $0xbb0] sm:$0xff] }
 0x2e1   :  { %v11232_v33 = vcombine.low %v400_v18, %v404_v20 }
 0x2e2   :  { %7960 = vmatpush1.bf16.msra.mxu0 %v11176_v25  ;;  %8329 = vmatpush1.bf16.msra.mxu1 %v11178_v26  ;;  %v11233_v25 = vcombine.high %v400_v18, %v404_v20  ;;  %v11235_v26 = vcombine.high %v401_v9, %v405_v21 }
 0x2e3   :  { %7961 = vmatprep.subr.bf16.mxu0 %v11185_v27  ;;  %8330 = vmatprep.subr.bf16.mxu1 %v11187_v63  ;;  %v408_v27 = vld [vmem:[%s17543_s1 + $0xbd0] sm:$0xff] }
 0x2e4   :  { %v412_v63 = vld [vmem:[%s17543_s1 + $0xbf0] sm:$0xff] }
 0x2e5   :  { %v11240_v42 = vcombine.low %v408_v27, %v412_v63 }
 0x2e6   :  { %7962 = vmatpush1.bf16.msra.mxu0 %v11184_v38  ;;  %8331 = vmatpush1.bf16.msra.mxu1 %v11186_v35  ;;  %v11241_v38 = vcombine.high %v408_v27, %v412_v63  ;;  %v11243_v35 = vcombine.high %v409_v30, %v413_v32 }
 0x2e7   :  { %7963 = vmatprep.subr.bf16.mxu0 %v11193_v36  ;;  %8332 = vmatprep.subr.bf16.mxu1 %v11195_v39  ;;  %v416_v36 = vld [vmem:[%s17543_s1 + $0xc10] sm:$0xff] }
 0x2e8   :  { %v420_v39 = vld [vmem:[%s17543_s1 + $0xc30] sm:$0xff] }
 0x2e9   :  { %v11248_v55 = vcombine.low %v416_v36, %v420_v39 }
 0x2ea   :  { %7964 = vmatpush1.bf16.msra.mxu0 %v11192_v48  ;;  %8333 = vmatpush1.bf16.msra.mxu1 %v11194_v46  ;;  %v11249_v48 = vcombine.high %v416_v36, %v420_v39  ;;  %v11251_v46 = vcombine.high %v417_v40, %v421_v41 }
 0x2eb   :  { %7965 = vmatprep.subr.bf16.mxu0 %v11201_v47  ;;  %8334 = vmatprep.subr.bf16.mxu1 %v11203_v49  ;;  %v424_v47 = vld [vmem:[%s17543_s1 + $0xc50] sm:$0xff] }
 0x2ec   :  { %v428_v49 = vld [vmem:[%s17543_s1 + $0xc70] sm:$0xff] }
 0x2ed   :  { %v11256_v0 = vcombine.low %v424_v47, %v428_v49 }
 0x2ee   :  { %7966 = vmatpush1.bf16.msra.mxu0 %v11200_v60  ;;  %8335 = vmatpush1.bf16.msra.mxu1 %v11202_v8  ;;  %v11257_v60 = vcombine.high %v424_v47, %v428_v49  ;;  %v11259_v8 = vcombine.high %v425_v52, %v429_v54  ;;  %v473_v49 = vld [vmem:[%s17543_s1 + $0xdd8] sm:$0xff] }
 0x2ef   :  { %7967 = vmatprep.subr.bf16.mxu0 %v11209_v23  ;;  %8336 = vmatprep.subr.bf16.mxu1 %v11211_v53  ;;  %v432_v23 = vld [vmem:[%s17543_s1 + $0xc90] sm:$0xff]  ;;  %v477_v52 = vld [vmem:[%s17543_s1 + $0xdf8] sm:$0xff] }
 0x2f0   :  { %v436_v53 = vld [vmem:[%s17543_s1 + $0xcb0] sm:$0xff] }
 0x2f1   :  { %v11264_v11 = vcombine.low %v432_v23, %v436_v53 }
 0x2f2   :  { %7968 = vmatpush1.bf16.msra.mxu0 %v11208_v28  ;;  %8337 = vmatpush1.bf16.msra.mxu1 %v11210_v3  ;;  %v11265_v28 = vcombine.high %v432_v23, %v436_v53  ;;  %v11267_v3 = vcombine.high %v433_v45, %v437_v61  ;;  %v11307_v61 = vcombine.high %v473_v49, %v477_v52 }
 0x2f3   :  { %7969 = vmatprep.subr.bf16.mxu0 %v11217_v31  ;;  %8338 = vmatprep.subr.bf16.mxu1 %v11219_v6  ;;  %v440_v31 = vld [vmem:[%s17543_s1 + $0xcd0] sm:$0xff] }
 0x2f4   :  { %v444_v6 = vld [vmem:[%s17543_s1 + $0xcf0] sm:$0xff] }
 0x2f5   :  { %v11273_v13 = vcombine.high %v440_v31, %v444_v6  ;;  %v11272_v18 = vcombine.low %v440_v31, %v444_v6  ;;  %v11306_v6 = vcombine.low %v473_v49, %v477_v52 }
 0x2f6   :  { %7970 = vmatpush1.bf16.msra.mxu0 %v11216_v1  ;;  %8339 = vmatpush1.bf16.msra.mxu1 %v11218_v14  ;;  %v448_v14 = vld [vmem:[%s17543_s1 + $0xd10] sm:$0xff] }
 0x2f7   :  { %7971 = vmatprep.subr.bf16.mxu0 %v11225_v15  ;;  %8340 = vmatprep.subr.bf16.mxu1 %v11227_v16  ;;  %v452_v15 = vld [vmem:[%s17543_s1 + $0xd30] sm:$0xff]  ;;  %v453_v16 = vld [vmem:[%s17543_s1 + $0xd38] sm:$0xff] }
 0x2f8   :  { %v11281_v9 = vcombine.high %v448_v14, %v452_v15  ;;  %v11280_v27 = vcombine.low %v448_v14, %v452_v15 }
 0x2fa   :  { %7972 = vmatpush1.bf16.msra.mxu0 %v11224_v22  ;;  %8341 = vmatpush1.bf16.msra.mxu1 %v11226_v24  ;;  %v456_v22 = vld [vmem:[%s17543_s1 + $0xd50] sm:$0xff] }
 0x2fb   :  { %7973 = vmatprep.subr.bf16.mxu0 %v11233_v25  ;;  %8342 = vmatprep.subr.bf16.mxu1 %v11235_v26  ;;  %v460_v24 = vld [vmem:[%s17543_s1 + $0xd70] sm:$0xff]  ;;  %v457_v25 = vld [vmem:[%s17543_s1 + $0xd58] sm:$0xff] }
 0x2fc   :  { %v461_v26 = vld [vmem:[%s17543_s1 + $0xd78] sm:$0xff]  ;;  %v11289_v30 = vcombine.high %v456_v22, %v460_v24  ;;  %v11288_v36 = vcombine.low %v456_v22, %v460_v24 }
 0x2fd   :  { %v11291_v32 = vcombine.high %v457_v25, %v461_v26  ;;  %v11290_v39 = vcombine.low %v457_v25, %v461_v26 }
 0x2fe   :  { %7974 = vmatpush1.bf16.msra.mxu0 %v11232_v33  ;;  %8343 = vmatpush1.bf16.msra.mxu1 %v11234_v34  ;;  %v464_v33 = vld [vmem:[%s17543_s1 + $0xd90] sm:$0xff] }
 0x2ff   :  { %7975 = vmatprep.subr.bf16.mxu0 %v11241_v38  ;;  %8344 = vmatprep.subr.bf16.mxu1 %v11243_v35  ;;  %v468_v34 = vld [vmem:[%s17543_s1 + $0xdb0] sm:$0xff]  ;;  %v465_v38 = vld [vmem:[%s17543_s1 + $0xd98] sm:$0xff] }
 0x300   :  { %v469_v35 = vld [vmem:[%s17543_s1 + $0xdb8] sm:$0xff]  ;;  %v11297_v40 = vcombine.high %v464_v33, %v468_v34 }
 0x301   :  { %v11298_v23 = vcombine.low %v465_v38, %v469_v35 }
 0x302   :  { %7976 = vmatpush1.bf16.msra.mxu0 %v11240_v42  ;;  %8345 = vmatpush1.bf16.msra.mxu1 %v11242_v44  ;;  %v11299_v42 = vcombine.high %v465_v38, %v469_v35  ;;  %v472_v44 = vld [vmem:[%s17543_s1 + $0xdd0] sm:$0xff] }
 0x303   :  { %7986 = vmatprep.subr.bf16.mxu0 %v11249_v48  ;;  %8355 = vmatprep.subr.bf16.mxu1 %v11251_v46  ;;  %v476_v48 = vld [vmem:[%s17543_s1 + $0xdf0] sm:$0xff] }
 0x304   :  { %v11305_v53 = vcombine.high %v472_v44, %v476_v48  ;;  %v11304_v31 = vcombine.low %v472_v44, %v476_v48 }
 0x305   :  { %7978 = vmatmul.mubr.bf16.vlgmr.msra.gmra.mrb[4].mxu0 %v13617_v58  ;;  %8347 = vmatmul.mubr.bf16.vlgmr.msra.gmra.mrb[4].mxu1 %v13617_v58  ;;  %v441_v58 = vld [vmem:[%s17543_s1 + $0xcd8] sm:$0xff] }
 0x306   :  { %7987 = vmatpush1.bf16.msra.mxu0 %v11248_v55  ;;  %8356 = vmatpush1.bf16.msra.mxu1 %v11250_v57  ;;  %v11275_v1 = vcombine.high %v441_v58, %v445_v10  ;;  %v11274_v20 = vcombine.low %v441_v58, %v445_v10  ;;  %v11296_v57 = vcombine.low %v464_v33, %v468_v34 }
 0x307   :  { %7988 = vmatprep.subr.bf16.mxu0 %v11257_v60  ;;  %8357 = vmatprep.subr.bf16.mxu1 %v11259_v8 }
 0x308   :  { %8018 = vmatprep.mubr.bf16.mxu0 %v13633_v4  ;;  %8387 = vmatprep.mubr.bf16.mxu1 %v13633_v4  ;;  %v449_v4 = vld [vmem:[%s17543_s1 + $0xd18] sm:$0xff] }
 0x309   :  { %v11283_v21 = vcombine.high %v449_v4, %v453_v16  ;;  %v11282_v63 = vcombine.low %v449_v4, %v453_v16 }
 0x30a   :  { %7989 = vmatpush1.bf16.msra.mxu0 %v11256_v0  ;;  %8358 = vmatpush1.bf16.msra.mxu1 %v11258_v2  ;;  %v480_v0 = vld [vmem:[%s17543_s1 + $0xe10] sm:$0xff] }
 0x30b   :  { %7990 = vmatprep.subr.bf16.mxu0 %v11265_v28  ;;  %8359 = vmatprep.subr.bf16.mxu1 %v11267_v3  ;;  %v484_v2 = vld [vmem:[%s17543_s1 + $0xe30] sm:$0xff]  ;;  %v481_v28 = vld [vmem:[%s17543_s1 + $0xe18] sm:$0xff] }
 0x30c   :  { %v485_v3 = vld [vmem:[%s17543_s1 + $0xe38] sm:$0xff]  ;;  %v11313_v58 = vcombine.high %v480_v0, %v484_v2  ;;  %v11312_v14 = vcombine.low %v480_v0, %v484_v2  ;;  %v528_v0 = vld [vmem:[%s17543_s1 + $0xf90] sm:$0xff] }
 0x30d   :  { %v11315_v10 = vcombine.high %v481_v28, %v485_v3  ;;  %v11314_v15 = vcombine.low %v481_v28, %v485_v3  ;;  %v532_v2 = vld [vmem:[%s17543_s1 + $0xfb0] sm:$0xff]  ;;  %v529_v28 = vld [vmem:[%s17543_s1 + $0xf98] sm:$0xff] }
 0x30e   :  { %7991 = vmatpush1.bf16.msra.mxu0 %v11264_v11  ;;  %8360 = vmatpush1.bf16.msra.mxu1 %v11266_v12  ;;  %v488_v11 = vld [vmem:[%s17543_s1 + $0xe50] sm:$0xff]  ;;  %v533_v3 = vld [vmem:[%s17543_s1 + $0xfb8] sm:$0xff] }
 0x30f   :  { %7992 = vmatprep.subr.bf16.mxu0 %v11273_v13  ;;  %8361 = vmatprep.subr.bf16.mxu1 %v11275_v1  ;;  %v492_v12 = vld [vmem:[%s17543_s1 + $0xe70] sm:$0xff]  ;;  %v489_v13 = vld [vmem:[%s17543_s1 + $0xe58] sm:$0xff] }
 0x310   :  { %v493_v1 = vld [vmem:[%s17543_s1 + $0xe78] sm:$0xff]  ;;  %v11321_v4 = vcombine.high %v488_v11, %v492_v12  ;;  %v11320_v22 = vcombine.low %v488_v11, %v492_v12  ;;  %v536_v11 = vld [vmem:[%s17543_s1 + $0xfd0] sm:$0xff] }
 0x311   :  { %v11323_v16 = vcombine.high %v489_v13, %v493_v1  ;;  %v11322_v24 = vcombine.low %v489_v13, %v493_v1  ;;  %v540_v12 = vld [vmem:[%s17543_s1 + $0xff0] sm:$0xff]  ;;  %v537_v13 = vld [vmem:[%s17543_s1 + $0xfd8] sm:$0xff] }
 0x312   :  { %7993 = vmatpush1.bf16.msra.mxu0 %v11272_v18  ;;  %8362 = vmatpush1.bf16.msra.mxu1 %v11274_v20  ;;  %v496_v18 = vld [vmem:[%s17543_s1 + $0xe90] sm:$0xff]  ;;  %v541_v1 = vld [vmem:[%s17543_s1 + $0xff8] sm:$0xff] }
 0x313   :  { %7994 = vmatprep.subr.bf16.mxu0 %v11281_v9  ;;  %8363 = vmatprep.subr.bf16.mxu1 %v11283_v21  ;;  %v500_v20 = vld [vmem:[%s17543_s1 + $0xeb0] sm:$0xff]  ;;  %v497_v9 = vld [vmem:[%s17543_s1 + $0xe98] sm:$0xff] }
 0x314   :  { %v501_v21 = vld [vmem:[%s17543_s1 + $0xeb8] sm:$0xff]  ;;  %v11329_v25 = vcombine.high %v496_v18, %v500_v20  ;;  %v11328_v33 = vcombine.low %v496_v18, %v500_v20  ;;  %v544_v18 = vld [vmem:[%s17543_s1 + $0x1010] sm:$0xff] }
 0x315   :  { %v11331_v26 = vcombine.high %v497_v9, %v501_v21  ;;  %v11330_v34 = vcombine.low %v497_v9, %v501_v21  ;;  %v548_v20 = vld [vmem:[%s17543_s1 + $0x1030] sm:$0xff]  ;;  %v545_v9 = vld [vmem:[%s17543_s1 + $0x1018] sm:$0xff] }
 0x316   :  { %7995 = vmatpush1.bf16.msra.mxu0 %v11280_v27  ;;  %8364 = vmatpush1.bf16.msra.mxu1 %v11282_v63  ;;  %v504_v27 = vld [vmem:[%s17543_s1 + $0xed0] sm:$0xff]  ;;  %v549_v21 = vld [vmem:[%s17543_s1 + $0x1038] sm:$0xff] }
 0x317   :  { %7996 = vmatprep.subr.bf16.mxu0 %v11289_v30  ;;  %8365 = vmatprep.subr.bf16.mxu1 %v11291_v32  ;;  %v508_v63 = vld [vmem:[%s17543_s1 + $0xef0] sm:$0xff]  ;;  %v505_v30 = vld [vmem:[%s17543_s1 + $0xed8] sm:$0xff] }
 0x318   :  { %v15523_v41 = vpop.f32.mrb[0].mxu0  ;;  %v15531_v46 = vpop.f32.mrb[0].mxu1  ;;  %v509_v32 = vld [vmem:[%s17543_s1 + $0xef8] sm:$0xff]  ;;  %v11337_v38 = vcombine.high %v504_v27, %v508_v63  ;;  %v11336_v44 = vcombine.low %v504_v27, %v508_v63  ;;  %v552_v27 = vld [vmem:[%s17543_s1 + $0x1050] sm:$0xff] }
 0x319   :  { %v15533_v47 = vpop.f32.mrb[1].mxu0  ;;  %v15541_v54 = vpop.f32.mrb[1].mxu1  ;;  %v11339_v35 = vcombine.high %v505_v30, %v509_v32  ;;  %v11338_v48 = vcombine.low %v505_v30, %v509_v32  ;;  %v556_v63 = vld [vmem:[%s17543_s1 + $0x1070] sm:$0xff]  ;;  %v553_v30 = vld [vmem:[%s17543_s1 + $0x1058] sm:$0xff] }
 0x31a   :  { %v7491_v55 = vpop.f32.mrb[2].mxu0  ;;  %7997 = vmatpush1.bf16.msra.mxu0 %v11288_v36  ;;  %v7860_v60 = vpop.f32.mrb[2].mxu1  ;;  %8366 = vmatpush1.bf16.msra.mxu1 %v11290_v39  ;;  %v512_v36 = vld [vmem:[%s17543_s1 + $0xf10] sm:$0xff]  ;;  %v557_v32 = vld [vmem:[%s17543_s1 + $0x1078] sm:$0xff] }
 0x31b   :  { %v7492_v8 = vpop.f32.mrb[3].mxu0  ;;  %7998 = vmatprep.subr.bf16.mxu0 %v11297_v40  ;;  %v7861_v45 = vpop.f32.mrb[3].mxu1  ;;  %8367 = vmatprep.subr.bf16.mxu1 %v11299_v42  ;;  %v516_v39 = vld [vmem:[%s17543_s1 + $0xf30] sm:$0xff]  ;;  %v513_v40 = vld [vmem:[%s17543_s1 + $0xf18] sm:$0xff] }
 0x31c   :  { %v517_v42 = vld [vmem:[%s17543_s1 + $0xf38] sm:$0xff]  ;;  %v11345_v49 = vcombine.high %v512_v36, %v516_v39  ;;  %v520_v55 = vld [vmem:[%s17543_s1 + $0xf50] sm:$0xff] }
 0x31d   :  { %v11347_v52 = vcombine.high %v513_v40, %v517_v42  ;;  %v521_v60 = vld [vmem:[%s17543_s1 + $0xf58] sm:$0xff] }
 0x31e   :  { %7999 = vmatpush1.bf16.msra.mxu0 %v11296_v57  ;;  %8368 = vmatpush1.bf16.msra.mxu1 %v11298_v23  ;;  %v524_v57 = vld [vmem:[%s17543_s1 + $0xf70] sm:$0xff]  ;;  %v525_v8 = vld [vmem:[%s17543_s1 + $0xf78] sm:$0xff]  ;;  %v11344_v23 = vcombine.low %v512_v36, %v516_v39 }
 0x31f   :  { %8000 = vmatprep.subr.bf16.mxu0 %v11305_v53  ;;  %8369 = vmatprep.subr.bf16.mxu1 %v11307_v61  ;;  %v11346_v53 = vcombine.low %v513_v40, %v517_v42  ;;  %v11353_v45 = vcombine.high %v520_v55, %v524_v57  ;;  %v11355_v61 = vcombine.high %v521_v60, %v525_v8  ;;  %v560_v36 = vld [vmem:[%s17543_s1 + $0x1090] sm:$0xff]  ;;  %v561_v40 = vld [vmem:[%s17543_s1 + $0x1098] sm:$0xff] }
 0x320   :  { %v564_v39 = vld [vmem:[%s17543_s1 + $0x10b0] sm:$0xff]  ;;  %v565_v42 = vld [vmem:[%s17543_s1 + $0x10b8] sm:$0xff] }
 0x322   :  { %8001 = vmatpush1.bf16.msra.mxu0 %v11304_v31  ;;  %8370 = vmatpush1.bf16.msra.mxu1 %v11306_v6  ;;  %v11352_v31 = vcombine.low %v520_v55, %v524_v57  ;;  %v11354_v6 = vcombine.low %v521_v60, %v525_v8  ;;  %v568_v55 = vld [vmem:[%s17543_s1 + $0x10d0] sm:$0xff]  ;;  %v573_v60 = vld [vmem:[%s17543_s1 + $0x10f8] sm:$0xff]  ;;  %v11392_v8 = vcombine.low %v560_v36, %v564_v39 }
 0x323   :  { %8002 = vmatprep.subr.bf16.mxu0 %v11313_v58  ;;  %8371 = vmatprep.subr.bf16.mxu1 %v11315_v10  ;;  %v11361_v58 = vcombine.high %v528_v0, %v532_v2  ;;  %v11363_v10 = vcombine.high %v529_v28, %v533_v3  ;;  %v572_v57 = vld [vmem:[%s17543_s1 + $0x10f0] sm:$0xff] }
 0x326   :  { %8003 = vmatpush1.bf16.msra.mxu0 %v11312_v14  ;;  %8372 = vmatpush1.bf16.msra.mxu1 %v11314_v15  ;;  %v11360_v14 = vcombine.low %v528_v0, %v532_v2  ;;  %v11362_v15 = vcombine.low %v529_v28, %v533_v3  ;;  %v580_v0 = vld [vmem:[%s17543_s1 + $0x1130] sm:$0xff]  ;;  %v581_v2 = vld [vmem:[%s17543_s1 + $0x1138] sm:$0xff]  ;;  %v11400_v28 = vcombine.low %v568_v55, %v572_v57 }
 0x327   :  { %8004 = vmatprep.subr.bf16.mxu0 %v11321_v4  ;;  %8373 = vmatprep.subr.bf16.mxu1 %v11323_v16  ;;  %v11369_v4 = vcombine.high %v536_v11, %v540_v12  ;;  %v11371_v16 = vcombine.high %v537_v13, %v541_v1 }
 0x32a   :  { %8005 = vmatpush1.bf16.msra.mxu0 %v11320_v22  ;;  %8374 = vmatpush1.bf16.msra.mxu1 %v11322_v24  ;;  %v11368_v22 = vcombine.low %v536_v11, %v540_v12  ;;  %v11370_v24 = vcombine.low %v537_v13, %v541_v1  ;;  %v585_v11 = vld [vmem:[%s17543_s1 + $0x1158] sm:$0xff] }
 0x32b   :  { %8006 = vmatprep.subr.bf16.mxu0 %v11329_v25  ;;  %8375 = vmatprep.subr.bf16.mxu1 %v11331_v26  ;;  %v11377_v25 = vcombine.high %v544_v18, %v548_v20  ;;  %v11379_v26 = vcombine.high %v545_v9, %v549_v21  ;;  %v589_v12 = vld [vmem:[%s17543_s1 + $0x1178] sm:$0xff] }
 0x32e   :  { %8007 = vmatpush1.bf16.msra.mxu0 %v11328_v33  ;;  %8376 = vmatpush1.bf16.msra.mxu1 %v11330_v34  ;;  %v11376_v33 = vcombine.low %v544_v18, %v548_v20  ;;  %v11378_v34 = vcombine.low %v545_v9, %v549_v21  ;;  %v593_v18 = vld [vmem:[%s17543_s1 + $0x1198] sm:$0xff]  ;;  %v11418_v21 = vcombine.low %v585_v11, %v589_v12 }
 0x32f   :  { %8008 = vmatprep.subr.bf16.mxu0 %v11337_v38  ;;  %8377 = vmatprep.subr.bf16.mxu1 %v11339_v35  ;;  %v11385_v38 = vcombine.high %v552_v27, %v556_v63  ;;  %v11387_v35 = vcombine.high %v553_v30, %v557_v32  ;;  %v597_v20 = vld [vmem:[%s17543_s1 + $0x11b8] sm:$0xff] }
 0x332   :  { %8009 = vmatpush1.bf16.msra.mxu0 %v11336_v44  ;;  %8378 = vmatpush1.bf16.msra.mxu1 %v11338_v48  ;;  %v11384_v44 = vcombine.low %v552_v27, %v556_v63  ;;  %v11386_v48 = vcombine.low %v553_v30, %v557_v32  ;;  %v601_v27 = vld [vmem:[%s17543_s1 + $0x11d8] sm:$0xff]  ;;  %v11426_v32 = vcombine.low %v593_v18, %v597_v20 }
 0x333   :  { %8010 = vmatprep.subr.bf16.mxu0 %v11345_v49  ;;  %8379 = vmatprep.subr.bf16.mxu1 %v11347_v52  ;;  %v11393_v49 = vcombine.high %v560_v36, %v564_v39  ;;  %v11395_v52 = vcombine.high %v561_v40, %v565_v42  ;;  %v605_v63 = vld [vmem:[%s17543_s1 + $0x11f8] sm:$0xff] }
 0x334   :  { %v609_v36 = vld [vmem:[%s17543_s1 + $0x1218] sm:$0xff] }
 0x335   :  { %v613_v39 = vld [vmem:[%s17543_s1 + $0x1238] sm:$0xff] }
 0x336   :  { %8011 = vmatpush1.bf16.msra.mxu0 %v11344_v23  ;;  %8380 = vmatpush1.bf16.msra.mxu1 %v11346_v53  ;;  %v11394_v23 = vcombine.low %v561_v40, %v565_v42  ;;  %v11401_v53 = vcombine.high %v568_v55, %v572_v57  ;;  %v11434_v42 = vcombine.low %v601_v27, %v605_v63  ;;  %v617_v55 = vld [vmem:[%s17543_s1 + $0x1258] sm:$0xff] }
 0x337   :  { %8012 = vmatprep.subr.bf16.mxu0 %v11353_v45  ;;  %8381 = vmatprep.subr.bf16.mxu1 %v11355_v61  ;;  %v576_v61 = vld [vmem:[%s17543_s1 + $0x1110] sm:$0xff]  ;;  %v621_v57 = vld [vmem:[%s17543_s1 + $0x1278] sm:$0xff] }
 0x338   :  { %v11408_v13 = vcombine.low %v576_v61, %v580_v0 }
 0x33a   :  { %8013 = vmatpush1.bf16.msra.mxu0 %v11352_v31  ;;  %8382 = vmatpush1.bf16.msra.mxu1 %v11354_v6  ;;  %v11409_v31 = vcombine.high %v576_v61, %v580_v0  ;;  %v625_v61 = vld [vmem:[%s17543_s1 + $0x1298] sm:$0xff] }
 0x33b   :  { %8014 = vmatprep.subr.bf16.mxu0 %v11361_v58  ;;  %8383 = vmatprep.subr.bf16.mxu1 %v11363_v10  ;;  %v584_v58 = vld [vmem:[%s17543_s1 + $0x1150] sm:$0xff]  ;;  %v629_v0 = vld [vmem:[%s17543_s1 + $0x12b8] sm:$0xff] }
 0x33c   :  { %v588_v10 = vld [vmem:[%s17543_s1 + $0x1170] sm:$0xff] }
 0x33d   :  { %v11416_v9 = vcombine.low %v584_v58, %v588_v10 }
 0x33e   :  { %8015 = vmatpush1.bf16.msra.mxu0 %v11360_v14  ;;  %8384 = vmatpush1.bf16.msra.mxu1 %v11362_v15  ;;  %v11417_v14 = vcombine.high %v584_v58, %v588_v10  ;;  %v11419_v15 = vcombine.high %v585_v11, %v589_v12  ;;  %v633_v58 = vld [vmem:[%s17543_s1 + $0x12d8] sm:$0xff]  ;;  %v11458_v12 = vcombine.low %v625_v61, %v629_v0 }
 0x33f   :  { %8016 = vmatprep.subr.bf16.mxu0 %v11369_v4  ;;  %8385 = vmatprep.subr.bf16.mxu1 %v11371_v16  ;;  %v592_v4 = vld [vmem:[%s17543_s1 + $0x1190] sm:$0xff]  ;;  %v637_v10 = vld [vmem:[%s17543_s1 + $0x12f8] sm:$0xff] }
 0x340   :  { %v596_v16 = vld [vmem:[%s17543_s1 + $0x11b0] sm:$0xff] }
 0x341   :  { %v11424_v30 = vcombine.low %v592_v4, %v596_v16 }
 0x342   :  { %8017 = vmatpush1.bf16.msra.mxu0 %v11368_v22  ;;  %8386 = vmatpush1.bf16.msra.mxu1 %v11370_v24  ;;  %v11425_v22 = vcombine.high %v592_v4, %v596_v16  ;;  %v11427_v24 = vcombine.high %v593_v18, %v597_v20  ;;  %v641_v4 = vld [vmem:[%s17543_s1 + $0x1318] sm:$0xff]  ;;  %v11466_v20 = vcombine.low %v633_v58, %v637_v10 }
 0x343   :  { %8027 = vmatprep.subr.bf16.mxu0 %v11377_v25  ;;  %8396 = vmatprep.subr.bf16.mxu1 %v11379_v26  ;;  %v600_v25 = vld [vmem:[%s17543_s1 + $0x11d0] sm:$0xff]  ;;  %v645_v16 = vld [vmem:[%s17543_s1 + $0x1338] sm:$0xff] }
 0x344   :  { %v604_v26 = vld [vmem:[%s17543_s1 + $0x11f0] sm:$0xff] }
 0x345   :  { %8019 = vmatmul.mubr.bf16.vlgmr.msra.gmra.mrb[4].mxu0 %v13832_v19  ;;  %8388 = vmatmul.mubr.bf16.vlgmr.msra.gmra.mrb[4].mxu1 %v13832_v19  ;;  %v569_v19 = vld [vmem:[%s17543_s1 + $0x10d8] sm:$0xff]  ;;  %v11432_v40 = vcombine.low %v600_v25, %v604_v26 }
 0x346   :  { %8028 = vmatpush1.bf16.msra.mxu0 %v11376_v33  ;;  %8397 = vmatpush1.bf16.msra.mxu1 %v11378_v34  ;;  %v11403_v45 = vcombine.high %v569_v19, %v573_v60  ;;  %v11402_v3 = vcombine.low %v569_v19, %v573_v60  ;;  %v11433_v33 = vcombine.high %v600_v25, %v604_v26  ;;  %v649_v25 = vld [vmem:[%s17543_s1 + $0x1358] sm:$0xff] }
 0x347   :  { %8029 = vmatprep.subr.bf16.mxu0 %v11385_v38  ;;  %8398 = vmatprep.subr.bf16.mxu1 %v11387_v35  ;;  %v11435_v34 = vcombine.high %v601_v27, %v605_v63  ;;  %v608_v38 = vld [vmem:[%s17543_s1 + $0x1210] sm:$0xff]  ;;  %v11442_v60 = vcombine.low %v609_v36, %v613_v39  ;;  %v653_v26 = vld [vmem:[%s17543_s1 + $0x1378] sm:$0xff]  ;;  %v11474_v63 = vcombine.low %v641_v4, %v645_v16 }
 0x348   :  { %8059 = vmatprep.mubr.bf16.mxu0 %v13847_v29  ;;  %8428 = vmatprep.mubr.bf16.mxu1 %v13847_v29  ;;  %v577_v29 = vld [vmem:[%s17543_s1 + $0x1118] sm:$0xff]  ;;  %v612_v35 = vld [vmem:[%s17543_s1 + $0x1230] sm:$0xff] }
 0x349   :  { %v11411_v6 = vcombine.high %v577_v29, %v581_v2  ;;  %v11410_v1 = vcombine.low %v577_v29, %v581_v2  ;;  %v11440_v19 = vcombine.low %v608_v38, %v612_v35  ;;  %v11450_v2 = vcombine.low %v617_v55, %v621_v57 }
 0x34a   :  { %8030 = vmatpush1.bf16.msra.mxu0 %v11384_v44  ;;  %8399 = vmatpush1.bf16.msra.mxu1 %v11386_v48  ;;  %v11441_v44 = vcombine.high %v608_v38, %v612_v35  ;;  %v11443_v48 = vcombine.high %v609_v36, %v613_v39  ;;  %v657_v38 = vld [vmem:[%s17543_s1 + $0x1398] sm:$0xff]  ;;  %v11482_v39 = vcombine.low %v649_v25, %v653_v26 }
 0x34b   :  { %8031 = vmatprep.subr.bf16.mxu0 %v11393_v49  ;;  %8400 = vmatprep.subr.bf16.mxu1 %v11395_v52  ;;  %v616_v49 = vld [vmem:[%s17543_s1 + $0x1250] sm:$0xff]  ;;  %v661_v35 = vld [vmem:[%s17543_s1 + $0x13b8] sm:$0xff] }
 0x34c   :  { %v620_v52 = vld [vmem:[%s17543_s1 + $0x1270] sm:$0xff] }
 0x34d   :  { %v11448_v29 = vcombine.low %v616_v49, %v620_v52 }
 0x34e   :  { %8032 = vmatpush1.bf16.msra.mxu0 %v11392_v8  ;;  %8401 = vmatpush1.bf16.msra.mxu1 %v11394_v23  ;;  %v11449_v8 = vcombine.high %v616_v49, %v620_v52  ;;  %v11451_v23 = vcombine.high %v617_v55, %v621_v57  ;;  %v665_v49 = vld [vmem:[%s17543_s1 + $0x13d8] sm:$0xff]  ;;  %v11490_v57 = vcombine.low %v657_v38, %v661_v35 }
 0x34f   :  { %8033 = vmatprep.subr.bf16.mxu0 %v11401_v53  ;;  %8402 = vmatprep.subr.bf16.mxu1 %v11403_v45  ;;  %v624_v53 = vld [vmem:[%s17543_s1 + $0x1290] sm:$0xff]  ;;  %v669_v52 = vld [vmem:[%s17543_s1 + $0x13f8] sm:$0xff] }
 0x350   :  { %v628_v45 = vld [vmem:[%s17543_s1 + $0x12b0] sm:$0xff] }
 0x351   :  { %v11456_v11 = vcombine.low %v624_v53, %v628_v45 }
 0x352   :  { %8034 = vmatpush1.bf16.msra.mxu0 %v11400_v28  ;;  %8403 = vmatpush1.bf16.msra.mxu1 %v11402_v3  ;;  %v11457_v28 = vcombine.high %v624_v53, %v628_v45  ;;  %v11459_v3 = vcombine.high %v625_v61, %v629_v0  ;;  %v673_v53 = vld [vmem:[%s17543_s1 + $0x1418] sm:$0xff]  ;;  %v11498_v0 = vcombine.low %v665_v49, %v669_v52 }
 0x353   :  { %8035 = vmatprep.subr.bf16.mxu0 %v11409_v31  ;;  %8404 = vmatprep.subr.bf16.mxu1 %v11411_v6  ;;  %v632_v31 = vld [vmem:[%s17543_s1 + $0x12d0] sm:$0xff]  ;;  %v677_v45 = vld [vmem:[%s17543_s1 + $0x1438] sm:$0xff] }
 0x354   :  { %v636_v6 = vld [vmem:[%s17543_s1 + $0x12f0] sm:$0xff] }
 0x355   :  { %v11464_v18 = vcombine.low %v632_v31, %v636_v6 }
 0x356   :  { %8036 = vmatpush1.bf16.msra.mxu0 %v11408_v13  ;;  %8405 = vmatpush1.bf16.msra.mxu1 %v11410_v1  ;;  %v11465_v13 = vcombine.high %v632_v31, %v636_v6  ;;  %v11467_v1 = vcombine.high %v633_v58, %v637_v10  ;;  %v681_v31 = vld [vmem:[%s17543_s1 + $0x1458] sm:$0xff]  ;;  %v11506_v10 = vcombine.low %v673_v53, %v677_v45 }
 0x357   :  { %8037 = vmatprep.subr.bf16.mxu0 %v11417_v14  ;;  %8406 = vmatprep.subr.bf16.mxu1 %v11419_v15  ;;  %v640_v14 = vld [vmem:[%s17543_s1 + $0x1310] sm:$0xff]  ;;  %v685_v6 = vld [vmem:[%s17543_s1 + $0x1478] sm:$0xff] }
 0x358   :  { %v644_v15 = vld [vmem:[%s17543_s1 + $0x1330] sm:$0xff] }
 0x359   :  { %v11472_v27 = vcombine.low %v640_v14, %v644_v15 }
 0x35a   :  { %8038 = vmatpush1.bf16.msra.mxu0 %v11416_v9  ;;  %8407 = vmatpush1.bf16.msra.mxu1 %v11418_v21  ;;  %v11473_v9 = vcombine.high %v640_v14, %v644_v15  ;;  %v11475_v21 = vcombine.high %v641_v4, %v645_v16  ;;  %v689_v14 = vld [vmem:[%s17543_s1 + $0x1498] sm:$0xff]  ;;  %v11514_v16 = vcombine.low %v681_v31, %v685_v6 }
 0x35b   :  { %8039 = vmatprep.subr.bf16.mxu0 %v11425_v22  ;;  %8408 = vmatprep.subr.bf16.mxu1 %v11427_v24  ;;  %v648_v22 = vld [vmem:[%s17543_s1 + $0x1350] sm:$0xff]  ;;  %v693_v15 = vld [vmem:[%s17543_s1 + $0x14b8] sm:$0xff] }
 0x35c   :  { %v652_v24 = vld [vmem:[%s17543_s1 + $0x1370] sm:$0xff] }
 0x35d   :  { %v11480_v36 = vcombine.low %v648_v22, %v652_v24 }
 0x35e   :  { %8040 = vmatpush1.bf16.msra.mxu0 %v11424_v30  ;;  %8409 = vmatpush1.bf16.msra.mxu1 %v11426_v32  ;;  %v11481_v30 = vcombine.high %v648_v22, %v652_v24  ;;  %v11483_v32 = vcombine.high %v649_v25, %v653_v26  ;;  %v701_v22 = vld [vmem:[%s17543_s1 + $0x14f8] sm:$0xff]  ;;  %v11522_v25 = vcombine.low %v689_v14, %v693_v15 }
 0x35f   :  { %8041 = vmatprep.subr.bf16.mxu0 %v11433_v33  ;;  %8410 = vmatprep.subr.bf16.mxu1 %v11435_v34  ;;  %v656_v33 = vld [vmem:[%s17543_s1 + $0x1390] sm:$0xff] }
 0x360   :  { %v660_v34 = vld [vmem:[%s17543_s1 + $0x13b0] sm:$0xff] }
 0x361   :  { %v11488_v55 = vcombine.low %v656_v33, %v660_v34 }
 0x362   :  { %8042 = vmatpush1.bf16.msra.mxu0 %v11432_v40  ;;  %8411 = vmatpush1.bf16.msra.mxu1 %v11434_v42  ;;  %v11489_v40 = vcombine.high %v656_v33, %v660_v34  ;;  %v11491_v42 = vcombine.high %v657_v38, %v661_v35 }
 0x363   :  { %8043 = vmatprep.subr.bf16.mxu0 %v11441_v44  ;;  %8412 = vmatprep.subr.bf16.mxu1 %v11443_v48  ;;  %v664_v44 = vld [vmem:[%s17543_s1 + $0x13d0] sm:$0xff] }
 0x364   :  { %v668_v48 = vld [vmem:[%s17543_s1 + $0x13f0] sm:$0xff] }
 0x365   :  { %v11496_v61 = vcombine.low %v664_v44, %v668_v48 }
 0x366   :  { %8044 = vmatpush1.bf16.msra.mxu0 %v11440_v19  ;;  %8413 = vmatpush1.bf16.msra.mxu1 %v11442_v60  ;;  %v11497_v19 = vcombine.high %v664_v44, %v668_v48  ;;  %v11499_v60 = vcombine.high %v665_v49, %v669_v52 }
 0x367   :  { %8045 = vmatprep.subr.bf16.mxu0 %v11449_v8  ;;  %8414 = vmatprep.subr.bf16.mxu1 %v11451_v23  ;;  %v672_v8 = vld [vmem:[%s17543_s1 + $0x1410] sm:$0xff] }
 0x368   :  { %v676_v23 = vld [vmem:[%s17543_s1 + $0x1430] sm:$0xff] }
 0x369   :  { %v11504_v58 = vcombine.low %v672_v8, %v676_v23 }
 0x36a   :  { %8046 = vmatpush1.bf16.msra.mxu0 %v11448_v29  ;;  %8415 = vmatpush1.bf16.msra.mxu1 %v11450_v2  ;;  %v11505_v29 = vcombine.high %v672_v8, %v676_v23  ;;  %v11507_v2 = vcombine.high %v673_v53, %v677_v45 }
 0x36b   :  { %8047 = vmatprep.subr.bf16.mxu0 %v11457_v28  ;;  %8416 = vmatprep.subr.bf16.mxu1 %v11459_v3  ;;  %v680_v28 = vld [vmem:[%s17543_s1 + $0x1450] sm:$0xff] }
 0x36c   :  { %v684_v3 = vld [vmem:[%s17543_s1 + $0x1470] sm:$0xff] }
 0x36d   :  { %v11512_v4 = vcombine.low %v680_v28, %v684_v3 }
 0x36e   :  { %8048 = vmatpush1.bf16.msra.mxu0 %v11456_v11  ;;  %8417 = vmatpush1.bf16.msra.mxu1 %v11458_v12  ;;  %v11513_v11 = vcombine.high %v680_v28, %v684_v3  ;;  %v11515_v12 = vcombine.high %v681_v31, %v685_v6 }
 0x36f   :  { %8049 = vmatprep.subr.bf16.mxu0 %v11465_v13  ;;  %8418 = vmatprep.subr.bf16.mxu1 %v11467_v1  ;;  %v688_v13 = vld [vmem:[%s17543_s1 + $0x1490] sm:$0xff] }
 0x370   :  { %v692_v1 = vld [vmem:[%s17543_s1 + $0x14b0] sm:$0xff] }
 0x371   :  { %v11520_v24 = vcombine.low %v688_v13, %v692_v1 }
 0x372   :  { %8050 = vmatpush1.bf16.msra.mxu0 %v11464_v18  ;;  %8419 = vmatpush1.bf16.msra.mxu1 %v11466_v20  ;;  %v11521_v18 = vcombine.high %v688_v13, %v692_v1  ;;  %v11523_v20 = vcombine.high %v689_v14, %v693_v15 }
 0x373   :  { %8051 = vmatprep.subr.bf16.mxu0 %v11473_v9  ;;  %8420 = vmatprep.subr.bf16.mxu1 %v11475_v21  ;;  %v696_v9 = vld [vmem:[%s17543_s1 + $0x14d0] sm:$0xff] }
 0x374   :  { %v700_v21 = vld [vmem:[%s17543_s1 + $0x14f0] sm:$0xff] }
 0x375   :  { %v11529_v26 = vcombine.high %v696_v9, %v700_v21  ;;  %v11528_v33 = vcombine.low %v696_v9, %v700_v21 }
 0x376   :  { %8052 = vmatpush1.bf16.msra.mxu0 %v11472_v27  ;;  %8421 = vmatpush1.bf16.msra.mxu1 %v11474_v63  ;;  %v704_v63 = vld [vmem:[%s17543_s1 + $0x1510] sm:$0xff] }
 0x377   :  { %8053 = vmatprep.subr.bf16.mxu0 %v11481_v30  ;;  %8422 = vmatprep.subr.bf16.mxu1 %v11483_v32  ;;  %v708_v30 = vld [vmem:[%s17543_s1 + $0x1530] sm:$0xff]  ;;  %v709_v32 = vld [vmem:[%s17543_s1 + $0x1538] sm:$0xff] }
 0x378   :  { %v11537_v38 = vcombine.high %v704_v63, %v708_v30  ;;  %v11536_v44 = vcombine.low %v704_v63, %v708_v30 }
 0x37a   :  { %8054 = vmatpush1.bf16.msra.mxu0 %v11480_v36  ;;  %8423 = vmatpush1.bf16.msra.mxu1 %v11482_v39  ;;  %v712_v36 = vld [vmem:[%s17543_s1 + $0x1550] sm:$0xff] }
 0x37b   :  { %8055 = vmatprep.subr.bf16.mxu0 %v11489_v40  ;;  %8424 = vmatprep.subr.bf16.mxu1 %v11491_v42  ;;  %v716_v39 = vld [vmem:[%s17543_s1 + $0x1570] sm:$0xff]  ;;  %v713_v40 = vld [vmem:[%s17543_s1 + $0x1558] sm:$0xff] }
 0x37c   :  { %v717_v42 = vld [vmem:[%s17543_s1 + $0x1578] sm:$0xff]  ;;  %v11545_v49 = vcombine.high %v712_v36, %v716_v39  ;;  %v11544_v8 = vcombine.low %v712_v36, %v716_v39 }
 0x37d   :  { %v11547_v52 = vcombine.high %v713_v40, %v717_v42  ;;  %v11546_v23 = vcombine.low %v713_v40, %v717_v42 }
 0x37e   :  { %8056 = vmatpush1.bf16.msra.mxu0 %v11488_v55  ;;  %8425 = vmatpush1.bf16.msra.mxu1 %v11490_v57  ;;  %v720_v55 = vld [vmem:[%s17543_s1 + $0x1590] sm:$0xff] }
 0x37f   :  { %8057 = vmatprep.subr.bf16.mxu0 %v11497_v19  ;;  %8426 = vmatprep.subr.bf16.mxu1 %v11499_v60  ;;  %v724_v57 = vld [vmem:[%s17543_s1 + $0x15b0] sm:$0xff]  ;;  %v721_v19 = vld [vmem:[%s17543_s1 + $0x1598] sm:$0xff] }
 0x380   :  { %v725_v60 = vld [vmem:[%s17543_s1 + $0x15b8] sm:$0xff]  ;;  %v11553_v53 = vcombine.high %v720_v55, %v724_v57  ;;  %v11552_v28 = vcombine.low %v720_v55, %v724_v57 }
 0x381   :  { %v11555_v45 = vcombine.high %v721_v19, %v725_v60  ;;  %v11554_v3 = vcombine.low %v721_v19, %v725_v60 }
 0x382   :  { %8058 = vmatpush1.bf16.msra.mxu0 %v11496_v61  ;;  %8427 = vmatpush1.bf16.msra.mxu1 %v11498_v0  ;;  %v728_v61 = vld [vmem:[%s17543_s1 + $0x15d0] sm:$0xff] }
 0x383   :  { %8068 = vmatprep.subr.bf16.mxu0 %v11505_v29  ;;  %8437 = vmatprep.subr.bf16.mxu1 %v11507_v2  ;;  %v732_v0 = vld [vmem:[%s17543_s1 + $0x15f0] sm:$0xff]  ;;  %v729_v29 = vld [vmem:[%s17543_s1 + $0x15d8] sm:$0xff] }
 0x384   :  { %v733_v2 = vld [vmem:[%s17543_s1 + $0x15f8] sm:$0xff]  ;;  %v11561_v31 = vcombine.high %v728_v61, %v732_v0  ;;  %v11560_v13 = vcombine.low %v728_v61, %v732_v0 }
 0x385   :  { %8060 = vmatmul.mubr.bf16.vlgmr.msra.gmra.mrb[4].mxu0 %v14035_v51  ;;  %8429 = vmatmul.mubr.bf16.vlgmr.msra.gmra.mrb[4].mxu1 %v14035_v51  ;;  %v697_v51 = vld [vmem:[%s17543_s1 + $0x14d8] sm:$0xff]  ;;  %v11563_v6 = vcombine.high %v729_v29, %v733_v2  ;;  %v11562_v1 = vcombine.low %v729_v29, %v733_v2 }
 0x386   :  { %8069 = vmatpush1.bf16.msra.mxu0 %v11504_v58  ;;  %8438 = vmatpush1.bf16.msra.mxu1 %v11506_v10  ;;  %v11531_v27 = vcombine.high %v697_v51, %v701_v22  ;;  %v11530_v34 = vcombine.low %v697_v51, %v701_v22  ;;  %v736_v58 = vld [vmem:[%s17543_s1 + $0x1610] sm:$0xff] }
 0x387   :  { %8070 = vmatprep.subr.bf16.mxu0 %v11513_v11  ;;  %8439 = vmatprep.subr.bf16.mxu1 %v11515_v12  ;;  %v740_v10 = vld [vmem:[%s17543_s1 + $0x1630] sm:$0xff]  ;;  %v737_v11 = vld [vmem:[%s17543_s1 + $0x1618] sm:$0xff] }
 0x388   :  { %8100 = vmatprep.mubr.bf16.mxu0 %v14051_v62  ;;  %8469 = vmatprep.mubr.bf16.mxu1 %v14051_v62  ;;  %v705_v62 = vld [vmem:[%s17543_s1 + $0x1518] sm:$0xff]  ;;  %v11569_v14 = vcombine.high %v736_v58, %v740_v10  ;;  %v11568_v9 = vcombine.low %v736_v58, %v740_v10 }
 0x389   :  { %v11539_v35 = vcombine.high %v705_v62, %v709_v32  ;;  %v11538_v48 = vcombine.low %v705_v62, %v709_v32  ;;  %v741_v12 = vld [vmem:[%s17543_s1 + $0x1638] sm:$0xff] }
 0x38a   :  { %8071 = vmatpush1.bf16.msra.mxu0 %v11512_v4  ;;  %8440 = vmatpush1.bf16.msra.mxu1 %v11514_v16  ;;  %v11571_v15 = vcombine.high %v737_v11, %v741_v12  ;;  %v744_v4 = vld [vmem:[%s17543_s1 + $0x1650] sm:$0xff]  ;;  %v11570_v21 = vcombine.low %v737_v11, %v741_v12 }
 0x38b   :  { %8072 = vmatprep.subr.bf16.mxu0 %v11521_v18  ;;  %8441 = vmatprep.subr.bf16.mxu1 %v11523_v20  ;;  %v748_v16 = vld [vmem:[%s17543_s1 + $0x1670] sm:$0xff]  ;;  %v745_v18 = vld [vmem:[%s17543_s1 + $0x1658] sm:$0xff] }
 0x38c   :  { %v749_v20 = vld [vmem:[%s17543_s1 + $0x1678] sm:$0xff]  ;;  %v11577_v51 = vcombine.high %v744_v4, %v748_v16  ;;  %v11576_v63 = vcombine.low %v744_v4, %v748_v16 }
 0x38d   :  { %v11579_v22 = vcombine.high %v745_v18, %v749_v20  ;;  %v11578_v30 = vcombine.low %v745_v18, %v749_v20 }
 0x38e   :  { %8073 = vmatpush1.bf16.msra.mxu0 %v11520_v24  ;;  %8442 = vmatpush1.bf16.msra.mxu1 %v11522_v25  ;;  %v752_v24 = vld [vmem:[%s17543_s1 + $0x1690] sm:$0xff] }
 0x38f   :  { %8074 = vmatprep.subr.bf16.mxu0 %v11529_v26  ;;  %8443 = vmatprep.subr.bf16.mxu1 %v11531_v27  ;;  %v756_v25 = vld [vmem:[%s17543_s1 + $0x16b0] sm:$0xff]  ;;  %v753_v26 = vld [vmem:[%s17543_s1 + $0x1698] sm:$0xff] }
 0x390   :  { %v757_v27 = vld [vmem:[%s17543_s1 + $0x16b8] sm:$0xff]  ;;  %v11585_v62 = vcombine.high %v752_v24, %v756_v25  ;;  %v11584_v36 = vcombine.low %v752_v24, %v756_v25 }
 0x391   :  { %v11587_v32 = vcombine.high %v753_v26, %v757_v27  ;;  %v11586_v39 = vcombine.low %v753_v26, %v757_v27 }
 0x392   :  { %8075 = vmatpush1.bf16.msra.mxu0 %v11528_v33  ;;  %8444 = vmatpush1.bf16.msra.mxu1 %v11530_v34  ;;  %v760_v33 = vld [vmem:[%s17543_s1 + $0x16d0] sm:$0xff] }
 0x393   :  { %8076 = vmatprep.subr.bf16.mxu0 %v11537_v38  ;;  %8445 = vmatprep.subr.bf16.mxu1 %v11539_v35  ;;  %v764_v34 = vld [vmem:[%s17543_s1 + $0x16f0] sm:$0xff]  ;;  %v761_v38 = vld [vmem:[%s17543_s1 + $0x16d8] sm:$0xff] }
 0x394   :  { %v765_v35 = vld [vmem:[%s17543_s1 + $0x16f8] sm:$0xff]  ;;  %v11593_v40 = vcombine.high %v760_v33, %v764_v34  ;;  %v11592_v55 = vcombine.low %v760_v33, %v764_v34 }
 0x395   :  { %v11595_v42 = vcombine.high %v761_v38, %v765_v35  ;;  %v11594_v57 = vcombine.low %v761_v38, %v765_v35 }
 0x396   :  { %8077 = vmatpush1.bf16.msra.mxu0 %v11536_v44  ;;  %8446 = vmatpush1.bf16.msra.mxu1 %v11538_v48  ;;  %v768_v44 = vld [vmem:[%s17543_s1 + $0x1710] sm:$0xff] }
 0x397   :  { %8078 = vmatprep.subr.bf16.mxu0 %v11545_v49  ;;  %8447 = vmatprep.subr.bf16.mxu1 %v11547_v52  ;;  %v772_v48 = vld [vmem:[%s17543_s1 + $0x1730] sm:$0xff]  ;;  %v769_v49 = vld [vmem:[%s17543_s1 + $0x1718] sm:$0xff] }
 0x398   :  { %v773_v52 = vld [vmem:[%s17543_s1 + $0x1738] sm:$0xff]  ;;  %v11601_v19 = vcombine.high %v768_v44, %v772_v48  ;;  %v11600_v61 = vcombine.low %v768_v44, %v772_v48 }
 0x399   :  { %v11603_v60 = vcombine.high %v769_v49, %v773_v52  ;;  %v11602_v0 = vcombine.low %v769_v49, %v773_v52 }
 0x39a   :  { %8079 = vmatpush1.bf16.msra.mxu0 %v11544_v8  ;;  %8448 = vmatpush1.bf16.msra.mxu1 %v11546_v23  ;;  %v776_v8 = vld [vmem:[%s17543_s1 + $0x1750] sm:$0xff] }
 0x39b   :  { %8080 = vmatprep.subr.bf16.mxu0 %v11553_v53  ;;  %8449 = vmatprep.subr.bf16.mxu1 %v11555_v45  ;;  %v780_v23 = vld [vmem:[%s17543_s1 + $0x1770] sm:$0xff]  ;;  %v777_v53 = vld [vmem:[%s17543_s1 + $0x1758] sm:$0xff] }
 0x39c   :  { %v781_v45 = vld [vmem:[%s17543_s1 + $0x1778] sm:$0xff]  ;;  %v11609_v29 = vcombine.high %v776_v8, %v780_v23  ;;  %v11608_v58 = vcombine.low %v776_v8, %v780_v23 }
 0x39d   :  { %v11611_v2 = vcombine.high %v777_v53, %v781_v45  ;;  %v11610_v10 = vcombine.low %v777_v53, %v781_v45  ;;  %v832_v45 = vld [vmem:[%s17543_s1 + $0x1910] sm:$0xff] }
 0x39e   :  { %8081 = vmatpush1.bf16.msra.mxu0 %v11552_v28  ;;  %8450 = vmatpush1.bf16.msra.mxu1 %v11554_v3  ;;  %v784_v28 = vld [vmem:[%s17543_s1 + $0x1790] sm:$0xff] }
 0x39f   :  { %8082 = vmatprep.subr.bf16.mxu0 %v11561_v31  ;;  %8451 = vmatprep.subr.bf16.mxu1 %v11563_v6  ;;  %v788_v3 = vld [vmem:[%s17543_s1 + $0x17b0] sm:$0xff]  ;;  %v785_v31 = vld [vmem:[%s17543_s1 + $0x1798] sm:$0xff] }
 0x3a0   :  { %v789_v6 = vld [vmem:[%s17543_s1 + $0x17b8] sm:$0xff]  ;;  %v11617_v11 = vcombine.high %v784_v28, %v788_v3  ;;  %v11616_v4 = vcombine.low %v784_v28, %v788_v3 }
 0x3a1   :  { %v11619_v12 = vcombine.high %v785_v31, %v789_v6  ;;  %v11618_v16 = vcombine.low %v785_v31, %v789_v6  ;;  %v840_v31 = vld [vmem:[%s17543_s1 + $0x1950] sm:$0xff] }
 0x3a2   :  { %8083 = vmatpush1.bf16.msra.mxu0 %v11560_v13  ;;  %8452 = vmatpush1.bf16.msra.mxu1 %v11562_v1  ;;  %v792_v13 = vld [vmem:[%s17543_s1 + $0x17d0] sm:$0xff] }
 0x3a3   :  { %8084 = vmatprep.subr.bf16.mxu0 %v11569_v14  ;;  %8453 = vmatprep.subr.bf16.mxu1 %v11571_v15  ;;  %v796_v1 = vld [vmem:[%s17543_s1 + $0x17f0] sm:$0xff]  ;;  %v793_v14 = vld [vmem:[%s17543_s1 + $0x17d8] sm:$0xff] }
 0x3a4   :  { %v797_v15 = vld [vmem:[%s17543_s1 + $0x17f8] sm:$0xff]  ;;  %v11625_v18 = vcombine.high %v792_v13, %v796_v1  ;;  %v11624_v24 = vcombine.low %v792_v13, %v796_v1  ;;  %v844_v6 = vld [vmem:[%s17543_s1 + $0x1970] sm:$0xff] }
 0x3a5   :  { %v11627_v20 = vcombine.high %v793_v14, %v797_v15  ;;  %v11626_v25 = vcombine.low %v793_v14, %v797_v15  ;;  %v11673_v13 = vcombine.high %v840_v31, %v844_v6  ;;  %v848_v14 = vld [vmem:[%s17543_s1 + $0x1990] sm:$0xff] }
 0x3a6   :  { %8085 = vmatpush1.bf16.msra.mxu0 %v11568_v9  ;;  %8454 = vmatpush1.bf16.msra.mxu1 %v11570_v21  ;;  %v800_v9 = vld [vmem:[%s17543_s1 + $0x1810] sm:$0xff] }
 0x3a7   :  { %8086 = vmatprep.subr.bf16.mxu0 %v11577_v51  ;;  %8455 = vmatprep.subr.bf16.mxu1 %v11579_v22  ;;  %v804_v21 = vld [vmem:[%s17543_s1 + $0x1830] sm:$0xff]  ;;  %v801_v51 = vld [vmem:[%s17543_s1 + $0x1818] sm:$0xff] }
 0x3a8   :  { %v805_v22 = vld [vmem:[%s17543_s1 + $0x1838] sm:$0xff]  ;;  %v11633_v26 = vcombine.high %v800_v9, %v804_v21  ;;  %v11632_v33 = vcombine.low %v800_v9, %v804_v21  ;;  %v852_v15 = vld [vmem:[%s17543_s1 + $0x19b0] sm:$0xff] }
 0x3a9   :  { %v11635_v27 = vcombine.high %v801_v51, %v805_v22  ;;  %v11634_v34 = vcombine.low %v801_v51, %v805_v22  ;;  %v11681_v9 = vcombine.high %v848_v14, %v852_v15  ;;  %v856_v51 = vld [vmem:[%s17543_s1 + $0x19d0] sm:$0xff] }
 0x3aa   :  { %8087 = vmatpush1.bf16.msra.mxu0 %v11576_v63  ;;  %8456 = vmatpush1.bf16.msra.mxu1 %v11578_v30  ;;  %v808_v63 = vld [vmem:[%s17543_s1 + $0x1850] sm:$0xff] }
 0x3ab   :  { %8088 = vmatprep.subr.bf16.mxu0 %v11585_v62  ;;  %8457 = vmatprep.subr.bf16.mxu1 %v11587_v32  ;;  %v812_v30 = vld [vmem:[%s17543_s1 + $0x1870] sm:$0xff]  ;;  %v809_v62 = vld [vmem:[%s17543_s1 + $0x1858] sm:$0xff] }
 0x3ac   :  { %v813_v32 = vld [vmem:[%s17543_s1 + $0x1878] sm:$0xff]  ;;  %v11641_v38 = vcombine.high %v808_v63, %v812_v30  ;;  %v11640_v44 = vcombine.low %v808_v63, %v812_v30  ;;  %v860_v22 = vld [vmem:[%s17543_s1 + $0x19f0] sm:$0xff] }
 0x3ad   :  { %v11643_v35 = vcombine.high %v809_v62, %v813_v32  ;;  %v11642_v48 = vcombine.low %v809_v62, %v813_v32  ;;  %v11689_v63 = vcombine.high %v856_v51, %v860_v22  ;;  %v864_v62 = vld [vmem:[%s17543_s1 + $0x1a10] sm:$0xff] }
 0x3ae   :  { %8089 = vmatpush1.bf16.msra.mxu0 %v11584_v36  ;;  %8458 = vmatpush1.bf16.msra.mxu1 %v11586_v39  ;;  %v816_v36 = vld [vmem:[%s17543_s1 + $0x1890] sm:$0xff] }
 0x3af   :  { %8090 = vmatprep.subr.bf16.mxu0 %v11593_v40  ;;  %8459 = vmatprep.subr.bf16.mxu1 %v11595_v42  ;;  %v820_v39 = vld [vmem:[%s17543_s1 + $0x18b0] sm:$0xff]  ;;  %v817_v40 = vld [vmem:[%s17543_s1 + $0x1898] sm:$0xff] }
 0x3b0   :  { %v821_v42 = vld [vmem:[%s17543_s1 + $0x18b8] sm:$0xff]  ;;  %v11649_v49 = vcombine.high %v816_v36, %v820_v39  ;;  %v868_v32 = vld [vmem:[%s17543_s1 + $0x1a30] sm:$0xff] }
 0x3b1   :  { %v11651_v52 = vcombine.high %v817_v40, %v821_v42  ;;  %v11650_v8 = vcombine.low %v817_v40, %v821_v42  ;;  %v872_v40 = vld [vmem:[%s17543_s1 + $0x1a50] sm:$0xff] }
 0x3b2   :  { %8091 = vmatpush1.bf16.msra.mxu0 %v11592_v55  ;;  %8460 = vmatpush1.bf16.msra.mxu1 %v11594_v57  ;;  %v824_v55 = vld [vmem:[%s17543_s1 + $0x18d0] sm:$0xff] }
 0x3b3   :  { %8092 = vmatprep.subr.bf16.mxu0 %v11601_v19  ;;  %8461 = vmatprep.subr.bf16.mxu1 %v11603_v60  ;;  %v828_v57 = vld [vmem:[%s17543_s1 + $0x18f0] sm:$0xff]  ;;  %v829_v19 = vld [vmem:[%s17543_s1 + $0x18f8] sm:$0xff]  ;;  %v11648_v60 = vcombine.low %v816_v36, %v820_v39  ;;  %v11697_v36 = vcombine.high %v864_v62, %v868_v32 }
 0x3b4   :  { %v11657_v23 = vcombine.high %v824_v55, %v828_v57  ;;  %v876_v42 = vld [vmem:[%s17543_s1 + $0x1a70] sm:$0xff] }
 0x3b6   :  { %8093 = vmatpush1.bf16.msra.mxu0 %v11600_v61  ;;  %8462 = vmatpush1.bf16.msra.mxu1 %v11602_v0  ;;  %v836_v61 = vld [vmem:[%s17543_s1 + $0x1930] sm:$0xff]  ;;  %v837_v0 = vld [vmem:[%s17543_s1 + $0x1938] sm:$0xff] }
 0x3b7   :  { %8094 = vmatprep.subr.bf16.mxu0 %v11609_v29  ;;  %8463 = vmatprep.subr.bf16.mxu1 %v11611_v2  ;;  %v11656_v29 = vcombine.low %v824_v55, %v828_v57  ;;  %v11665_v28 = vcombine.high %v832_v45, %v836_v61  ;;  %v11705_v55 = vcombine.high %v872_v40, %v876_v42 }
 0x3ba   :  { %8095 = vmatpush1.bf16.msra.mxu0 %v11608_v58  ;;  %8464 = vmatpush1.bf16.msra.mxu1 %v11610_v10  ;;  %v841_v58 = vld [vmem:[%s17543_s1 + $0x1958] sm:$0xff] }
 0x3bb   :  { %8096 = vmatprep.subr.bf16.mxu0 %v11617_v11  ;;  %8465 = vmatprep.subr.bf16.mxu1 %v11619_v12  ;;  %v845_v10 = vld [vmem:[%s17543_s1 + $0x1978] sm:$0xff]  ;;  %v11664_v11 = vcombine.low %v832_v45, %v836_v61 }
 0x3bc   :  { %v11675_v1 = vcombine.high %v841_v58, %v845_v10 }
 0x3be   :  { %8097 = vmatpush1.bf16.msra.mxu0 %v11616_v4  ;;  %8466 = vmatpush1.bf16.msra.mxu1 %v11618_v16  ;;  %v849_v4 = vld [vmem:[%s17543_s1 + $0x1998] sm:$0xff] }
 0x3bf   :  { %8098 = vmatprep.subr.bf16.mxu0 %v11625_v18  ;;  %8467 = vmatprep.subr.bf16.mxu1 %v11627_v20  ;;  %v853_v16 = vld [vmem:[%s17543_s1 + $0x19b8] sm:$0xff]  ;;  %v11672_v18 = vcombine.low %v840_v31, %v844_v6  ;;  %v11674_v20 = vcombine.low %v841_v58, %v845_v10  ;;  %v896_v58 = vld [vmem:[%s17543_s1 + $0x1b10] sm:$0xff] }
 0x3c0   :  { %v11683_v21 = vcombine.high %v849_v4, %v853_v16  ;;  %v900_v10 = vld [vmem:[%s17543_s1 + $0x1b30] sm:$0xff] }
 0x3c2   :  { %8099 = vmatpush1.bf16.msra.mxu0 %v11624_v24  ;;  %8468 = vmatpush1.bf16.msra.mxu1 %v11626_v25  ;;  %v857_v24 = vld [vmem:[%s17543_s1 + $0x19d8] sm:$0xff] }
 0x3c3   :  { %8109 = vmatprep.subr.bf16.mxu0 %v11633_v26  ;;  %8478 = vmatprep.subr.bf16.mxu1 %v11635_v27  ;;  %v861_v25 = vld [vmem:[%s17543_s1 + $0x19f8] sm:$0xff]  ;;  %v11680_v26 = vcombine.low %v848_v14, %v852_v15  ;;  %v11682_v27 = vcombine.low %v849_v4, %v853_v16  ;;  %v11729_v14 = vcombine.high %v896_v58, %v900_v10  ;;  %v904_v4 = vld [vmem:[%s17543_s1 + $0x1b50] sm:$0xff] }
 0x3c4   :  { %v11691_v30 = vcombine.high %v857_v24, %v861_v25  ;;  %v908_v16 = vld [vmem:[%s17543_s1 + $0x1b70] sm:$0xff] }
 0x3c5   :  { %8101 = vmatmul.mubr.bf16.vlgmr.msra.gmra.mrb[4].mxu0 %v14246_v59  ;;  %8470 = vmatmul.mubr.bf16.vlgmr.msra.gmra.mrb[4].mxu1 %v14246_v59  ;;  %v825_v59 = vld [vmem:[%s17543_s1 + $0x18d8] sm:$0xff] }
 0x3c6   :  { %8110 = vmatpush1.bf16.msra.mxu0 %v11632_v33  ;;  %8479 = vmatpush1.bf16.msra.mxu1 %v11634_v34  ;;  %v11659_v53 = vcombine.high %v825_v59, %v829_v19  ;;  %v11658_v2 = vcombine.low %v825_v59, %v829_v19  ;;  %v865_v33 = vld [vmem:[%s17543_s1 + $0x1a18] sm:$0xff]  ;;  %v880_v59 = vld [vmem:[%s17543_s1 + $0x1a90] sm:$0xff] }
 0x3c7   :  { %8111 = vmatprep.subr.bf16.mxu0 %v11641_v38  ;;  %8480 = vmatprep.subr.bf16.mxu1 %v11643_v35  ;;  %v869_v34 = vld [vmem:[%s17543_s1 + $0x1a38] sm:$0xff]  ;;  %v11688_v38 = vcombine.low %v856_v51, %v860_v22  ;;  %v11690_v35 = vcombine.low %v857_v24, %v861_v25  ;;  %v884_v19 = vld [vmem:[%s17543_s1 + $0x1ab0] sm:$0xff]  ;;  %v11737_v51 = vcombine.high %v904_v4, %v908_v16 }
 0x3c8   :  { %8141 = vmatprep.mubr.bf16.mxu0 %v14261_v37  ;;  %8510 = vmatprep.mubr.bf16.mxu1 %v14261_v37  ;;  %v833_v37 = vld [vmem:[%s17543_s1 + $0x1918] sm:$0xff]  ;;  %v11699_v39 = vcombine.high %v865_v33, %v869_v34  ;;  %v11713_v45 = vcombine.high %v880_v59, %v884_v19  ;;  %v912_v24 = vld [vmem:[%s17543_s1 + $0x1b90] sm:$0xff] }
 0x3c9   :  { %v11667_v3 = vcombine.high %v833_v37, %v837_v0  ;;  %v11666_v12 = vcombine.low %v833_v37, %v837_v0  ;;  %v888_v37 = vld [vmem:[%s17543_s1 + $0x1ad0] sm:$0xff] }
 0x3ca   :  { %8112 = vmatpush1.bf16.msra.mxu0 %v11640_v44  ;;  %8481 = vmatpush1.bf16.msra.mxu1 %v11642_v48  ;;  %v873_v44 = vld [vmem:[%s17543_s1 + $0x1a58] sm:$0xff]  ;;  %v892_v0 = vld [vmem:[%s17543_s1 + $0x1af0] sm:$0xff] }
 0x3cb   :  { %8113 = vmatprep.subr.bf16.mxu0 %v11649_v49  ;;  %8482 = vmatprep.subr.bf16.mxu1 %v11651_v52  ;;  %v877_v48 = vld [vmem:[%s17543_s1 + $0x1a78] sm:$0xff]  ;;  %v11696_v49 = vcombine.low %v864_v62, %v868_v32  ;;  %v11698_v52 = vcombine.low %v865_v33, %v869_v34  ;;  %v11721_v31 = vcombine.high %v888_v37, %v892_v0  ;;  %v916_v25 = vld [vmem:[%s17543_s1 + $0x1bb0] sm:$0xff] }
 0x3cc   :  { %v11707_v57 = vcombine.high %v873_v44, %v877_v48  ;;  %v11745_v62 = vcombine.high %v912_v24, %v916_v25  ;;  %v920_v33 = vld [vmem:[%s17543_s1 + $0x1bd0] sm:$0xff] }
 0x3cd   :  { %v924_v34 = vld [vmem:[%s17543_s1 + $0x1bf0] sm:$0xff] }
 0x3ce   :  { %8114 = vmatpush1.bf16.msra.mxu0 %v11648_v60  ;;  %8483 = vmatpush1.bf16.msra.mxu1 %v11650_v8  ;;  %v881_v60 = vld [vmem:[%s17543_s1 + $0x1a98] sm:$0xff] }
 0x3cf   :  { %8115 = vmatprep.subr.bf16.mxu0 %v11657_v23  ;;  %8484 = vmatprep.subr.bf16.mxu1 %v11659_v53  ;;  %v885_v8 = vld [vmem:[%s17543_s1 + $0x1ab8] sm:$0xff]  ;;  %v11704_v23 = vcombine.low %v872_v40, %v876_v42  ;;  %v11706_v53 = vcombine.low %v873_v44, %v877_v48  ;;  %v11753_v40 = vcombine.high %v920_v33, %v924_v34  ;;  %v928_v44 = vld [vmem:[%s17543_s1 + $0x1c10] sm:$0xff] }
 0x3d0   :  { %v11715_v61 = vcombine.high %v881_v60, %v885_v8  ;;  %v932_v48 = vld [vmem:[%s17543_s1 + $0x1c30] sm:$0xff] }
 0x3d2   :  { %8116 = vmatpush1.bf16.msra.mxu0 %v11656_v29  ;;  %8485 = vmatpush1.bf16.msra.mxu1 %v11658_v2  ;;  %v889_v29 = vld [vmem:[%s17543_s1 + $0x1ad8] sm:$0xff] }
 0x3d3   :  { %8117 = vmatprep.subr.bf16.mxu0 %v11665_v28  ;;  %8486 = vmatprep.subr.bf16.mxu1 %v11667_v3  ;;  %v893_v2 = vld [vmem:[%s17543_s1 + $0x1af8] sm:$0xff]  ;;  %v11712_v28 = vcombine.low %v880_v59, %v884_v19  ;;  %v11714_v3 = vcombine.low %v881_v60, %v885_v8  ;;  %v11761_v59 = vcombine.high %v928_v44, %v932_v48  ;;  %v936_v60 = vld [vmem:[%s17543_s1 + $0x1c50] sm:$0xff] }
 0x3d4   :  { %v11723_v6 = vcombine.high %v889_v29, %v893_v2  ;;  %v940_v8 = vld [vmem:[%s17543_s1 + $0x1c70] sm:$0xff] }
 0x3d6   :  { %8118 = vmatpush1.bf16.msra.mxu0 %v11664_v11  ;;  %8487 = vmatpush1.bf16.msra.mxu1 %v11666_v12  ;;  %v897_v11 = vld [vmem:[%s17543_s1 + $0x1b18] sm:$0xff] }
 0x3d7   :  { %8119 = vmatprep.subr.bf16.mxu0 %v11673_v13  ;;  %8488 = vmatprep.subr.bf16.mxu1 %v11675_v1  ;;  %v901_v12 = vld [vmem:[%s17543_s1 + $0x1b38] sm:$0xff]  ;;  %v11720_v13 = vcombine.low %v888_v37, %v892_v0  ;;  %v11722_v1 = vcombine.low %v889_v29, %v893_v2  ;;  %v11769_v37 = vcombine.high %v936_v60, %v940_v8  ;;  %v944_v0 = vld [vmem:[%s17543_s1 + $0x1c90] sm:$0xff] }
 0x3d8   :  { %v11731_v15 = vcombine.high %v897_v11, %v901_v12  ;;  %v948_v29 = vld [vmem:[%s17543_s1 + $0x1cb0] sm:$0xff] }
 0x3da   :  { %8120 = vmatpush1.bf16.msra.mxu0 %v11672_v18  ;;  %8489 = vmatpush1.bf16.msra.mxu1 %v11674_v20  ;;  %v905_v18 = vld [vmem:[%s17543_s1 + $0x1b58] sm:$0xff] }
 0x3db   :  { %8121 = vmatprep.subr.bf16.mxu0 %v11681_v9  ;;  %8490 = vmatprep.subr.bf16.mxu1 %v11683_v21  ;;  %v909_v20 = vld [vmem:[%s17543_s1 + $0x1b78] sm:$0xff]  ;;  %v11728_v9 = vcombine.low %v896_v58, %v900_v10  ;;  %v11730_v21 = vcombine.low %v897_v11, %v901_v12  ;;  %v11777_v58 = vcombine.high %v944_v0, %v948_v29  ;;  %v952_v11 = vld [vmem:[%s17543_s1 + $0x1cd0] sm:$0xff] }
 0x3dc   :  { %v11739_v22 = vcombine.high %v905_v18, %v909_v20  ;;  %v956_v12 = vld [vmem:[%s17543_s1 + $0x1cf0] sm:$0xff] }
 0x3de   :  { %8122 = vmatpush1.bf16.msra.mxu0 %v11680_v26  ;;  %8491 = vmatpush1.bf16.msra.mxu1 %v11682_v27  ;;  %v913_v26 = vld [vmem:[%s17543_s1 + $0x1b98] sm:$0xff] }
 0x3df   :  { %8123 = vmatprep.subr.bf16.mxu0 %v11689_v63  ;;  %8492 = vmatprep.subr.bf16.mxu1 %v11691_v30  ;;  %v917_v27 = vld [vmem:[%s17543_s1 + $0x1bb8] sm:$0xff]  ;;  %v11736_v63 = vcombine.low %v904_v4, %v908_v16  ;;  %v11738_v30 = vcombine.low %v905_v18, %v909_v20  ;;  %v960_v4 = vld [vmem:[%s17543_s1 + $0x1d10] sm:$0xff] }
 0x3e0   :  { %v11747_v32 = vcombine.high %v913_v26, %v917_v27  ;;  %v964_v16 = vld [vmem:[%s17543_s1 + $0x1d30] sm:$0xff]  ;;  %v961_v18 = vld [vmem:[%s17543_s1 + $0x1d18] sm:$0xff] }
 0x3e1   :  { %v965_v20 = vld [vmem:[%s17543_s1 + $0x1d38] sm:$0xff] }
 0x3e2   :  { %8124 = vmatpush1.bf16.msra.mxu0 %v11688_v38  ;;  %8493 = vmatpush1.bf16.msra.mxu1 %v11690_v35  ;;  %v921_v38 = vld [vmem:[%s17543_s1 + $0x1bd8] sm:$0xff] }
 0x3e3   :  { %8125 = vmatprep.subr.bf16.mxu0 %v11697_v36  ;;  %8494 = vmatprep.subr.bf16.mxu1 %v11699_v39  ;;  %v925_v35 = vld [vmem:[%s17543_s1 + $0x1bf8] sm:$0xff]  ;;  %v11744_v36 = vcombine.low %v912_v24, %v916_v25  ;;  %v11746_v39 = vcombine.low %v913_v26, %v917_v27  ;;  %v972_v24 = vld [vmem:[%s17543_s1 + $0x1d70] sm:$0xff]  ;;  %v11795_v26 = vcombine.high %v961_v18, %v965_v20 }
 0x3e4   :  { %v11755_v42 = vcombine.high %v921_v38, %v925_v35  ;;  %v969_v25 = vld [vmem:[%s17543_s1 + $0x1d58] sm:$0xff] }
 0x3e5   :  { %v973_v27 = vld [vmem:[%s17543_s1 + $0x1d78] sm:$0xff] }
 0x3e6   :  { %8126 = vmatpush1.bf16.msra.mxu0 %v11696_v49  ;;  %8495 = vmatpush1.bf16.msra.mxu1 %v11698_v52  ;;  %v929_v49 = vld [vmem:[%s17543_s1 + $0x1c18] sm:$0xff] }
 0x3e7   :  { %8127 = vmatprep.subr.bf16.mxu0 %v11705_v55  ;;  %8496 = vmatprep.subr.bf16.mxu1 %v11707_v57  ;;  %v933_v52 = vld [vmem:[%s17543_s1 + $0x1c38] sm:$0xff]  ;;  %v11752_v55 = vcombine.low %v920_v33, %v924_v34  ;;  %v11754_v57 = vcombine.low %v921_v38, %v925_v35  ;;  %v980_v33 = vld [vmem:[%s17543_s1 + $0x1db0] sm:$0xff]  ;;  %v11803_v38 = vcombine.high %v969_v25, %v973_v27 }
 0x3e8   :  { %v11763_v19 = vcombine.high %v929_v49, %v933_v52  ;;  %v977_v34 = vld [vmem:[%s17543_s1 + $0x1d98] sm:$0xff] }
 0x3e9   :  { %v981_v35 = vld [vmem:[%s17543_s1 + $0x1db8] sm:$0xff] }
 0x3ea   :  { %8128 = vmatpush1.bf16.msra.mxu0 %v11704_v23  ;;  %8497 = vmatpush1.bf16.msra.mxu1 %v11706_v53  ;;  %v937_v23 = vld [vmem:[%s17543_s1 + $0x1c58] sm:$0xff] }
 0x3eb   :  { %8129 = vmatprep.subr.bf16.mxu0 %v11713_v45  ;;  %8498 = vmatprep.subr.bf16.mxu1 %v11715_v61  ;;  %v941_v53 = vld [vmem:[%s17543_s1 + $0x1c78] sm:$0xff]  ;;  %v11760_v45 = vcombine.low %v928_v44, %v932_v48  ;;  %v11762_v61 = vcombine.low %v929_v49, %v933_v52  ;;  %v988_v44 = vld [vmem:[%s17543_s1 + $0x1df0] sm:$0xff]  ;;  %v11811_v49 = vcombine.high %v977_v34, %v981_v35 }
 0x3ec   :  { %v11771_v2 = vcombine.high %v937_v23, %v941_v53  ;;  %v985_v48 = vld [vmem:[%s17543_s1 + $0x1dd8] sm:$0xff] }
 0x3ed   :  { %v989_v52 = vld [vmem:[%s17543_s1 + $0x1df8] sm:$0xff] }
 0x3ee   :  { %8130 = vmatpush1.bf16.msra.mxu0 %v11712_v28  ;;  %8499 = vmatpush1.bf16.msra.mxu1 %v11714_v3  ;;  %v945_v28 = vld [vmem:[%s17543_s1 + $0x1c98] sm:$0xff] }
 0x3ef   :  { %8131 = vmatprep.subr.bf16.mxu0 %v11721_v31  ;;  %8500 = vmatprep.subr.bf16.mxu1 %v11723_v6  ;;  %v949_v3 = vld [vmem:[%s17543_s1 + $0x1cb8] sm:$0xff]  ;;  %v11768_v31 = vcombine.low %v936_v60, %v940_v8  ;;  %v11770_v6 = vcombine.low %v937_v23, %v941_v53  ;;  %v996_v60 = vld [vmem:[%s17543_s1 + $0x1e30] sm:$0xff]  ;;  %v11819_v23 = vcombine.high %v985_v48, %v989_v52 }
 0x3f0   :  { %v11779_v10 = vcombine.high %v945_v28, %v949_v3  ;;  %v993_v8 = vld [vmem:[%s17543_s1 + $0x1e18] sm:$0xff] }
 0x3f1   :  { %v997_v53 = vld [vmem:[%s17543_s1 + $0x1e38] sm:$0xff] }
 0x3f2   :  { %8132 = vmatpush1.bf16.msra.mxu0 %v11720_v13  ;;  %8501 = vmatpush1.bf16.msra.mxu1 %v11722_v1  ;;  %v953_v13 = vld [vmem:[%s17543_s1 + $0x1cd8] sm:$0xff]  ;;  %v11776_v1 = vcombine.low %v944_v0, %v948_v29  ;;  %v1000_v0 = vld [vmem:[%s17543_s1 + $0x1e50] sm:$0xff] }
 0x3f3   :  { %8133 = vmatprep.subr.bf16.mxu0 %v11729_v14  ;;  %8502 = vmatprep.subr.bf16.mxu1 %v11731_v15  ;;  %v11778_v14 = vcombine.low %v945_v28, %v949_v3  ;;  %v11785_v15 = vcombine.high %v952_v11, %v956_v12  ;;  %v1004_v29 = vld [vmem:[%s17543_s1 + $0x1e70] sm:$0xff]  ;;  %v11827_v28 = vcombine.high %v993_v8, %v997_v53  ;;  %v1005_v3 = vld [vmem:[%s17543_s1 + $0x1e78] sm:$0xff] }
 0x3f6   :  { %8134 = vmatpush1.bf16.msra.mxu0 %v11728_v9  ;;  %8503 = vmatpush1.bf16.msra.mxu1 %v11730_v21  ;;  %v11784_v9 = vcombine.low %v952_v11, %v956_v12  ;;  %v1012_v11 = vld [vmem:[%s17543_s1 + $0x1eb0] sm:$0xff]  ;;  %v1009_v12 = vld [vmem:[%s17543_s1 + $0x1e98] sm:$0xff] }
 0x3f7   :  { %8135 = vmatprep.subr.bf16.mxu0 %v11737_v51  ;;  %8504 = vmatprep.subr.bf16.mxu1 %v11739_v22  ;;  %v11793_v51 = vcombine.high %v960_v4, %v964_v16  ;;  %v968_v22 = vld [vmem:[%s17543_s1 + $0x1d50] sm:$0xff] }
 0x3fa   :  { %8136 = vmatpush1.bf16.msra.mxu0 %v11736_v63  ;;  %8505 = vmatpush1.bf16.msra.mxu1 %v11738_v30  ;;  %v11792_v63 = vcombine.low %v960_v4, %v964_v16  ;;  %v11794_v30 = vcombine.low %v961_v18, %v965_v20  ;;  %v1016_v4 = vld [vmem:[%s17543_s1 + $0x1ed0] sm:$0xff]  ;;  %v1017_v18 = vld [vmem:[%s17543_s1 + $0x1ed8] sm:$0xff] }
 0x3fb   :  { %8137 = vmatprep.subr.bf16.mxu0 %v11745_v62  ;;  %8506 = vmatprep.subr.bf16.mxu1 %v11747_v32  ;;  %v11801_v62 = vcombine.high %v968_v22, %v972_v24  ;;  %v976_v32 = vld [vmem:[%s17543_s1 + $0x1d90] sm:$0xff]  ;;  %v1021_v20 = vld [vmem:[%s17543_s1 + $0x1ef8] sm:$0xff] }
 0x3fc   :  { %v1020_v16 = vld [vmem:[%s17543_s1 + $0x1ef0] sm:$0xff] }
 0x3fe   :  { %8138 = vmatpush1.bf16.msra.mxu0 %v11744_v36  ;;  %8507 = vmatpush1.bf16.msra.mxu1 %v11746_v39  ;;  %v11800_v36 = vcombine.low %v968_v22, %v972_v24  ;;  %v11802_v39 = vcombine.low %v969_v25, %v973_v27  ;;  %v1024_v22 = vld [vmem:[%s17543_s1 + $0x1f10] sm:$0xff]  ;;  %v1025_v25 = vld [vmem:[%s17543_s1 + $0x1f18] sm:$0xff] }
 0x3ff   :  { %8139 = vmatprep.subr.bf16.mxu0 %v11753_v40  ;;  %8508 = vmatprep.subr.bf16.mxu1 %v11755_v42  ;;  %v11809_v40 = vcombine.high %v976_v32, %v980_v33  ;;  %v984_v42 = vld [vmem:[%s17543_s1 + $0x1dd0] sm:$0xff]  ;;  %v1029_v27 = vld [vmem:[%s17543_s1 + $0x1f38] sm:$0xff] }
 0x400   :  { %v1028_v24 = vld [vmem:[%s17543_s1 + $0x1f30] sm:$0xff] }
 0x402   :  { %8140 = vmatpush1.bf16.msra.mxu0 %v11752_v55  ;;  %8509 = vmatpush1.bf16.msra.mxu1 %v11754_v57  ;;  %v11808_v55 = vcombine.low %v976_v32, %v980_v33  ;;  %v11810_v57 = vcombine.low %v977_v34, %v981_v35  ;;  %v1032_v32 = vld [vmem:[%s17543_s1 + $0x1f50] sm:$0xff]  ;;  %v1033_v34 = vld [vmem:[%s17543_s1 + $0x1f58] sm:$0xff] }
 0x403   :  { %8150 = vmatprep.subr.bf16.mxu0 %v11761_v59  ;;  %8519 = vmatprep.subr.bf16.mxu1 %v11763_v19  ;;  %v11817_v59 = vcombine.high %v984_v42, %v988_v44  ;;  %v992_v19 = vld [vmem:[%s17543_s1 + $0x1e10] sm:$0xff]  ;;  %v1037_v35 = vld [vmem:[%s17543_s1 + $0x1f78] sm:$0xff] }
 0x404   :  { %v1036_v33 = vld [vmem:[%s17543_s1 + $0x1f70] sm:$0xff] }
 0x405   :  { %8142 = vmatmul.mubr.bf16.vlgmr.msra.gmra.mrb[4].mxu0 %v14449_v7  ;;  %8511 = vmatmul.mubr.bf16.vlgmr.msra.gmra.mrb[4].mxu1 %v14449_v7  ;;  %v957_v7 = vld [vmem:[%s17543_s1 + $0x1cf8] sm:$0xff] }
 0x406   :  { %8151 = vmatpush1.bf16.msra.mxu0 %v11760_v45  ;;  %8520 = vmatpush1.bf16.msra.mxu1 %v11762_v61  ;;  %v11786_v21 = vcombine.low %v953_v13, %v957_v7  ;;  %v11816_v45 = vcombine.low %v984_v42, %v988_v44  ;;  %v11818_v61 = vcombine.low %v985_v48, %v989_v52  ;;  %v1040_v42 = vld [vmem:[%s17543_s1 + $0x1f90] sm:$0xff]  ;;  %v1041_v48 = vld [vmem:[%s17543_s1 + $0x1f98] sm:$0xff] }
 0x407   :  { %8152 = vmatprep.subr.bf16.mxu0 %v11769_v37  ;;  %8521 = vmatprep.subr.bf16.mxu1 %v11771_v2  ;;  %v11825_v37 = vcombine.high %v992_v19, %v996_v60  ;;  %v1001_v2 = vld [vmem:[%s17543_s1 + $0x1e58] sm:$0xff]  ;;  %v1044_v44 = vld [vmem:[%s17543_s1 + $0x1fb0] sm:$0xff] }
 0x408   :  { %8182 = vmatprep.mubr.bf16.mxu0 %v14465_v17  ;;  %8551 = vmatprep.mubr.bf16.mxu1 %v14465_v17  ;;  %v11787_v17 = vcombine.high %v953_v13, %v957_v7  ;;  %v11835_v13 = vcombine.high %v1001_v2, %v1005_v3  ;;  %v1013_v7 = vld [vmem:[%s17543_s1 + $0x1eb8] sm:$0xff] }
 0x409   :  { %v1045_v52 = vld [vmem:[%s17543_s1 + $0x1fb8] sm:$0xff] }
 0x40a   :  { %8153 = vmatpush1.bf16.msra.mxu0 %v11768_v31  ;;  %8522 = vmatpush1.bf16.msra.mxu1 %v11770_v6  ;;  %v11824_v31 = vcombine.low %v992_v19, %v996_v60  ;;  %v11826_v6 = vcombine.low %v993_v8, %v997_v53  ;;  %v1048_v19 = vld [vmem:[%s17543_s1 + $0x1fd0] sm:$0xff]  ;;  %v1049_v8 = vld [vmem:[%s17543_s1 + $0x1fd8] sm:$0xff] }
 0x40b   :  { %8154 = vmatprep.subr.bf16.mxu0 %v11777_v58  ;;  %8523 = vmatprep.subr.bf16.mxu1 %v11779_v10  ;;  %v11833_v58 = vcombine.high %v1000_v0, %v1004_v29  ;;  %v1008_v10 = vld [vmem:[%s17543_s1 + $0x1e90] sm:$0xff]  ;;  %v1053_v53 = vld [vmem:[%s17543_s1 + $0x1ff8] sm:$0xff] }
 0x40c   :  { %v1052_v60 = vld [vmem:[%s17543_s1 + $0x1ff0] sm:$0xff] }
 0x40e   :  { %8155 = vmatpush1.bf16.msra.mxu0 %v11776_v1  ;;  %8524 = vmatpush1.bf16.msra.mxu1 %v11778_v14  ;;  %v11832_v1 = vcombine.low %v1000_v0, %v1004_v29  ;;  %v11834_v14 = vcombine.low %v1001_v2, %v1005_v3  ;;  %v1056_v0 = vld [vmem:[%s17543_s1 + $0x2010] sm:$0xff]  ;;  %v1057_v2 = vld [vmem:[%s17543_s1 + $0x2018] sm:$0xff] }
 0x40f   :  { %8156 = vmatprep.subr.bf16.mxu0 %v11785_v15  ;;  %8525 = vmatprep.subr.bf16.mxu1 %v11787_v17  ;;  %v11841_v15 = vcombine.high %v1008_v10, %v1012_v11  ;;  %v11843_v17 = vcombine.high %v1009_v12, %v1013_v7  ;;  %v1060_v29 = vld [vmem:[%s17543_s1 + $0x2030] sm:$0xff]  ;;  %v1061_v3 = vld [vmem:[%s17543_s1 + $0x2038] sm:$0xff] }
 0x412   :  { %8157 = vmatpush1.bf16.msra.mxu0 %v11784_v9  ;;  %8526 = vmatpush1.bf16.msra.mxu1 %v11786_v21  ;;  %v11840_v9 = vcombine.low %v1008_v10, %v1012_v11  ;;  %v11842_v21 = vcombine.low %v1009_v12, %v1013_v7  ;;  %v1064_v10 = vld [vmem:[%s17543_s1 + $0x2050] sm:$0xff]  ;;  %v1065_v12 = vld [vmem:[%s17543_s1 + $0x2058] sm:$0xff] }
 0x413   :  { %8158 = vmatprep.subr.bf16.mxu0 %v11793_v51  ;;  %8527 = vmatprep.subr.bf16.mxu1 %v11795_v26  ;;  %v11849_v51 = vcombine.high %v1016_v4, %v1020_v16  ;;  %v11851_v26 = vcombine.high %v1017_v18, %v1021_v20  ;;  %v1068_v11 = vld [vmem:[%s17543_s1 + $0x2070] sm:$0xff]  ;;  %v1069_v7 = vld [vmem:[%s17543_s1 + $0x2078] sm:$0xff] }
 0x416   :  { %8159 = vmatpush1.bf16.msra.mxu0 %v11792_v63  ;;  %8528 = vmatpush1.bf16.msra.mxu1 %v11794_v30  ;;  %v11848_v63 = vcombine.low %v1016_v4, %v1020_v16  ;;  %v11850_v30 = vcombine.low %v1017_v18, %v1021_v20  ;;  %v11890_v4 = vcombine.low %v1057_v2, %v1061_v3  ;;  %v1077_v20 = vld [vmem:[%s17543_s1 + $0x20b8] sm:$0xff] }
 0x417   :  { %8160 = vmatprep.subr.bf16.mxu0 %v11801_v62  ;;  %8529 = vmatprep.subr.bf16.mxu1 %v11803_v38  ;;  %v11857_v62 = vcombine.high %v1024_v22, %v1028_v24  ;;  %v11859_v38 = vcombine.high %v1025_v25, %v1029_v27  ;;  %v11897_v16 = vcombine.high %v1064_v10, %v1068_v11 }
 0x418   :  { %v11899_v18 = vcombine.high %v1065_v12, %v1069_v7 }
 0x41a   :  { %8161 = vmatpush1.bf16.msra.mxu0 %v11800_v36  ;;  %8530 = vmatpush1.bf16.msra.mxu1 %v11802_v39  ;;  %v11856_v36 = vcombine.low %v1024_v22, %v1028_v24  ;;  %v11858_v39 = vcombine.low %v1025_v25, %v1029_v27  ;;  %v1080_v24 = vld [vmem:[%s17543_s1 + $0x20d0] sm:$0xff] }
 0x41b   :  { %8162 = vmatprep.subr.bf16.mxu0 %v11809_v40  ;;  %8531 = vmatprep.subr.bf16.mxu1 %v11811_v49  ;;  %v11865_v40 = vcombine.high %v1032_v32, %v1036_v33  ;;  %v11867_v49 = vcombine.high %v1033_v34, %v1037_v35  ;;  %v1084_v25 = vld [vmem:[%s17543_s1 + $0x20f0] sm:$0xff] }
 0x41e   :  { %8163 = vmatpush1.bf16.msra.mxu0 %v11808_v55  ;;  %8532 = vmatpush1.bf16.msra.mxu1 %v11810_v57  ;;  %v11864_v55 = vcombine.low %v1032_v32, %v1036_v33  ;;  %v11866_v57 = vcombine.low %v1033_v34, %v1037_v35  ;;  %v1092_v32 = vld [vmem:[%s17543_s1 + $0x2130] sm:$0xff]  ;;  %v1089_v33 = vld [vmem:[%s17543_s1 + $0x2118] sm:$0xff] }
 0x41f   :  { %8164 = vmatprep.subr.bf16.mxu0 %v11817_v59  ;;  %8533 = vmatprep.subr.bf16.mxu1 %v11819_v23  ;;  %v11873_v59 = vcombine.high %v1040_v42, %v1044_v44  ;;  %v11875_v23 = vcombine.high %v1041_v48, %v1045_v52  ;;  %v1093_v34 = vld [vmem:[%s17543_s1 + $0x2138] sm:$0xff] }
 0x422   :  { %8165 = vmatpush1.bf16.msra.mxu0 %v11816_v45  ;;  %8534 = vmatpush1.bf16.msra.mxu1 %v11818_v61  ;;  %v11872_v45 = vcombine.low %v1040_v42, %v1044_v44  ;;  %v11874_v61 = vcombine.low %v1041_v48, %v1045_v52  ;;  %v1097_v42 = vld [vmem:[%s17543_s1 + $0x2158] sm:$0xff]  ;;  %v11923_v44 = vcombine.high %v1089_v33, %v1093_v34 }
 0x423   :  { %8166 = vmatprep.subr.bf16.mxu0 %v11825_v37  ;;  %8535 = vmatprep.subr.bf16.mxu1 %v11827_v28  ;;  %v11881_v37 = vcombine.high %v1048_v19, %v1052_v60  ;;  %v11883_v28 = vcombine.high %v1049_v8, %v1053_v53  ;;  %v1101_v48 = vld [vmem:[%s17543_s1 + $0x2178] sm:$0xff]  ;;  %v11922_v52 = vcombine.low %v1089_v33, %v1093_v34 }
 0x424   :  { %v1149_v33 = vld [vmem:[%s17543_s1 + $0x22f8] sm:$0xff] }
 0x426   :  { %8167 = vmatpush1.bf16.msra.mxu0 %v11824_v31  ;;  %8536 = vmatpush1.bf16.msra.mxu1 %v11826_v6  ;;  %v11880_v31 = vcombine.low %v1048_v19, %v1052_v60  ;;  %v11882_v6 = vcombine.low %v1049_v8, %v1053_v53  ;;  %v1105_v19 = vld [vmem:[%s17543_s1 + $0x2198] sm:$0xff]  ;;  %v11931_v60 = vcombine.high %v1097_v42, %v1101_v48 }
 0x427   :  { %8168 = vmatprep.subr.bf16.mxu0 %v11833_v58  ;;  %8537 = vmatprep.subr.bf16.mxu1 %v11835_v13  ;;  %v11889_v58 = vcombine.high %v1056_v0, %v1060_v29  ;;  %v11891_v13 = vcombine.high %v1057_v2, %v1061_v3  ;;  %v1109_v8 = vld [vmem:[%s17543_s1 + $0x21b8] sm:$0xff]  ;;  %v11930_v53 = vcombine.low %v1097_v42, %v1101_v48 }
 0x428   :  { %v1117_v2 = vld [vmem:[%s17543_s1 + $0x21f8] sm:$0xff]  ;;  %v11938_v3 = vcombine.low %v1105_v19, %v1109_v8 }
 0x429   :  { %v1157_v42 = vld [vmem:[%s17543_s1 + $0x2338] sm:$0xff] }
 0x42a   :  { %8169 = vmatpush1.bf16.msra.mxu0 %v11832_v1  ;;  %8538 = vmatpush1.bf16.msra.mxu1 %v11834_v14  ;;  %v11888_v1 = vcombine.low %v1056_v0, %v1060_v29  ;;  %v1072_v14 = vld [vmem:[%s17543_s1 + $0x2090] sm:$0xff]  ;;  %v1113_v0 = vld [vmem:[%s17543_s1 + $0x21d8] sm:$0xff]  ;;  %v11939_v29 = vcombine.high %v1105_v19, %v1109_v8 }
 0x42b   :  { %8170 = vmatprep.subr.bf16.mxu0 %v11841_v15  ;;  %8539 = vmatprep.subr.bf16.mxu1 %v11843_v17  ;;  %v1076_v15 = vld [vmem:[%s17543_s1 + $0x20b0] sm:$0xff]  ;;  %v1073_v17 = vld [vmem:[%s17543_s1 + $0x2098] sm:$0xff] }
 0x42c   :  { %v11907_v22 = vcombine.high %v1073_v17, %v1077_v20  ;;  %v11904_v27 = vcombine.low %v1072_v14, %v1076_v15  ;;  %v1165_v19 = vld [vmem:[%s17543_s1 + $0x2378] sm:$0xff] }
 0x42e   :  { %8171 = vmatpush1.bf16.msra.mxu0 %v11840_v9  ;;  %8540 = vmatpush1.bf16.msra.mxu1 %v11842_v21  ;;  %v11896_v9 = vcombine.low %v1064_v10, %v1068_v11  ;;  %v11898_v21 = vcombine.low %v1065_v12, %v1069_v7  ;;  %v1121_v10 = vld [vmem:[%s17543_s1 + $0x2218] sm:$0xff]  ;;  %v11947_v11 = vcombine.high %v1113_v0, %v1117_v2 }
 0x42f   :  { %8172 = vmatprep.subr.bf16.mxu0 %v11849_v51  ;;  %8541 = vmatprep.subr.bf16.mxu1 %v11851_v26  ;;  %v11905_v51 = vcombine.high %v1072_v14, %v1076_v15  ;;  %v1081_v26 = vld [vmem:[%s17543_s1 + $0x20d8] sm:$0xff]  ;;  %v11946_v7 = vcombine.low %v1113_v0, %v1117_v2  ;;  %v1128_v14 = vld [vmem:[%s17543_s1 + $0x2250] sm:$0xff]  ;;  %v1190_v2 = vsub.s32 1, %v13036_v43 }
 0x430   :  { %v1125_v12 = vld [vmem:[%s17543_s1 + $0x2238] sm:$0xff]  ;;  %v1132_v15 = vld [vmem:[%s17543_s1 + $0x2270] sm:$0xff] }
 0x432   :  { %8173 = vmatpush1.bf16.msra.mxu0 %v11848_v63  ;;  %8542 = vmatpush1.bf16.msra.mxu1 %v11850_v30  ;;  %v11906_v63 = vcombine.low %v1073_v17, %v1077_v20  ;;  %v11913_v30 = vcombine.high %v1080_v24, %v1084_v25  ;;  %v11954_v20 = vcombine.low %v1121_v10, %v1125_v12 }
 0x433   :  { %8174 = vmatprep.subr.bf16.mxu0 %v11857_v62  ;;  %8543 = vmatprep.subr.bf16.mxu1 %v11859_v38  ;;  %v1088_v62 = vld [vmem:[%s17543_s1 + $0x2110] sm:$0xff]  ;;  %v11912_v38 = vcombine.low %v1080_v24, %v1084_v25  ;;  %v1141_v25 = vld [vmem:[%s17543_s1 + $0x22b8] sm:$0xff] }
 0x436   :  { %8175 = vmatpush1.bf16.msra.mxu0 %v11856_v36  ;;  %8544 = vmatpush1.bf16.msra.mxu1 %v11858_v39  ;;  %v11921_v36 = vcombine.high %v1088_v62, %v1092_v32  ;;  %v1096_v39 = vld [vmem:[%s17543_s1 + $0x2150] sm:$0xff] }
 0x437   :  { %8176 = vmatprep.subr.bf16.mxu0 %v11865_v40  ;;  %8545 = vmatprep.subr.bf16.mxu1 %v11867_v49  ;;  %v1100_v40 = vld [vmem:[%s17543_s1 + $0x2170] sm:$0xff]  ;;  %v11920_v49 = vcombine.low %v1088_v62, %v1092_v32  ;;  %v1145_v62 = vld [vmem:[%s17543_s1 + $0x22d8] sm:$0xff] }
 0x438   :  { %v11978_v48 = vcombine.low %v1145_v62, %v1149_v33 }
 0x43a   :  { %8177 = vmatpush1.bf16.msra.mxu0 %v11864_v55  ;;  %8546 = vmatpush1.bf16.msra.mxu1 %v11866_v57  ;;  %v11929_v55 = vcombine.high %v1096_v39, %v1100_v40  ;;  %v1104_v57 = vld [vmem:[%s17543_s1 + $0x2190] sm:$0xff] }
 0x43b   :  { %8178 = vmatprep.subr.bf16.mxu0 %v11873_v59  ;;  %8547 = vmatprep.subr.bf16.mxu1 %v11875_v23  ;;  %v1108_v59 = vld [vmem:[%s17543_s1 + $0x21b0] sm:$0xff]  ;;  %v11928_v23 = vcombine.low %v1096_v39, %v1100_v40  ;;  %v1153_v39 = vld [vmem:[%s17543_s1 + $0x2318] sm:$0xff]  ;;  %v11979_v40 = vcombine.high %v1145_v62, %v1149_v33 }
 0x43c   :  { %v11986_v8 = vcombine.low %v1153_v39, %v1157_v42  ;;  %v12535_v62 = vld [vmem:[%s17545_s3 + $0x6c] ss:$16 sps:$4 sm:$0xff]   ;;  %v12533_v33 = vld [vmem:[%s17545_s3 + $0x68] ss:$16 sps:$4 sm:$0xff]  }
 0x43e   :  { %8179 = vmatpush1.bf16.msra.mxu0 %v11872_v45  ;;  %8548 = vmatpush1.bf16.msra.mxu1 %v11874_v61  ;;  %v11937_v45 = vcombine.high %v1104_v57, %v1108_v59  ;;  %v1112_v61 = vld [vmem:[%s17543_s1 + $0x21d0] sm:$0xff] }
 0x43f   :  { %8180 = vmatprep.subr.bf16.mxu0 %v11881_v37  ;;  %8549 = vmatprep.subr.bf16.mxu1 %v11883_v28  ;;  %v1116_v37 = vld [vmem:[%s17543_s1 + $0x21f0] sm:$0xff]  ;;  %v11936_v28 = vcombine.low %v1104_v57, %v1108_v59  ;;  %v1161_v57 = vld [vmem:[%s17543_s1 + $0x2358] sm:$0xff]  ;;  %v11987_v59 = vcombine.high %v1153_v39, %v1157_v42 }
 0x440   :  { %v11995_v0 = vcombine.high %v1161_v57, %v1165_v19  ;;  %v12547_v39 = vld [vmem:[%s17545_s3 + $0xac] ss:$16 sps:$4 sm:$0xff]   ;;  %v12545_v42 = vld [vmem:[%s17545_s3 + $0xa8] ss:$16 sps:$4 sm:$0xff]  }
 0x442   :  { %8181 = vmatpush1.bf16.msra.mxu0 %v11880_v31  ;;  %8550 = vmatpush1.bf16.msra.mxu1 %v11882_v6  ;;  %v11945_v31 = vcombine.high %v1112_v61, %v1116_v37  ;;  %v1120_v6 = vld [vmem:[%s17543_s1 + $0x2210] sm:$0xff] }
 0x443   :  { %8191 = vmatprep.subr.bf16.mxu0 %v11889_v58  ;;  %8560 = vmatprep.subr.bf16.mxu1 %v11891_v13  ;;  %v1124_v58 = vld [vmem:[%s17543_s1 + $0x2230] sm:$0xff]  ;;  %v11944_v13 = vcombine.low %v1112_v61, %v1116_v37  ;;  %v1169_v61 = vld [vmem:[%s17543_s1 + $0x2398] sm:$0xff]  ;;  %v16607_v37 = vld [vmem:[%s17546_s2] sm:$0xff] }
 0x444   :  { %v11952_v17 = vcombine.low %v1120_v6, %v1124_v58 }
 0x445   :  { %8183 = vmatmul.mubr.bf16.vlgmr.msra.gmra.mrb[4].mxu0 %v14660_v56  ;;  %8552 = vmatmul.mubr.bf16.vlgmr.msra.gmra.mrb[4].mxu1 %v14660_v56  ;;  %v1085_v56 = vld [vmem:[%s17543_s1 + $0x20f8] sm:$0xff] }
 0x446   :  { %8192 = vmatpush1.bf16.msra.mxu0 %v11888_v1  ;;  %8561 = vmatpush1.bf16.msra.mxu1 %v11890_v4  ;;  %v11914_v35 = vcombine.low %v1081_v26, %v1085_v56  ;;  %v11953_v1 = vcombine.high %v1120_v6, %v1124_v58  ;;  %v1129_v4 = vld [vmem:[%s17543_s1 + $0x2258] sm:$0xff]  ;;  %v1176_v6 = vld [vmem:[%s17543_s1 + $0x23d0] sm:$0xff] }
 0x447   :  { %8193 = vmatprep.subr.bf16.mxu0 %v11897_v16  ;;  %8562 = vmatprep.subr.bf16.mxu1 %v11899_v18  ;;  %v11955_v16 = vcombine.high %v1121_v10, %v1125_v12  ;;  %v1133_v18 = vld [vmem:[%s17543_s1 + $0x2278] sm:$0xff]  ;;  %v1180_v58 = vld [vmem:[%s17543_s1 + $0x23f0] sm:$0xff] }
 0x448   :  { %8223 = vmatprep.mubr.bf16.mxu0 %v14675_v5  ;;  %8592 = vmatprep.mubr.bf16.mxu1 %v14675_v5  ;;  %v11915_v5 = vcombine.high %v1081_v26, %v1085_v56  ;;  %v11963_v24 = vcombine.high %v1129_v4, %v1133_v18  ;;  %v11960_v26 = vcombine.low %v1128_v14, %v1132_v15  ;;  %v1177_v10 = vld [vmem:[%s17543_s1 + $0x23d8] sm:$0xff] }
 0x449   :  { %v11962_v56 = vcombine.low %v1129_v4, %v1133_v18  ;;  %v1181_v12 = vld [vmem:[%s17543_s1 + $0x23f8] sm:$0xff] }
 0x44a   :  { %8194 = vmatpush1.bf16.msra.mxu0 %v11896_v9  ;;  %8563 = vmatpush1.bf16.msra.mxu1 %v11898_v21  ;;  %v11961_v9 = vcombine.high %v1128_v14, %v1132_v15  ;;  %v1136_v21 = vld [vmem:[%s17543_s1 + $0x2290] sm:$0xff]  ;;  %v12009_v14 = vcombine.high %v1176_v6, %v1180_v58  ;;  %v12011_v15 = vcombine.high %v1177_v10, %v1181_v12 }
 0x44b   :  { %8195 = vmatprep.subr.bf16.mxu0 %v11905_v51  ;;  %8564 = vmatprep.subr.bf16.mxu1 %v11907_v22  ;;  %v1140_v51 = vld [vmem:[%s17543_s1 + $0x22b0] sm:$0xff]  ;;  %v1137_v22 = vld [vmem:[%s17543_s1 + $0x2298] sm:$0xff]  ;;  %v12010_v18 = vcombine.low %v1177_v10, %v1181_v12 }
 0x44c   :  { %v11971_v32 = vcombine.high %v1137_v22, %v1141_v25  ;;  %v11970_v34 = vcombine.low %v1137_v22, %v1141_v25  ;;  %v12518_v25 = vld [vmem:[%s17545_s3 + $0x20] ss:$16 sps:$4 sm:$0xff]   ;;  %v12583_v10 = vld [vmem:[%s17545_s3 + $0x16c] ss:$16 sps:$4 sm:$0xff]   ;;  %v12581_v12 = vld [vmem:[%s17545_s3 + $0x168] ss:$16 sps:$4 sm:$0xff]  }
 0x44e   :  { %8196 = vmatpush1.bf16.msra.mxu0 %v11904_v27  ;;  %8565 = vmatpush1.bf16.msra.mxu1 %v11906_v63  ;;  %v11969_v27 = vcombine.high %v1136_v21, %v1140_v51  ;;  %v1144_v63 = vld [vmem:[%s17543_s1 + $0x22d0] sm:$0xff] }
 0x44f   :  { %8197 = vmatprep.subr.bf16.mxu0 %v11913_v30  ;;  %8566 = vmatprep.subr.bf16.mxu1 %v11915_v5  ;;  %v1148_v30 = vld [vmem:[%s17543_s1 + $0x22f0] sm:$0xff]  ;;  %v11968_v5 = vcombine.low %v1136_v21, %v1140_v51 }
 0x450   :  { %v12520_v51 = vld [vmem:[%s17545_s3 + $0x24] ss:$16 sps:$4 sm:$0xff]  }
 0x452   :  { %8198 = vmatpush1.bf16.msra.mxu0 %v11912_v38  ;;  %8567 = vmatpush1.bf16.msra.mxu1 %v11914_v35  ;;  %v11977_v38 = vcombine.high %v1144_v63, %v1148_v30  ;;  %v1152_v35 = vld [vmem:[%s17543_s1 + $0x2310] sm:$0xff] }
 0x453   :  { %8199 = vmatprep.subr.bf16.mxu0 %v11921_v36  ;;  %8568 = vmatprep.subr.bf16.mxu1 %v11923_v44  ;;  %v1156_v36 = vld [vmem:[%s17543_s1 + $0x2330] sm:$0xff]  ;;  %v11976_v44 = vcombine.low %v1144_v63, %v1148_v30  ;;  %v12527_v63 = vld [vmem:[%s17545_s3 + $0x48] ss:$16 sps:$4 sm:$0xff]  }
 0x454   :  { %v12532_v30 = vld [vmem:[%s17545_s3 + $0x64] ss:$16 sps:$4 sm:$0xff]  }
 0x456   :  { %8200 = vmatpush1.bf16.msra.mxu0 %v11920_v49  ;;  %8569 = vmatpush1.bf16.msra.mxu1 %v11922_v52  ;;  %v11985_v49 = vcombine.high %v1152_v35, %v1156_v36  ;;  %v1160_v52 = vld [vmem:[%s17543_s1 + $0x2350] sm:$0xff] }
 0x457   :  { %8201 = vmatprep.subr.bf16.mxu0 %v11929_v55  ;;  %8570 = vmatprep.subr.bf16.mxu1 %v11931_v60  ;;  %v1164_v55 = vld [vmem:[%s17543_s1 + $0x2370] sm:$0xff]  ;;  %v11984_v60 = vcombine.low %v1152_v35, %v1156_v36  ;;  %v12539_v35 = vld [vmem:[%s17545_s3 + $0x88] ss:$16 sps:$4 sm:$0xff]  }
 0x458   :  { %v12544_v36 = vld [vmem:[%s17545_s3 + $0xa4] ss:$16 sps:$4 sm:$0xff]  }
 0x45a   :  { %8202 = vmatpush1.bf16.msra.mxu0 %v11928_v23  ;;  %8571 = vmatpush1.bf16.msra.mxu1 %v11930_v53  ;;  %v11993_v23 = vcombine.high %v1160_v52, %v1164_v55  ;;  %v1168_v53 = vld [vmem:[%s17543_s1 + $0x2390] sm:$0xff] }
 0x45b   :  { %8203 = vmatprep.subr.bf16.mxu0 %v11937_v45  ;;  %8572 = vmatprep.subr.bf16.mxu1 %v11939_v29  ;;  %v1172_v45 = vld [vmem:[%s17543_s1 + $0x23b0] sm:$0xff]  ;;  %v1173_v29 = vld [vmem:[%s17543_s1 + $0x23b8] sm:$0xff] }
 0x45e   :  { %8204 = vmatpush1.bf16.msra.mxu0 %v11936_v28  ;;  %8573 = vmatpush1.bf16.msra.mxu1 %v11938_v3  ;;  %v11992_v28 = vcombine.low %v1160_v52, %v1164_v55  ;;  %v11994_v3 = vcombine.low %v1161_v57, %v1165_v19  ;;  %v12551_v52 = vld [vmem:[%s17545_s3 + $0xc8] ss:$16 sps:$4 sm:$0xff]   ;;  %v12556_v55 = vld [vmem:[%s17545_s3 + $0xe4] ss:$16 sps:$4 sm:$0xff]   ;;  %v12559_v57 = vld [vmem:[%s17545_s3 + $0xec] ss:$16 sps:$4 sm:$0xff]  }
 0x45f   :  { %8205 = vmatprep.subr.bf16.mxu0 %v11945_v31  ;;  %8574 = vmatprep.subr.bf16.mxu1 %v11947_v11  ;;  %v12001_v31 = vcombine.high %v1168_v53, %v1172_v45  ;;  %v12003_v11 = vcombine.high %v1169_v61, %v1173_v29  ;;  %v12557_v19 = vld [vmem:[%s17545_s3 + $0xe8] ss:$16 sps:$4 sm:$0xff]  }
 0x462   :  { %8206 = vmatpush1.bf16.msra.mxu0 %v11944_v13  ;;  %8575 = vmatpush1.bf16.msra.mxu1 %v11946_v7  ;;  %v1191_v13 = vrot.slane %v16607_v37, %v1190_v2  ;;  %v12000_v7 = vcombine.low %v1168_v53, %v1172_v45  ;;  %v12563_v53 = vld [vmem:[%s17545_s3 + $0x108] ss:$16 sps:$4 sm:$0xff]   ;;  %v12568_v45 = vld [vmem:[%s17545_s3 + $0x124] ss:$16 sps:$4 sm:$0xff]  }
 0x463   :  { %8207 = vmatprep.subr.bf16.mxu0 %v11953_v1  ;;  %8576 = vmatprep.subr.bf16.mxu1 %v11955_v16  ;;  %v12002_v1 = vcombine.low %v1169_v61, %v1173_v29  ;;  %v12008_v16 = vcombine.low %v1176_v6, %v1180_v58  ;;  %v12571_v61 = vld [vmem:[%s17545_s3 + $0x12c] ss:$16 sps:$4 sm:$0xff]   ;;  %v12569_v29 = vld [vmem:[%s17545_s3 + $0x128] ss:$16 sps:$4 sm:$0xff]   ;;  %v12580_v58 = vld [vmem:[%s17545_s3 + $0x164] ss:$16 sps:$4 sm:$0xff]  }
 0x464   :  { %v12346_v4 = vadd.f32 %v15533_v47, %v1191_v13  ;;  %v12515_v47 = vld [vmem:[%s17545_s3 + $0x8] ss:$16 sps:$4 sm:$0xff]   ;;  %v12586_v13 = vld [vmem:[%s17545_s3 + $0x184] ss:$16 sps:$4 sm:$0xff]  }
 0x465   :  { %v12575_v6 = vld [vmem:[%s17545_s3 + $0x148] ss:$16 sps:$4 sm:$0xff]  }
 0x466   :  { %8208 = vmatpush1.bf16.msra.mxu0 %v11952_v17  ;;  %8577 = vmatpush1.bf16.msra.mxu1 %v11954_v20  ;;  %v12514_v17 = vld [vmem:[%s17545_s3 + $0x4] ss:$16 sps:$4 sm:$0xff]   ;;  %v12512_v20 = vld [vmem:[%s17545_s3] ss:$16 sps:$4 sm:$0xff]   ;;  %v8602_v21 = vmax.f32 %v12346_v4, 0.0 }
 0x467   :  { %8209 = vmatprep.subr.bf16.mxu0 %v11961_v9  ;;  %8578 = vmatprep.subr.bf16.mxu1 %v11963_v24  ;;  %v12517_v9 = vld [vmem:[%s17545_s3 + $0xc] ss:$16 sps:$4 sm:$0xff]   ;;  %v12592_v4 = vld [vmem:[%s17545_s3 + $0x1a4] ss:$16 sps:$4 sm:$0xff]  }
 0x468   :  { %v8610_v22 = vpack.c.bf16 %v8602_v21, %v8602_v21  ;;  %v12523_v24 = vld [vmem:[%s17545_s3 + $0x2c] ss:$16 sps:$4 sm:$0xff]   ;;  %v12598_v21 = vld [vmem:[%s17545_s3 + $0x1c4] ss:$16 sps:$4 sm:$0xff]  }
 0x46a   :  { %8210 = vmatpush1.bf16.msra.mxu0 %v11960_v26  ;;  %8579 = vmatpush1.bf16.msra.mxu1 %v11962_v56  ;;  %v12521_v26 = vld [vmem:[%s17545_s3 + $0x28] ss:$16 sps:$4 sm:$0xff]   ;;  %v12526_v56 = vld [vmem:[%s17545_s3 + $0x44] ss:$16 sps:$4 sm:$0xff]  }
 0x46b   :  { %8211 = vmatprep.subr.bf16.mxu0 %v11969_v27  ;;  %8580 = vmatprep.subr.bf16.mxu1 %v11971_v32  ;;  %v12524_v27 = vld [vmem:[%s17545_s3 + $0x40] ss:$16 sps:$4 sm:$0xff]  }
 0x46c   :  { %v12530_v32 = vld [vmem:[%s17545_s3 + $0x60] ss:$16 sps:$4 sm:$0xff]  }
 0x46e   :  { %8212 = vmatpush1.bf16.msra.mxu0 %v11968_v5  ;;  %8581 = vmatpush1.bf16.msra.mxu1 %v11970_v34  ;;  %v12538_v5 = vld [vmem:[%s17545_s3 + $0x84] ss:$16 sps:$4 sm:$0xff]   ;;  %v12541_v34 = vld [vmem:[%s17545_s3 + $0x8c] ss:$16 sps:$4 sm:$0xff]  }
 0x46f   :  { %8213 = vmatprep.subr.bf16.mxu0 %v11977_v38  ;;  %8582 = vmatprep.subr.bf16.mxu1 %v11979_v40  ;;  %v12536_v38 = vld [vmem:[%s17545_s3 + $0x80] ss:$16 sps:$4 sm:$0xff]  }
 0x470   :  { %v12542_v40 = vld [vmem:[%s17545_s3 + $0xa0] ss:$16 sps:$4 sm:$0xff]  }
 0x472   :  { %8214 = vmatpush1.bf16.msra.mxu0 %v11976_v44  ;;  %8583 = vmatpush1.bf16.msra.mxu1 %v11978_v48  ;;  %v12550_v44 = vld [vmem:[%s17545_s3 + $0xc4] ss:$16 sps:$4 sm:$0xff]   ;;  %v12553_v48 = vld [vmem:[%s17545_s3 + $0xcc] ss:$16 sps:$4 sm:$0xff]  }
 0x473   :  { %8215 = vmatprep.subr.bf16.mxu0 %v11985_v49  ;;  %8584 = vmatprep.subr.bf16.mxu1 %v11987_v59  ;;  %v12548_v49 = vld [vmem:[%s17545_s3 + $0xc0] ss:$16 sps:$4 sm:$0xff]  }
 0x474   :  { %v12554_v59 = vld [vmem:[%s17545_s3 + $0xe0] ss:$16 sps:$4 sm:$0xff]  }
 0x476   :  { %8216 = vmatpush1.bf16.msra.mxu0 %v11984_v60  ;;  %8585 = vmatpush1.bf16.msra.mxu1 %v11986_v8  ;;  %v12562_v60 = vld [vmem:[%s17545_s3 + $0x104] ss:$16 sps:$4 sm:$0xff]   ;;  %v12565_v8 = vld [vmem:[%s17545_s3 + $0x10c] ss:$16 sps:$4 sm:$0xff]  }
 0x477   :  { %8217 = vmatprep.subr.bf16.mxu0 %v11993_v23  ;;  %8586 = vmatprep.subr.bf16.mxu1 %v11995_v0  ;;  %v12560_v23 = vld [vmem:[%s17545_s3 + $0x100] ss:$16 sps:$4 sm:$0xff]  }
 0x478   :  { %v12566_v0 = vld [vmem:[%s17545_s3 + $0x120] ss:$16 sps:$4 sm:$0xff]  }
 0x47a   :  { %8218 = vmatpush1.bf16.msra.mxu0 %v11992_v28  ;;  %8587 = vmatpush1.bf16.msra.mxu1 %v11994_v3  ;;  %v12574_v28 = vld [vmem:[%s17545_s3 + $0x144] ss:$16 sps:$4 sm:$0xff]   ;;  %v12577_v3 = vld [vmem:[%s17545_s3 + $0x14c] ss:$16 sps:$4 sm:$0xff]  }
 0x47b   :  { %8219 = vmatprep.subr.bf16.mxu0 %v12001_v31  ;;  %8588 = vmatprep.subr.bf16.mxu1 %v12003_v11  ;;  %v12572_v31 = vld [vmem:[%s17545_s3 + $0x140] ss:$16 sps:$4 sm:$0xff]  }
 0x47c   :  { %v12578_v11 = vld [vmem:[%s17545_s3 + $0x160] ss:$16 sps:$4 sm:$0xff]  }
 0x47e   :  { %8220 = vmatpush1.bf16.msra.mxu0 %v12000_v7  ;;  %8589 = vmatpush1.bf16.msra.mxu1 %v12002_v1  ;;  %v12589_v7 = vld [vmem:[%s17545_s3 + $0x18c] ss:$16 sps:$4 sm:$0xff]   ;;  %v12584_v1 = vld [vmem:[%s17545_s3 + $0x180] ss:$16 sps:$4 sm:$0xff]  }
 0x47f   :  { %8221 = vmatprep.subr.bf16.mxu0 %v12009_v14  ;;  %8590 = vmatprep.subr.bf16.mxu1 %v12011_v15  ;;  %v1186_v14 = vsub.s32 0, %v13036_v43  ;;  %v12587_v15 = vld [vmem:[%s17545_s3 + $0x188] ss:$16 sps:$4 sm:$0xff]  }
 0x482   :  { %8222 = vmatpush1.bf16.msra.mxu0 %v12008_v16  ;;  %8591 = vmatpush1.bf16.msra.mxu1 %v12010_v18  ;;  %v12595_v16 = vld [vmem:[%s17545_s3 + $0x1ac] ss:$16 sps:$4 sm:$0xff]   ;;  %v1198_v18 = vsub.s32 3, %v13036_v43 }
 0x483   :  { %10175 = vmatprep.subr.bf16.mxu0 %v12514_v17  ;;  %10339 = vmatprep.subr.bf16.mxu1 %v12517_v9  ;;  %v12590_v17 = vld [vmem:[%s17545_s3 + $0x1a0] ss:$16 sps:$4 sm:$0xff]   ;;  %v12593_v9 = vld [vmem:[%s17545_s3 + $0x1a8] ss:$16 sps:$4 sm:$0xff]  }
 0x485   :  { %8224 = vmatmul.mubr.bf16.vlgmr.msra.gmra.mrb[4].mxu0 %v14863_v50  ;;  %8593 = vmatmul.mubr.bf16.vlgmr.msra.gmra.mrb[4].mxu1 %v14863_v50  ;;  %v12529_v50 = vld [vmem:[%s17545_s3 + $0x4c] ss:$16 sps:$4 sm:$0xff]  }
 0x486   :  { %10176 = vmatpush1.bf16.msra.mxu0 %v12512_v20  ;;  %10207 = vmatprep.mubr.bf16.mxu0 %v8610_v22  ;;  %v1187_v20 = vrot.slane %v16607_v37, %v1186_v14 }
 0x487   :  { %10340 = vmatpush1.bf16.msra.mxu1 %v12515_v47  ;;  %10371 = vmatprep.mubr.bf16.mxu1 %v8610_v22  ;;  %v12601_v47 = vld [vmem:[%s17545_s3 + $0x1cc] ss:$16 sps:$4 sm:$0xff]   ;;  %v12596_v22 = vld [vmem:[%s17545_s3 + $0x1c0] ss:$16 sps:$4 sm:$0xff]  }
 0x488   :  { %10177 = vmatprep.subr.bf16.mxu0 %v12520_v51  ;;  %10341 = vmatprep.subr.bf16.mxu1 %v12523_v24  ;;  %v1199_v51 = vrot.slane %v16607_v37, %v1198_v18  ;;  %v12345_v24 = vadd.f32 %v15523_v41, %v1187_v20  ;;  %v12602_v41 = vld [vmem:[%s17545_s3 + $0x1e0] ss:$16 sps:$4 sm:$0xff]   ;;  %v12673_v20 = vld [vmem:[%s17545_s3 + $0x34c] ss:$16 sps:$4 sm:$0xff]  }
 0x48a   :  { %10178 = vmatpush1.bf16.msra.mxu0 %v12518_v25  ;;  %v12599_v25 = vld [vmem:[%s17545_s3 + $0x1c8] ss:$16 sps:$4 sm:$0xff]  }
 0x48b   :  { %10342 = vmatpush1.bf16.msra.mxu1 %v12521_v26  ;;  %10179 = vmatprep.subr.bf16.mxu0 %v12526_v56  ;;  %v12604_v26 = vld [vmem:[%s17545_s3 + $0x1e4] ss:$16 sps:$4 sm:$0xff]   ;;  %v12607_v56 = vld [vmem:[%s17545_s3 + $0x1ec] ss:$16 sps:$4 sm:$0xff]  }
 0x48c   :  { %10343 = vmatprep.subr.bf16.mxu1 %v12529_v50  ;;  %v12348_v50 = vadd.f32 %v15541_v54, %v1199_v51  ;;  %v12613_v54 = vld [vmem:[%s17545_s3 + $0x20c] ss:$16 sps:$4 sm:$0xff]  }
 0x48d   :  { %v12679_v51 = vld [vmem:[%s17545_s3 + $0x36c] ss:$16 sps:$4 sm:$0xff]  }
 0x48e   :  { %10180 = vmatpush1.bf16.msra.mxu0 %v12524_v27  ;;  %v8601_v27 = vmax.f32 %v12345_v24, 0.0  ;;  %v12677_v24 = vld [vmem:[%s17545_s3 + $0x368] ss:$16 sps:$4 sm:$0xff]  }
 0x48f   :  { %10344 = vmatpush1.bf16.msra.mxu1 %v12527_v63  ;;  %10181 = vmatprep.subr.bf16.mxu0 %v12532_v30  ;;  %v12605_v63 = vld [vmem:[%s17545_s3 + $0x1e8] ss:$16 sps:$4 sm:$0xff]   ;;  %v12610_v30 = vld [vmem:[%s17545_s3 + $0x204] ss:$16 sps:$4 sm:$0xff]  }
 0x490   :  { %10345 = vmatprep.subr.bf16.mxu1 %v12535_v62  ;;  %v8604_v62 = vmax.f32 %v12348_v50, 0.0  ;;  %v1194_v50 = vsub.s32 2, %v13036_v43 }
 0x492   :  { %10182 = vmatpush1.bf16.msra.mxu0 %v12530_v32  ;;  %v12608_v32 = vld [vmem:[%s17545_s3 + $0x200] ss:$16 sps:$4 sm:$0xff]  }
 0x493   :  { %10346 = vmatpush1.bf16.msra.mxu1 %v12533_v33  ;;  %10183 = vmatprep.subr.bf16.mxu0 %v12538_v5  ;;  %v8609_v33 = vpack.c.bf16 %v8601_v27, %v8601_v27  ;;  %v12611_v5 = vld [vmem:[%s17545_s3 + $0x208] ss:$16 sps:$4 sm:$0xff]   ;;  %v12688_v27 = vld [vmem:[%s17545_s3 + $0x3a4] ss:$16 sps:$4 sm:$0xff]  }
 0x494   :  { %10347 = vmatprep.subr.bf16.mxu1 %v12541_v34  ;;  %v12616_v34 = vld [vmem:[%s17545_s3 + $0x224] ss:$16 sps:$4 sm:$0xff]  }
 0x496   :  { %10184 = vmatpush1.bf16.msra.mxu0 %v12536_v38  ;;  %v8612_v38 = vpack.c.bf16 %v8604_v62, %v8604_v62  ;;  %v12689_v62 = vld [vmem:[%s17545_s3 + $0x3a8] ss:$16 sps:$4 sm:$0xff]  }
 0x497   :  { %10348 = vmatpush1.bf16.msra.mxu1 %v12539_v35  ;;  %10185 = vmatprep.subr.bf16.mxu0 %v12544_v36  ;;  %v12619_v35 = vld [vmem:[%s17545_s3 + $0x22c] ss:$16 sps:$4 sm:$0xff]   ;;  %v12614_v36 = vld [vmem:[%s17545_s3 + $0x220] ss:$16 sps:$4 sm:$0xff]  }
 0x498   :  { %10349 = vmatprep.subr.bf16.mxu1 %v12547_v39  ;;  %v12617_v39 = vld [vmem:[%s17545_s3 + $0x228] ss:$16 sps:$4 sm:$0xff]  }
 0x49a   :  { %10186 = vmatpush1.bf16.msra.mxu0 %v12542_v40  ;;  %v12622_v40 = vld [vmem:[%s17545_s3 + $0x244] ss:$16 sps:$4 sm:$0xff]  }
 0x49b   :  { %10350 = vmatpush1.bf16.msra.mxu1 %v12545_v42  ;;  %10187 = vmatprep.subr.bf16.mxu0 %v12550_v44  ;;  %v12625_v42 = vld [vmem:[%s17545_s3 + $0x24c] ss:$16 sps:$4 sm:$0xff]   ;;  %v12620_v44 = vld [vmem:[%s17545_s3 + $0x240] ss:$16 sps:$4 sm:$0xff]  }
 0x49c   :  { %10351 = vmatprep.subr.bf16.mxu1 %v12553_v48  ;;  %v12623_v48 = vld [vmem:[%s17545_s3 + $0x248] ss:$16 sps:$4 sm:$0xff]  }
 0x49e   :  { %10188 = vmatpush1.bf16.msra.mxu0 %v12548_v49  ;;  %v12628_v49 = vld [vmem:[%s17545_s3 + $0x264] ss:$16 sps:$4 sm:$0xff]  }
 0x49f   :  { %10352 = vmatpush1.bf16.msra.mxu1 %v12551_v52  ;;  %10189 = vmatprep.subr.bf16.mxu0 %v12556_v55  ;;  %v12631_v52 = vld [vmem:[%s17545_s3 + $0x26c] ss:$16 sps:$4 sm:$0xff]   ;;  %v12626_v55 = vld [vmem:[%s17545_s3 + $0x260] ss:$16 sps:$4 sm:$0xff]  }
 0x4a0   :  { %10353 = vmatprep.subr.bf16.mxu1 %v12559_v57  ;;  %v12629_v57 = vld [vmem:[%s17545_s3 + $0x268] ss:$16 sps:$4 sm:$0xff]  }
 0x4a2   :  { %10190 = vmatpush1.bf16.msra.mxu0 %v12554_v59  ;;  %v12634_v59 = vld [vmem:[%s17545_s3 + $0x284] ss:$16 sps:$4 sm:$0xff]  }
 0x4a3   :  { %10354 = vmatpush1.bf16.msra.mxu1 %v12557_v19  ;;  %10191 = vmatprep.subr.bf16.mxu0 %v12562_v60  ;;  %v12637_v19 = vld [vmem:[%s17545_s3 + $0x28c] ss:$16 sps:$4 sm:$0xff]   ;;  %v12632_v60 = vld [vmem:[%s17545_s3 + $0x280] ss:$16 sps:$4 sm:$0xff]  }
 0x4a4   :  { %10355 = vmatprep.subr.bf16.mxu1 %v12565_v8  ;;  %v12635_v8 = vld [vmem:[%s17545_s3 + $0x288] ss:$16 sps:$4 sm:$0xff]  }
 0x4a6   :  { %10192 = vmatpush1.bf16.msra.mxu0 %v12560_v23  ;;  %v12640_v23 = vld [vmem:[%s17545_s3 + $0x2a4] ss:$16 sps:$4 sm:$0xff]  }
 0x4a7   :  { %10356 = vmatpush1.bf16.msra.mxu1 %v12563_v53  ;;  %10193 = vmatprep.subr.bf16.mxu0 %v12568_v45  ;;  %v12643_v53 = vld [vmem:[%s17545_s3 + $0x2ac] ss:$16 sps:$4 sm:$0xff]   ;;  %v12638_v45 = vld [vmem:[%s17545_s3 + $0x2a0] ss:$16 sps:$4 sm:$0xff]  }
 0x4a8   :  { %10357 = vmatprep.subr.bf16.mxu1 %v12571_v61  ;;  %v12641_v61 = vld [vmem:[%s17545_s3 + $0x2a8] ss:$16 sps:$4 sm:$0xff]  }
 0x4aa   :  { %10194 = vmatpush1.bf16.msra.mxu0 %v12566_v0  ;;  %v12646_v0 = vld [vmem:[%s17545_s3 + $0x2c4] ss:$16 sps:$4 sm:$0xff]  }
 0x4ab   :  { %10358 = vmatpush1.bf16.msra.mxu1 %v12569_v29  ;;  %10195 = vmatprep.subr.bf16.mxu0 %v12574_v28  ;;  %v12649_v29 = vld [vmem:[%s17545_s3 + $0x2cc] ss:$16 sps:$4 sm:$0xff]   ;;  %v12644_v28 = vld [vmem:[%s17545_s3 + $0x2c0] ss:$16 sps:$4 sm:$0xff]  }
 0x4ac   :  { %10359 = vmatprep.subr.bf16.mxu1 %v12577_v3  ;;  %v12647_v3 = vld [vmem:[%s17545_s3 + $0x2c8] ss:$16 sps:$4 sm:$0xff]  }
 0x4ae   :  { %10196 = vmatpush1.bf16.msra.mxu0 %v12572_v31  ;;  %v12652_v31 = vld [vmem:[%s17545_s3 + $0x2e4] ss:$16 sps:$4 sm:$0xff]  }
 0x4af   :  { %10360 = vmatpush1.bf16.msra.mxu1 %v12575_v6  ;;  %10197 = vmatprep.subr.bf16.mxu0 %v12580_v58  ;;  %v12655_v6 = vld [vmem:[%s17545_s3 + $0x2ec] ss:$16 sps:$4 sm:$0xff]   ;;  %v12650_v58 = vld [vmem:[%s17545_s3 + $0x2e0] ss:$16 sps:$4 sm:$0xff]  }
 0x4b0   :  { %10361 = vmatprep.subr.bf16.mxu1 %v12583_v10  ;;  %v12653_v10 = vld [vmem:[%s17545_s3 + $0x2e8] ss:$16 sps:$4 sm:$0xff]  }
 0x4b2   :  { %10198 = vmatpush1.bf16.msra.mxu0 %v12578_v11  ;;  %v12658_v11 = vld [vmem:[%s17545_s3 + $0x304] ss:$16 sps:$4 sm:$0xff]  }
 0x4b3   :  { %10362 = vmatpush1.bf16.msra.mxu1 %v12581_v12  ;;  %10199 = vmatprep.subr.bf16.mxu0 %v12586_v13  ;;  %v12661_v12 = vld [vmem:[%s17545_s3 + $0x30c] ss:$16 sps:$4 sm:$0xff]   ;;  %v12656_v13 = vld [vmem:[%s17545_s3 + $0x300] ss:$16 sps:$4 sm:$0xff]  }
 0x4b4   :  { %10363 = vmatprep.subr.bf16.mxu1 %v12589_v7  ;;  %v12659_v7 = vld [vmem:[%s17545_s3 + $0x308] ss:$16 sps:$4 sm:$0xff]  }
 0x4b6   :  { %10200 = vmatpush1.bf16.msra.mxu0 %v12584_v1  ;;  %v12664_v1 = vld [vmem:[%s17545_s3 + $0x324] ss:$16 sps:$4 sm:$0xff]  }
 0x4b7   :  { %10364 = vmatpush1.bf16.msra.mxu1 %v12587_v15  ;;  %10201 = vmatprep.subr.bf16.mxu0 %v12592_v4  ;;  %v12667_v15 = vld [vmem:[%s17545_s3 + $0x32c] ss:$16 sps:$4 sm:$0xff]   ;;  %v12662_v4 = vld [vmem:[%s17545_s3 + $0x320] ss:$16 sps:$4 sm:$0xff]  }
 0x4b8   :  { %10365 = vmatprep.subr.bf16.mxu1 %v12595_v16  ;;  %v12665_v16 = vld [vmem:[%s17545_s3 + $0x328] ss:$16 sps:$4 sm:$0xff]  }
 0x4ba   :  { %10202 = vmatpush1.bf16.msra.mxu0 %v12590_v17  ;;  %v12670_v17 = vld [vmem:[%s17545_s3 + $0x344] ss:$16 sps:$4 sm:$0xff]  }
 0x4bb   :  { %10366 = vmatpush1.bf16.msra.mxu1 %v12593_v9  ;;  %10203 = vmatprep.subr.bf16.mxu0 %v12598_v21  ;;  %v12668_v9 = vld [vmem:[%s17545_s3 + $0x340] ss:$16 sps:$4 sm:$0xff]   ;;  %v12671_v21 = vld [vmem:[%s17545_s3 + $0x348] ss:$16 sps:$4 sm:$0xff]  }
 0x4bc   :  { %10367 = vmatprep.subr.bf16.mxu1 %v12601_v47  ;;  %v12676_v47 = vld [vmem:[%s17545_s3 + $0x364] ss:$16 sps:$4 sm:$0xff]  }
 0x4be   :  { %10204 = vmatpush1.bf16.msra.mxu0 %v12596_v22  ;;  %v12674_v22 = vld [vmem:[%s17545_s3 + $0x360] ss:$16 sps:$4 sm:$0xff]  }
 0x4bf   :  { %10368 = vmatpush1.bf16.msra.mxu1 %v12599_v25  ;;  %10205 = vmatprep.subr.bf16.mxu0 %v12604_v26  ;;  %v12682_v25 = vld [vmem:[%s17545_s3 + $0x384] ss:$16 sps:$4 sm:$0xff]   ;;  %v12685_v26 = vld [vmem:[%s17545_s3 + $0x38c] ss:$16 sps:$4 sm:$0xff]  }
 0x4c0   :  { %10369 = vmatprep.subr.bf16.mxu1 %v12607_v56  ;;  %v12680_v56 = vld [vmem:[%s17545_s3 + $0x380] ss:$16 sps:$4 sm:$0xff]  }
 0x4c2   :  { %10206 = vmatpush1.bf16.msra.mxu0 %v12602_v41  ;;  %v12683_v41 = vld [vmem:[%s17545_s3 + $0x388] ss:$16 sps:$4 sm:$0xff]  }
 0x4c3   :  { %10370 = vmatpush1.bf16.msra.mxu1 %v12605_v63  ;;  %10216 = vmatprep.subr.bf16.mxu0 %v12610_v30  ;;  %v12691_v63 = vld [vmem:[%s17545_s3 + $0x3ac] ss:$16 sps:$4 sm:$0xff]   ;;  %v12686_v30 = vld [vmem:[%s17545_s3 + $0x3a0] ss:$16 sps:$4 sm:$0xff]  }
 0x4c4   :  { %10380 = vmatprep.subr.bf16.mxu1 %v12613_v54  ;;  %v1195_v54 = vrot.slane %v16607_v37, %v1194_v50  ;;  %v12692_v37 = vld [vmem:[%s17545_s3 + $0x3c0] ss:$16 sps:$4 sm:$0xff]  }
 0x4c5   :  { %10208 = vmatmul.mubr.bf16.vlgmr.msra.gmra.mrb[8].mxu0 %v8609_v33 }
 0x4c6   :  { %10372 = vmatmul.mubr.bf16.vlgmr.msra.gmra.mrb[8].mxu1 %v8609_v33  ;;  %10217 = vmatpush1.bf16.msra.mxu0 %v12608_v32  ;;  %v12694_v32 = vld [vmem:[%s17545_s3 + $0x3c4] ss:$16 sps:$4 sm:$0xff]   ;;  %v12697_v33 = vld [vmem:[%s17545_s3 + $0x3cc] ss:$16 sps:$4 sm:$0xff]  }
 0x4c7   :  { %10248 = vmatprep.mubr.bf16.mxu0 %v8612_v38  ;;  %10381 = vmatpush1.bf16.msra.mxu1 %v12611_v5  ;;  %v12347_v5 = vadd.f32 %v15531_v46, %v1195_v54  ;;  %v12698_v46 = vld [vmem:[%s17545_s3 + $0x3e0] ss:$16 sps:$4 sm:$0xff]  }
 0x4c8   :  { %10412 = vmatprep.mubr.bf16.mxu1 %v8612_v38  ;;  %10218 = vmatprep.subr.bf16.mxu0 %v12616_v34  ;;  %v12695_v34 = vld [vmem:[%s17545_s3 + $0x3c8] ss:$16 sps:$4 sm:$0xff]   ;;  %v12700_v38 = vld [vmem:[%s17545_s3 + $0x3e4] ss:$16 sps:$4 sm:$0xff]   ;;  %v12770_v54 = vld [vmem:[%s17545_s3 + $0x560] ss:$16 sps:$4 sm:$0xff]  }
 0x4c9   :  { %10382 = vmatprep.subr.bf16.mxu1 %v12619_v35  ;;  %v12703_v35 = vld [vmem:[%s17545_s3 + $0x3ec] ss:$16 sps:$4 sm:$0xff]  }
 0x4ca   :  { %10219 = vmatpush1.bf16.msra.mxu0 %v12614_v36  ;;  %v8603_v36 = vmax.f32 %v12347_v5, 0.0  ;;  %v12779_v5 = vld [vmem:[%s17545_s3 + $0x588] ss:$16 sps:$4 sm:$0xff]  }
 0x4cb   :  { %10383 = vmatpush1.bf16.msra.mxu1 %v12617_v39  ;;  %10220 = vmatprep.subr.bf16.mxu0 %v12622_v40  ;;  %v12701_v39 = vld [vmem:[%s17545_s3 + $0x3e8] ss:$16 sps:$4 sm:$0xff]   ;;  %v12706_v40 = vld [vmem:[%s17545_s3 + $0x404] ss:$16 sps:$4 sm:$0xff]  }
 0x4cc   :  { %10384 = vmatprep.subr.bf16.mxu1 %v12625_v42  ;;  %v12709_v42 = vld [vmem:[%s17545_s3 + $0x40c] ss:$16 sps:$4 sm:$0xff]  }
 0x4ce   :  { %10221 = vmatpush1.bf16.msra.mxu0 %v12620_v44  ;;  %v12704_v44 = vld [vmem:[%s17545_s3 + $0x400] ss:$16 sps:$4 sm:$0xff]  }
 0x4cf   :  { %10385 = vmatpush1.bf16.msra.mxu1 %v12623_v48  ;;  %10222 = vmatprep.subr.bf16.mxu0 %v12628_v49  ;;  %v8611_v48 = vpack.c.bf16 %v8603_v36, %v8603_v36  ;;  %v12707_v49 = vld [vmem:[%s17545_s3 + $0x408] ss:$16 sps:$4 sm:$0xff]   ;;  %v12790_v36 = vld [vmem:[%s17545_s3 + $0x5c4] ss:$16 sps:$4 sm:$0xff]  }
 0x4d0   :  { %10386 = vmatprep.subr.bf16.mxu1 %v12631_v52  ;;  %v12712_v52 = vld [vmem:[%s17545_s3 + $0x424] ss:$16 sps:$4 sm:$0xff]  }
 0x4d2   :  { %10223 = vmatpush1.bf16.msra.mxu0 %v12626_v55  ;;  %v12715_v55 = vld [vmem:[%s17545_s3 + $0x42c] ss:$16 sps:$4 sm:$0xff]  }
 0x4d3   :  { %10387 = vmatpush1.bf16.msra.mxu1 %v12629_v57  ;;  %10224 = vmatprep.subr.bf16.mxu0 %v12634_v59  ;;  %v12710_v57 = vld [vmem:[%s17545_s3 + $0x420] ss:$16 sps:$4 sm:$0xff]   ;;  %v12713_v59 = vld [vmem:[%s17545_s3 + $0x428] ss:$16 sps:$4 sm:$0xff]  }
 0x4d4   :  { %10388 = vmatprep.subr.bf16.mxu1 %v12637_v19  ;;  %v12718_v19 = vld [vmem:[%s17545_s3 + $0x444] ss:$16 sps:$4 sm:$0xff]  }
 0x4d6   :  { %10225 = vmatpush1.bf16.msra.mxu0 %v12632_v60  ;;  %v12721_v60 = vld [vmem:[%s17545_s3 + $0x44c] ss:$16 sps:$4 sm:$0xff]  }
 0x4d7   :  { %10389 = vmatpush1.bf16.msra.mxu1 %v12635_v8  ;;  %10226 = vmatprep.subr.bf16.mxu0 %v12640_v23  ;;  %v12716_v8 = vld [vmem:[%s17545_s3 + $0x440] ss:$16 sps:$4 sm:$0xff]   ;;  %v12719_v23 = vld [vmem:[%s17545_s3 + $0x448] ss:$16 sps:$4 sm:$0xff]  }
 0x4d8   :  { %10390 = vmatprep.subr.bf16.mxu1 %v12643_v53  ;;  %v12724_v53 = vld [vmem:[%s17545_s3 + $0x464] ss:$16 sps:$4 sm:$0xff]  }
 0x4da   :  { %10227 = vmatpush1.bf16.msra.mxu0 %v12638_v45  ;;  %v12727_v45 = vld [vmem:[%s17545_s3 + $0x46c] ss:$16 sps:$4 sm:$0xff]  }
 0x4db   :  { %10391 = vmatpush1.bf16.msra.mxu1 %v12641_v61  ;;  %10228 = vmatprep.subr.bf16.mxu0 %v12646_v0  ;;  %v12722_v61 = vld [vmem:[%s17545_s3 + $0x460] ss:$16 sps:$4 sm:$0xff]   ;;  %v12725_v0 = vld [vmem:[%s17545_s3 + $0x468] ss:$16 sps:$4 sm:$0xff]  }
 0x4dc   :  { %10392 = vmatprep.subr.bf16.mxu1 %v12649_v29  ;;  %v12730_v29 = vld [vmem:[%s17545_s3 + $0x484] ss:$16 sps:$4 sm:$0xff]  }
 0x4de   :  { %10229 = vmatpush1.bf16.msra.mxu0 %v12644_v28  ;;  %v12733_v28 = vld [vmem:[%s17545_s3 + $0x48c] ss:$16 sps:$4 sm:$0xff]  }
 0x4df   :  { %10393 = vmatpush1.bf16.msra.mxu1 %v12647_v3  ;;  %10230 = vmatprep.subr.bf16.mxu0 %v12652_v31  ;;  %v12728_v3 = vld [vmem:[%s17545_s3 + $0x480] ss:$16 sps:$4 sm:$0xff]   ;;  %v12731_v31 = vld [vmem:[%s17545_s3 + $0x488] ss:$16 sps:$4 sm:$0xff]  }
 0x4e0   :  { %10394 = vmatprep.subr.bf16.mxu1 %v12655_v6  ;;  %v12736_v6 = vld [vmem:[%s17545_s3 + $0x4a4] ss:$16 sps:$4 sm:$0xff]  }
 0x4e2   :  { %10231 = vmatpush1.bf16.msra.mxu0 %v12650_v58  ;;  %v12739_v58 = vld [vmem:[%s17545_s3 + $0x4ac] ss:$16 sps:$4 sm:$0xff]  }
 0x4e3   :  { %10395 = vmatpush1.bf16.msra.mxu1 %v12653_v10  ;;  %10232 = vmatprep.subr.bf16.mxu0 %v12658_v11  ;;  %v12734_v10 = vld [vmem:[%s17545_s3 + $0x4a0] ss:$16 sps:$4 sm:$0xff]   ;;  %v12737_v11 = vld [vmem:[%s17545_s3 + $0x4a8] ss:$16 sps:$4 sm:$0xff]  }
 0x4e4   :  { %10396 = vmatprep.subr.bf16.mxu1 %v12661_v12  ;;  %v12742_v12 = vld [vmem:[%s17545_s3 + $0x4c4] ss:$16 sps:$4 sm:$0xff]  }
 0x4e6   :  { %10233 = vmatpush1.bf16.msra.mxu0 %v12656_v13  ;;  %v12745_v13 = vld [vmem:[%s17545_s3 + $0x4cc] ss:$16 sps:$4 sm:$0xff]  }
 0x4e7   :  { %10397 = vmatpush1.bf16.msra.mxu1 %v12659_v7  ;;  %10234 = vmatprep.subr.bf16.mxu0 %v12664_v1  ;;  %v12740_v7 = vld [vmem:[%s17545_s3 + $0x4c0] ss:$16 sps:$4 sm:$0xff]   ;;  %v12743_v1 = vld [vmem:[%s17545_s3 + $0x4c8] ss:$16 sps:$4 sm:$0xff]  }
 0x4e8   :  { %10398 = vmatprep.subr.bf16.mxu1 %v12667_v15  ;;  %v12748_v15 = vld [vmem:[%s17545_s3 + $0x4e4] ss:$16 sps:$4 sm:$0xff]  }
 0x4ea   :  { %10235 = vmatpush1.bf16.msra.mxu0 %v12662_v4  ;;  %v12751_v4 = vld [vmem:[%s17545_s3 + $0x4ec] ss:$16 sps:$4 sm:$0xff]  }
 0x4eb   :  { %10399 = vmatpush1.bf16.msra.mxu1 %v12665_v16  ;;  %10236 = vmatprep.subr.bf16.mxu0 %v12670_v17  ;;  %v12746_v16 = vld [vmem:[%s17545_s3 + $0x4e0] ss:$16 sps:$4 sm:$0xff]   ;;  %v12749_v17 = vld [vmem:[%s17545_s3 + $0x4e8] ss:$16 sps:$4 sm:$0xff]  }
 0x4ec   :  { %10400 = vmatprep.subr.bf16.mxu1 %v12673_v20  ;;  %v12754_v20 = vld [vmem:[%s17545_s3 + $0x504] ss:$16 sps:$4 sm:$0xff]  }
 0x4ee   :  { %10237 = vmatpush1.bf16.msra.mxu0 %v12668_v9  ;;  %v12757_v9 = vld [vmem:[%s17545_s3 + $0x50c] ss:$16 sps:$4 sm:$0xff]  }
 0x4ef   :  { %10401 = vmatpush1.bf16.msra.mxu1 %v12671_v21  ;;  %10238 = vmatprep.subr.bf16.mxu0 %v12676_v47  ;;  %v12752_v21 = vld [vmem:[%s17545_s3 + $0x500] ss:$16 sps:$4 sm:$0xff]   ;;  %v12755_v47 = vld [vmem:[%s17545_s3 + $0x508] ss:$16 sps:$4 sm:$0xff]  }
 0x4f0   :  { %10402 = vmatprep.subr.bf16.mxu1 %v12679_v51  ;;  %v12760_v51 = vld [vmem:[%s17545_s3 + $0x524] ss:$16 sps:$4 sm:$0xff]  }
 0x4f2   :  { %10239 = vmatpush1.bf16.msra.mxu0 %v12674_v22  ;;  %v12763_v22 = vld [vmem:[%s17545_s3 + $0x52c] ss:$16 sps:$4 sm:$0xff]  }
 0x4f3   :  { %10403 = vmatpush1.bf16.msra.mxu1 %v12677_v24  ;;  %10240 = vmatprep.subr.bf16.mxu0 %v12682_v25  ;;  %v12758_v24 = vld [vmem:[%s17545_s3 + $0x520] ss:$16 sps:$4 sm:$0xff]   ;;  %v12761_v25 = vld [vmem:[%s17545_s3 + $0x528] ss:$16 sps:$4 sm:$0xff]  }
 0x4f4   :  { %10404 = vmatprep.subr.bf16.mxu1 %v12685_v26  ;;  %v12766_v26 = vld [vmem:[%s17545_s3 + $0x544] ss:$16 sps:$4 sm:$0xff]  }
 0x4f6   :  { %10241 = vmatpush1.bf16.msra.mxu0 %v12680_v56  ;;  %v12769_v56 = vld [vmem:[%s17545_s3 + $0x54c] ss:$16 sps:$4 sm:$0xff]  }
 0x4f7   :  { %10405 = vmatpush1.bf16.msra.mxu1 %v12683_v41  ;;  %10242 = vmatprep.subr.bf16.mxu0 %v12688_v27  ;;  %v12764_v41 = vld [vmem:[%s17545_s3 + $0x540] ss:$16 sps:$4 sm:$0xff]   ;;  %v12767_v27 = vld [vmem:[%s17545_s3 + $0x548] ss:$16 sps:$4 sm:$0xff]  }
 0x4f8   :  { %10406 = vmatprep.subr.bf16.mxu1 %v12691_v63  ;;  %v12772_v63 = vld [vmem:[%s17545_s3 + $0x564] ss:$16 sps:$4 sm:$0xff]  }
 0x4fa   :  { %10243 = vmatpush1.bf16.msra.mxu0 %v12686_v30  ;;  %v12775_v30 = vld [vmem:[%s17545_s3 + $0x56c] ss:$16 sps:$4 sm:$0xff]  }
 0x4fb   :  { %10407 = vmatpush1.bf16.msra.mxu1 %v12689_v62  ;;  %10244 = vmatprep.subr.bf16.mxu0 %v12694_v32  ;;  %v12773_v62 = vld [vmem:[%s17545_s3 + $0x568] ss:$16 sps:$4 sm:$0xff]   ;;  %v12778_v32 = vld [vmem:[%s17545_s3 + $0x584] ss:$16 sps:$4 sm:$0xff]  }
 0x4fc   :  { %10408 = vmatprep.subr.bf16.mxu1 %v12697_v33  ;;  %v12781_v33 = vld [vmem:[%s17545_s3 + $0x58c] ss:$16 sps:$4 sm:$0xff]  }
 0x4fe   :  { %10245 = vmatpush1.bf16.msra.mxu0 %v12692_v37  ;;  %v12776_v37 = vld [vmem:[%s17545_s3 + $0x580] ss:$16 sps:$4 sm:$0xff]  }
 0x4ff   :  { %10409 = vmatpush1.bf16.msra.mxu1 %v12695_v34  ;;  %10246 = vmatprep.subr.bf16.mxu0 %v12700_v38  ;;  %v12784_v34 = vld [vmem:[%s17545_s3 + $0x5a4] ss:$16 sps:$4 sm:$0xff]   ;;  %v12782_v38 = vld [vmem:[%s17545_s3 + $0x5a0] ss:$16 sps:$4 sm:$0xff]  }
 0x500   :  { %10410 = vmatprep.subr.bf16.mxu1 %v12703_v35  ;;  %v12787_v35 = vld [vmem:[%s17545_s3 + $0x5ac] ss:$16 sps:$4 sm:$0xff]  }
 0x502   :  { %10247 = vmatpush1.bf16.msra.mxu0 %v12698_v46  ;;  %v12785_v46 = vld [vmem:[%s17545_s3 + $0x5a8] ss:$16 sps:$4 sm:$0xff]  }
 0x503   :  { %10411 = vmatpush1.bf16.msra.mxu1 %v12701_v39  ;;  %10257 = vmatprep.subr.bf16.mxu0 %v12706_v40  ;;  %v12793_v39 = vld [vmem:[%s17545_s3 + $0x5cc] ss:$16 sps:$4 sm:$0xff]   ;;  %v12788_v40 = vld [vmem:[%s17545_s3 + $0x5c0] ss:$16 sps:$4 sm:$0xff]  }
 0x504   :  { %10421 = vmatprep.subr.bf16.mxu1 %v12709_v42  ;;  %v12791_v42 = vld [vmem:[%s17545_s3 + $0x5c8] ss:$16 sps:$4 sm:$0xff]  }
 0x505   :  { %10249 = vmatmul.mubr.bf16.vlgmr.msra.gmra.mrb[8].mxu0 %v8611_v48 }
 0x506   :  { %10413 = vmatmul.mubr.bf16.vlgmr.msra.gmra.mrb[8].mxu1 %v8611_v48  ;;  %10258 = vmatpush1.bf16.msra.mxu0 %v12704_v44  ;;  %v12796_v44 = vld [vmem:[%s17545_s3 + $0x5e4] ss:$16 sps:$4 sm:$0xff]   ;;  %v12799_v48 = vld [vmem:[%s17545_s3 + $0x5ec] ss:$16 sps:$4 sm:$0xff]  }
 0x507   :  { %10422 = vmatpush1.bf16.msra.mxu1 %v12707_v49  ;;  %10259 = vmatprep.subr.bf16.mxu0 %v12712_v52  ;;  %v12794_v49 = vld [vmem:[%s17545_s3 + $0x5e0] ss:$16 sps:$4 sm:$0xff]   ;;  %v12797_v52 = vld [vmem:[%s17545_s3 + $0x5e8] ss:$16 sps:$4 sm:$0xff]  }
 0x508   :  { %10423 = vmatprep.subr.bf16.mxu1 %v12715_v55  ;;  %v12802_v55 = vld [vmem:[%s17545_s3 + $0x604] ss:$16 sps:$4 sm:$0xff]  }
 0x50a   :  { %10260 = vmatpush1.bf16.msra.mxu0 %v12710_v57  ;;  %v12805_v57 = vld [vmem:[%s17545_s3 + $0x60c] ss:$16 sps:$4 sm:$0xff]  }
 0x50b   :  { %10424 = vmatpush1.bf16.msra.mxu1 %v12713_v59  ;;  %10261 = vmatprep.subr.bf16.mxu0 %v12718_v19  ;;  %v1202_v59 = vsub.s32 4, %v13036_v43  ;;  %v1206_v19 = vsub.s32 5, %v13036_v43 }
 0x50c   :  { %10425 = vmatprep.subr.bf16.mxu1 %v12721_v60  ;;  %v1214_v60 = vsub.s32 7, %v13036_v43 }
 0x50e   :  { %10262 = vmatpush1.bf16.msra.mxu0 %v12716_v8  ;;  %v17234_v8 = vld [vmem:[%s17546_s2] sm:$0xff] }
 0x50f   :  { %10426 = vmatpush1.bf16.msra.mxu1 %v12719_v23  ;;  %10263 = vmatprep.subr.bf16.mxu0 %v12724_v53  ;;  %v1203_v23 = vrot.slane %v17234_v8, %v1202_v59  ;;  %v1207_v53 = vrot.slane %v17234_v8, %v1206_v19  ;;  %v12859_v59 = vld [vmem:[%s17545_s3 + $0x72c] ss:$16 sps:$4 sm:$0xff]   ;;  %v12854_v19 = vld [vmem:[%s17545_s3 + $0x720] ss:$16 sps:$4 sm:$0xff]  }
 0x510   :  { %10427 = vmatprep.subr.bf16.mxu1 %v12727_v45  ;;  %v1215_v45 = vrot.slane %v17234_v8, %v1214_v60  ;;  %v12857_v60 = vld [vmem:[%s17545_s3 + $0x728] ss:$16 sps:$4 sm:$0xff]  }
 0x512   :  { %10264 = vmatpush1.bf16.msra.mxu0 %v12722_v61 }
 0x513   :  { %10428 = vmatpush1.bf16.msra.mxu1 %v12725_v0  ;;  %10265 = vmatprep.subr.bf16.mxu0 %v12730_v29 }
 0x514   :  { %10429 = vmatprep.subr.bf16.mxu1 %v12733_v28 }
 0x516   :  { %10266 = vmatpush1.bf16.msra.mxu0 %v12728_v3 }
 0x517   :  { %10430 = vmatpush1.bf16.msra.mxu1 %v12731_v31  ;;  %10267 = vmatprep.subr.bf16.mxu0 %v12736_v6 }
 0x518   :  { %10431 = vmatprep.subr.bf16.mxu1 %v12739_v58 }
 0x51a   :  { %10268 = vmatpush1.bf16.msra.mxu0 %v12734_v10 }
 0x51b   :  { %10432 = vmatpush1.bf16.msra.mxu1 %v12737_v11  ;;  %10269 = vmatprep.subr.bf16.mxu0 %v12742_v12 }
 0x51c   :  { %10433 = vmatprep.subr.bf16.mxu1 %v12745_v13 }
 0x51e   :  { %10270 = vmatpush1.bf16.msra.mxu0 %v12740_v7 }
 0x51f   :  { %10434 = vmatpush1.bf16.msra.mxu1 %v12743_v1  ;;  %10271 = vmatprep.subr.bf16.mxu0 %v12748_v15 }
 0x520   :  { %10435 = vmatprep.subr.bf16.mxu1 %v12751_v4  ;;  %v12800_v4 = vld [vmem:[%s17545_s3 + $0x600] ss:$16 sps:$4 sm:$0xff]  }
 0x522   :  { %10272 = vmatpush1.bf16.msra.mxu0 %v12746_v16  ;;  %v12803_v16 = vld [vmem:[%s17545_s3 + $0x608] ss:$16 sps:$4 sm:$0xff]  }
 0x523   :  { %10436 = vmatpush1.bf16.msra.mxu1 %v12749_v17  ;;  %10273 = vmatprep.subr.bf16.mxu0 %v12754_v20  ;;  %v12808_v20 = vld [vmem:[%s17545_s3 + $0x624] ss:$16 sps:$4 sm:$0xff]  }
 0x524   :  { %10437 = vmatprep.subr.bf16.mxu1 %v12757_v9  ;;  %v12811_v9 = vld [vmem:[%s17545_s3 + $0x62c] ss:$16 sps:$4 sm:$0xff]  }
 0x526   :  { %10274 = vmatpush1.bf16.msra.mxu0 %v12752_v21 }
 0x527   :  { %10438 = vmatpush1.bf16.msra.mxu1 %v12755_v47  ;;  %10275 = vmatprep.subr.bf16.mxu0 %v12760_v51  ;;  %v12806_v47 = vld [vmem:[%s17545_s3 + $0x620] ss:$16 sps:$4 sm:$0xff]   ;;  %v12809_v51 = vld [vmem:[%s17545_s3 + $0x628] ss:$16 sps:$4 sm:$0xff]  }
 0x528   :  { %10439 = vmatprep.subr.bf16.mxu1 %v12763_v22  ;;  %v12814_v22 = vld [vmem:[%s17545_s3 + $0x644] ss:$16 sps:$4 sm:$0xff]  }
 0x52a   :  { %10276 = vmatpush1.bf16.msra.mxu0 %v12758_v24  ;;  %v12817_v24 = vld [vmem:[%s17545_s3 + $0x64c] ss:$16 sps:$4 sm:$0xff]  }
 0x52b   :  { %10440 = vmatpush1.bf16.msra.mxu1 %v12761_v25  ;;  %10277 = vmatprep.subr.bf16.mxu0 %v12766_v26  ;;  %v12812_v25 = vld [vmem:[%s17545_s3 + $0x640] ss:$16 sps:$4 sm:$0xff]   ;;  %v12815_v26 = vld [vmem:[%s17545_s3 + $0x648] ss:$16 sps:$4 sm:$0xff]  }
 0x52c   :  { %10441 = vmatprep.subr.bf16.mxu1 %v12769_v56  ;;  %v12820_v56 = vld [vmem:[%s17545_s3 + $0x664] ss:$16 sps:$4 sm:$0xff]  }
 0x52e   :  { %10278 = vmatpush1.bf16.msra.mxu0 %v12764_v41  ;;  %v12823_v41 = vld [vmem:[%s17545_s3 + $0x66c] ss:$16 sps:$4 sm:$0xff]  }
 0x52f   :  { %10442 = vmatpush1.bf16.msra.mxu1 %v12767_v27  ;;  %10279 = vmatprep.subr.bf16.mxu0 %v12772_v63  ;;  %v12818_v27 = vld [vmem:[%s17545_s3 + $0x660] ss:$16 sps:$4 sm:$0xff]   ;;  %v12821_v63 = vld [vmem:[%s17545_s3 + $0x668] ss:$16 sps:$4 sm:$0xff]  }
 0x530   :  { %10443 = vmatprep.subr.bf16.mxu1 %v12775_v30  ;;  %v12826_v30 = vld [vmem:[%s17545_s3 + $0x684] ss:$16 sps:$4 sm:$0xff]  }
 0x532   :  { %10280 = vmatpush1.bf16.msra.mxu0 %v12770_v54  ;;  %v12829_v54 = vld [vmem:[%s17545_s3 + $0x68c] ss:$16 sps:$4 sm:$0xff]  }
 0x533   :  { %10444 = vmatpush1.bf16.msra.mxu1 %v12773_v62  ;;  %10281 = vmatprep.subr.bf16.mxu0 %v12778_v32  ;;  %v12824_v62 = vld [vmem:[%s17545_s3 + $0x680] ss:$16 sps:$4 sm:$0xff]   ;;  %v12827_v32 = vld [vmem:[%s17545_s3 + $0x688] ss:$16 sps:$4 sm:$0xff]  }
 0x534   :  { %10445 = vmatprep.subr.bf16.mxu1 %v12781_v33  ;;  %v12832_v33 = vld [vmem:[%s17545_s3 + $0x6a4] ss:$16 sps:$4 sm:$0xff]  }
 0x536   :  { %10282 = vmatpush1.bf16.msra.mxu0 %v12776_v37  ;;  %v12835_v37 = vld [vmem:[%s17545_s3 + $0x6ac] ss:$16 sps:$4 sm:$0xff]  }
 0x537   :  { %10446 = vmatpush1.bf16.msra.mxu1 %v12779_v5  ;;  %10283 = vmatprep.subr.bf16.mxu0 %v12784_v34  ;;  %v12830_v5 = vld [vmem:[%s17545_s3 + $0x6a0] ss:$16 sps:$4 sm:$0xff]   ;;  %v12833_v34 = vld [vmem:[%s17545_s3 + $0x6a8] ss:$16 sps:$4 sm:$0xff]  }
 0x538   :  { %10447 = vmatprep.subr.bf16.mxu1 %v12787_v35  ;;  %v12841_v35 = vld [vmem:[%s17545_s3 + $0x6cc] ss:$16 sps:$4 sm:$0xff]  }
 0x53a   :  { %10284 = vmatpush1.bf16.msra.mxu0 %v12782_v38  ;;  %v12838_v38 = vld [vmem:[%s17545_s3 + $0x6c4] ss:$16 sps:$4 sm:$0xff]  }
 0x53b   :  { %10448 = vmatpush1.bf16.msra.mxu1 %v12785_v46  ;;  %10285 = vmatprep.subr.bf16.mxu0 %v12790_v36  ;;  %v12836_v46 = vld [vmem:[%s17545_s3 + $0x6c0] ss:$16 sps:$4 sm:$0xff]   ;;  %v12839_v36 = vld [vmem:[%s17545_s3 + $0x6c8] ss:$16 sps:$4 sm:$0xff]  }
 0x53c   :  { %10449 = vmatprep.subr.bf16.mxu1 %v12793_v39  ;;  %v12844_v39 = vld [vmem:[%s17545_s3 + $0x6e4] ss:$16 sps:$4 sm:$0xff]  }
 0x53e   :  { %10286 = vmatpush1.bf16.msra.mxu0 %v12788_v40  ;;  %v12847_v40 = vld [vmem:[%s17545_s3 + $0x6ec] ss:$16 sps:$4 sm:$0xff]  }
 0x53f   :  { %10450 = vmatpush1.bf16.msra.mxu1 %v12791_v42  ;;  %10287 = vmatprep.subr.bf16.mxu0 %v12796_v44  ;;  %v12842_v42 = vld [vmem:[%s17545_s3 + $0x6e0] ss:$16 sps:$4 sm:$0xff]   ;;  %v12845_v44 = vld [vmem:[%s17545_s3 + $0x6e8] ss:$16 sps:$4 sm:$0xff]  }
 0x540   :  { %10451 = vmatprep.subr.bf16.mxu1 %v12799_v48  ;;  %v12850_v48 = vld [vmem:[%s17545_s3 + $0x704] ss:$16 sps:$4 sm:$0xff]  }
 0x542   :  { %10288 = vmatpush1.bf16.msra.mxu0 %v12794_v49  ;;  %v12853_v49 = vld [vmem:[%s17545_s3 + $0x70c] ss:$16 sps:$4 sm:$0xff]  }
 0x543   :  { %10452 = vmatpush1.bf16.msra.mxu1 %v12797_v52  ;;  %10298 = vmatprep.subr.bf16.mxu0 %v12802_v55  ;;  %v12848_v52 = vld [vmem:[%s17545_s3 + $0x700] ss:$16 sps:$4 sm:$0xff]   ;;  %v12851_v55 = vld [vmem:[%s17545_s3 + $0x708] ss:$16 sps:$4 sm:$0xff]  }
 0x544   :  { %10462 = vmatprep.subr.bf16.mxu1 %v12805_v57  ;;  %v12856_v57 = vld [vmem:[%s17545_s3 + $0x724] ss:$16 sps:$4 sm:$0xff]  }
 0x558   :  { %v8225_v61 = vpop.f32.mrb[4].mxu0  ;;  %v17239_v29 = vpop.f32.mrb[4].mxu1 }
 0x559   :  { %v12349_v0 = vadd.f32 %v8225_v61, %v1203_v23  ;;  %v8227_v28 = vpop.f32.mrb[5].mxu0  ;;  %v8596_v31 = vpop.f32.mrb[5].mxu1  ;;  %v12862_v23 = vld [vmem:[%s17545_s3 + $0x744] ss:$16 sps:$4 sm:$0xff]   ;;  %v12863_v61 = vld [vmem:[%s17545_s3 + $0x748] ss:$16 sps:$4 sm:$0xff]  }
 0x55a   :  { %v12350_v3 = vadd.f32 %v8227_v28, %v1207_v53  ;;  %v8229_v6 = vpop.f32.mrb[6].mxu0  ;;  %v12352_v10 = vadd.f32 %v8596_v31, %v1215_v45  ;;  %v8598_v11 = vpop.f32.mrb[6].mxu1  ;;  %v12865_v53 = vld [vmem:[%s17545_s3 + $0x74c] ss:$16 sps:$4 sm:$0xff]   ;;  %v12860_v45 = vld [vmem:[%s17545_s3 + $0x740] ss:$16 sps:$4 sm:$0xff]  }
 0x55b   :  { %v8605_v58 = vmax.f32 %v12349_v0, 0.0  ;;  %v8230_v12 = vpop.f32.mrb[7].mxu0  ;;  %v8599_v7 = vpop.f32.mrb[7].mxu1  ;;  %v12868_v0 = vld [vmem:[%s17545_s3 + $0x764] ss:$16 sps:$4 sm:$0xff]  }
 0x55c   :  { %v8606_v13 = vmax.f32 %v12350_v3, 0.0  ;;  %v8608_v1 = vmax.f32 %v12352_v10, 0.0  ;;  %v12871_v28 = vld [vmem:[%s17545_s3 + $0x76c] ss:$16 sps:$4 sm:$0xff]   ;;  %v12866_v3 = vld [vmem:[%s17545_s3 + $0x760] ss:$16 sps:$4 sm:$0xff]  }
 0x55d   :  { %v8613_v17 = vpack.c.bf16 %v8605_v58, %v8605_v58  ;;  %v12869_v31 = vld [vmem:[%s17545_s3 + $0x768] ss:$16 sps:$4 sm:$0xff]   ;;  %v12874_v6 = vld [vmem:[%s17545_s3 + $0x784] ss:$16 sps:$4 sm:$0xff]   ;;  %v12877_v58 = vld [vmem:[%s17545_s3 + $0x78c] ss:$16 sps:$4 sm:$0xff]  }
 0x55e   :  { %v8614_v15 = vpack.c.bf16 %v8606_v13, %v8606_v13  ;;  %v8616_v21 = vpack.c.bf16 %v8608_v1, %v8608_v1  ;;  %v12872_v10 = vld [vmem:[%s17545_s3 + $0x780] ss:$16 sps:$4 sm:$0xff]   ;;  %v12875_v11 = vld [vmem:[%s17545_s3 + $0x788] ss:$16 sps:$4 sm:$0xff]   ;;  %v1210_v12 = vsub.s32 6, %v13036_v43 }
 0x55f   :  { %v12880_v13 = vld [vmem:[%s17545_s3 + $0x7a4] ss:$16 sps:$4 sm:$0xff]   ;;  %v12883_v7 = vld [vmem:[%s17545_s3 + $0x7ac] ss:$16 sps:$4 sm:$0xff]   ;;  %v12878_v1 = vld [vmem:[%s17545_s3 + $0x7a0] ss:$16 sps:$4 sm:$0xff]  }
 0x560   :  { %10289 = vmatprep.mubr.bf16.mxu0 %v8614_v15  ;;  %10453 = vmatprep.mubr.bf16.mxu1 %v8614_v15  ;;  %v12881_v15 = vld [vmem:[%s17545_s3 + $0x7a8] ss:$16 sps:$4 sm:$0xff]  }
 0x561   :  { %10290 = vmatmul.mubr.bf16.vlgmr.msra.gmra.mrb[8].mxu0 %v8613_v17  ;;  %10454 = vmatmul.mubr.bf16.vlgmr.msra.gmra.mrb[8].mxu1 %v8613_v17  ;;  %v12889_v17 = vld [vmem:[%s17545_s3 + $0x7cc] ss:$16 sps:$4 sm:$0xff]  }
 0x562   :  { %10299 = vmatpush1.bf16.msra.mxu0 %v12800_v4  ;;  %10463 = vmatpush1.bf16.msra.mxu1 %v12803_v16  ;;  %v1211_v4 = vrot.slane %v17234_v8, %v1210_v12  ;;  %v12886_v16 = vld [vmem:[%s17545_s3 + $0x7c4] ss:$16 sps:$4 sm:$0xff]   ;;  %v12887_v8 = vld [vmem:[%s17545_s3 + $0x7c8] ss:$16 sps:$4 sm:$0xff]  }
 0x563   :  { %10330 = vmatprep.mubr.bf16.mxu0 %v8616_v21  ;;  %10494 = vmatprep.mubr.bf16.mxu1 %v8616_v21  ;;  %v12892_v21 = vld [vmem:[%s17545_s3 + $0x7e4] ss:$16 sps:$4 sm:$0xff]  }
 0x564   :  { %10300 = vmatprep.subr.bf16.mxu0 %v12808_v20  ;;  %10464 = vmatprep.subr.bf16.mxu1 %v12811_v9  ;;  %v12884_v20 = vld [vmem:[%s17545_s3 + $0x7c0] ss:$16 sps:$4 sm:$0xff]   ;;  %v12351_v9 = vadd.f32 %v17239_v29, %v1211_v4  ;;  %v12893_v29 = vld [vmem:[%s17545_s3 + $0x7e8] ss:$16 sps:$4 sm:$0xff]  }
 0x566   :  { %10301 = vmatpush1.bf16.msra.mxu0 %v12806_v47  ;;  %10465 = vmatpush1.bf16.msra.mxu1 %v12809_v51  ;;  %v12895_v47 = vld [vmem:[%s17545_s3 + $0x7ec] ss:$16 sps:$4 sm:$0xff]   ;;  %v12890_v51 = vld [vmem:[%s17545_s3 + $0x7e0] ss:$16 sps:$4 sm:$0xff]  }
 0x567   :  { %10302 = vmatprep.subr.bf16.mxu0 %v12814_v22  ;;  %10466 = vmatprep.subr.bf16.mxu1 %v12817_v24  ;;  %v8607_v22 = vmax.f32 %v12351_v9, 0.0  ;;  %v12896_v24 = vld [vmem:[%s17547_s5 + $0x40] sm:$0xff]  }
 0x56a   :  { %10303 = vmatpush1.bf16.msra.mxu0 %v12812_v25  ;;  %10467 = vmatpush1.bf16.msra.mxu1 %v12815_v26  ;;  %v12897_v25 = vld [vmem:[%s17547_s5 + $0xc0] sm:$0xff]  }
 0x56b   :  { %10304 = vmatprep.subr.bf16.mxu0 %v12820_v56  ;;  %10468 = vmatprep.subr.bf16.mxu1 %v12823_v41  ;;  %v12898_v26 = vld [vmem:[%s17547_s5] sm:$0xff]   ;;  %v8615_v41 = vpack.c.bf16 %v8607_v22, %v8607_v22 }
 0x56c   :  { %v12899_v56 = vld [vmem:[%s17547_s5 + $0x80] sm:$0xff]  }
 0x56e   :  { %10305 = vmatpush1.bf16.msra.mxu0 %v12818_v27  ;;  %10469 = vmatpush1.bf16.msra.mxu1 %v12821_v63  ;;  %v12900_v27 = vld [vmem:[%s17547_s5 + $0x48] sm:$0xff]  }
 0x56f   :  { %10306 = vmatprep.subr.bf16.mxu0 %v12826_v30  ;;  %10470 = vmatprep.subr.bf16.mxu1 %v12829_v54  ;;  %v12901_v63 = vld [vmem:[%s17547_s5 + $0xc8] sm:$0xff]  }
 0x570   :  { %v12902_v30 = vld [vmem:[%s17547_s5 + $0x8] sm:$0xff]  }
 0x571   :  { %v12903_v54 = vld [vmem:[%s17547_s5 + $0x88] sm:$0xff]  }
 0x572   :  { %10307 = vmatpush1.bf16.msra.mxu0 %v12824_v62  ;;  %10471 = vmatpush1.bf16.msra.mxu1 %v12827_v32  ;;  %v12904_v62 = vld [vmem:[%s17547_s5 + $0x50] sm:$0xff]  }
 0x573   :  { %10308 = vmatprep.subr.bf16.mxu0 %v12832_v33  ;;  %10472 = vmatprep.subr.bf16.mxu1 %v12835_v37  ;;  %v12905_v32 = vld [vmem:[%s17547_s5 + $0xd0] sm:$0xff]  }
 0x574   :  { %v12906_v33 = vld [vmem:[%s17547_s5 + $0x10] sm:$0xff]  }
 0x575   :  { %v12907_v37 = vld [vmem:[%s17547_s5 + $0x90] sm:$0xff]  }
 0x576   :  { %10309 = vmatpush1.bf16.msra.mxu0 %v12830_v5  ;;  %10473 = vmatpush1.bf16.msra.mxu1 %v12833_v34  ;;  %v12908_v5 = vld [vmem:[%s17547_s5 + $0x58] sm:$0xff]  }
 0x577   :  { %10310 = vmatprep.subr.bf16.mxu0 %v12838_v38  ;;  %10474 = vmatprep.subr.bf16.mxu1 %v12841_v35  ;;  %v12909_v34 = vld [vmem:[%s17547_s5 + $0xd8] sm:$0xff]  }
 0x578   :  { %v12910_v38 = vld [vmem:[%s17547_s5 + $0x18] sm:$0xff]  }
 0x579   :  { %v12911_v35 = vld [vmem:[%s17547_s5 + $0x98] sm:$0xff]  }
 0x57a   :  { %10311 = vmatpush1.bf16.msra.mxu0 %v12836_v46  ;;  %10475 = vmatpush1.bf16.msra.mxu1 %v12839_v36  ;;  %v12912_v46 = vld [vmem:[%s17547_s5 + $0x60] sm:$0xff]  }
 0x57b   :  { %10312 = vmatprep.subr.bf16.mxu0 %v12844_v39  ;;  %10476 = vmatprep.subr.bf16.mxu1 %v12847_v40  ;;  %v12913_v36 = vld [vmem:[%s17547_s5 + $0xe0] sm:$0xff]  }
 0x57c   :  { %v12914_v39 = vld [vmem:[%s17547_s5 + $0x20] sm:$0xff]  }
 0x57d   :  { %v12915_v40 = vld [vmem:[%s17547_s5 + $0xa0] sm:$0xff]  }
 0x57e   :  { %10313 = vmatpush1.bf16.msra.mxu0 %v12842_v42  ;;  %10477 = vmatpush1.bf16.msra.mxu1 %v12845_v44  ;;  %v12916_v42 = vld [vmem:[%s17547_s5 + $0x68] sm:$0xff]  }
 0x57f   :  { %10314 = vmatprep.subr.bf16.mxu0 %v12850_v48  ;;  %10478 = vmatprep.subr.bf16.mxu1 %v12853_v49  ;;  %v12917_v44 = vld [vmem:[%s17547_s5 + $0xe8] sm:$0xff]  }
 0x580   :  { %v12918_v48 = vld [vmem:[%s17547_s5 + $0x28] sm:$0xff]  }
 0x581   :  { %v12919_v49 = vld [vmem:[%s17547_s5 + $0xa8] sm:$0xff]  }
 0x582   :  { %10315 = vmatpush1.bf16.msra.mxu0 %v12848_v52  ;;  %10479 = vmatpush1.bf16.msra.mxu1 %v12851_v55  ;;  %v12920_v52 = vld [vmem:[%s17547_s5 + $0x70] sm:$0xff]  }
 0x583   :  { %10316 = vmatprep.subr.bf16.mxu0 %v12856_v57  ;;  %10480 = vmatprep.subr.bf16.mxu1 %v12859_v59  ;;  %v12921_v55 = vld [vmem:[%s17547_s5 + $0xf0] sm:$0xff]  }
 0x584   :  { %v12922_v57 = vld [vmem:[%s17547_s5 + $0x30] sm:$0xff]  }
 0x585   :  { %v12923_v59 = vld [vmem:[%s17547_s5 + $0xb0] sm:$0xff]  }
 0x586   :  { %10317 = vmatpush1.bf16.msra.mxu0 %v12854_v19  ;;  %10481 = vmatpush1.bf16.msra.mxu1 %v12857_v60  ;;  %v12924_v19 = vld [vmem:[%s17547_s5 + $0x78] sm:$0xff]  }
 0x587   :  { %10318 = vmatprep.subr.bf16.mxu0 %v12862_v23  ;;  %10482 = vmatprep.subr.bf16.mxu1 %v12865_v53  ;;  %v12925_v60 = vld [vmem:[%s17547_s5 + $0xf8] sm:$0xff]  }
 0x588   :  { %v12926_v23 = vld [vmem:[%s17547_s5 + $0x38] sm:$0xff]  }
 0x589   :  { %v12927_v53 = vld [vmem:[%s17547_s5 + $0xb8] sm:$0xff]  }
 0x58a   :  { %10319 = vmatpush1.bf16.msra.mxu0 %v12860_v45  ;;  %10483 = vmatpush1.bf16.msra.mxu1 %v12863_v61  ;;  %v8873_v45 = vld [vmem:[%s17548_s4] sm:$0xf] }
 0x58b   :  { %10320 = vmatprep.subr.bf16.mxu0 %v12868_v0  ;;  %10484 = vmatprep.subr.bf16.mxu1 %v12871_v28  ;;  %v8878_v61 = vrot.slane %v8873_v45, %v1186_v14  ;;  %v8886_v0 = vrot.slane %v8873_v45, %v1194_v50  ;;  %v8882_v28 = vrot.slane %v8873_v45, %v1190_v2 }
 0x58e   :  { %10321 = vmatpush1.bf16.msra.mxu0 %v12866_v3  ;;  %10485 = vmatpush1.bf16.msra.mxu1 %v12869_v31  ;;  %v8890_v3 = vrot.slane %v8873_v45, %v1198_v18 }
 0x58f   :  { %10322 = vmatprep.subr.bf16.mxu0 %v12874_v6  ;;  %10486 = vmatprep.subr.bf16.mxu1 %v12877_v58 }
 0x592   :  { %10323 = vmatpush1.bf16.msra.mxu0 %v12872_v10  ;;  %10487 = vmatpush1.bf16.msra.mxu1 %v12875_v11 }
 0x593   :  { %10324 = vmatprep.subr.bf16.mxu0 %v12880_v13  ;;  %10488 = vmatprep.subr.bf16.mxu1 %v12883_v7 }
 0x596   :  { %10325 = vmatpush1.bf16.msra.mxu0 %v12878_v1  ;;  %10489 = vmatpush1.bf16.msra.mxu1 %v12881_v15 }
 0x597   :  { %10326 = vmatprep.subr.bf16.mxu0 %v12886_v16  ;;  %10490 = vmatprep.subr.bf16.mxu1 %v12889_v17 }
 0x59a   :  { %10327 = vmatpush1.bf16.msra.mxu0 %v12884_v20  ;;  %10491 = vmatpush1.bf16.msra.mxu1 %v12887_v8 }
 0x59b   :  { %10328 = vmatprep.subr.bf16.mxu0 %v12892_v21  ;;  %10492 = vmatprep.subr.bf16.mxu1 %v12895_v47  ;;  %v12268_v47 = vld [vmem:[%s17549_s6] ss:$0 sm:$0xff] }
 0x59e   :  { %10329 = vmatpush1.bf16.msra.mxu0 %v12890_v51  ;;  %10493 = vmatpush1.bf16.msra.mxu1 %v12893_v29 }
 0x59f   :  { %12301 = vmatprep.subr.bf16.mxu0 %v12896_v24  ;;  %12323 = vmatprep.subr.bf16.mxu1 %v12897_v25 }
 0x5a1   :  { %10331 = vmatmul.mubr.bf16.vlgmr.msra.gmra.mrb[8].mxu0 %v8615_v41  ;;  %10495 = vmatmul.mubr.bf16.vlgmr.msra.gmra.mrb[8].mxu1 %v8615_v41 }
 0x5a2   :  { %12302 = vmatpush3.bf16.msra.mxu0 %v12898_v26  ;;  %12324 = vmatpush3.bf16.msra.mxu1 %v12899_v56 }
 0x5a3   :  { %12303 = vmatprep.subr.bf16.mxu0 %v12900_v27  ;;  %12325 = vmatprep.subr.bf16.mxu1 %v12901_v63 }
 0x5a6   :  { %12304 = vmatpush3.bf16.msra.mxu0 %v12902_v30  ;;  %12326 = vmatpush3.bf16.msra.mxu1 %v12903_v54 }
 0x5a7   :  { %12305 = vmatprep.subr.bf16.mxu0 %v12904_v62  ;;  %12327 = vmatprep.subr.bf16.mxu1 %v12905_v32 }
 0x5aa   :  { %12306 = vmatpush3.bf16.msra.mxu0 %v12906_v33  ;;  %12328 = vmatpush3.bf16.msra.mxu1 %v12907_v37 }
 0x5ab   :  { %12307 = vmatprep.subr.bf16.mxu0 %v12908_v5  ;;  %12329 = vmatprep.subr.bf16.mxu1 %v12909_v34 }
 0x5ae   :  { %12308 = vmatpush3.bf16.msra.mxu0 %v12910_v38  ;;  %12330 = vmatpush3.bf16.msra.mxu1 %v12911_v35 }
 0x5af   :  { %12309 = vmatprep.subr.bf16.mxu0 %v12912_v46  ;;  %12331 = vmatprep.subr.bf16.mxu1 %v12913_v36 }
 0x5b2   :  { %12310 = vmatpush3.bf16.msra.mxu0 %v12914_v39  ;;  %12332 = vmatpush3.bf16.msra.mxu1 %v12915_v40 }
 0x5b3   :  { %12311 = vmatprep.subr.bf16.mxu0 %v12916_v42  ;;  %12333 = vmatprep.subr.bf16.mxu1 %v12917_v44 }
 0x5b6   :  { %12312 = vmatpush3.bf16.msra.mxu0 %v12918_v48  ;;  %12334 = vmatpush3.bf16.msra.mxu1 %v12919_v49 }
 0x5b7   :  { %12313 = vmatprep.subr.bf16.mxu0 %v12920_v52  ;;  %12335 = vmatprep.subr.bf16.mxu1 %v12921_v55 }
 0x5ba   :  { %12314 = vmatpush3.bf16.msra.mxu0 %v12922_v57  ;;  %12336 = vmatpush3.bf16.msra.mxu1 %v12923_v59 }
 0x5bb   :  { %12315 = vmatprep.subr.bf16.mxu0 %v12924_v19  ;;  %12337 = vmatprep.subr.bf16.mxu1 %v12925_v60 }
 0x5be   :  { %12316 = vmatpush3.bf16.msra.mxu0 %v12926_v23  ;;  %12338 = vmatpush3.bf16.msra.mxu1 %v12927_v53 }
 0x674   :  { %v10332_v31 = vpop.f32.mrb[8].mxu0  ;;  %v10496_v6 = vpop.f32.mrb[8].mxu1 }
 0x675   :  { %v12353_v58 = vadd.f32 %v10332_v31, %v8878_v61  ;;  %v12355_v10 = vadd.f32 %v10496_v6, %v8886_v0  ;;  %v10334_v11 = vpop.f32.mrb[9].mxu0  ;;  %v10498_v12 = vpop.f32.mrb[9].mxu1 }
 0x676   :  { %v12354_v13 = vadd.f32 %v10334_v11, %v8882_v28  ;;  %v12356_v7 = vadd.f32 %v10498_v12, %v8890_v3  ;;  %v10336_v1 = vpop.f32.mrb[10].mxu0  ;;  %v10500_v15 = vpop.f32.mrb[10].mxu1 }
 0x677   :  { %v10503_v14 = vmax.f32 %v12353_v58, 0.0  ;;  %v10505_v4 = vmax.f32 %v12355_v10, 0.0  ;;  %v10337_v16 = vpop.f32.mrb[11].mxu0  ;;  %v10501_v50 = vpop.f32.mrb[11].mxu1 }
 0x678   :  { %v10504_v17 = vmax.f32 %v12354_v13, 0.0  ;;  %v10506_v20 = vmax.f32 %v12356_v7, 0.0 }
 0x679   :  { %v10507_v43 = vpack.c.bf16 %v10503_v14, %v10503_v14  ;;  %v10509_v18 = vpack.c.bf16 %v10505_v4, %v10505_v4 }
 0x67a   :  { %v10508_v2 = vpack.c.bf16 %v10504_v17, %v10504_v17  ;;  %v10510_v8 = vpack.c.bf16 %v10506_v20, %v10506_v20 }
 0x67c   :  { %10806 = vmatprep.mubr.bf16.mxu0 %v10508_v2  ;;  %10846 = vmatprep.mubr.bf16.mxu1 %v10510_v8 }
 0x67d   :  { %10807 = vmatmul.mubr.bf16.vlgmr.msra.gmra.mrb[12].mxu0 %v10507_v43  ;;  %10847 = vmatmul.mubr.bf16.vlgmr.msra.gmra.mrb[12].mxu1 %v10509_v18 }
 0x750   :  { %v12317_v9 = vpop.f32.mrb[12].mxu0  ;;  %v12339_v21 = vpop.f32.mrb[12].mxu1 }
 0x751   :  { %v12318_v51 = vpop.f32.mrb[13].mxu0  ;;  %v12340_v29 = vpop.f32.mrb[13].mxu1 }
 0x752   :  { %v12319_v22 = vadd.f32 %v12318_v51, %v12317_v9  ;;  %v12341_v24 = vadd.f32 %v12340_v29, %v12339_v21  ;;  %v12320_v25 = vpop.f32.mrb[14].mxu0  ;;  %v12342_v26 = vpop.f32.mrb[14].mxu1 }
 0x753   :  { %v12321_v56 = vpop.f32.mrb[15].mxu0  ;;  %v12343_v41 = vpop.f32.mrb[15].mxu1 }
 0x754   :  { %v10809_v27 = vadd.f32 %v12319_v22, %v12268_v47 }
 0x756   :  { %v10849_v63 = vadd.f32 %v12341_v24, %v10809_v27 }
 0x758   :  { %10854 = vst [vmem:[%s17550_s7] sm:$0x3] %v10849_v63 }

</bundles_post_ra>
